<compile_context>
chip_gen: v7x
topology: tpu7x:2x2x1
jax: 0.10.0
libtpu: 0.0.40
codegen_flags: <defaults>
</compile_context>

<pallas_src>
import jax
import jax.numpy as jnp
import numpy as np
from jax.experimental import pallas as pl
from jax.experimental.pallas import tpu as pltpu


HEAD_PAD = 128   # lane-dense padded width of the concatenated cls|bbox head
HIDDEN = 1024    # fc1 / fc2 width
K_ALIGN = 256    # MXU-aligned padding of the fc1 contraction dimension


def _round_up(x, m):
    return ((x + m - 1) // m) * m


# ----------------------------------------------------------------------------
# Parameter / constant setup (glue, done once outside the hot path)
# ----------------------------------------------------------------------------
def adaptive_pool_matrix(H, W, out_h=7, out_w=7):
    """(H*W, out_h*out_w) matrix reproducing nn.AdaptiveAvgPool2d((7, 7))."""
    P = np.zeros((H * W, out_h * out_w), dtype=np.float32)
    for ph in range(out_h):
        hs = (ph * H) // out_h
        he = -(-((ph + 1) * H) // out_h)      # ceil
        for pw in range(out_w):
            ws = (pw * W) // out_w
            we = -(-((pw + 1) * W) // out_w)  # ceil
            inv = 1.0 / float((he - hs) * (we - ws))
            for h in range(hs, he):
                for w in range(ws, we):
                    P[h * W + w, ph * out_w + pw] = inv
    return jnp.asarray(P)


def init_linear(key, fan_in, fan_out):
    """Deterministic PyTorch-Linear-style init, stored as (in, out) / (1, out)."""
    kw, kb = jax.random.split(key)
    bound = 1.0 / float(np.sqrt(fan_in))
    w = jax.random.uniform(kw, (fan_in, fan_out), jnp.float32, -bound, bound)
    b = jax.random.uniform(kb, (1, fan_out), jnp.float32, -bound, bound)
    return w, b


def init_rcnn_head_params(key, in_channels, num_classes):
    k1, k2, k3, k4 = jax.random.split(key, 4)
    w1, b1 = init_linear(k1, in_channels * 7 * 7, 1024)
    w2, b2 = init_linear(k2, 1024, 1024)
    wc, bc = init_linear(k3, 1024, num_classes)
    wb, bb = init_linear(k4, 1024, 8)
    return (w1, b1, w2, b2, wc, bc, wb, bb)


def prepare_rcnn_head_weights(params, C, H, W):
    """Fold the adaptive pool into fc1, pad K to an MXU-aligned multiple, and
    concat + zero-pad the cls/bbox heads into one lane-dense (1024, 128) head.

    Returns (w1f, b1, w2, b2, wh, bh) with bf16 weights and f32 biases:
      w1f: (round_up(C*H*W, 256), 1024)  -- pool folded into fc1 (exact, f32 fold)
      wh : (1024, 128)                   -- [cls_score | bbox_pred | zero pad]
    """
    w1, b1, w2, b2, wc, bc, wb, bb = params
    num_classes = wc.shape[1]
    assert num_classes + 8 <= HEAD_PAD

    # Fold pooling into fc1 (exact; done once, in f32).
    P = adaptive_pool_matrix(H, W)                        # (H*W, 49)
    w1_r = w1.reshape(C, 49, HIDDEN)                      # torch.flatten order
    w1f = jnp.einsum("kp,cpo->cko", P, w1_r).reshape(C * H * W, HIDDEN)

    K1 = C * H * W
    K1p = _round_up(K1, K_ALIGN)
    w1f = jnp.pad(w1f, ((0, K1p - K1), (0, 0)))           # zero rows: exact

    wh = jnp.zeros((HIDDEN, HEAD_PAD), jnp.float32)
    wh = wh.at[:, :num_classes].set(wc).at[:, num_classes:num_classes + 8].set(wb)
    bh = jnp.zeros((1, HEAD_PAD), jnp.float32)
    bh = bh.at[:, :num_classes].set(bc).at[:, num_classes:num_classes + 8].set(bb)

    return (w1f.astype(jnp.bfloat16), b1,
            w2.astype(jnp.bfloat16), b2,
            wh.astype(jnp.bfloat16), bh)


# ----------------------------------------------------------------------------
# Fused Pallas kernel: fc1(+pool) -> ReLU -> fc2 -> ReLU -> [cls | bbox]
# ----------------------------------------------------------------------------
def _rcnn_head_kernel(x_ref, w1_ref, b1_ref, w2_ref, b2_ref, wh_ref, bh_ref,
                      out_ref, acc_ref):
    """One row tile.  Grid = (row_tiles, k_tiles).

    The fc1 contraction is accumulated into an f32 VMEM scratch across the
    trailing "arbitrary" k axis; the rest of the network runs on the last k
    step only.  x arrives as f32 and is cast to bf16 in-kernel.
    """
    k = pl.program_id(1)

    @pl.when(k == 0)
    def _init():
        acc_ref[...] = jnp.zeros_like(acc_ref)

    # fc1 partial product for this K tile (bf16 MXU, f32 accumulation).
    acc_ref[...] += jnp.dot(x_ref[...].astype(jnp.bfloat16), w1_ref[...],
                            preferred_element_type=jnp.float32)

    @pl.when(k == pl.num_programs(1) - 1)
    def _finalize():
        h1 = jnp.maximum(acc_ref[...] + b1_ref[...], 0.0).astype(jnp.bfloat16)
        h2 = jnp.dot(h1, w2_ref[...], preferred_element_type=jnp.float32)
        h2 = jnp.maximum(h2 + b2_ref[...], 0.0).astype(jnp.bfloat16)
        # Single lane-dense 128-wide head output (cls | bbox | zero pad).
        out_ref[...] = (jnp.dot(h2, wh_ref[...],
                                preferred_element_type=jnp.float32) + bh_ref[...])


# ----------------------------------------------------------------------------
# VMEM accounting / tiling choices
# ----------------------------------------------------------------------------
def _vmem_capacity_bytes():
    try:
        return int(pltpu.get_tpu_info().vmem_capacity_bytes)
    except Exception:
        return 64 << 20          # conservative fallback: v7x per-TensorCore VMEM


def _vmem_need(TM, TK, nk):
    """Working-set estimate with resident weights single-buffered."""
    D = HIDDEN
    w1_buffers = 1 if nk == 1 else 2       # w1f re-fetched only when K is split
    need = 0
    need += w1_buffers * TK * D * 2        # w1f tile(s), bf16
    need += (D * D + D * HEAD_PAD) * 2     # resident w2, wh (bf16, Buffered(1))
    need += (2 * D + HEAD_PAD) * 4         # biases (f32)
    need += 2 * TM * TK * 4                # double-buffered f32 x tile
    need += 2 * TM * HEAD_PAD * 4          # double-buffered f32 out tile
    need += TM * D * 4                     # fc1 accumulator scratch
    need += 2 * TM * D * 4                 # h1/h2 live-value headroom
    need += 4 << 20                        # Mosaic internal scratch headroom
    return need


def _pick_tk(K1p, TM, budget, max_tk):
    """Fully resident fc1 weight when it fits; otherwise largest 256-aligned
    K tile that fits the per-generation VMEM budget."""
    if max_tk is None and _vmem_need(TM, K1p, 1) <= budget:
        return K1p
    cap = K1p if max_tk is None else min(_round_up(max_tk, K_ALIGN), K1p)
    tk = max(K_ALIGN, cap - cap % K_ALIGN)
    while tk > K_ALIGN and _vmem_need(TM, tk, 2) > budget:
        tk -= K_ALIGN
    return tk


def _resident_spec(shape):
    """Constant-index (VMEM-resident) block; single-buffered (never re-fetched)."""
    idx = lambda i, k: (0,) * len(shape)
    try:
        return pl.BlockSpec(shape, idx, pipeline_mode=pl.Buffered(1))
    except TypeError:   # older jax without pipeline_mode / Buffered
        return pl.BlockSpec(shape, idx)


# ----------------------------------------------------------------------------
# Wrapper
# ----------------------------------------------------------------------------
def rcnn_head_forward(x, params, *, max_tk=None):
    """x: (N, C, H, W) float32 NCHW.  Returns (scores, bbox_full, bbox_vis).

    max_tk: optional cap on the fc1 contraction tile (testing / tuning hook);
    by default the folded fc1 weight stays fully VMEM-resident when it fits.
    """
    N, C, H, W = x.shape
    num_classes = params[4].shape[1]
    D = HIDDEN
    K1 = C * H * W

    # TODO(synk): in a real model fold/pad the weights once at load time; for
    # single-row-tile calls on v5e a cross-pallas_call weight-prefetch future
    # (P10) could additionally hide the initial weight fill.
    w1f, b1, w2, b2, wh, bh = prepare_rcnn_head_weights(params, C, H, W)
    K1p = w1f.shape[0]                      # folded K, padded to 256

    # Row (ROI) tiling: up to 512 rows / tile, multiple of 16 (bf16 sublanes).
    TM = min(512, _round_up(N, 16))
    N_pad = _round_up(N, TM)

    # Per-generation VMEM budget and fc1-K tiling.
    budget = max(_vmem_capacity_bytes() - (8 << 20), 16 << 20)
    TK = _pick_tk(K1p, TM, budget, max_tk)
    K_pad = _round_up(K1p, TK)
    nk = K_pad // TK
    if K_pad > K1p:
        w1f = jnp.pad(w1f, ((0, K_pad - K1p), (0, 0)))

    vmem_limit = int(min(max(_vmem_need(TM, TK, nk), 32 << 20), budget))

    # Flatten NCHW -> (N, C*H*W) (pure reshape) and zero-pad rows / K lanes.
    # Kept in f32: the bf16 cast happens inside the kernel.
    x2d = jnp.pad(x.reshape(N, K1), ((0, N_pad - N), (0, K_pad - K1)))

    grid = (N_pad // TM, nk)

    if nk == 1:
        w1_spec = _resident_spec((TK, D))
    else:
        w1_spec = pl.BlockSpec((TK, D), lambda i, k: (k, 0))

    in_specs = [
        pl.BlockSpec((TM, TK), lambda i, k: (i, k)),   # f32 row/K tile of x
        w1_spec,                                       # folded fc1 weight
        _resident_spec((1, D)),                        # b1
        _resident_spec((D, D)),                        # w2
        _resident_spec((1, D)),                        # b2
        _resident_spec((D, HEAD_PAD)),                 # wh = [cls | bbox | 0]
        _resident_spec((1, HEAD_PAD)),                 # bh
    ]
    out_spec = pl.BlockSpec((TM, HEAD_PAD), lambda i, k: (i, 0))

    cost = pl.CostEstimate(
        flops=2 * N_pad * (K_pad * D + D * D + D * HEAD_PAD),
        transcendentals=0,
        bytes_accessed=int(N_pad * K_pad * 4
                           + (K_pad * D + D * D + D * HEAD_PAD) * 2
                           + (2 * D + HEAD_PAD) * 4
                           + N_pad * HEAD_PAD * 4),
    )

    def _call(dim_sems):
        return pl.pallas_call(
            _rcnn_head_kernel,
            out_shape=jax.ShapeDtypeStruct((N_pad, HEAD_PAD), jnp.float32),
            grid=grid,
            in_specs=in_specs,
            out_specs=out_spec,
            scratch_shapes=[pltpu.VMEM((TM, D), jnp.float32)],
            compiler_params=pltpu.CompilerParams(
                dimension_semantics=dim_sems,
                vmem_limit_bytes=vmem_limit),
            cost_estimate=cost,
        )(x2d, w1f, b1, w2, b2, wh, bh)

    if grid[0] >= 2:
        # Shard row tiles across TensorCores (up to 2x on v7x); fall back to
        # the plain "parallel" annotation where CORE_PARALLEL is unsupported.
        try:
            out = _call((pltpu.CORE_PARALLEL, pltpu.ARBITRARY))
            out.block_until_ready()
        except Exception:
            out = _call(("parallel", "arbitrary"))
    else:
        out = _call(("parallel", "arbitrary"))

    # Cheap XLA slices outside the kernel: drop row padding, split the heads.
    out = out[:N]
    scores = out[:, :num_classes]
    bbox = out[:, num_classes:num_classes + 8]
    return scores, bbox[:, :4], bbox[:, 4:]


# ----------------------------------------------------------------------------
# Pure-JAX f32 reference (exact adaptive pool via the same pool matrix)
# ----------------------------------------------------------------------------
def rcnn_head_reference(x, params):
    N, C, H, W = x.shape
    P = adaptive_pool_matrix(H, W)
    pooled = (x.reshape(N * C, H * W) @ P).reshape(N, C * 49)
    w1, b1, w2, b2, wc, bc, wb, bb = params
    h1 = jax.nn.relu(pooled @ w1 + b1)
    h2 = jax.nn.relu(h1 @ w2 + b2)
    scores = h2 @ wc + bc
    bbox = h2 @ wb + bb
    return scores, bbox[:, :4], bbox[:, 4:]


if __name__ == "__main__":
    # Small shapes consistent with the module: in_channels=16, num_classes=2.
    N, C, H, W = 2, 16, 14, 14
    num_classes = 2

    key = jax.random.PRNGKey(0)
    kx, kp = jax.random.split(key)
    x = jax.random.normal(kx, (N, C, H, W), dtype=jnp.float32)
    params = init_rcnn_head_params(kp, in_channels=C, num_classes=num_classes)

    ref_scores, ref_full, ref_vis = rcnn_head_reference(x, params)

    # 1) Default path: folded fc1 weight fully VMEM-resident (nk == 1).
    # 2) Forced K-split path (max_tk=1024 -> 4 K tiles): exercises the
    #    accumulator / pl.when init-finalize pipeline used for large C / v7x.
    for tag, kwargs in (("resident", {}), ("k-split", {"max_tk": 1024})):
        scores, bbox_full, bbox_vis = jax.block_until_ready(
            rcnn_head_forward(x, params, **kwargs))
        assert scores.shape == (N, num_classes), (tag, scores.shape)
        assert bbox_full.shape == (N, 4) and bbox_vis.shape == (N, 4), tag
        # bf16 matmuls (f32 accumulation) -> slightly looser tolerance than f32.
        np.testing.assert_allclose(np.asarray(scores), np.asarray(ref_scores),
                                   rtol=2e-2, atol=2e-2)
        np.testing.assert_allclose(np.asarray(bbox_full), np.asarray(ref_full),
                                   rtol=2e-2, atol=2e-2)
        np.testing.assert_allclose(np.asarray(bbox_vis), np.asarray(ref_vis),
                                   rtol=2e-2, atol=2e-2)

    print("KERNEL_OK")
</pallas_src>

<mosaic_0001>
module attributes {stable_mosaic.version = 11 : i64} {
  func.func @_rcnn_head_kernel(%arg0: i32, %arg1: i32, %arg2: memref<16x3328xf32, #tpu.memory_space<vmem>>, %arg3: memref<3328x1024xbf16, #tpu.memory_space<vmem>>, %arg4: memref<1x1024xf32, #tpu.memory_space<vmem>>, %arg5: memref<1024x1024xbf16, #tpu.memory_space<vmem>>, %arg6: memref<1x1024xf32, #tpu.memory_space<vmem>>, %arg7: memref<1024x128xbf16, #tpu.memory_space<vmem>>, %arg8: memref<1x128xf32, #tpu.memory_space<vmem>>, %arg9: memref<16x128xf32, #tpu.memory_space<vmem>>, %arg10: memref<16x1024xf32, #tpu.memory_space<vmem>>) attributes {dimension_semantics = [#tpu.dimension_semantics<parallel>, #tpu.dimension_semantics<arbitrary>], iteration_bounds = array<i64: 1, 1>, scalar_prefetch = 0 : i64, scratch_operands = 1 : i64, tpu.core_type = #tpu.core_type<tc>, window_params = [{transform_indices = @transform_0, window_bounds = array<i64: 16, 3328>}, {pipeline_mode = #tpu.pipeline_mode<synchronous>, transform_indices = @transform_1, window_bounds = array<i64: 3328, 1024>}, {pipeline_mode = #tpu.pipeline_mode<synchronous>, transform_indices = @transform_2, window_bounds = array<i64: 1, 1024>}, {pipeline_mode = #tpu.pipeline_mode<synchronous>, transform_indices = @transform_3, window_bounds = array<i64: 1024, 1024>}, {pipeline_mode = #tpu.pipeline_mode<synchronous>, transform_indices = @transform_4, window_bounds = array<i64: 1, 1024>}, {pipeline_mode = #tpu.pipeline_mode<synchronous>, transform_indices = @transform_5, window_bounds = array<i64: 1024, 128>}, {pipeline_mode = #tpu.pipeline_mode<synchronous>, transform_indices = @transform_6, window_bounds = array<i64: 1, 128>}, {transform_indices = @transform_7, window_bounds = array<i64: 16, 128>}]} {
    %c0_i32 = arith.constant 0 : i32
    %0 = arith.cmpi eq, %arg1, %c0_i32 : i32
    %1 = arith.extui %0 : i1 to i32
    %c0_i32_0 = arith.constant 0 : i32
    %2 = arith.cmpi ne, %1, %c0_i32_0 : i32
    scf.if %2 {
      %cst_10 = arith.constant 0.000000e+00 : f32
      %13 = vector.broadcast %cst_10 : f32 to vector<16x1024xf32>
      %c0_11 = arith.constant 0 : index
      %c0_12 = arith.constant 0 : index
      %14 = vector.load %arg10[%c0_11, %c0_12] : memref<16x1024xf32, #tpu.memory_space<vmem>>, vector<16x1024xf32>
      tpu.vector_store %arg10[%c0_11, %c0_12], %13 {strides = array<i32>} : memref<16x1024xf32, #tpu.memory_space<vmem>>, vector<16x1024xf32>,
    } else {
    }
    %c0 = arith.constant 0 : index
    %c0_1 = arith.constant 0 : index
    %3 = vector.load %arg10[%c0, %c0_1] : memref<16x1024xf32, #tpu.memory_space<vmem>>, vector<16x1024xf32>
    %c0_2 = arith.constant 0 : index
    %c0_3 = arith.constant 0 : index
    %4 = vector.load %arg2[%c0_2, %c0_3] : memref<16x3328xf32, #tpu.memory_space<vmem>>, vector<16x3328xf32>
    %5 = arith.truncf %4 : vector<16x3328xf32> to vector<16x3328xbf16>
    %c0_4 = arith.constant 0 : index
    %c0_5 = arith.constant 0 : index
    %6 = vector.load %arg3[%c0_4, %c0_5] : memref<3328x1024xbf16, #tpu.memory_space<vmem>>, vector<3328x1024xbf16>
    %cst = arith.constant dense<0.000000e+00> : vector<16x1024xf32>
    %7 = tpu.matmul %5, %6, %cst {dimension_numbers = #tpu.dot_dimension_numbers<[1], [0], [0], [1], [0, 0, 1, 1], [], []>} : vector<16x3328xbf16>, vector<3328x1024xbf16>, vector<16x1024xf32> -> vector<16x1024xf32>
    %8 = arith.addf %3, %7 : vector<16x1024xf32>
    %c0_6 = arith.constant 0 : index
    %c0_7 = arith.constant 0 : index
    %9 = vector.load %arg10[%c0_6, %c0_7] : memref<16x1024xf32, #tpu.memory_space<vmem>>, vector<16x1024xf32>
    tpu.vector_store %arg10[%c0_6, %c0_7], %8 {strides = array<i32>} : memref<16x1024xf32, #tpu.memory_space<vmem>>, vector<16x1024xf32>,
    %c0_i32_8 = arith.constant 0 : i32
    %10 = arith.cmpi eq, %arg1, %c0_i32_8 : i32
    %11 = arith.extui %10 : i1 to i32
    %c0_i32_9 = arith.constant 0 : i32
    %12 = arith.cmpi ne, %11, %c0_i32_9 : i32
    scf.if %12 {
      %c0_10 = arith.constant 0 : index
      %c0_11 = arith.constant 0 : index
      %13 = vector.load %arg10[%c0_10, %c0_11] : memref<16x1024xf32, #tpu.memory_space<vmem>>, vector<16x1024xf32>
      %c0_12 = arith.constant 0 : index
      %c0_13 = arith.constant 0 : index
      %14 = vector.load %arg4[%c0_12, %c0_13] : memref<1x1024xf32, #tpu.memory_space<vmem>>, vector<1x1024xf32>
      %15 = vector.broadcast %14 : vector<1x1024xf32> to vector<16x1024xf32>
      %16 = arith.addf %13, %15 : vector<16x1024xf32>
      %cst_14 = arith.constant 0.000000e+00 : f32
      %17 = vector.broadcast %cst_14 : f32 to vector<16x1024xf32>
      %18 = arith.maximumf %16, %17 : vector<16x1024xf32>
      %19 = arith.truncf %18 : vector<16x1024xf32> to vector<16x1024xbf16>
      %c0_15 = arith.constant 0 : index
      %c0_16 = arith.constant 0 : index
      %20 = vector.load %arg5[%c0_15, %c0_16] : memref<1024x1024xbf16, #tpu.memory_space<vmem>>, vector<1024x1024xbf16>
      %cst_17 = arith.constant dense<0.000000e+00> : vector<16x1024xf32>
      %21 = tpu.matmul %19, %20, %cst_17 {dimension_numbers = #tpu.dot_dimension_numbers<[1], [0], [0], [1], [0, 0, 1, 1], [], []>} : vector<16x1024xbf16>, vector<1024x1024xbf16>, vector<16x1024xf32> -> vector<16x1024xf32>
      %c0_18 = arith.constant 0 : index
      %c0_19 = arith.constant 0 : index
      %22 = vector.load %arg6[%c0_18, %c0_19] : memref<1x1024xf32, #tpu.memory_space<vmem>>, vector<1x1024xf32>
      %23 = vector.broadcast %22 : vector<1x1024xf32> to vector<16x1024xf32>
      %24 = arith.addf %21, %23 : vector<16x1024xf32>
      %cst_20 = arith.constant 0.000000e+00 : f32
      %25 = vector.broadcast %cst_20 : f32 to vector<16x1024xf32>
      %26 = arith.maximumf %24, %25 : vector<16x1024xf32>
      %27 = arith.truncf %26 : vector<16x1024xf32> to vector<16x1024xbf16>
      %c0_21 = arith.constant 0 : index
      %c0_22 = arith.constant 0 : index
      %28 = vector.load %arg7[%c0_21, %c0_22] : memref<1024x128xbf16, #tpu.memory_space<vmem>>, vector<1024x128xbf16>
      %cst_23 = arith.constant dense<0.000000e+00> : vector<16x128xf32>
      %29 = tpu.matmul %27, %28, %cst_23 {dimension_numbers = #tpu.dot_dimension_numbers<[1], [0], [0], [1], [0, 0, 1, 1], [], []>} : vector<16x1024xbf16>, vector<1024x128xbf16>, vector<16x128xf32> -> vector<16x128xf32>
      %c0_24 = arith.constant 0 : index
      %c0_25 = arith.constant 0 : index
      %30 = vector.load %arg8[%c0_24, %c0_25] : memref<1x128xf32, #tpu.memory_space<vmem>>, vector<1x128xf32>
      %31 = vector.broadcast %30 : vector<1x128xf32> to vector<16x128xf32>
      %32 = arith.addf %29, %31 : vector<16x128xf32>
      %c0_26 = arith.constant 0 : index
      %c0_27 = arith.constant 0 : index
      %33 = vector.load %arg9[%c0_26, %c0_27] : memref<16x128xf32, #tpu.memory_space<vmem>>, vector<16x128xf32>
      tpu.vector_store %arg9[%c0_26, %c0_27], %32 {strides = array<i32>} : memref<16x128xf32, #tpu.memory_space<vmem>>, vector<16x128xf32>,
    } else {
    }
    return
  }
  func.func @transform_0(%arg0: i32, %arg1: i32) -> (i32, i32) {
    %c0_i32 = arith.constant 0 : i32
    return %arg0, %arg1 : i32, i32
  }
  func.func @transform_1(%arg0: i32, %arg1: i32) -> (i32, i32) {
    %c0_i32 = arith.constant 0 : i32
    %c0_i32_0 = arith.constant 0 : i32
    %c0_i32_1 = arith.constant 0 : i32
    return %c0_i32, %c0_i32_0 : i32, i32
  }
  func.func @transform_2(%arg0: i32, %arg1: i32) -> (i32, i32) {
    %c0_i32 = arith.constant 0 : i32
    %c0_i32_0 = arith.constant 0 : i32
    %c0_i32_1 = arith.constant 0 : i32
    return %c0_i32, %c0_i32_0 : i32, i32
  }
  func.func @transform_3(%arg0: i32, %arg1: i32) -> (i32, i32) {
    %c0_i32 = arith.constant 0 : i32
    %c0_i32_0 = arith.constant 0 : i32
    %c0_i32_1 = arith.constant 0 : i32
    return %c0_i32, %c0_i32_0 : i32, i32
  }
  func.func @transform_4(%arg0: i32, %arg1: i32) -> (i32, i32) {
    %c0_i32 = arith.constant 0 : i32
    %c0_i32_0 = arith.constant 0 : i32
    %c0_i32_1 = arith.constant 0 : i32
    return %c0_i32, %c0_i32_0 : i32, i32
  }
  func.func @transform_5(%arg0: i32, %arg1: i32) -> (i32, i32) {
    %c0_i32 = arith.constant 0 : i32
    %c0_i32_0 = arith.constant 0 : i32
    %c0_i32_1 = arith.constant 0 : i32
    return %c0_i32, %c0_i32_0 : i32, i32
  }
  func.func @transform_6(%arg0: i32, %arg1: i32) -> (i32, i32) {
    %c0_i32 = arith.constant 0 : i32
    %c0_i32_0 = arith.constant 0 : i32
    %c0_i32_1 = arith.constant 0 : i32
    return %c0_i32, %c0_i32_0 : i32, i32
  }
  func.func @transform_7(%arg0: i32, %arg1: i32) -> (i32, i32) {
    %c0_i32 = arith.constant 0 : i32
    %c0_i32_0 = arith.constant 0 : i32
    return %arg0, %c0_i32 : i32, i32
  }
}

</mosaic_0001>

<bundles_post_ra>
// kernel: tpu_custom_call.1
= control target key start
LH: loop header
LB: loop body
LE: loop exit
PB: predicated region body
PF: predicated region fallthrough
CT: control target
= control target key end

     0   :  { %12 = vsyncpa [#allocation4], 0  ;;  %s20403_s0 = inlined_call_operand.hbm [shape: f32[16,3328], index: 0, kind: input, shape index: {}]   ;;  %s20404_s1 = inlined_call_operand.hbm [shape: bf16[3328,1024], index: 1, kind: input, shape index: {}]   ;;  %s20405_s2 = inlined_call_operand.hbm [shape: f32[1,1024], index: 2, kind: input, shape index: {}]   ;;  %s20406_s3 = inlined_call_operand.hbm [shape: bf16[1024,1024], index: 3, kind: input, shape index: {}]   ;;  %s20407_s4 = inlined_call_operand.hbm [shape: f32[1,1024], index: 4, kind: input, shape index: {}]   ;;  %s20408_s5 = inlined_call_operand.hbm [shape: bf16[1024,128], index: 5, kind: input, shape index: {}]   ;;  %s20409_s6 = inlined_call_operand.hbm [shape: f32[1,128], index: 6, kind: input, shape index: {}]   ;;  %s20410_s7 = inlined_call_operand.hbm [shape: f32[16,128], index: 7, kind: output, shape index: {}]  }
   0x1   :  { %13 = vsyncpa [#allocation7], 0 }
   0x2   :  { %14 = vsyncpa [#allocation10], 0 }
   0x3   :  { %15 = vsyncpa [#allocation13], 0 }
   0x4   :  { %16 = vsyncpa [#allocation5], 0  ;;  %s19967_s24 = smov [#allocation6]   ;;  %s19781_s28 = scalar_lea.hbm %s20404_s1, 212992 }
   0x5   :  { %s34_s25 = sshll.u32 %s19967_s24, 4  ;;  %p19782_p0 = scmp.ne.s32.totalorder %s20404_s1, %s19781_s28  ;;  %s35_s25 = int_to_ptr.vmem [resolvable:$true] %s34_s25 }
   0x6   :  { %p19785_p1 = scmp.lt.u32.totalorder %s19781_s28, %s20404_s1 }
   0x8   :  { %p19787_p2 = pnand %p19785_p1, %p19782_p0 }
   0xa   :  { %19790 = shalt.err (!%p19787_p2)
}
   0xb   :  { %s19791_s10 = scalar_lea.vmem %s35_s25, 212992  ;;  %p19796_p4 = scmp.lt.s32.totalorder %s35_s25, %s35_s25 }
   0xc   :  { %p19792_p3 = scmp.ne.s32.totalorder %s35_s25, %s19791_s10  ;;  %p19797_p5 = scmp.lt.s32.totalorder %s19791_s10, %s19791_s10 }
   0xe   :  { %p19798_p6 = por %p19797_p5, %p19796_p4 }
  0x10   :  { %p19799_p7 = pnand %p19798_p6, %p19792_p3 }
  0x12   :  { %19802 = shalt.err (!%p19799_p7)
}
  0x13   :  { %s19968_s11 = smov 512   ;;  %s19969_s12 = smov 32  }
  0x14   :  { %40 = dma.hbm_to_vmem [thread:$0]  %s20404_s1, 212992, %s35_s25, [#allocation7], %s19968_s11, %s19968_s11, %s19969_s12  }
  0x15   :  { %s19970_s15 = smov [#allocation9]   ;;  %s19971_s17 = smov [#allocation12]  }
  0x16   :  { %s56_s16 = sshll.u32 %s19970_s15, 4  ;;  %s78_s18 = sshll.u32 %s19971_s17, 4  ;;  %s57_s16 = int_to_ptr.vmem [resolvable:$true] %s56_s16  ;;  %s79_s18 = int_to_ptr.vmem [resolvable:$true] %s78_s18 }
  0x17   :  { %s19803_s21 = scalar_lea.hbm %s20406_s3, 65536 }
  0x18   :  { %p19804_p8 = scmp.ne.s32.totalorder %s20406_s3, %s19803_s21  ;;  %p19807_p9 = scmp.lt.u32.totalorder %s19803_s21, %s20406_s3 }
  0x1a   :  { %p19809_p10 = pnand %p19807_p9, %p19804_p8 }
  0x1c   :  { %19812 = shalt.err (!%p19809_p10)
}
  0x1d   :  { %s19813_s1 = scalar_lea.vmem %s57_s16, 65536  ;;  %p19818_p12 = scmp.lt.s32.totalorder %s57_s16, %s57_s16 }
  0x1e   :  { %p19814_p11 = scmp.ne.s32.totalorder %s57_s16, %s19813_s1  ;;  %p19819_p13 = scmp.lt.s32.totalorder %s19813_s1, %s19813_s1 }
  0x20   :  { %p19820_p0 = por %p19819_p13, %p19818_p12 }
  0x22   :  { %p19821_p1 = pnand %p19820_p0, %p19814_p11 }
  0x24   :  { %19824 = shalt.err (!%p19821_p1)
}
  0x25   :  { %62 = dma.hbm_to_vmem [thread:$0]  %s20406_s3, 65536, %s57_s16, [#allocation10], %s19968_s11, %s19968_s11, %s19969_s12  }
  0x26   :  { %s19825_s30 = scalar_lea.hbm %s20408_s5, 8192 }
  0x27   :  { %p19826_p2 = scmp.ne.s32.totalorder %s20408_s5, %s19825_s30  ;;  %p19829_p3 = scmp.lt.u32.totalorder %s19825_s30, %s20408_s5 }
  0x29   :  { %p19831_p4 = pnand %p19829_p3, %p19826_p2 }
  0x2b   :  { %19834 = shalt.err (!%p19831_p4)
}
  0x2c   :  { %s19835_s14 = scalar_lea.vmem %s79_s18, 8192  ;;  %p19840_p6 = scmp.lt.s32.totalorder %s79_s18, %s79_s18 }
  0x2d   :  { %p19836_p5 = scmp.ne.s32.totalorder %s79_s18, %s19835_s14  ;;  %p19841_p7 = scmp.lt.s32.totalorder %s19835_s14, %s19835_s14 }
  0x2f   :  { %p19842_p8 = por %p19841_p7, %p19840_p6 }
  0x31   :  { %p19843_p9 = pnand %p19842_p8, %p19836_p5 }
  0x33   :  { %19846 = shalt.err (!%p19843_p9)
}
  0x34   :  { %s19972_s3 = smov 64   ;;  %s19973_s11 = smov 4  }
  0x35   :  { %84 = dma.hbm_to_vmem [thread:$0]  %s20408_s5, 8192, %s79_s18, [#allocation13], %s19972_s3, %s19972_s3, %s19973_s11  }
  0x36   :  { %s19974_s16 = smov [#allocation3]   ;;  %s19847_s21 = scalar_lea.hbm %s20403_s0, 6656 }
  0x37   :  { %s22_s17 = sshll.u32 %s19974_s16, 4  ;;  %p19848_p10 = scmp.ne.s32.totalorder %s20403_s0, %s19847_s21  ;;  %s23_s17 = int_to_ptr.vmem [resolvable:$true] %s22_s17 }
  0x38   :  { %p19851_p11 = scmp.lt.u32.totalorder %s19847_s21, %s20403_s0 }
  0x3a   :  { %p19853_p12 = pnand %p19851_p11, %p19848_p10 }
  0x3c   :  { %19856 = shalt.err (!%p19853_p12)
}
  0x3d   :  { %s19857_s1 = scalar_lea.vmem %s23_s17, 6656  ;;  %p19862_p0 = scmp.lt.s32.totalorder %s23_s17, %s23_s17 }
  0x3e   :  { %p19858_p13 = scmp.ne.s32.totalorder %s23_s17, %s19857_s1  ;;  %p19863_p1 = scmp.lt.s32.totalorder %s19857_s1, %s19857_s1 }
  0x40   :  { %p19864_p2 = por %p19863_p1, %p19862_p0 }
  0x42   :  { %p19865_p3 = pnand %p19864_p2, %p19858_p13 }
  0x44   :  { %19868 = shalt.err (!%p19865_p3)
}
  0x45   :  { %s19975_s5 = smov 3328   ;;  %s19976_s18 = smov 208  }
  0x46   :  { %28 = dma.hbm_to_vmem [thread:$0]  %s20403_s0, 6656, %s23_s17, [#allocation4], %s19975_s5, %s19975_s5, %s19976_s18  }
  0x47   :  { %s19977_s28 = smov [#allocation8]   ;;  %s19978_s30 = smov [#allocation11]  }
  0x48   :  { %s47_s29 = sshll.u32 %s19977_s28, 4  ;;  %s69_s8 = sshll.u32 %s19978_s30, 4  ;;  %s48_s29 = int_to_ptr.vmem [resolvable:$true] %s47_s29  ;;  %s70_s8 = int_to_ptr.vmem [resolvable:$true] %s69_s8 }
  0x49   :  { %s19869_s13 = scalar_lea.hbm %s20405_s2, 128 }
  0x4a   :  { %p19870_p4 = scmp.ne.s32.totalorder %s20405_s2, %s19869_s13  ;;  %p19873_p5 = scmp.lt.u32.totalorder %s19869_s13, %s20405_s2 }
  0x4c   :  { %p19875_p6 = pnand %p19873_p5, %p19870_p4 }
  0x4e   :  { %19878 = shalt.err (!%p19875_p6)
}
  0x4f   :  { %s19879_s0 = scalar_lea.vmem %s48_s29, 128  ;;  %p19884_p8 = scmp.lt.s32.totalorder %s48_s29, %s48_s29 }
  0x50   :  { %p19880_p7 = scmp.ne.s32.totalorder %s48_s29, %s19879_s0  ;;  %p19885_p9 = scmp.lt.s32.totalorder %s19879_s0, %s19879_s0 }
  0x52   :  { %p19886_p10 = por %p19885_p9, %p19884_p8 }
  0x54   :  { %p19887_p11 = pnand %p19886_p10, %p19880_p7 }
  0x56   :  { %19890 = shalt.err (!%p19887_p11)
}
  0x57   :  { %50 = dma.hbm_to_vmem [thread:$0]  %s20405_s2, 128, %s48_s29, [#allocation7]  }
  0x58   :  { %s19891_s20 = scalar_lea.hbm %s20407_s4, 128 }
  0x59   :  { %p19892_p12 = scmp.ne.s32.totalorder %s20407_s4, %s19891_s20  ;;  %p19895_p13 = scmp.lt.u32.totalorder %s19891_s20, %s20407_s4 }
  0x5b   :  { %p19897_p0 = pnand %p19895_p13, %p19892_p12 }
  0x5d   :  { %19900 = shalt.err (!%p19897_p0)
}
  0x5e   :  { %s19901_s26 = scalar_lea.vmem %s70_s8, 128  ;;  %p19906_p2 = scmp.lt.s32.totalorder %s70_s8, %s70_s8 }
  0x5f   :  { %p19902_p1 = scmp.ne.s32.totalorder %s70_s8, %s19901_s26  ;;  %p19907_p3 = scmp.lt.s32.totalorder %s19901_s26, %s19901_s26 }
  0x61   :  { %p19908_p4 = por %p19907_p3, %p19906_p2 }
  0x63   :  { %p19909_p5 = pnand %p19908_p4, %p19902_p1 }
  0x65   :  { %19912 = shalt.err (!%p19909_p5)
}
  0x66   :  { %72 = dma.hbm_to_vmem [thread:$0]  %s20407_s4, 128, %s70_s8, [#allocation10]  }
  0x67   :  { %s19979_s5 = smov [#allocation14]   ;;  %s19913_s28 = scalar_lea.hbm %s20409_s6, 16 }
  0x68   :  { %s91_s18 = sshll.u32 %s19979_s5, 4  ;;  %p19914_p6 = scmp.ne.s32.totalorder %s20409_s6, %s19913_s28  ;;  %s92_s18 = int_to_ptr.vmem [resolvable:$true] %s91_s18 }
  0x69   :  { %p19917_p7 = scmp.lt.u32.totalorder %s19913_s28, %s20409_s6 }
  0x6b   :  { %p19919_p8 = pnand %p19917_p7, %p19914_p6 }
  0x6d   :  { %19922 = shalt.err (!%p19919_p8)
}
  0x6e   :  { %s19923_s13 = scalar_lea.vmem %s92_s18, 16  ;;  %s19927_s4 = scalar_lea.vmem %s92_s18, 32 }
  0x6f   :  { %p19924_p9 = scmp.ne.s32.totalorder %s92_s18, %s19923_s13  ;;  %p19928_p10 = scmp.lt.s32.totalorder %s92_s18, %s92_s18 }
  0x70   :  { %p19929_p11 = scmp.lt.s32.totalorder %s19927_s4, %s19923_s13 }
  0x72   :  { %p19930_p12 = por %p19929_p11, %p19928_p10 }
  0x74   :  { %p19931_p13 = pnand %p19930_p12, %p19924_p9 }
  0x76   :  { %19934 = shalt.err (!%p19931_p13)
}
  0x77   :  { %94 = dma.hbm_to_vmem [thread:$0]  %s20409_s6, 16, %s92_s18, [#allocation13]  }
  0x78   :  { %19957 = dma.done.wait [#allocation4], 6656  }
  0x79   :  { %19958 = vsyncadd [#allocation4], 4294960640 }
  0x7a   :  { %19959 = dma.done.wait [#allocation7], 213120  }
  0x7b   :  { %19960 = vsyncadd [#allocation7], 4294754176 }
  0x7c   :  { %19961 = dma.done.wait [#allocation10], 65664  }
  0x7d   :  { %19962 = vsyncadd [#allocation10], 4294901632 }
  0x7e   :  { %19963 = dma.done.wait [#allocation13], 8208  }
  0x7f   :  { %19964 = vsyncadd [#allocation13], 4294959088  ;;  %v231_v0 = vld [vmem:[#allocation6] sm:$0xff]  ;;  %v232_v2 = vld [vmem:[#allocation6 + $0x8] sm:$0xff]  ;;  %s19980_s6 = smov [#allocation15]  }
  0x80   :  { %v235_v1 = vld [vmem:[#allocation6 + $0x20] sm:$0xff]  ;;  %v236_v4 = vld [vmem:[#allocation6 + $0x28] sm:$0xff]  ;;  %v180_v54 = vld [vmem:[#allocation3 + $0xd8] sm:$0xff]  ;;  %s17100_s3 = sshll.u32 %s19980_s6, 4  ;;  %s17101_s3 = int_to_ptr.vmem [resolvable:$true] %s17100_s3 }
  0x81   :  { %v17116_v3 = vcombine.high %v231_v0, %v235_v1  ;;  %v17115_v5 = vcombine.low %v231_v0, %v235_v1  ;;  %v239_v6 = vld [vmem:[#allocation6 + $0x40] sm:$0xff]  ;;  %v17118_v8 = vcombine.high %v232_v2, %v236_v4  ;;  %v17117_v9 = vcombine.low %v232_v2, %v236_v4  ;;  %v240_v11 = vld [vmem:[#allocation6 + $0x48] sm:$0xff]  ;;  %s19935_s11 = scalar_lea.vmem %s17101_s3, 256  ;;  %p19940_p1 = scmp.lt.s32.totalorder %s17101_s3, %s17101_s3 }
  0x82   :  { %v243_v7 = vld [vmem:[#allocation6 + $0x60] sm:$0xff]  ;;  %v244_v12 = vld [vmem:[#allocation6 + $0x68] sm:$0xff]  ;;  %p19936_p0 = scmp.ne.s32.totalorder %s17101_s3, %s19935_s11  ;;  %p19941_p2 = scmp.lt.s32.totalorder %s19935_s11, %s19935_s11 }
  0x83   :  { %v17124_v10 = vcombine.high %v239_v6, %v243_v7  ;;  %v247_v13 = vld [vmem:[#allocation6 + $0x80] sm:$0xff]  ;;  %10215 = vmatprep.subr.bf16.mxu0 %v17116_v3  ;;  %v17126_v14 = vcombine.high %v240_v11, %v244_v12  ;;  %v248_v16 = vld [vmem:[#allocation6 + $0x88] sm:$0xff]  ;;  %10774 = vmatprep.subr.bf16.mxu1 %v17118_v8  ;;  %v17123_v18 = vcombine.low %v239_v6, %v243_v7 }
  0x84   :  { %v251_v15 = vld [vmem:[#allocation6 + $0xa0] sm:$0xff]  ;;  %v252_v17 = vld [vmem:[#allocation6 + $0xa8] sm:$0xff]  ;;  %10216 = vmatpush1.bf16.msra.mxu0 %v17115_v5  ;;  %10775 = vmatpush1.bf16.msra.mxu1 %v17117_v9  ;;  %v17125_v19 = vcombine.low %v240_v11, %v244_v12  ;;  %p19942_p3 = por %p19941_p2, %p19940_p1 }
  0x85   :  { %10217 = vmatprep.subr.bf16.mxu0 %v17124_v10  ;;  %v17132_v20 = vcombine.high %v247_v13, %v251_v15  ;;  %10776 = vmatprep.subr.bf16.mxu1 %v17126_v14  ;;  %v17134_v21 = vcombine.high %v248_v16, %v252_v17  ;;  %v255_v22 = vld [vmem:[#allocation6 + $0xc0] sm:$0xff]  ;;  %v256_v24 = vld [vmem:[#allocation6 + $0xc8] sm:$0xff]  ;;  %v17131_v26 = vcombine.low %v247_v13, %v251_v15 }
  0x86   :  { %v259_v23 = vld [vmem:[#allocation6 + $0xe0] sm:$0xff]  ;;  %v260_v25 = vld [vmem:[#allocation6 + $0xe8] sm:$0xff]  ;;  %v17133_v27 = vcombine.low %v248_v16, %v252_v17  ;;  %p19943_p4 = pnand %p19942_p3, %p19936_p0 }
  0x87   :  { %v17140_v28 = vcombine.high %v255_v22, %v259_v23  ;;  %v17142_v29 = vcombine.high %v256_v24, %v260_v25  ;;  %v263_v30 = vld [vmem:[#allocation6 + $0x100] sm:$0xff]  ;;  %v264_v32 = vld [vmem:[#allocation6 + $0x108] sm:$0xff]  ;;  %v17139_v34 = vcombine.low %v255_v22, %v259_v23  ;;  %v17141_v35 = vcombine.low %v256_v24, %v260_v25 }
  0x88   :  { %10218 = vmatpush1.bf16.msra.mxu0 %v17123_v18  ;;  %10777 = vmatpush1.bf16.msra.mxu1 %v17125_v19  ;;  %v267_v31 = vld [vmem:[#allocation6 + $0x120] sm:$0xff]  ;;  %v268_v33 = vld [vmem:[#allocation6 + $0x128] sm:$0xff] }
  0x89   :  { %10219 = vmatprep.subr.bf16.mxu0 %v17132_v20  ;;  %10778 = vmatprep.subr.bf16.mxu1 %v17134_v21  ;;  %v17148_v36 = vcombine.high %v263_v30, %v267_v31  ;;  %v17150_v37 = vcombine.high %v264_v32, %v268_v33  ;;  %v271_v38 = vld [vmem:[#allocation6 + $0x140] sm:$0xff]  ;;  %v272_v40 = vld [vmem:[#allocation6 + $0x148] sm:$0xff]  ;;  %v17147_v42 = vcombine.low %v263_v30, %v267_v31 }
  0x8a   :  { %v275_v39 = vld [vmem:[#allocation6 + $0x160] sm:$0xff]  ;;  %v276_v41 = vld [vmem:[#allocation6 + $0x168] sm:$0xff]  ;;  %v17149_v43 = vcombine.low %v264_v32, %v268_v33 }
  0x8b   :  { %v17156_v44 = vcombine.high %v271_v38, %v275_v39  ;;  %v17158_v45 = vcombine.high %v272_v40, %v276_v41  ;;  %v279_v46 = vld [vmem:[#allocation6 + $0x180] sm:$0xff]  ;;  %v280_v48 = vld [vmem:[#allocation6 + $0x188] sm:$0xff]  ;;  %v17155_v50 = vcombine.low %v271_v38, %v275_v39  ;;  %v17157_v51 = vcombine.low %v272_v40, %v276_v41 }
  0x8c   :  { %10220 = vmatpush1.bf16.msra.mxu0 %v17131_v26  ;;  %10779 = vmatpush1.bf16.msra.mxu1 %v17133_v27  ;;  %v283_v47 = vld [vmem:[#allocation6 + $0x1a0] sm:$0xff]  ;;  %v284_v49 = vld [vmem:[#allocation6 + $0x1a8] sm:$0xff] }
  0x8d   :  { %10221 = vmatprep.subr.bf16.mxu0 %v17140_v28  ;;  %10780 = vmatprep.subr.bf16.mxu1 %v17142_v29  ;;  %v17164_v52 = vcombine.high %v279_v46, %v283_v47  ;;  %v154_v53 = vld [vmem:[#allocation3 + $0x8] sm:$0xff]  ;;  %v17166_v55 = vcombine.high %v280_v48, %v284_v49  ;;  %v287_v56 = vld [vmem:[#allocation6 + $0x1c0] sm:$0xff]  ;;  %v17163_v61 = vcombine.low %v279_v46, %v283_v47 }
  0x8e   :  { %v291_v57 = vld [vmem:[#allocation6 + $0x1e0] sm:$0xff]  ;;  %v20107_v58 = vpack.c.bf16 %v180_v54, %v154_v53  ;;  %v288_v59 = vld [vmem:[#allocation6 + $0x1c8] sm:$0xff]  ;;  %v17165_v62 = vcombine.low %v280_v48, %v284_v49 }
  0x8f   :  { %v292_v60 = vld [vmem:[#allocation6 + $0x1e8] sm:$0xff]  ;;  %v17172_v63 = vcombine.high %v287_v56, %v291_v57  ;;  %v295_v1 = vld [vmem:[#allocation6 + $0x200] sm:$0xff]  ;;  %v17171_v5 = vcombine.low %v287_v56, %v291_v57 }
  0x90   :  { %10222 = vmatpush1.bf16.msra.mxu0 %v17139_v34  ;;  %10781 = vmatpush1.bf16.msra.mxu1 %v17141_v35  ;;  %v17174_v0 = vcombine.high %v288_v59, %v292_v60  ;;  %v299_v2 = vld [vmem:[#allocation6 + $0x220] sm:$0xff]  ;;  %v296_v3 = vld [vmem:[#allocation6 + $0x208] sm:$0xff]  ;;  %v17173_v6 = vcombine.low %v288_v59, %v292_v60 }
  0x91   :  { %10223 = vmatprep.subr.bf16.mxu0 %v17148_v36  ;;  %10782 = vmatprep.subr.bf16.mxu1 %v17150_v37  ;;  %v300_v4 = vld [vmem:[#allocation6 + $0x228] sm:$0xff]  ;;  %v17180_v7 = vcombine.high %v295_v1, %v299_v2  ;;  %v303_v9 = vld [vmem:[#allocation6 + $0x240] sm:$0xff]  ;;  %v17179_v13 = vcombine.low %v295_v1, %v299_v2 }
  0x92   :  { %10247 = vmatprep.mubr.bf16.mxu0 %v20107_v58  ;;  %10806 = vmatprep.mubr.bf16.mxu1 %v20107_v58  ;;  %v17182_v8 = vcombine.high %v296_v3, %v300_v4  ;;  %v307_v10 = vld [vmem:[#allocation6 + $0x260] sm:$0xff]  ;;  %v304_v11 = vld [vmem:[#allocation6 + $0x248] sm:$0xff]  ;;  %v17181_v14 = vcombine.low %v296_v3, %v300_v4 }
  0x93   :  { %v308_v12 = vld [vmem:[#allocation6 + $0x268] sm:$0xff]  ;;  %v17188_v15 = vcombine.high %v303_v9, %v307_v10  ;;  %v311_v17 = vld [vmem:[#allocation6 + $0x280] sm:$0xff]  ;;  %v17187_v21 = vcombine.low %v303_v9, %v307_v10 }
  0x94   :  { %10224 = vmatpush1.bf16.msra.mxu0 %v17147_v42  ;;  %10783 = vmatpush1.bf16.msra.mxu1 %v17149_v43  ;;  %v17190_v16 = vcombine.high %v304_v11, %v308_v12  ;;  %v315_v18 = vld [vmem:[#allocation6 + $0x2a0] sm:$0xff]  ;;  %v312_v19 = vld [vmem:[#allocation6 + $0x288] sm:$0xff]  ;;  %v17189_v22 = vcombine.low %v304_v11, %v308_v12 }
  0x95   :  { %10225 = vmatprep.subr.bf16.mxu0 %v17156_v44  ;;  %10784 = vmatprep.subr.bf16.mxu1 %v17158_v45  ;;  %v316_v20 = vld [vmem:[#allocation6 + $0x2a8] sm:$0xff]  ;;  %v17196_v23 = vcombine.high %v311_v17, %v315_v18  ;;  %v319_v25 = vld [vmem:[#allocation6 + $0x2c0] sm:$0xff]  ;;  %v17195_v29 = vcombine.low %v311_v17, %v315_v18  ;;  %v156_v17 = vld [vmem:[#allocation3 + $0x18] sm:$0xff] }
  0x96   :  { %v17198_v24 = vcombine.high %v312_v19, %v316_v20  ;;  %v323_v26 = vld [vmem:[#allocation6 + $0x2e0] sm:$0xff]  ;;  %v320_v27 = vld [vmem:[#allocation6 + $0x2c8] sm:$0xff]  ;;  %v17197_v30 = vcombine.low %v312_v19, %v316_v20 }
  0x97   :  { %v324_v28 = vld [vmem:[#allocation6 + $0x2e8] sm:$0xff]  ;;  %v17204_v31 = vcombine.high %v319_v25, %v323_v26  ;;  %v327_v33 = vld [vmem:[#allocation6 + $0x300] sm:$0xff]  ;;  %v17203_v37 = vcombine.low %v319_v25, %v323_v26 }
  0x98   :  { %10226 = vmatpush1.bf16.msra.mxu0 %v17155_v50  ;;  %10785 = vmatpush1.bf16.msra.mxu1 %v17157_v51  ;;  %v17206_v32 = vcombine.high %v320_v27, %v324_v28  ;;  %v331_v34 = vld [vmem:[#allocation6 + $0x320] sm:$0xff]  ;;  %v328_v35 = vld [vmem:[#allocation6 + $0x308] sm:$0xff]  ;;  %v17205_v38 = vcombine.low %v320_v27, %v324_v28 }
  0x99   :  { %10227 = vmatprep.subr.bf16.mxu0 %v17164_v52  ;;  %10786 = vmatprep.subr.bf16.mxu1 %v17166_v55  ;;  %v332_v36 = vld [vmem:[#allocation6 + $0x328] sm:$0xff]  ;;  %v17212_v39 = vcombine.high %v327_v33, %v331_v34  ;;  %v335_v41 = vld [vmem:[#allocation6 + $0x340] sm:$0xff]  ;;  %v17211_v45 = vcombine.low %v327_v33, %v331_v34 }
  0x9a   :  { %v17214_v40 = vcombine.high %v328_v35, %v332_v36  ;;  %v339_v42 = vld [vmem:[#allocation6 + $0x360] sm:$0xff]  ;;  %v336_v43 = vld [vmem:[#allocation6 + $0x348] sm:$0xff]  ;;  %v17213_v46 = vcombine.low %v328_v35, %v332_v36 }
  0x9b   :  { %v340_v44 = vld [vmem:[#allocation6 + $0x368] sm:$0xff]  ;;  %v17220_v47 = vcombine.high %v335_v41, %v339_v42  ;;  %v343_v49 = vld [vmem:[#allocation6 + $0x380] sm:$0xff]  ;;  %v17219_v53 = vcombine.low %v335_v41, %v339_v42 }
  0x9c   :  { %10228 = vmatpush1.bf16.msra.mxu0 %v17163_v61  ;;  %10787 = vmatpush1.bf16.msra.mxu1 %v17165_v62  ;;  %v17222_v48 = vcombine.high %v336_v43, %v340_v44  ;;  %v347_v50 = vld [vmem:[#allocation6 + $0x3a0] sm:$0xff]  ;;  %v344_v51 = vld [vmem:[#allocation6 + $0x388] sm:$0xff]  ;;  %v17221_v54 = vcombine.low %v336_v43, %v340_v44 }
  0x9d   :  { %10229 = vmatprep.subr.bf16.mxu0 %v17172_v63  ;;  %10788 = vmatprep.subr.bf16.mxu1 %v17174_v0  ;;  %v348_v52 = vld [vmem:[#allocation6 + $0x3a8] sm:$0xff]  ;;  %v17228_v55 = vcombine.high %v343_v49, %v347_v50  ;;  %v351_v57 = vld [vmem:[#allocation6 + $0x3c0] sm:$0xff]  ;;  %v17227_v62 = vcombine.low %v343_v49, %v347_v50 }
  0x9e   :  { %v17230_v56 = vcombine.high %v344_v51, %v348_v52  ;;  %v355_v59 = vld [vmem:[#allocation6 + $0x3e0] sm:$0xff]  ;;  %v352_v60 = vld [vmem:[#allocation6 + $0x3c8] sm:$0xff]  ;;  %v17229_v63 = vcombine.low %v344_v51, %v348_v52 }
  0x9f   :  { %v356_v61 = vld [vmem:[#allocation6 + $0x3e8] sm:$0xff]  ;;  %v17236_v0 = vcombine.high %v351_v57, %v355_v59  ;;  %v359_v2 = vld [vmem:[#allocation6 + $0x400] sm:$0xff] }
  0xa0   :  { %10230 = vmatpush1.bf16.msra.mxu0 %v17171_v5  ;;  %10789 = vmatpush1.bf16.msra.mxu1 %v17173_v6  ;;  %v17238_v1 = vcombine.high %v352_v60, %v356_v61  ;;  %v363_v3 = vld [vmem:[#allocation6 + $0x420] sm:$0xff]  ;;  %v360_v4 = vld [vmem:[#allocation6 + $0x408] sm:$0xff]  ;;  %v17235_v6 = vcombine.low %v351_v57, %v355_v59  ;;  %v17237_v9 = vcombine.low %v352_v60, %v356_v61 }
  0xa1   :  { %10231 = vmatprep.subr.bf16.mxu0 %v17180_v7  ;;  %10790 = vmatprep.subr.bf16.mxu1 %v17182_v8  ;;  %v364_v5 = vld [vmem:[#allocation6 + $0x428] sm:$0xff]  ;;  %v153_v7 = vld [vmem:[#allocation3] sm:$0xff]  ;;  %v179_v8 = vld [vmem:[#allocation3 + $0xd0] sm:$0xff]  ;;  %v17244_v10 = vcombine.high %v359_v2, %v363_v3  ;;  %v17243_v19 = vcombine.low %v359_v2, %v363_v3 }
  0xa2   :  { %v17246_v11 = vcombine.high %v360_v4, %v364_v5  ;;  %v367_v12 = vld [vmem:[#allocation6 + $0x440] sm:$0xff]  ;;  %v182_v18 = vld [vmem:[#allocation3 + $0xe8] sm:$0xff]  ;;  %v17245_v20 = vcombine.low %v360_v4, %v364_v5 }
  0xa3   :  { %v20113_v25 = vpack.c.bf16 %v182_v18, %v156_v17  ;;  %v376_v26 = vld [vmem:[#allocation6 + $0x488] sm:$0xff]  ;;  %v431_v17 = vld [vmem:[#allocation6 + $0x640] sm:$0xff] }
  0xa4   :  { %10232 = vmatpush1.bf16.msra.mxu0 %v17179_v13  ;;  %10791 = vmatpush1.bf16.msra.mxu1 %v17181_v14  ;;  %v371_v13 = vld [vmem:[#allocation6 + $0x460] sm:$0xff]  ;;  %v368_v14 = vld [vmem:[#allocation6 + $0x448] sm:$0xff] }
  0xa5   :  { %10233 = vmatprep.subr.bf16.mxu0 %v17188_v15  ;;  %10792 = vmatprep.subr.bf16.mxu1 %v17190_v16  ;;  %v20111_v15 = vpack.c.bf16 %v179_v8, %v153_v7  ;;  %v372_v16 = vld [vmem:[#allocation6 + $0x468] sm:$0xff]  ;;  %v17251_v28 = vcombine.low %v367_v12, %v371_v13  ;;  %v423_v8 = vld [vmem:[#allocation6 + $0x600] sm:$0xff] }
  0xa6   :  { %v380_v27 = vld [vmem:[#allocation6 + $0x4a8] sm:$0xff]  ;;  %v435_v18 = vld [vmem:[#allocation6 + $0x660] sm:$0xff] }
  0xa7   :  { %v17262_v33 = vcombine.high %v376_v26, %v380_v27  ;;  %v384_v34 = vld [vmem:[#allocation6 + $0x4c8] sm:$0xff] }
  0xa8   :  { %10234 = vmatpush1.bf16.msra.mxu0 %v17187_v21  ;;  %10793 = vmatpush1.bf16.msra.mxu1 %v17189_v22  ;;  %v17252_v21 = vcombine.high %v367_v12, %v371_v13  ;;  %v17254_v22 = vcombine.high %v368_v14, %v372_v16  ;;  %v388_v35 = vld [vmem:[#allocation6 + $0x4e8] sm:$0xff] }
  0xa9   :  { %10235 = vmatprep.subr.bf16.mxu0 %v17196_v23  ;;  %10794 = vmatprep.subr.bf16.mxu1 %v17198_v24  ;;  %v375_v23 = vld [vmem:[#allocation6 + $0x480] sm:$0xff]  ;;  %v392_v41 = vld [vmem:[#allocation6 + $0x508] sm:$0xff]  ;;  %v17270_v42 = vcombine.high %v384_v34, %v388_v35 }
  0xaa   :  { %v379_v24 = vld [vmem:[#allocation6 + $0x4a0] sm:$0xff]  ;;  %v396_v43 = vld [vmem:[#allocation6 + $0x528] sm:$0xff] }
  0xab   :  { %v17259_v36 = vcombine.low %v375_v23, %v379_v24  ;;  %v400_v49 = vld [vmem:[#allocation6 + $0x548] sm:$0xff]  ;;  %v17278_v50 = vcombine.high %v392_v41, %v396_v43 }
  0xac   :  { %10236 = vmatpush1.bf16.msra.mxu0 %v17195_v29  ;;  %10795 = vmatpush1.bf16.msra.mxu1 %v17197_v30  ;;  %v17253_v29 = vcombine.low %v368_v14, %v372_v16  ;;  %v17260_v30 = vcombine.high %v375_v23, %v379_v24  ;;  %v404_v51 = vld [vmem:[#allocation6 + $0x568] sm:$0xff]  ;;  %v17316_v24 = vcombine.high %v431_v17, %v435_v18 }
  0xad   :  { %10237 = vmatprep.subr.bf16.mxu0 %v17204_v31  ;;  %10796 = vmatprep.subr.bf16.mxu1 %v17206_v32  ;;  %v383_v31 = vld [vmem:[#allocation6 + $0x4c0] sm:$0xff]  ;;  %v408_v57 = vld [vmem:[#allocation6 + $0x588] sm:$0xff]  ;;  %v17286_v59 = vcombine.high %v400_v49, %v404_v51 }
  0xae   :  { %v387_v32 = vld [vmem:[#allocation6 + $0x4e0] sm:$0xff]  ;;  %v412_v60 = vld [vmem:[#allocation6 + $0x5a8] sm:$0xff] }
  0xaf   :  { %v17267_v44 = vcombine.low %v383_v31, %v387_v32  ;;  %v416_v2 = vld [vmem:[#allocation6 + $0x5c8] sm:$0xff]  ;;  %v17294_v3 = vcombine.high %v408_v57, %v412_v60 }
  0xb0   :  { %10238 = vmatpush1.bf16.msra.mxu0 %v17203_v37  ;;  %10797 = vmatpush1.bf16.msra.mxu1 %v17205_v38  ;;  %v17261_v37 = vcombine.low %v376_v26, %v380_v27  ;;  %v17268_v38 = vcombine.high %v383_v31, %v387_v32  ;;  %v420_v4 = vld [vmem:[#allocation6 + $0x5e8] sm:$0xff]  ;;  %v439_v26 = vld [vmem:[#allocation6 + $0x680] sm:$0xff]  ;;  %v17315_v31 = vcombine.low %v431_v17, %v435_v18  ;;  %v155_v17 = vld [vmem:[#allocation3 + $0x10] sm:$0xff] }
  0xb1   :  { %10239 = vmatprep.subr.bf16.mxu0 %v17212_v39  ;;  %10798 = vmatprep.subr.bf16.mxu1 %v17214_v40  ;;  %v391_v39 = vld [vmem:[#allocation6 + $0x500] sm:$0xff]  ;;  %v428_v12 = vld [vmem:[#allocation6 + $0x628] sm:$0xff]  ;;  %v17301_v14 = vcombine.low %v416_v2, %v420_v4 }
  0xb2   :  { %v395_v40 = vld [vmem:[#allocation6 + $0x520] sm:$0xff] }
  0xb3   :  { %v17275_v52 = vcombine.low %v391_v39, %v395_v40  ;;  %v443_v27 = vld [vmem:[#allocation6 + $0x6a0] sm:$0xff] }
  0xb4   :  { %10240 = vmatpush1.bf16.msra.mxu0 %v17211_v45  ;;  %10799 = vmatpush1.bf16.msra.mxu1 %v17213_v46  ;;  %v17269_v45 = vcombine.low %v384_v34, %v388_v35  ;;  %v17276_v46 = vcombine.high %v391_v39, %v395_v40  ;;  %v447_v34 = vld [vmem:[#allocation6 + $0x6c0] sm:$0xff]  ;;  %v17323_v39 = vcombine.low %v439_v26, %v443_v27 }
  0xb5   :  { %10241 = vmatprep.subr.bf16.mxu0 %v17220_v47  ;;  %10800 = vmatprep.subr.bf16.mxu1 %v17222_v48  ;;  %v399_v47 = vld [vmem:[#allocation6 + $0x540] sm:$0xff] }
  0xb6   :  { %v403_v48 = vld [vmem:[#allocation6 + $0x560] sm:$0xff] }
  0xb7   :  { %v17283_v61 = vcombine.low %v399_v47, %v403_v48  ;;  %v451_v35 = vld [vmem:[#allocation6 + $0x6e0] sm:$0xff] }
  0xb8   :  { %10242 = vmatpush1.bf16.msra.mxu0 %v17219_v53  ;;  %10801 = vmatpush1.bf16.msra.mxu1 %v17221_v54  ;;  %v17277_v53 = vcombine.low %v392_v41, %v396_v43  ;;  %v17284_v54 = vcombine.high %v399_v47, %v403_v48  ;;  %v17332_v41 = vcombine.high %v447_v34, %v451_v35  ;;  %v459_v43 = vld [vmem:[#allocation6 + $0x720] sm:$0xff] }
  0xb9   :  { %10243 = vmatprep.subr.bf16.mxu0 %v17228_v55  ;;  %10802 = vmatprep.subr.bf16.mxu1 %v17230_v56  ;;  %v407_v55 = vld [vmem:[#allocation6 + $0x580] sm:$0xff]  ;;  %v17331_v47 = vcombine.low %v447_v34, %v451_v35 }
  0xba   :  { %v411_v56 = vld [vmem:[#allocation6 + $0x5a0] sm:$0xff] }
  0xbb   :  { %v17291_v5 = vcombine.low %v407_v55, %v411_v56  ;;  %v181_v18 = vld [vmem:[#allocation3 + $0xe0] sm:$0xff] }
  0xbc   :  { %10244 = vmatpush1.bf16.msra.mxu0 %v17227_v62  ;;  %10803 = vmatpush1.bf16.msra.mxu1 %v17229_v63  ;;  %v17285_v62 = vcombine.low %v400_v49, %v404_v51  ;;  %v17292_v63 = vcombine.high %v407_v55, %v411_v56  ;;  %v467_v51 = vld [vmem:[#allocation6 + $0x760] sm:$0xff] }
  0xbd   :  { %10245 = vmatprep.subr.bf16.mxu0 %v17236_v0  ;;  %10804 = vmatprep.subr.bf16.mxu1 %v17238_v1  ;;  %v415_v0 = vld [vmem:[#allocation6 + $0x5c0] sm:$0xff] }
  0xbe   :  { %v419_v1 = vld [vmem:[#allocation6 + $0x5e0] sm:$0xff] }
  0xbf   :  { %v17300_v7 = vcombine.high %v415_v0, %v419_v1  ;;  %v17299_v13 = vcombine.low %v415_v0, %v419_v1  ;;  %v503_v35 = vld [vmem:[#allocation6 + $0x880] sm:$0xff] }
  0xc0   :  { %10246 = vmatpush1.bf16.msra.mxu0 %v17235_v6  ;;  %10805 = vmatpush1.bf16.msra.mxu1 %v17237_v9  ;;  %v17293_v6 = vcombine.low %v408_v57, %v412_v60  ;;  %v427_v9 = vld [vmem:[#allocation6 + $0x620] sm:$0xff] }
  0xc1   :  { %10258 = vmatprep.subr.bf16.mxu0 %v17244_v10  ;;  %10817 = vmatprep.subr.bf16.mxu1 %v17246_v11  ;;  %v424_v10 = vld [vmem:[#allocation6 + $0x608] sm:$0xff]  ;;  %v17302_v11 = vcombine.high %v416_v2, %v420_v4  ;;  %v17308_v16 = vcombine.high %v423_v8, %v427_v9  ;;  %v475_v60 = vld [vmem:[#allocation6 + $0x7a0] sm:$0xff] }
  0xc2   :  { %v17309_v23 = vcombine.low %v424_v10, %v428_v12  ;;  %v483_v4 = vld [vmem:[#allocation6 + $0x7e0] sm:$0xff] }
  0xc3   :  { %10248 = vmatmul.mubr.bf16.vlgmr.msra.gmra.mrb[0].mxu0 %v20111_v15  ;;  %10807 = vmatmul.mubr.bf16.vlgmr.msra.gmra.mrb[0].mxu1 %v20111_v15 }
  0xc4   :  { %10259 = vmatpush1.bf16.msra.mxu0 %v17243_v19  ;;  %10818 = vmatpush1.bf16.msra.mxu1 %v17245_v20  ;;  %v432_v19 = vld [vmem:[#allocation6 + $0x648] sm:$0xff]  ;;  %v17310_v20 = vcombine.high %v424_v10, %v428_v12  ;;  %v491_v12 = vld [vmem:[#allocation6 + $0x820] sm:$0xff] }
  0xc5   :  { %10260 = vmatprep.subr.bf16.mxu0 %v17252_v21  ;;  %10819 = vmatprep.subr.bf16.mxu1 %v17254_v22  ;;  %v436_v21 = vld [vmem:[#allocation6 + $0x668] sm:$0xff]  ;;  %v17307_v22 = vcombine.low %v423_v8, %v427_v9  ;;  %v487_v9 = vld [vmem:[#allocation6 + $0x800] sm:$0xff] }
  0xc6   :  { %10290 = vmatprep.mubr.bf16.mxu0 %v20113_v25  ;;  %10849 = vmatprep.mubr.bf16.mxu1 %v20113_v25  ;;  %v17317_v32 = vcombine.low %v432_v19, %v436_v21 }
  0xc8   :  { %10261 = vmatpush1.bf16.msra.mxu0 %v17251_v28  ;;  %10820 = vmatpush1.bf16.msra.mxu1 %v17253_v29  ;;  %v440_v28 = vld [vmem:[#allocation6 + $0x688] sm:$0xff]  ;;  %v17318_v29 = vcombine.high %v432_v19, %v436_v21  ;;  %v499_v21 = vld [vmem:[#allocation6 + $0x860] sm:$0xff] }
  0xc9   :  { %10262 = vmatprep.subr.bf16.mxu0 %v17260_v30  ;;  %10821 = vmatprep.subr.bf16.mxu1 %v17262_v33  ;;  %v444_v30 = vld [vmem:[#allocation6 + $0x6a8] sm:$0xff]  ;;  %v17324_v33 = vcombine.high %v439_v26, %v443_v27 }
  0xca   :  { %v17325_v40 = vcombine.low %v440_v28, %v444_v30  ;;  %v500_v26 = vld [vmem:[#allocation6 + $0x868] sm:$0xff] }
  0xcb   :  { %v158_v27 = vld [vmem:[#allocation3 + $0x28] sm:$0xff] }
  0xcc   :  { %10263 = vmatpush1.bf16.msra.mxu0 %v17259_v36  ;;  %10822 = vmatpush1.bf16.msra.mxu1 %v17261_v37  ;;  %v448_v36 = vld [vmem:[#allocation6 + $0x6c8] sm:$0xff]  ;;  %v17326_v37 = vcombine.high %v440_v28, %v444_v30  ;;  %v20119_v30 = vpack.c.bf16 %v181_v18, %v155_v17 }
  0xcd   :  { %10264 = vmatprep.subr.bf16.mxu0 %v17268_v38  ;;  %10823 = vmatprep.subr.bf16.mxu1 %v17270_v42  ;;  %v452_v38 = vld [vmem:[#allocation6 + $0x6e8] sm:$0xff]  ;;  %v455_v42 = vld [vmem:[#allocation6 + $0x700] sm:$0xff] }
  0xce   :  { %v17333_v48 = vcombine.low %v448_v36, %v452_v38  ;;  %v17340_v49 = vcombine.high %v455_v42, %v459_v43  ;;  %v17339_v55 = vcombine.low %v455_v42, %v459_v43  ;;  %v511_v43 = vld [vmem:[#allocation6 + $0x8c0] sm:$0xff]  ;;  %v548_v17 = vld [vmem:[#allocation6 + $0x9e8] sm:$0xff] }
  0xd0   :  { %10265 = vmatpush1.bf16.msra.mxu0 %v17267_v44  ;;  %10824 = vmatpush1.bf16.msra.mxu1 %v17269_v45  ;;  %v456_v44 = vld [vmem:[#allocation6 + $0x708] sm:$0xff]  ;;  %v17334_v45 = vcombine.high %v448_v36, %v452_v38  ;;  %v507_v36 = vld [vmem:[#allocation6 + $0x8a0] sm:$0xff] }
  0xd1   :  { %10266 = vmatprep.subr.bf16.mxu0 %v17276_v46  ;;  %10825 = vmatprep.subr.bf16.mxu1 %v17278_v50  ;;  %v460_v46 = vld [vmem:[#allocation6 + $0x728] sm:$0xff]  ;;  %v463_v50 = vld [vmem:[#allocation6 + $0x740] sm:$0xff]  ;;  %v17388_v42 = vcombine.high %v503_v35, %v507_v36 }
  0xd2   :  { %v17341_v56 = vcombine.low %v456_v44, %v460_v46  ;;  %v17348_v57 = vcombine.high %v463_v50, %v467_v51  ;;  %v17347_v0 = vcombine.low %v463_v50, %v467_v51  ;;  %v504_v38 = vld [vmem:[#allocation6 + $0x888] sm:$0xff] }
  0xd4   :  { %10267 = vmatpush1.bf16.msra.mxu0 %v17275_v52  ;;  %10826 = vmatpush1.bf16.msra.mxu1 %v17277_v53  ;;  %v464_v52 = vld [vmem:[#allocation6 + $0x748] sm:$0xff]  ;;  %v17342_v53 = vcombine.high %v456_v44, %v460_v46  ;;  %v515_v44 = vld [vmem:[#allocation6 + $0x8e0] sm:$0xff] }
  0xd5   :  { %10268 = vmatprep.subr.bf16.mxu0 %v17284_v54  ;;  %10827 = vmatprep.subr.bf16.mxu1 %v17286_v59  ;;  %v468_v54 = vld [vmem:[#allocation6 + $0x768] sm:$0xff]  ;;  %v471_v59 = vld [vmem:[#allocation6 + $0x780] sm:$0xff]  ;;  %v17396_v50 = vcombine.high %v511_v43, %v515_v44 }
  0xd6   :  { %v17349_v1 = vcombine.low %v464_v52, %v468_v54  ;;  %v17356_v2 = vcombine.high %v471_v59, %v475_v60  ;;  %v17355_v8 = vcombine.low %v471_v59, %v475_v60 }
  0xd8   :  { %10269 = vmatpush1.bf16.msra.mxu0 %v17283_v61  ;;  %10828 = vmatpush1.bf16.msra.mxu1 %v17285_v62  ;;  %v472_v61 = vld [vmem:[#allocation6 + $0x788] sm:$0xff]  ;;  %v17350_v62 = vcombine.high %v464_v52, %v468_v54  ;;  %v519_v52 = vld [vmem:[#allocation6 + $0x900] sm:$0xff] }
  0xd9   :  { %10270 = vmatprep.subr.bf16.mxu0 %v17292_v63  ;;  %10829 = vmatprep.subr.bf16.mxu1 %v17294_v3  ;;  %v476_v63 = vld [vmem:[#allocation6 + $0x7a8] sm:$0xff]  ;;  %v479_v3 = vld [vmem:[#allocation6 + $0x7c0] sm:$0xff] }
  0xda   :  { %v17357_v10 = vcombine.low %v472_v61, %v476_v63  ;;  %v17363_v19 = vcombine.low %v479_v3, %v483_v4  ;;  %v520_v54 = vld [vmem:[#allocation6 + $0x908] sm:$0xff] }
  0xdc   :  { %10271 = vmatpush1.bf16.msra.mxu0 %v17291_v5  ;;  %10830 = vmatpush1.bf16.msra.mxu1 %v17293_v6  ;;  %v480_v5 = vld [vmem:[#allocation6 + $0x7c8] sm:$0xff]  ;;  %v17358_v6 = vcombine.high %v472_v61, %v476_v63  ;;  %v527_v61 = vld [vmem:[#allocation6 + $0x940] sm:$0xff] }
  0xdd   :  { %10272 = vmatprep.subr.bf16.mxu0 %v17300_v7  ;;  %10831 = vmatprep.subr.bf16.mxu1 %v17302_v11  ;;  %v484_v7 = vld [vmem:[#allocation6 + $0x7e8] sm:$0xff]  ;;  %v17364_v11 = vcombine.high %v479_v3, %v483_v4 }
  0xde   :  { %v528_v63 = vld [vmem:[#allocation6 + $0x948] sm:$0xff] }
  0xe0   :  { %10273 = vmatpush1.bf16.msra.mxu0 %v17299_v13  ;;  %10832 = vmatpush1.bf16.msra.mxu1 %v17301_v14  ;;  %v488_v13 = vld [vmem:[#allocation6 + $0x808] sm:$0xff] }
  0xe1   :  { %10274 = vmatprep.subr.bf16.mxu0 %v17308_v16  ;;  %10833 = vmatprep.subr.bf16.mxu1 %v17310_v20  ;;  %v492_v14 = vld [vmem:[#allocation6 + $0x828] sm:$0xff]  ;;  %v17366_v16 = vcombine.high %v480_v5, %v484_v7  ;;  %v495_v20 = vld [vmem:[#allocation6 + $0x840] sm:$0xff] }
  0xe2   :  { %v17374_v28 = vcombine.high %v488_v13, %v492_v14 }
  0xe4   :  { %10275 = vmatpush1.bf16.msra.mxu0 %v17307_v22  ;;  %10834 = vmatpush1.bf16.msra.mxu1 %v17309_v23  ;;  %v17365_v22 = vcombine.low %v480_v5, %v484_v7  ;;  %v17372_v23 = vcombine.high %v487_v9, %v491_v12  ;;  %v535_v5 = vld [vmem:[#allocation6 + $0x980] sm:$0xff]  ;;  %v536_v7 = vld [vmem:[#allocation6 + $0x988] sm:$0xff] }
  0xe5   :  { %10276 = vmatprep.subr.bf16.mxu0 %v17316_v24  ;;  %10835 = vmatprep.subr.bf16.mxu1 %v17318_v29  ;;  %v496_v24 = vld [vmem:[#allocation6 + $0x848] sm:$0xff]  ;;  %v184_v29 = vld [vmem:[#allocation3 + $0xf8] sm:$0xff] }
  0xe6   :  { %v17382_v34 = vcombine.high %v496_v24, %v500_v26 }
  0xe8   :  { %10277 = vmatpush1.bf16.msra.mxu0 %v17315_v31  ;;  %10836 = vmatpush1.bf16.msra.mxu1 %v17317_v32  ;;  %v17371_v31 = vcombine.low %v487_v9, %v491_v12  ;;  %v17373_v32 = vcombine.low %v488_v13, %v492_v14  ;;  %v543_v13 = vld [vmem:[#allocation6 + $0x9c0] sm:$0xff] }
  0xe9   :  { %10278 = vmatprep.subr.bf16.mxu0 %v17324_v33  ;;  %10837 = vmatprep.subr.bf16.mxu1 %v17326_v37  ;;  %v17380_v33 = vcombine.high %v495_v20, %v499_v21  ;;  %v20121_v37 = vpack.c.bf16 %v184_v29, %v158_v27  ;;  %v547_v14 = vld [vmem:[#allocation6 + $0x9e0] sm:$0xff] }
  0xea   :  { %v17427_v27 = vcombine.low %v543_v13, %v547_v14 }
  0xec   :  { %10279 = vmatpush1.bf16.msra.mxu0 %v17323_v39  ;;  %10838 = vmatpush1.bf16.msra.mxu1 %v17325_v40  ;;  %v508_v39 = vld [vmem:[#allocation6 + $0x8a8] sm:$0xff]  ;;  %v17379_v40 = vcombine.low %v495_v20, %v499_v21  ;;  %v17428_v20 = vcombine.high %v543_v13, %v547_v14 }
  0xed   :  { %10280 = vmatprep.subr.bf16.mxu0 %v17332_v41  ;;  %10839 = vmatprep.subr.bf16.mxu1 %v17334_v45  ;;  %v17381_v41 = vcombine.low %v496_v24, %v500_v26  ;;  %v512_v45 = vld [vmem:[#allocation6 + $0x8c8] sm:$0xff]  ;;  %v17390_v46 = vcombine.high %v504_v38, %v508_v39 }
  0xee   :  { %v552_v24 = vld [vmem:[#allocation6 + $0xa08] sm:$0xff] }
  0xef   :  { %v556_v26 = vld [vmem:[#allocation6 + $0xa28] sm:$0xff] }
  0xf0   :  { %10281 = vmatpush1.bf16.msra.mxu0 %v17331_v47  ;;  %10840 = vmatpush1.bf16.msra.mxu1 %v17333_v48  ;;  %v516_v47 = vld [vmem:[#allocation6 + $0x8e8] sm:$0xff]  ;;  %v17387_v48 = vcombine.low %v503_v35, %v507_v36 }
  0xf1   :  { %10282 = vmatprep.subr.bf16.mxu0 %v17340_v49  ;;  %10841 = vmatprep.subr.bf16.mxu1 %v17342_v53  ;;  %v17389_v49 = vcombine.low %v504_v38, %v508_v39  ;;  %v17398_v51 = vcombine.high %v512_v45, %v516_v47  ;;  %v523_v53 = vld [vmem:[#allocation6 + $0x920] sm:$0xff]  ;;  %v564_v35 = vld [vmem:[#allocation6 + $0xa68] sm:$0xff]  ;;  %v17437_v38 = vcombine.low %v552_v24, %v556_v26 }
  0xf2   :  { %v17404_v59 = vcombine.high %v519_v52, %v523_v53  ;;  %v604_v13 = vld [vmem:[#allocation6 + $0xba8] sm:$0xff] }
  0xf4   :  { %10283 = vmatpush1.bf16.msra.mxu0 %v17339_v55  ;;  %10842 = vmatpush1.bf16.msra.mxu1 %v17341_v56  ;;  %v524_v55 = vld [vmem:[#allocation6 + $0x928] sm:$0xff]  ;;  %v17395_v56 = vcombine.low %v511_v43, %v515_v44 }
  0xf5   :  { %10284 = vmatprep.subr.bf16.mxu0 %v17348_v57  ;;  %10843 = vmatprep.subr.bf16.mxu1 %v17350_v62  ;;  %v17397_v57 = vcombine.low %v512_v45, %v516_v47  ;;  %v17406_v60 = vcombine.high %v520_v54, %v524_v55  ;;  %v531_v62 = vld [vmem:[#allocation6 + $0x960] sm:$0xff]  ;;  %v568_v43 = vld [vmem:[#allocation6 + $0xa88] sm:$0xff] }
  0xf6   :  { %v17412_v3 = vcombine.high %v527_v61, %v531_v62  ;;  %v17411_v9 = vcombine.low %v527_v61, %v531_v62  ;;  %v572_v44 = vld [vmem:[#allocation6 + $0xaa8] sm:$0xff] }
  0xf7   :  { %v588_v61 = vld [vmem:[#allocation6 + $0xb28] sm:$0xff] }
  0xf8   :  { %10285 = vmatpush1.bf16.msra.mxu0 %v17347_v0  ;;  %10844 = vmatpush1.bf16.msra.mxu1 %v17349_v1  ;;  %v532_v0 = vld [vmem:[#allocation6 + $0x968] sm:$0xff]  ;;  %v17403_v1 = vcombine.low %v519_v52, %v523_v53 }
  0xf9   :  { %10286 = vmatprep.subr.bf16.mxu0 %v17356_v2  ;;  %10845 = vmatprep.subr.bf16.mxu1 %v17358_v6  ;;  %v17405_v2 = vcombine.low %v520_v54, %v524_v55  ;;  %v17414_v4 = vcombine.high %v528_v63, %v532_v0  ;;  %v539_v6 = vld [vmem:[#allocation6 + $0x9a0] sm:$0xff]  ;;  %v580_v52 = vld [vmem:[#allocation6 + $0xae8] sm:$0xff]  ;;  %v17453_v54 = vcombine.low %v568_v43, %v572_v44 }
  0xfa   :  { %v17419_v18 = vcombine.low %v535_v5, %v539_v6 }
  0xfc   :  { %10287 = vmatpush1.bf16.msra.mxu0 %v17355_v8  ;;  %10846 = vmatpush1.bf16.msra.mxu1 %v17357_v10  ;;  %v540_v8 = vld [vmem:[#allocation6 + $0x9a8] sm:$0xff]  ;;  %v17413_v10 = vcombine.low %v528_v63, %v532_v0 }
  0xfd   :  { %10288 = vmatprep.subr.bf16.mxu0 %v17364_v11  ;;  %10847 = vmatprep.subr.bf16.mxu1 %v17366_v16  ;;  %v17420_v11 = vcombine.high %v535_v5, %v539_v6  ;;  %v17422_v12 = vcombine.high %v536_v7, %v540_v8  ;;  %v544_v16 = vld [vmem:[#allocation6 + $0x9c8] sm:$0xff] }
  0xfe   :  { %v17430_v21 = vcombine.high %v544_v16, %v548_v17  ;;  %v596_v5 = vld [vmem:[#allocation6 + $0xb68] sm:$0xff] }
 0x100   :  { %10289 = vmatpush1.bf16.msra.mxu0 %v17363_v19  ;;  %10848 = vmatpush1.bf16.msra.mxu1 %v17365_v22  ;;  %v17421_v19 = vcombine.low %v536_v7, %v540_v8  ;;  %v551_v22 = vld [vmem:[#allocation6 + $0xa00] sm:$0xff] }
 0x101   :  { %10301 = vmatprep.subr.bf16.mxu0 %v17372_v23  ;;  %10860 = vmatprep.subr.bf16.mxu1 %v17374_v28  ;;  %v555_v23 = vld [vmem:[#allocation6 + $0xa20] sm:$0xff]  ;;  %v17429_v28 = vcombine.low %v544_v16, %v548_v17 }
 0x102   :  { %v17436_v29 = vcombine.high %v551_v22, %v555_v23  ;;  %v17435_v36 = vcombine.low %v551_v22, %v555_v23  ;;  %v612_v22 = vld [vmem:[#allocation6 + $0xbe8] sm:$0xff] }
 0x103   :  { %10291 = vmatmul.mubr.bf16.vlgmr.msra.gmra.mrb[0].mxu0 %v20119_v30  ;;  %10850 = vmatmul.mubr.bf16.vlgmr.msra.gmra.mrb[0].mxu1 %v20119_v30 }
 0x104   :  { %10302 = vmatpush1.bf16.msra.mxu0 %v17371_v31  ;;  %10861 = vmatpush1.bf16.msra.mxu1 %v17373_v32  ;;  %v17438_v31 = vcombine.high %v552_v24, %v556_v26  ;;  %v559_v32 = vld [vmem:[#allocation6 + $0xa40] sm:$0xff] }
 0x105   :  { %10303 = vmatprep.subr.bf16.mxu0 %v17380_v33  ;;  %10862 = vmatprep.subr.bf16.mxu1 %v17382_v34  ;;  %v563_v33 = vld [vmem:[#allocation6 + $0xa60] sm:$0xff]  ;;  %v560_v34 = vld [vmem:[#allocation6 + $0xa48] sm:$0xff] }
 0x106   :  { %10333 = vmatprep.mubr.bf16.mxu0 %v20121_v37  ;;  %10892 = vmatprep.mubr.bf16.mxu1 %v20121_v37  ;;  %v17444_v39 = vcombine.high %v559_v32, %v563_v33  ;;  %v17443_v45 = vcombine.low %v559_v32, %v563_v33  ;;  %v620_v32 = vld [vmem:[#allocation6 + $0xc28] sm:$0xff] }
 0x108   :  { %10304 = vmatpush1.bf16.msra.mxu0 %v17379_v40  ;;  %10863 = vmatpush1.bf16.msra.mxu1 %v17381_v41  ;;  %v17446_v40 = vcombine.high %v560_v34, %v564_v35  ;;  %v567_v41 = vld [vmem:[#allocation6 + $0xa80] sm:$0xff] }
 0x109   :  { %10305 = vmatprep.subr.bf16.mxu0 %v17388_v42  ;;  %10864 = vmatprep.subr.bf16.mxu1 %v17390_v46  ;;  %v571_v42 = vld [vmem:[#allocation6 + $0xaa0] sm:$0xff]  ;;  %v17445_v46 = vcombine.low %v560_v34, %v564_v35  ;;  %v183_v35 = vld [vmem:[#allocation3 + $0xf0] sm:$0xff] }
 0x10a   :  { %v17452_v47 = vcombine.high %v567_v41, %v571_v42  ;;  %v17451_v53 = vcombine.low %v567_v41, %v571_v42  ;;  %v157_v34 = vld [vmem:[#allocation3 + $0x20] sm:$0xff]  ;;  %v624_v42 = vld [vmem:[#allocation6 + $0xc48] sm:$0xff] }
 0x10b   :  { %v627_v41 = vld [vmem:[#allocation6 + $0xc60] sm:$0xff] }
 0x10c   :  { %10306 = vmatpush1.bf16.msra.mxu0 %v17387_v48  ;;  %10865 = vmatpush1.bf16.msra.mxu1 %v17389_v49  ;;  %v17454_v48 = vcombine.high %v568_v43, %v572_v44  ;;  %v575_v49 = vld [vmem:[#allocation6 + $0xac0] sm:$0xff]  ;;  %v20127_v43 = vpack.c.bf16 %v183_v35, %v157_v34  ;;  %v628_v44 = vld [vmem:[#allocation6 + $0xc68] sm:$0xff] }
 0x10d   :  { %10307 = vmatprep.subr.bf16.mxu0 %v17396_v50  ;;  %10866 = vmatprep.subr.bf16.mxu1 %v17398_v51  ;;  %v579_v50 = vld [vmem:[#allocation6 + $0xae0] sm:$0xff]  ;;  %v576_v51 = vld [vmem:[#allocation6 + $0xac8] sm:$0xff] }
 0x10e   :  { %v17460_v55 = vcombine.high %v575_v49, %v579_v50  ;;  %v17459_v62 = vcombine.low %v575_v49, %v579_v50  ;;  %v17461_v63 = vcombine.low %v576_v51, %v580_v52  ;;  %v17510_v50 = vcombine.high %v624_v42, %v628_v44  ;;  %v672_v34 = vld [vmem:[#allocation6 + $0xdc8] sm:$0xff] }
 0x10f   :  { %v676_v35 = vld [vmem:[#allocation6 + $0xde8] sm:$0xff] }
 0x110   :  { %10308 = vmatpush1.bf16.msra.mxu0 %v17395_v56  ;;  %10867 = vmatpush1.bf16.msra.mxu1 %v17397_v57  ;;  %v17462_v56 = vcombine.high %v576_v51, %v580_v52  ;;  %v583_v57 = vld [vmem:[#allocation6 + $0xb00] sm:$0xff] }
 0x111   :  { %10309 = vmatprep.subr.bf16.mxu0 %v17404_v59  ;;  %10868 = vmatprep.subr.bf16.mxu1 %v17406_v60  ;;  %v587_v59 = vld [vmem:[#allocation6 + $0xb20] sm:$0xff]  ;;  %v584_v60 = vld [vmem:[#allocation6 + $0xb08] sm:$0xff] }
 0x112   :  { %v17468_v0 = vcombine.high %v583_v57, %v587_v59  ;;  %v17467_v6 = vcombine.low %v583_v57, %v587_v59  ;;  %v17469_v7 = vcombine.low %v584_v60, %v588_v61  ;;  %v631_v51 = vld [vmem:[#allocation6 + $0xc80] sm:$0xff]  ;;  %v17509_v57 = vcombine.low %v624_v42, %v628_v44  ;;  %v680_v44 = vld [vmem:[#allocation6 + $0xe08] sm:$0xff] }
 0x113   :  { %v635_v52 = vld [vmem:[#allocation6 + $0xca0] sm:$0xff] }
 0x114   :  { %10310 = vmatpush1.bf16.msra.mxu0 %v17403_v1  ;;  %10869 = vmatpush1.bf16.msra.mxu1 %v17405_v2  ;;  %v17470_v1 = vcombine.high %v584_v60, %v588_v61  ;;  %v591_v2 = vld [vmem:[#allocation6 + $0xb40] sm:$0xff]  ;;  %v17516_v59 = vcombine.high %v631_v51, %v635_v52 }
 0x115   :  { %10311 = vmatprep.subr.bf16.mxu0 %v17412_v3  ;;  %10870 = vmatprep.subr.bf16.mxu1 %v17414_v4  ;;  %v595_v3 = vld [vmem:[#allocation6 + $0xb60] sm:$0xff]  ;;  %v592_v4 = vld [vmem:[#allocation6 + $0xb48] sm:$0xff] }
 0x116   :  { %v17476_v8 = vcombine.high %v591_v2, %v595_v3  ;;  %v17475_v14 = vcombine.low %v591_v2, %v595_v3  ;;  %v17477_v16 = vcombine.low %v592_v4, %v596_v5  ;;  %v639_v61 = vld [vmem:[#allocation6 + $0xcc0] sm:$0xff] }
 0x117   :  { %v683_v42 = vld [vmem:[#allocation6 + $0xe20] sm:$0xff] }
 0x118   :  { %10312 = vmatpush1.bf16.msra.mxu0 %v17411_v9  ;;  %10871 = vmatpush1.bf16.msra.mxu1 %v17413_v10  ;;  %v17478_v9 = vcombine.high %v592_v4, %v596_v5  ;;  %v599_v10 = vld [vmem:[#allocation6 + $0xb80] sm:$0xff] }
 0x119   :  { %10313 = vmatprep.subr.bf16.mxu0 %v17420_v11  ;;  %10872 = vmatprep.subr.bf16.mxu1 %v17422_v12  ;;  %v603_v11 = vld [vmem:[#allocation6 + $0xba0] sm:$0xff]  ;;  %v600_v12 = vld [vmem:[#allocation6 + $0xb88] sm:$0xff] }
 0x11a   :  { %v17484_v17 = vcombine.high %v599_v10, %v603_v11  ;;  %v17483_v23 = vcombine.low %v599_v10, %v603_v11  ;;  %v17485_v24 = vcombine.low %v600_v12, %v604_v13  ;;  %v647_v5 = vld [vmem:[#allocation6 + $0xd00] sm:$0xff] }
 0x11c   :  { %10314 = vmatpush1.bf16.msra.mxu0 %v17419_v18  ;;  %10873 = vmatpush1.bf16.msra.mxu1 %v17421_v19  ;;  %v17486_v18 = vcombine.high %v600_v12, %v604_v13  ;;  %v607_v19 = vld [vmem:[#allocation6 + $0xbc0] sm:$0xff] }
 0x11d   :  { %10315 = vmatprep.subr.bf16.mxu0 %v17428_v20  ;;  %10874 = vmatprep.subr.bf16.mxu1 %v17430_v21  ;;  %v611_v20 = vld [vmem:[#allocation6 + $0xbe0] sm:$0xff]  ;;  %v608_v21 = vld [vmem:[#allocation6 + $0xbc8] sm:$0xff] }
 0x11e   :  { %v17492_v26 = vcombine.high %v607_v19, %v611_v20  ;;  %v17491_v33 = vcombine.low %v607_v19, %v611_v20  ;;  %v655_v13 = vld [vmem:[#allocation6 + $0xd40] sm:$0xff] }
 0x120   :  { %10316 = vmatpush1.bf16.msra.mxu0 %v17427_v27  ;;  %10875 = vmatpush1.bf16.msra.mxu1 %v17429_v28  ;;  %v17494_v27 = vcombine.high %v608_v21, %v612_v22  ;;  %v615_v28 = vld [vmem:[#allocation6 + $0xc00] sm:$0xff] }
 0x121   :  { %10317 = vmatprep.subr.bf16.mxu0 %v17436_v29  ;;  %10876 = vmatprep.subr.bf16.mxu1 %v17438_v31  ;;  %v619_v29 = vld [vmem:[#allocation6 + $0xc20] sm:$0xff]  ;;  %v616_v31 = vld [vmem:[#allocation6 + $0xc08] sm:$0xff] }
 0x124   :  { %10318 = vmatpush1.bf16.msra.mxu0 %v17435_v36  ;;  %10877 = vmatpush1.bf16.msra.mxu1 %v17437_v38  ;;  %v17493_v36 = vcombine.low %v608_v21, %v612_v22  ;;  %v17500_v38 = vcombine.high %v615_v28, %v619_v29  ;;  %v663_v22 = vld [vmem:[#allocation6 + $0xd80] sm:$0xff] }
 0x125   :  { %10319 = vmatprep.subr.bf16.mxu0 %v17444_v39  ;;  %10878 = vmatprep.subr.bf16.mxu1 %v17446_v40  ;;  %v17502_v39 = vcombine.high %v616_v31, %v620_v32  ;;  %v623_v40 = vld [vmem:[#allocation6 + $0xc40] sm:$0xff] }
 0x126   :  { %v17508_v49 = vcombine.high %v623_v40, %v627_v41 }
 0x128   :  { %10320 = vmatpush1.bf16.msra.mxu0 %v17443_v45  ;;  %10879 = vmatpush1.bf16.msra.mxu1 %v17445_v46  ;;  %v160_v45 = vld [vmem:[#allocation3 + $0x38] sm:$0xff]  ;;  %v186_v46 = vld [vmem:[#allocation3 + $0x108] sm:$0xff] }
 0x129   :  { %10321 = vmatprep.subr.bf16.mxu0 %v17452_v47  ;;  %10880 = vmatprep.subr.bf16.mxu1 %v17454_v48  ;;  %v17499_v47 = vcombine.low %v615_v28, %v619_v29  ;;  %v17501_v48 = vcombine.low %v616_v31, %v620_v32  ;;  %v671_v32 = vld [vmem:[#allocation6 + $0xdc0] sm:$0xff] }
 0x12c   :  { %10322 = vmatpush1.bf16.msra.mxu0 %v17451_v53  ;;  %10881 = vmatpush1.bf16.msra.mxu1 %v17453_v54  ;;  %v20129_v53 = vpack.c.bf16 %v186_v46, %v160_v45  ;;  %v632_v54 = vld [vmem:[#allocation6 + $0xc88] sm:$0xff] }
 0x12d   :  { %10323 = vmatprep.subr.bf16.mxu0 %v17460_v55  ;;  %10882 = vmatprep.subr.bf16.mxu1 %v17462_v56  ;;  %v636_v55 = vld [vmem:[#allocation6 + $0xca8] sm:$0xff]  ;;  %v17507_v56 = vcombine.low %v623_v40, %v627_v41  ;;  %v17558_v40 = vcombine.high %v672_v34, %v676_v35  ;;  %v679_v41 = vld [vmem:[#allocation6 + $0xe00] sm:$0xff] }
 0x12e   :  { %v17518_v60 = vcombine.high %v632_v54, %v636_v55  ;;  %v17517_v2 = vcombine.low %v632_v54, %v636_v55  ;;  %v684_v45 = vld [vmem:[#allocation6 + $0xe28] sm:$0xff]  ;;  %v17563_v55 = vcombine.low %v679_v41, %v683_v42 }
 0x12f   :  { %v692_v54 = vld [vmem:[#allocation6 + $0xe68] sm:$0xff] }
 0x130   :  { %10324 = vmatpush1.bf16.msra.mxu0 %v17459_v62  ;;  %10883 = vmatpush1.bf16.msra.mxu1 %v17461_v63  ;;  %v643_v62 = vld [vmem:[#allocation6 + $0xce0] sm:$0xff]  ;;  %v640_v63 = vld [vmem:[#allocation6 + $0xcc8] sm:$0xff] }
 0x131   :  { %10325 = vmatprep.subr.bf16.mxu0 %v17468_v0  ;;  %10884 = vmatprep.subr.bf16.mxu1 %v17470_v1  ;;  %v644_v0 = vld [vmem:[#allocation6 + $0xce8] sm:$0xff]  ;;  %v17515_v1 = vcombine.low %v631_v51, %v635_v52  ;;  %v17524_v3 = vcombine.high %v639_v61, %v643_v62  ;;  %v691_v51 = vld [vmem:[#allocation6 + $0xe60] sm:$0xff] }
 0x132   :  { %v17526_v4 = vcombine.high %v640_v63, %v644_v0  ;;  %v17525_v10 = vcombine.low %v640_v63, %v644_v0  ;;  %v688_v52 = vld [vmem:[#allocation6 + $0xe48] sm:$0xff] }
 0x133   :  { %v700_v63 = vld [vmem:[#allocation6 + $0xea8] sm:$0xff] }
 0x134   :  { %10326 = vmatpush1.bf16.msra.mxu0 %v17467_v6  ;;  %10885 = vmatpush1.bf16.msra.mxu1 %v17469_v7  ;;  %v651_v6 = vld [vmem:[#allocation6 + $0xd20] sm:$0xff]  ;;  %v648_v7 = vld [vmem:[#allocation6 + $0xd08] sm:$0xff] }
 0x135   :  { %10327 = vmatprep.subr.bf16.mxu0 %v17476_v8  ;;  %10886 = vmatprep.subr.bf16.mxu1 %v17478_v9  ;;  %v652_v8 = vld [vmem:[#allocation6 + $0xd28] sm:$0xff]  ;;  %v17523_v9 = vcombine.low %v639_v61, %v643_v62  ;;  %v17532_v11 = vcombine.high %v647_v5, %v651_v6  ;;  %v699_v61 = vld [vmem:[#allocation6 + $0xea0] sm:$0xff] }
 0x136   :  { %v17534_v12 = vcombine.high %v648_v7, %v652_v8  ;;  %v17533_v19 = vcombine.low %v648_v7, %v652_v8  ;;  %v696_v62 = vld [vmem:[#allocation6 + $0xe88] sm:$0xff] }
 0x137   :  { %v708_v7 = vld [vmem:[#allocation6 + $0xee8] sm:$0xff] }
 0x138   :  { %10328 = vmatpush1.bf16.msra.mxu0 %v17475_v14  ;;  %10887 = vmatpush1.bf16.msra.mxu1 %v17477_v16  ;;  %v659_v14 = vld [vmem:[#allocation6 + $0xd60] sm:$0xff]  ;;  %v656_v16 = vld [vmem:[#allocation6 + $0xd48] sm:$0xff] }
 0x139   :  { %10329 = vmatprep.subr.bf16.mxu0 %v17484_v17  ;;  %10888 = vmatprep.subr.bf16.mxu1 %v17486_v18  ;;  %v660_v17 = vld [vmem:[#allocation6 + $0xd68] sm:$0xff]  ;;  %v17531_v18 = vcombine.low %v647_v5, %v651_v6  ;;  %v17540_v20 = vcombine.high %v655_v13, %v659_v14  ;;  %v707_v5 = vld [vmem:[#allocation6 + $0xee0] sm:$0xff] }
 0x13a   :  { %v17542_v21 = vcombine.high %v656_v16, %v660_v17  ;;  %v17541_v28 = vcombine.low %v656_v16, %v660_v17  ;;  %v704_v6 = vld [vmem:[#allocation6 + $0xec8] sm:$0xff] }
 0x13b   :  { %v716_v16 = vld [vmem:[#allocation6 + $0xf28] sm:$0xff] }
 0x13c   :  { %10330 = vmatpush1.bf16.msra.mxu0 %v17483_v23  ;;  %10889 = vmatpush1.bf16.msra.mxu1 %v17485_v24  ;;  %v667_v23 = vld [vmem:[#allocation6 + $0xda0] sm:$0xff]  ;;  %v664_v24 = vld [vmem:[#allocation6 + $0xd88] sm:$0xff] }
 0x13d   :  { %10331 = vmatprep.subr.bf16.mxu0 %v17492_v26  ;;  %10890 = vmatprep.subr.bf16.mxu1 %v17494_v27  ;;  %v668_v26 = vld [vmem:[#allocation6 + $0xda8] sm:$0xff]  ;;  %v17539_v27 = vcombine.low %v655_v13, %v659_v14  ;;  %v17548_v29 = vcombine.high %v663_v22, %v667_v23  ;;  %v715_v13 = vld [vmem:[#allocation6 + $0xf20] sm:$0xff] }
 0x13e   :  { %v17550_v31 = vcombine.high %v664_v24, %v668_v26  ;;  %v712_v14 = vld [vmem:[#allocation6 + $0xf08] sm:$0xff] }
 0x140   :  { %10332 = vmatpush1.bf16.msra.mxu0 %v17491_v33  ;;  %10891 = vmatpush1.bf16.msra.mxu1 %v17493_v36  ;;  %v675_v33 = vld [vmem:[#allocation6 + $0xde0] sm:$0xff]  ;;  %v17547_v36 = vcombine.low %v663_v22, %v667_v23  ;;  %v720_v23 = vld [vmem:[#allocation6 + $0xf48] sm:$0xff] }
 0x141   :  { %10344 = vmatprep.subr.bf16.mxu0 %v17500_v38  ;;  %10903 = vmatprep.subr.bf16.mxu1 %v17502_v39  ;;  %v17549_v38 = vcombine.low %v664_v24, %v668_v26  ;;  %v17556_v39 = vcombine.high %v671_v32, %v675_v33  ;;  %v17555_v46 = vcombine.low %v671_v32, %v675_v33  ;;  %v723_v22 = vld [vmem:[#allocation6 + $0xf60] sm:$0xff]  ;;  %v724_v24 = vld [vmem:[#allocation6 + $0xf68] sm:$0xff] }
 0x142   :  { %v731_v32 = vld [vmem:[#allocation6 + $0xfa0] sm:$0xff]  ;;  %v728_v33 = vld [vmem:[#allocation6 + $0xf88] sm:$0xff] }
 0x143   :  { %10334 = vmatmul.mubr.bf16.vlgmr.msra.gmra.mrb[0].mxu0 %v20127_v43  ;;  %10893 = vmatmul.mubr.bf16.vlgmr.msra.gmra.mrb[0].mxu1 %v20127_v43 }
 0x144   :  { %10345 = vmatpush1.bf16.msra.mxu0 %v17499_v47  ;;  %10904 = vmatpush1.bf16.msra.mxu1 %v17501_v48  ;;  %v17557_v47 = vcombine.low %v672_v34, %v676_v35  ;;  %v17564_v48 = vcombine.high %v679_v41, %v683_v42  ;;  %v732_v34 = vld [vmem:[#allocation6 + $0xfa8] sm:$0xff]  ;;  %v739_v41 = vld [vmem:[#allocation6 + $0xfe0] sm:$0xff] }
 0x145   :  { %10346 = vmatprep.subr.bf16.mxu0 %v17508_v49  ;;  %10905 = vmatprep.subr.bf16.mxu1 %v17510_v50  ;;  %v17566_v49 = vcombine.high %v680_v44, %v684_v45  ;;  %v687_v50 = vld [vmem:[#allocation6 + $0xe40] sm:$0xff]  ;;  %v736_v42 = vld [vmem:[#allocation6 + $0xfc8] sm:$0xff] }
 0x146   :  { %10376 = vmatprep.mubr.bf16.mxu0 %v20129_v53  ;;  %10935 = vmatprep.mubr.bf16.mxu1 %v20129_v53  ;;  %v17571_v0 = vcombine.low %v687_v50, %v691_v51 }
 0x148   :  { %10347 = vmatpush1.bf16.msra.mxu0 %v17507_v56  ;;  %10906 = vmatpush1.bf16.msra.mxu1 %v17509_v57  ;;  %v17565_v56 = vcombine.low %v680_v44, %v684_v45  ;;  %v17572_v57 = vcombine.high %v687_v50, %v691_v51  ;;  %v740_v44 = vld [vmem:[#allocation6 + $0xfe8] sm:$0xff]  ;;  %v747_v50 = vld [vmem:[#allocation6 + $0x1020] sm:$0xff] }
 0x149   :  { %10348 = vmatprep.subr.bf16.mxu0 %v17516_v59  ;;  %10907 = vmatprep.subr.bf16.mxu1 %v17518_v60  ;;  %v17574_v59 = vcombine.high %v688_v52, %v692_v54  ;;  %v695_v60 = vld [vmem:[#allocation6 + $0xe80] sm:$0xff]  ;;  %v744_v51 = vld [vmem:[#allocation6 + $0x1008] sm:$0xff] }
 0x14a   :  { %v17579_v8 = vcombine.low %v695_v60, %v699_v61 }
 0x14c   :  { %10349 = vmatpush1.bf16.msra.mxu0 %v17515_v1  ;;  %10908 = vmatpush1.bf16.msra.mxu1 %v17517_v2  ;;  %v17573_v1 = vcombine.low %v688_v52, %v692_v54  ;;  %v17580_v2 = vcombine.high %v695_v60, %v699_v61  ;;  %v748_v52 = vld [vmem:[#allocation6 + $0x1028] sm:$0xff]  ;;  %v751_v61 = vld [vmem:[#allocation6 + $0x1040] sm:$0xff] }
 0x14d   :  { %10350 = vmatprep.subr.bf16.mxu0 %v17524_v3  ;;  %10909 = vmatprep.subr.bf16.mxu1 %v17526_v4  ;;  %v17582_v3 = vcombine.high %v696_v62, %v700_v63  ;;  %v703_v4 = vld [vmem:[#allocation6 + $0xec0] sm:$0xff]  ;;  %v17630_v60 = vcombine.high %v744_v51, %v748_v52 }
 0x14e   :  { %v17587_v17 = vcombine.low %v703_v4, %v707_v5 }
 0x150   :  { %10351 = vmatpush1.bf16.msra.mxu0 %v17523_v9  ;;  %10910 = vmatpush1.bf16.msra.mxu1 %v17525_v10  ;;  %v17581_v9 = vcombine.low %v696_v62, %v700_v63  ;;  %v17588_v10 = vcombine.high %v703_v4, %v707_v5  ;;  %v755_v62 = vld [vmem:[#allocation6 + $0x1060] sm:$0xff]  ;;  %v752_v63 = vld [vmem:[#allocation6 + $0x1048] sm:$0xff]  ;;  %v17629_v5 = vcombine.low %v744_v51, %v748_v52 }
 0x151   :  { %10352 = vmatprep.subr.bf16.mxu0 %v17532_v11  ;;  %10911 = vmatprep.subr.bf16.mxu1 %v17534_v12  ;;  %v17590_v11 = vcombine.high %v704_v6, %v708_v7  ;;  %v711_v12 = vld [vmem:[#allocation6 + $0xf00] sm:$0xff] }
 0x152   :  { %v17595_v26 = vcombine.low %v711_v12, %v715_v13 }
 0x154   :  { %10353 = vmatpush1.bf16.msra.mxu0 %v17531_v18  ;;  %10912 = vmatpush1.bf16.msra.mxu1 %v17533_v19  ;;  %v17589_v18 = vcombine.low %v704_v6, %v708_v7  ;;  %v17596_v19 = vcombine.high %v711_v12, %v715_v13  ;;  %v17636_v6 = vcombine.high %v751_v61, %v755_v62  ;;  %v764_v12 = vld [vmem:[#allocation6 + $0x10a8] sm:$0xff] }
 0x155   :  { %10354 = vmatprep.subr.bf16.mxu0 %v17540_v20  ;;  %10913 = vmatprep.subr.bf16.mxu1 %v17542_v21  ;;  %v17598_v20 = vcombine.high %v712_v14, %v716_v16  ;;  %v719_v21 = vld [vmem:[#allocation6 + $0xf40] sm:$0xff]  ;;  %v17635_v13 = vcombine.low %v751_v61, %v755_v62 }
 0x156   :  { %v17603_v35 = vcombine.low %v719_v21, %v723_v22 }
 0x158   :  { %10355 = vmatpush1.bf16.msra.mxu0 %v17539_v27  ;;  %10914 = vmatpush1.bf16.msra.mxu1 %v17541_v28  ;;  %v17597_v27 = vcombine.low %v712_v14, %v716_v16  ;;  %v17604_v28 = vcombine.high %v719_v21, %v723_v22  ;;  %v772_v21 = vld [vmem:[#allocation6 + $0x10e8] sm:$0xff] }
 0x159   :  { %10356 = vmatprep.subr.bf16.mxu0 %v17548_v29  ;;  %10915 = vmatprep.subr.bf16.mxu1 %v17550_v31  ;;  %v17606_v29 = vcombine.high %v720_v23, %v724_v24  ;;  %v727_v31 = vld [vmem:[#allocation6 + $0xf80] sm:$0xff] }
 0x15a   :  { %v17611_v45 = vcombine.low %v727_v31, %v731_v32 }
 0x15c   :  { %10357 = vmatpush1.bf16.msra.mxu0 %v17547_v36  ;;  %10916 = vmatpush1.bf16.msra.mxu1 %v17549_v38  ;;  %v17605_v36 = vcombine.low %v720_v23, %v724_v24  ;;  %v17612_v38 = vcombine.high %v727_v31, %v731_v32  ;;  %v780_v31 = vld [vmem:[#allocation6 + $0x1128] sm:$0xff] }
 0x15d   :  { %10358 = vmatprep.subr.bf16.mxu0 %v17556_v39  ;;  %10917 = vmatprep.subr.bf16.mxu1 %v17558_v40  ;;  %v17614_v39 = vcombine.high %v728_v33, %v732_v34  ;;  %v735_v40 = vld [vmem:[#allocation6 + $0xfc0] sm:$0xff] }
 0x15e   :  { %v17619_v54 = vcombine.low %v735_v40, %v739_v41 }
 0x160   :  { %10359 = vmatpush1.bf16.msra.mxu0 %v17555_v46  ;;  %10918 = vmatpush1.bf16.msra.mxu1 %v17557_v47  ;;  %v17613_v46 = vcombine.low %v728_v33, %v732_v34  ;;  %v17620_v47 = vcombine.high %v735_v40, %v739_v41  ;;  %v788_v40 = vld [vmem:[#allocation6 + $0x1168] sm:$0xff] }
 0x161   :  { %10360 = vmatprep.subr.bf16.mxu0 %v17564_v48  ;;  %10919 = vmatprep.subr.bf16.mxu1 %v17566_v49  ;;  %v17622_v48 = vcombine.high %v736_v42, %v740_v44  ;;  %v743_v49 = vld [vmem:[#allocation6 + $0x1000] sm:$0xff] }
 0x162   :  { %v17627_v4 = vcombine.low %v743_v49, %v747_v50 }
 0x164   :  { %10361 = vmatpush1.bf16.msra.mxu0 %v17563_v55  ;;  %10920 = vmatpush1.bf16.msra.mxu1 %v17565_v56  ;;  %v159_v55 = vld [vmem:[#allocation3 + $0x30] sm:$0xff]  ;;  %v185_v56 = vld [vmem:[#allocation3 + $0x100] sm:$0xff] }
 0x165   :  { %10362 = vmatprep.subr.bf16.mxu0 %v17572_v57  ;;  %10921 = vmatprep.subr.bf16.mxu1 %v17574_v59  ;;  %v17621_v57 = vcombine.low %v736_v42, %v740_v44  ;;  %v17628_v59 = vcombine.high %v743_v49, %v747_v50  ;;  %v796_v49 = vld [vmem:[#allocation6 + $0x11a8] sm:$0xff] }
 0x168   :  { %10363 = vmatpush1.bf16.msra.mxu0 %v17571_v0  ;;  %10922 = vmatpush1.bf16.msra.mxu1 %v17573_v1  ;;  %v20135_v0 = vpack.c.bf16 %v185_v56, %v159_v55  ;;  %v756_v1 = vld [vmem:[#allocation6 + $0x1068] sm:$0xff]  ;;  %v799_v55 = vld [vmem:[#allocation6 + $0x11c0] sm:$0xff] }
 0x169   :  { %10364 = vmatprep.subr.bf16.mxu0 %v17580_v2  ;;  %10923 = vmatprep.subr.bf16.mxu1 %v17582_v3  ;;  %v162_v2 = vld [vmem:[#allocation3 + $0x48] sm:$0xff]  ;;  %v188_v3 = vld [vmem:[#allocation3 + $0x118] sm:$0xff]  ;;  %v17638_v7 = vcombine.high %v752_v63, %v756_v1  ;;  %v17637_v14 = vcombine.low %v752_v63, %v756_v1  ;;  %v803_v56 = vld [vmem:[#allocation6 + $0x11e0] sm:$0xff] }
 0x16a   :  { %v17684_v62 = vcombine.high %v799_v55, %v803_v56  ;;  %v807_v1 = vld [vmem:[#allocation6 + $0x1200] sm:$0xff] }
 0x16c   :  { %10365 = vmatpush1.bf16.msra.mxu0 %v17579_v8  ;;  %10924 = vmatpush1.bf16.msra.mxu1 %v17581_v9  ;;  %v759_v8 = vld [vmem:[#allocation6 + $0x1080] sm:$0xff] }
 0x16d   :  { %10366 = vmatprep.subr.bf16.mxu0 %v17588_v10  ;;  %10925 = vmatprep.subr.bf16.mxu1 %v17590_v11  ;;  %v763_v9 = vld [vmem:[#allocation6 + $0x10a0] sm:$0xff]  ;;  %v20137_v10 = vpack.c.bf16 %v188_v3, %v162_v2  ;;  %v760_v11 = vld [vmem:[#allocation6 + $0x1088] sm:$0xff] }
 0x16e   :  { %v17644_v16 = vcombine.high %v759_v8, %v763_v9  ;;  %v17643_v22 = vcombine.low %v759_v8, %v763_v9  ;;  %v17645_v23 = vcombine.low %v760_v11, %v764_v12  ;;  %v811_v2 = vld [vmem:[#allocation6 + $0x1220] sm:$0xff]  ;;  %v808_v3 = vld [vmem:[#allocation6 + $0x1208] sm:$0xff] }
 0x16f   :  { %v815_v9 = vld [vmem:[#allocation6 + $0x1240] sm:$0xff] }
 0x170   :  { %10367 = vmatpush1.bf16.msra.mxu0 %v17587_v17  ;;  %10926 = vmatpush1.bf16.msra.mxu1 %v17589_v18  ;;  %v17646_v17 = vcombine.high %v760_v11, %v764_v12  ;;  %v767_v18 = vld [vmem:[#allocation6 + $0x10c0] sm:$0xff]  ;;  %v816_v12 = vld [vmem:[#allocation6 + $0x1248] sm:$0xff] }
 0x171   :  { %10368 = vmatprep.subr.bf16.mxu0 %v17596_v19  ;;  %10927 = vmatprep.subr.bf16.mxu1 %v17598_v20  ;;  %v771_v19 = vld [vmem:[#allocation6 + $0x10e0] sm:$0xff]  ;;  %v768_v20 = vld [vmem:[#allocation6 + $0x10c8] sm:$0xff] }
 0x172   :  { %v17652_v24 = vcombine.high %v767_v18, %v771_v19  ;;  %v17651_v32 = vcombine.low %v767_v18, %v771_v19  ;;  %v17653_v33 = vcombine.low %v768_v20, %v772_v21  ;;  %v819_v11 = vld [vmem:[#allocation6 + $0x1260] sm:$0xff] }
 0x173   :  { %v823_v19 = vld [vmem:[#allocation6 + $0x1280] sm:$0xff] }
 0x174   :  { %10369 = vmatpush1.bf16.msra.mxu0 %v17595_v26  ;;  %10928 = vmatpush1.bf16.msra.mxu1 %v17597_v27  ;;  %v17654_v26 = vcombine.high %v768_v20, %v772_v21  ;;  %v775_v27 = vld [vmem:[#allocation6 + $0x1100] sm:$0xff]  ;;  %v824_v21 = vld [vmem:[#allocation6 + $0x1288] sm:$0xff] }
 0x175   :  { %10370 = vmatprep.subr.bf16.mxu0 %v17604_v28  ;;  %10929 = vmatprep.subr.bf16.mxu1 %v17606_v29  ;;  %v779_v28 = vld [vmem:[#allocation6 + $0x1120] sm:$0xff]  ;;  %v776_v29 = vld [vmem:[#allocation6 + $0x1108] sm:$0xff] }
 0x176   :  { %v17660_v34 = vcombine.high %v775_v27, %v779_v28  ;;  %v17659_v41 = vcombine.low %v775_v27, %v779_v28  ;;  %v17661_v42 = vcombine.low %v776_v29, %v780_v31  ;;  %v827_v20 = vld [vmem:[#allocation6 + $0x12a0] sm:$0xff] }
 0x177   :  { %v831_v28 = vld [vmem:[#allocation6 + $0x12c0] sm:$0xff] }
 0x178   :  { %10371 = vmatpush1.bf16.msra.mxu0 %v17603_v35  ;;  %10930 = vmatpush1.bf16.msra.mxu1 %v17605_v36  ;;  %v17662_v35 = vcombine.high %v776_v29, %v780_v31  ;;  %v783_v36 = vld [vmem:[#allocation6 + $0x1140] sm:$0xff]  ;;  %v832_v31 = vld [vmem:[#allocation6 + $0x12c8] sm:$0xff] }
 0x179   :  { %10372 = vmatprep.subr.bf16.mxu0 %v17612_v38  ;;  %10931 = vmatprep.subr.bf16.mxu1 %v17614_v39  ;;  %v787_v38 = vld [vmem:[#allocation6 + $0x1160] sm:$0xff]  ;;  %v784_v39 = vld [vmem:[#allocation6 + $0x1148] sm:$0xff] }
 0x17a   :  { %v17668_v44 = vcombine.high %v783_v36, %v787_v38  ;;  %v17667_v50 = vcombine.low %v783_v36, %v787_v38  ;;  %v17669_v51 = vcombine.low %v784_v39, %v788_v40  ;;  %v835_v29 = vld [vmem:[#allocation6 + $0x12e0] sm:$0xff] }
 0x17b   :  { %v839_v38 = vld [vmem:[#allocation6 + $0x1300] sm:$0xff] }
 0x17c   :  { %10373 = vmatpush1.bf16.msra.mxu0 %v17611_v45  ;;  %10932 = vmatpush1.bf16.msra.mxu1 %v17613_v46  ;;  %v17670_v45 = vcombine.high %v784_v39, %v788_v40  ;;  %v791_v46 = vld [vmem:[#allocation6 + $0x1180] sm:$0xff]  ;;  %v840_v40 = vld [vmem:[#allocation6 + $0x1308] sm:$0xff] }
 0x17d   :  { %10374 = vmatprep.subr.bf16.mxu0 %v17620_v47  ;;  %10933 = vmatprep.subr.bf16.mxu1 %v17622_v48  ;;  %v795_v47 = vld [vmem:[#allocation6 + $0x11a0] sm:$0xff]  ;;  %v792_v48 = vld [vmem:[#allocation6 + $0x1188] sm:$0xff] }
 0x17e   :  { %v17676_v52 = vcombine.high %v791_v46, %v795_v47  ;;  %v17677_v61 = vcombine.low %v792_v48, %v796_v49  ;;  %v843_v39 = vld [vmem:[#allocation6 + $0x1320] sm:$0xff] }
 0x180   :  { %10375 = vmatpush1.bf16.msra.mxu0 %v17619_v54  ;;  %10934 = vmatpush1.bf16.msra.mxu1 %v17621_v57  ;;  %v17678_v54 = vcombine.high %v792_v48, %v796_v49  ;;  %v800_v57 = vld [vmem:[#allocation6 + $0x11c8] sm:$0xff]  ;;  %v851_v48 = vld [vmem:[#allocation6 + $0x1360] sm:$0xff] }
 0x181   :  { %10387 = vmatprep.subr.bf16.mxu0 %v17628_v59  ;;  %10946 = vmatprep.subr.bf16.mxu1 %v17630_v60  ;;  %v804_v59 = vld [vmem:[#allocation6 + $0x11e8] sm:$0xff]  ;;  %v17675_v60 = vcombine.low %v791_v46, %v795_v47  ;;  %v847_v47 = vld [vmem:[#allocation6 + $0x1340] sm:$0xff] }
 0x182   :  { %v17686_v63 = vcombine.high %v800_v57, %v804_v59  ;;  %v848_v49 = vld [vmem:[#allocation6 + $0x1348] sm:$0xff] }
 0x183   :  { %10377 = vmatmul.mubr.bf16.vlgmr.msra.gmra.mrb[0].mxu0 %v20135_v0  ;;  %10936 = vmatmul.mubr.bf16.vlgmr.msra.gmra.mrb[0].mxu1 %v20135_v0 }
 0x184   :  { %10388 = vmatpush1.bf16.msra.mxu0 %v17627_v4  ;;  %10947 = vmatpush1.bf16.msra.mxu1 %v17629_v5  ;;  %v812_v4 = vld [vmem:[#allocation6 + $0x1228] sm:$0xff]  ;;  %v17683_v5 = vcombine.low %v799_v55, %v803_v56  ;;  %v855_v56 = vld [vmem:[#allocation6 + $0x1380] sm:$0xff] }
 0x185   :  { %10389 = vmatprep.subr.bf16.mxu0 %v17636_v6  ;;  %10948 = vmatprep.subr.bf16.mxu1 %v17638_v7  ;;  %v17685_v6 = vcombine.low %v800_v57, %v804_v59  ;;  %v17692_v7 = vcombine.high %v807_v1, %v811_v2  ;;  %v17694_v8 = vcombine.high %v808_v3, %v812_v4  ;;  %v859_v57 = vld [vmem:[#allocation6 + $0x13a0] sm:$0xff]  ;;  %v856_v59 = vld [vmem:[#allocation6 + $0x1388] sm:$0xff] }
 0x186   :  { %10419 = vmatprep.mubr.bf16.mxu0 %v20137_v10  ;;  %10978 = vmatprep.mubr.bf16.mxu1 %v20137_v10 }
 0x188   :  { %10390 = vmatpush1.bf16.msra.mxu0 %v17635_v13  ;;  %10949 = vmatpush1.bf16.msra.mxu1 %v17637_v14  ;;  %v820_v13 = vld [vmem:[#allocation6 + $0x1268] sm:$0xff]  ;;  %v17691_v14 = vcombine.low %v807_v1, %v811_v2  ;;  %v863_v2 = vld [vmem:[#allocation6 + $0x13c0] sm:$0xff] }
 0x189   :  { %10391 = vmatprep.subr.bf16.mxu0 %v17644_v16  ;;  %10950 = vmatprep.subr.bf16.mxu1 %v17646_v17  ;;  %v17693_v16 = vcombine.low %v808_v3, %v812_v4  ;;  %v17700_v17 = vcombine.high %v815_v9, %v819_v11  ;;  %v17702_v18 = vcombine.high %v816_v12, %v820_v13  ;;  %v867_v3 = vld [vmem:[#allocation6 + $0x13e0] sm:$0xff]  ;;  %v864_v4 = vld [vmem:[#allocation6 + $0x13c8] sm:$0xff] }
 0x18c   :  { %10392 = vmatpush1.bf16.msra.mxu0 %v17643_v22  ;;  %10951 = vmatpush1.bf16.msra.mxu1 %v17645_v23  ;;  %v828_v22 = vld [vmem:[#allocation6 + $0x12a8] sm:$0xff]  ;;  %v17699_v23 = vcombine.low %v815_v9, %v819_v11  ;;  %v871_v11 = vld [vmem:[#allocation6 + $0x1400] sm:$0xff] }
 0x18d   :  { %10393 = vmatprep.subr.bf16.mxu0 %v17652_v24  ;;  %10952 = vmatprep.subr.bf16.mxu1 %v17654_v26  ;;  %v17701_v24 = vcombine.low %v816_v12, %v820_v13  ;;  %v17708_v26 = vcombine.high %v823_v19, %v827_v20  ;;  %v17710_v27 = vcombine.high %v824_v21, %v828_v22  ;;  %v875_v12 = vld [vmem:[#allocation6 + $0x1420] sm:$0xff]  ;;  %v872_v13 = vld [vmem:[#allocation6 + $0x1408] sm:$0xff] }
 0x190   :  { %10394 = vmatpush1.bf16.msra.mxu0 %v17651_v32  ;;  %10953 = vmatpush1.bf16.msra.mxu1 %v17653_v33  ;;  %v836_v32 = vld [vmem:[#allocation6 + $0x12e8] sm:$0xff]  ;;  %v17707_v33 = vcombine.low %v823_v19, %v827_v20  ;;  %v17756_v20 = vcombine.high %v871_v11, %v875_v12 }
 0x191   :  { %10395 = vmatprep.subr.bf16.mxu0 %v17660_v34  ;;  %10954 = vmatprep.subr.bf16.mxu1 %v17662_v35  ;;  %v17709_v34 = vcombine.low %v824_v21, %v828_v22  ;;  %v17716_v35 = vcombine.high %v831_v28, %v835_v29  ;;  %v17718_v36 = vcombine.high %v832_v31, %v836_v32  ;;  %v879_v22 = vld [vmem:[#allocation6 + $0x1440] sm:$0xff] }
 0x194   :  { %10396 = vmatpush1.bf16.msra.mxu0 %v17659_v41  ;;  %10955 = vmatpush1.bf16.msra.mxu1 %v17661_v42  ;;  %v844_v41 = vld [vmem:[#allocation6 + $0x1328] sm:$0xff]  ;;  %v17715_v42 = vcombine.low %v831_v28, %v835_v29  ;;  %v164_v28 = vld [vmem:[#allocation3 + $0x58] sm:$0xff] }
 0x195   :  { %10397 = vmatprep.subr.bf16.mxu0 %v17668_v44  ;;  %10956 = vmatprep.subr.bf16.mxu1 %v17670_v45  ;;  %v17717_v44 = vcombine.low %v832_v31, %v836_v32  ;;  %v17724_v45 = vcombine.high %v839_v38, %v843_v39  ;;  %v17726_v46 = vcombine.high %v840_v40, %v844_v41  ;;  %v190_v29 = vld [vmem:[#allocation3 + $0x128] sm:$0xff] }
 0x196   :  { %v17755_v31 = vcombine.low %v871_v11, %v875_v12  ;;  %v923_v11 = vld [vmem:[#allocation6 + $0x15a0] sm:$0xff]  ;;  %v920_v12 = vld [vmem:[#allocation6 + $0x1588] sm:$0xff] }
 0x198   :  { %10398 = vmatpush1.bf16.msra.mxu0 %v17667_v50  ;;  %10957 = vmatpush1.bf16.msra.mxu1 %v17669_v51  ;;  %v852_v50 = vld [vmem:[#allocation6 + $0x1368] sm:$0xff]  ;;  %v17723_v51 = vcombine.low %v839_v38, %v843_v39  ;;  %v20145_v38 = vpack.c.bf16 %v190_v29, %v164_v28  ;;  %v935_v29 = vld [vmem:[#allocation6 + $0x1600] sm:$0xff] }
 0x199   :  { %10399 = vmatprep.subr.bf16.mxu0 %v17676_v52  ;;  %10958 = vmatprep.subr.bf16.mxu1 %v17678_v54  ;;  %v17725_v52 = vcombine.low %v840_v40, %v844_v41  ;;  %v17732_v54 = vcombine.high %v847_v47, %v851_v48  ;;  %v17734_v55 = vcombine.high %v848_v49, %v852_v50  ;;  %v888_v39 = vld [vmem:[#allocation6 + $0x1488] sm:$0xff] }
 0x19a   :  { %v892_v40 = vld [vmem:[#allocation6 + $0x14a8] sm:$0xff] }
 0x19c   :  { %10400 = vmatpush1.bf16.msra.mxu0 %v17675_v60  ;;  %10959 = vmatpush1.bf16.msra.mxu1 %v17677_v61  ;;  %v860_v60 = vld [vmem:[#allocation6 + $0x13a8] sm:$0xff]  ;;  %v17731_v61 = vcombine.low %v847_v47, %v851_v48  ;;  %v899_v47 = vld [vmem:[#allocation6 + $0x14e0] sm:$0xff] }
 0x19d   :  { %10401 = vmatprep.subr.bf16.mxu0 %v17684_v62  ;;  %10960 = vmatprep.subr.bf16.mxu1 %v17686_v63  ;;  %v17733_v62 = vcombine.low %v848_v49, %v852_v50  ;;  %v17740_v63 = vcombine.high %v855_v56, %v859_v57  ;;  %v17742_v1 = vcombine.high %v856_v59, %v860_v60  ;;  %v896_v48 = vld [vmem:[#allocation6 + $0x14c8] sm:$0xff] }
 0x19e   :  { %v900_v49 = vld [vmem:[#allocation6 + $0x14e8] sm:$0xff] }
 0x1a0   :  { %10402 = vmatpush1.bf16.msra.mxu0 %v17683_v5  ;;  %10961 = vmatpush1.bf16.msra.mxu1 %v17685_v6  ;;  %v868_v5 = vld [vmem:[#allocation6 + $0x13e8] sm:$0xff]  ;;  %v17739_v6 = vcombine.low %v855_v56, %v859_v57  ;;  %v907_v56 = vld [vmem:[#allocation6 + $0x1520] sm:$0xff] }
 0x1a1   :  { %10403 = vmatprep.subr.bf16.mxu0 %v17692_v7  ;;  %10962 = vmatprep.subr.bf16.mxu1 %v17694_v8  ;;  %v17741_v7 = vcombine.low %v856_v59, %v860_v60  ;;  %v17748_v8 = vcombine.high %v863_v2, %v867_v3  ;;  %v17750_v9 = vcombine.high %v864_v4, %v868_v5  ;;  %v904_v57 = vld [vmem:[#allocation6 + $0x1508] sm:$0xff] }
 0x1a2   :  { %v17749_v19 = vcombine.low %v864_v4, %v868_v5  ;;  %v908_v59 = vld [vmem:[#allocation6 + $0x1528] sm:$0xff] }
 0x1a3   :  { %v916_v4 = vld [vmem:[#allocation6 + $0x1568] sm:$0xff] }
 0x1a4   :  { %10404 = vmatpush1.bf16.msra.mxu0 %v17691_v14  ;;  %10963 = vmatpush1.bf16.msra.mxu1 %v17693_v16  ;;  %v876_v14 = vld [vmem:[#allocation6 + $0x1428] sm:$0xff]  ;;  %v17747_v16 = vcombine.low %v863_v2, %v867_v3  ;;  %v915_v2 = vld [vmem:[#allocation6 + $0x1560] sm:$0xff] }
 0x1a5   :  { %10405 = vmatprep.subr.bf16.mxu0 %v17700_v17  ;;  %10964 = vmatprep.subr.bf16.mxu1 %v17702_v18  ;;  %v161_v17 = vld [vmem:[#allocation3 + $0x40] sm:$0xff]  ;;  %v187_v18 = vld [vmem:[#allocation3 + $0x110] sm:$0xff]  ;;  %v17758_v21 = vcombine.high %v872_v13, %v876_v14  ;;  %v17757_v32 = vcombine.low %v872_v13, %v876_v14  ;;  %v912_v3 = vld [vmem:[#allocation6 + $0x1548] sm:$0xff] }
 0x1a6   :  { %v924_v13 = vld [vmem:[#allocation6 + $0x15a8] sm:$0xff] }
 0x1a8   :  { %10406 = vmatpush1.bf16.msra.mxu0 %v17699_v23  ;;  %10965 = vmatpush1.bf16.msra.mxu1 %v17701_v24  ;;  %v883_v23 = vld [vmem:[#allocation6 + $0x1460] sm:$0xff]  ;;  %v880_v24 = vld [vmem:[#allocation6 + $0x1448] sm:$0xff] }
 0x1a9   :  { %10407 = vmatprep.subr.bf16.mxu0 %v17708_v26  ;;  %10966 = vmatprep.subr.bf16.mxu1 %v17710_v27  ;;  %v20143_v26 = vpack.c.bf16 %v187_v18, %v161_v17  ;;  %v884_v27 = vld [vmem:[#allocation6 + $0x1468] sm:$0xff]  ;;  %v17763_v41 = vcombine.low %v879_v22, %v883_v23  ;;  %v17806_v18 = vcombine.high %v920_v12, %v924_v13 }
 0x1ac   :  { %10408 = vmatpush1.bf16.msra.mxu0 %v17707_v33  ;;  %10967 = vmatpush1.bf16.msra.mxu1 %v17709_v34  ;;  %v17764_v33 = vcombine.high %v879_v22, %v883_v23  ;;  %v17766_v34 = vcombine.high %v880_v24, %v884_v27  ;;  %v932_v22 = vld [vmem:[#allocation6 + $0x15e8] sm:$0xff] }
 0x1ad   :  { %10409 = vmatprep.subr.bf16.mxu0 %v17716_v35  ;;  %10968 = vmatprep.subr.bf16.mxu1 %v17718_v36  ;;  %v887_v35 = vld [vmem:[#allocation6 + $0x1480] sm:$0xff] }
 0x1ae   :  { %v891_v36 = vld [vmem:[#allocation6 + $0x14a0] sm:$0xff] }
 0x1af   :  { %v17771_v50 = vcombine.low %v887_v35, %v891_v36 }
 0x1b0   :  { %10410 = vmatpush1.bf16.msra.mxu0 %v17715_v42  ;;  %10969 = vmatpush1.bf16.msra.mxu1 %v17717_v44  ;;  %v17765_v42 = vcombine.low %v880_v24, %v884_v27  ;;  %v17772_v44 = vcombine.high %v887_v35, %v891_v36  ;;  %v17805_v24 = vcombine.low %v920_v12, %v924_v13  ;;  %v975_v13 = vld [vmem:[#allocation6 + $0x1740] sm:$0xff] }
 0x1b1   :  { %10411 = vmatprep.subr.bf16.mxu0 %v17724_v45  ;;  %10970 = vmatprep.subr.bf16.mxu1 %v17726_v46  ;;  %v17774_v45 = vcombine.high %v888_v39, %v892_v40  ;;  %v895_v46 = vld [vmem:[#allocation6 + $0x14c0] sm:$0xff] }
 0x1b2   :  { %v17779_v60 = vcombine.low %v895_v46, %v899_v47 }
 0x1b4   :  { %10412 = vmatpush1.bf16.msra.mxu0 %v17723_v51  ;;  %10971 = vmatpush1.bf16.msra.mxu1 %v17725_v52  ;;  %v17773_v51 = vcombine.low %v888_v39, %v892_v40  ;;  %v17780_v52 = vcombine.high %v895_v46, %v899_v47  ;;  %v943_v40 = vld [vmem:[#allocation6 + $0x1640] sm:$0xff] }
 0x1b5   :  { %10413 = vmatprep.subr.bf16.mxu0 %v17732_v54  ;;  %10972 = vmatprep.subr.bf16.mxu1 %v17734_v55  ;;  %v17782_v54 = vcombine.high %v896_v48, %v900_v49  ;;  %v903_v55 = vld [vmem:[#allocation6 + $0x1500] sm:$0xff] }
 0x1b6   :  { %v17787_v5 = vcombine.low %v903_v55, %v907_v56 }
 0x1b8   :  { %10414 = vmatpush1.bf16.msra.mxu0 %v17731_v61  ;;  %10973 = vmatpush1.bf16.msra.mxu1 %v17733_v62  ;;  %v17781_v61 = vcombine.low %v896_v48, %v900_v49  ;;  %v17788_v62 = vcombine.high %v903_v55, %v907_v56  ;;  %v951_v49 = vld [vmem:[#allocation6 + $0x1680] sm:$0xff] }
 0x1b9   :  { %10415 = vmatprep.subr.bf16.mxu0 %v17740_v63  ;;  %10974 = vmatprep.subr.bf16.mxu1 %v17742_v1  ;;  %v17790_v63 = vcombine.high %v904_v57, %v908_v59  ;;  %v911_v1 = vld [vmem:[#allocation6 + $0x1540] sm:$0xff] }
 0x1ba   :  { %v17795_v14 = vcombine.low %v911_v1, %v915_v2 }
 0x1bc   :  { %10416 = vmatpush1.bf16.msra.mxu0 %v17739_v6  ;;  %10975 = vmatpush1.bf16.msra.mxu1 %v17741_v7  ;;  %v17789_v6 = vcombine.low %v904_v57, %v908_v59  ;;  %v17796_v7 = vcombine.high %v911_v1, %v915_v2  ;;  %v959_v59 = vld [vmem:[#allocation6 + $0x16c0] sm:$0xff] }
 0x1bd   :  { %10417 = vmatprep.subr.bf16.mxu0 %v17748_v8  ;;  %10976 = vmatprep.subr.bf16.mxu1 %v17750_v9  ;;  %v17798_v8 = vcombine.high %v912_v3, %v916_v4  ;;  %v919_v9 = vld [vmem:[#allocation6 + $0x1580] sm:$0xff] }
 0x1be   :  { %v17804_v17 = vcombine.high %v919_v9, %v923_v11  ;;  %v17803_v23 = vcombine.low %v919_v9, %v923_v11 }
 0x1c0   :  { %10418 = vmatpush1.bf16.msra.mxu0 %v17747_v16  ;;  %10977 = vmatpush1.bf16.msra.mxu1 %v17749_v19  ;;  %v17797_v16 = vcombine.low %v912_v3, %v916_v4  ;;  %v927_v19 = vld [vmem:[#allocation6 + $0x15c0] sm:$0xff] }
 0x1c1   :  { %10430 = vmatprep.subr.bf16.mxu0 %v17756_v20  ;;  %10989 = vmatprep.subr.bf16.mxu1 %v17758_v21  ;;  %v931_v20 = vld [vmem:[#allocation6 + $0x15e0] sm:$0xff]  ;;  %v928_v21 = vld [vmem:[#allocation6 + $0x15c8] sm:$0xff] }
 0x1c2   :  { %v17812_v27 = vcombine.high %v927_v19, %v931_v20  ;;  %v17814_v28 = vcombine.high %v928_v21, %v932_v22  ;;  %v17813_v35 = vcombine.low %v928_v21, %v932_v22  ;;  %v967_v4 = vld [vmem:[#allocation6 + $0x1700] sm:$0xff] }
 0x1c3   :  { %10420 = vmatmul.mubr.bf16.vlgmr.msra.gmra.mrb[0].mxu0 %v20143_v26  ;;  %10979 = vmatmul.mubr.bf16.vlgmr.msra.gmra.mrb[0].mxu1 %v20143_v26  ;;  %v983_v22 = vld [vmem:[#allocation6 + $0x1780] sm:$0xff] }
 0x1c4   :  { %10431 = vmatpush1.bf16.msra.mxu0 %v17755_v31  ;;  %10990 = vmatpush1.bf16.msra.mxu1 %v17757_v32  ;;  %v939_v31 = vld [vmem:[#allocation6 + $0x1620] sm:$0xff]  ;;  %v936_v32 = vld [vmem:[#allocation6 + $0x1608] sm:$0xff] }
 0x1c5   :  { %10432 = vmatprep.subr.bf16.mxu0 %v17764_v33  ;;  %10991 = vmatprep.subr.bf16.mxu1 %v17766_v34  ;;  %v940_v33 = vld [vmem:[#allocation6 + $0x1628] sm:$0xff]  ;;  %v17811_v34 = vcombine.low %v927_v19, %v931_v20  ;;  %v17820_v36 = vcombine.high %v935_v29, %v939_v31 }
 0x1c6   :  { %10462 = vmatprep.mubr.bf16.mxu0 %v20145_v38  ;;  %11021 = vmatprep.mubr.bf16.mxu1 %v20145_v38  ;;  %v17822_v39 = vcombine.high %v936_v32, %v940_v33  ;;  %v17821_v46 = vcombine.low %v936_v32, %v940_v33  ;;  %v991_v33 = vld [vmem:[#allocation6 + $0x17c0] sm:$0xff] }
 0x1c8   :  { %10433 = vmatpush1.bf16.msra.mxu0 %v17763_v41  ;;  %10992 = vmatpush1.bf16.msra.mxu1 %v17765_v42  ;;  %v947_v41 = vld [vmem:[#allocation6 + $0x1660] sm:$0xff]  ;;  %v944_v42 = vld [vmem:[#allocation6 + $0x1648] sm:$0xff] }
 0x1c9   :  { %10434 = vmatprep.subr.bf16.mxu0 %v17772_v44  ;;  %10993 = vmatprep.subr.bf16.mxu1 %v17774_v45  ;;  %v948_v44 = vld [vmem:[#allocation6 + $0x1668] sm:$0xff]  ;;  %v17819_v45 = vcombine.low %v935_v29, %v939_v31  ;;  %v17828_v47 = vcombine.high %v943_v40, %v947_v41 }
 0x1ca   :  { %v17830_v48 = vcombine.high %v944_v42, %v948_v44  ;;  %v17829_v55 = vcombine.low %v944_v42, %v948_v44  ;;  %v999_v44 = vld [vmem:[#allocation6 + $0x1800] sm:$0xff] }
 0x1cc   :  { %10435 = vmatpush1.bf16.msra.mxu0 %v17771_v50  ;;  %10994 = vmatpush1.bf16.msra.mxu1 %v17773_v51  ;;  %v955_v50 = vld [vmem:[#allocation6 + $0x16a0] sm:$0xff]  ;;  %v952_v51 = vld [vmem:[#allocation6 + $0x1688] sm:$0xff] }
 0x1cd   :  { %10436 = vmatprep.subr.bf16.mxu0 %v17780_v52  ;;  %10995 = vmatprep.subr.bf16.mxu1 %v17782_v54  ;;  %v956_v52 = vld [vmem:[#allocation6 + $0x16a8] sm:$0xff]  ;;  %v17827_v54 = vcombine.low %v943_v40, %v947_v41  ;;  %v17836_v56 = vcombine.high %v951_v49, %v955_v50 }
 0x1ce   :  { %v17838_v57 = vcombine.high %v952_v51, %v956_v52  ;;  %v17837_v1 = vcombine.low %v952_v51, %v956_v52 }
 0x1d0   :  { %10437 = vmatpush1.bf16.msra.mxu0 %v17779_v60  ;;  %10996 = vmatpush1.bf16.msra.mxu1 %v17781_v61  ;;  %v963_v60 = vld [vmem:[#allocation6 + $0x16e0] sm:$0xff]  ;;  %v960_v61 = vld [vmem:[#allocation6 + $0x16c8] sm:$0xff] }
 0x1d1   :  { %10438 = vmatprep.subr.bf16.mxu0 %v17788_v62  ;;  %10997 = vmatprep.subr.bf16.mxu1 %v17790_v63  ;;  %v964_v62 = vld [vmem:[#allocation6 + $0x16e8] sm:$0xff]  ;;  %v17835_v63 = vcombine.low %v951_v49, %v955_v50  ;;  %v17844_v2 = vcombine.high %v959_v59, %v963_v60  ;;  %v163_v49 = vld [vmem:[#allocation3 + $0x50] sm:$0xff]  ;;  %v189_v50 = vld [vmem:[#allocation3 + $0x120] sm:$0xff] }
 0x1d2   :  { %v17846_v3 = vcombine.high %v960_v61, %v964_v62  ;;  %v17845_v9 = vcombine.low %v960_v61, %v964_v62  ;;  %v166_v61 = vld [vmem:[#allocation3 + $0x68] sm:$0xff]  ;;  %v192_v62 = vld [vmem:[#allocation3 + $0x138] sm:$0xff] }
 0x1d4   :  { %10439 = vmatpush1.bf16.msra.mxu0 %v17787_v5  ;;  %10998 = vmatpush1.bf16.msra.mxu1 %v17789_v6  ;;  %v971_v5 = vld [vmem:[#allocation6 + $0x1720] sm:$0xff]  ;;  %v968_v6 = vld [vmem:[#allocation6 + $0x1708] sm:$0xff] }
 0x1d5   :  { %10440 = vmatprep.subr.bf16.mxu0 %v17796_v7  ;;  %10999 = vmatprep.subr.bf16.mxu1 %v17798_v8  ;;  %v972_v7 = vld [vmem:[#allocation6 + $0x1728] sm:$0xff]  ;;  %v17843_v8 = vcombine.low %v959_v59, %v963_v60  ;;  %v17852_v11 = vcombine.high %v967_v4, %v971_v5  ;;  %v20151_v59 = vpack.c.bf16 %v189_v50, %v163_v49 }
 0x1d6   :  { %v17854_v12 = vcombine.high %v968_v6, %v972_v7  ;;  %v17853_v19 = vcombine.low %v968_v6, %v972_v7  ;;  %v1012_v60 = vld [vmem:[#allocation6 + $0x1868] sm:$0xff]  ;;  %v20153_v6 = vpack.c.bf16 %v192_v62, %v166_v61 }
 0x1d7   :  { %v1016_v7 = vld [vmem:[#allocation6 + $0x1888] sm:$0xff] }
 0x1d8   :  { %10441 = vmatpush1.bf16.msra.mxu0 %v17795_v14  ;;  %11000 = vmatpush1.bf16.msra.mxu1 %v17797_v16  ;;  %v979_v14 = vld [vmem:[#allocation6 + $0x1760] sm:$0xff]  ;;  %v976_v16 = vld [vmem:[#allocation6 + $0x1748] sm:$0xff] }
 0x1d9   :  { %10442 = vmatprep.subr.bf16.mxu0 %v17804_v17  ;;  %11001 = vmatprep.subr.bf16.mxu1 %v17806_v18  ;;  %v980_v17 = vld [vmem:[#allocation6 + $0x1768] sm:$0xff]  ;;  %v17851_v18 = vcombine.low %v967_v4, %v971_v5  ;;  %v17860_v20 = vcombine.high %v975_v13, %v979_v14  ;;  %v1015_v4 = vld [vmem:[#allocation6 + $0x1880] sm:$0xff] }
 0x1da   :  { %v17862_v21 = vcombine.high %v976_v16, %v980_v17  ;;  %v17861_v29 = vcombine.low %v976_v16, %v980_v17  ;;  %v1019_v5 = vld [vmem:[#allocation6 + $0x18a0] sm:$0xff]  ;;  %v1024_v17 = vld [vmem:[#allocation6 + $0x18c8] sm:$0xff] }
 0x1db   :  { %v1027_v16 = vld [vmem:[#allocation6 + $0x18e0] sm:$0xff] }
 0x1dc   :  { %10443 = vmatpush1.bf16.msra.mxu0 %v17803_v23  ;;  %11002 = vmatpush1.bf16.msra.mxu1 %v17805_v24  ;;  %v987_v23 = vld [vmem:[#allocation6 + $0x17a0] sm:$0xff]  ;;  %v984_v24 = vld [vmem:[#allocation6 + $0x1788] sm:$0xff] }
 0x1dd   :  { %10444 = vmatprep.subr.bf16.mxu0 %v17812_v27  ;;  %11003 = vmatprep.subr.bf16.mxu1 %v17814_v28  ;;  %v988_v27 = vld [vmem:[#allocation6 + $0x17a8] sm:$0xff]  ;;  %v17859_v28 = vcombine.low %v975_v13, %v979_v14  ;;  %v17868_v31 = vcombine.high %v983_v22, %v987_v23  ;;  %v1023_v14 = vld [vmem:[#allocation6 + $0x18c0] sm:$0xff] }
 0x1de   :  { %v17870_v32 = vcombine.high %v984_v24, %v988_v27  ;;  %v17869_v40 = vcombine.low %v984_v24, %v988_v27  ;;  %v1035_v24 = vld [vmem:[#allocation6 + $0x1920] sm:$0xff]  ;;  %v1032_v27 = vld [vmem:[#allocation6 + $0x1908] sm:$0xff] }
 0x1e0   :  { %10445 = vmatpush1.bf16.msra.mxu0 %v17811_v34  ;;  %11004 = vmatpush1.bf16.msra.mxu1 %v17813_v35  ;;  %v995_v34 = vld [vmem:[#allocation6 + $0x17e0] sm:$0xff]  ;;  %v992_v35 = vld [vmem:[#allocation6 + $0x17c8] sm:$0xff] }
 0x1e1   :  { %10446 = vmatprep.subr.bf16.mxu0 %v17820_v36  ;;  %11005 = vmatprep.subr.bf16.mxu1 %v17822_v39  ;;  %v996_v36 = vld [vmem:[#allocation6 + $0x17e8] sm:$0xff]  ;;  %v17867_v39 = vcombine.low %v983_v22, %v987_v23  ;;  %v17876_v41 = vcombine.high %v991_v33, %v995_v34  ;;  %v1031_v23 = vld [vmem:[#allocation6 + $0x1900] sm:$0xff] }
 0x1e2   :  { %v17878_v42 = vcombine.high %v992_v35, %v996_v36  ;;  %v17877_v51 = vcombine.low %v992_v35, %v996_v36  ;;  %v1043_v35 = vld [vmem:[#allocation6 + $0x1960] sm:$0xff]  ;;  %v1040_v36 = vld [vmem:[#allocation6 + $0x1948] sm:$0xff] }
 0x1e4   :  { %10447 = vmatpush1.bf16.msra.mxu0 %v17819_v45  ;;  %11006 = vmatpush1.bf16.msra.mxu1 %v17821_v46  ;;  %v1003_v45 = vld [vmem:[#allocation6 + $0x1820] sm:$0xff]  ;;  %v1000_v46 = vld [vmem:[#allocation6 + $0x1808] sm:$0xff] }
 0x1e5   :  { %10448 = vmatprep.subr.bf16.mxu0 %v17828_v47  ;;  %11007 = vmatprep.subr.bf16.mxu1 %v17830_v48  ;;  %v1004_v47 = vld [vmem:[#allocation6 + $0x1828] sm:$0xff]  ;;  %v17875_v48 = vcombine.low %v991_v33, %v995_v34  ;;  %v17884_v52 = vcombine.high %v999_v44, %v1003_v45  ;;  %v1039_v34 = vld [vmem:[#allocation6 + $0x1940] sm:$0xff] }
 0x1e6   :  { %v17923_v49 = vcombine.low %v1039_v34, %v1043_v35 }
 0x1e8   :  { %10449 = vmatpush1.bf16.msra.mxu0 %v17827_v54  ;;  %11008 = vmatpush1.bf16.msra.mxu1 %v17829_v55  ;;  %v17886_v54 = vcombine.high %v1000_v46, %v1004_v47  ;;  %v1007_v55 = vld [vmem:[#allocation6 + $0x1840] sm:$0xff] }
 0x1e9   :  { %10450 = vmatprep.subr.bf16.mxu0 %v17836_v56  ;;  %11009 = vmatprep.subr.bf16.mxu1 %v17838_v57  ;;  %v1011_v56 = vld [vmem:[#allocation6 + $0x1860] sm:$0xff]  ;;  %v1008_v57 = vld [vmem:[#allocation6 + $0x1848] sm:$0xff] }
 0x1ec   :  { %10451 = vmatpush1.bf16.msra.mxu0 %v17835_v63  ;;  %11010 = vmatpush1.bf16.msra.mxu1 %v17837_v1  ;;  %v17883_v63 = vcombine.low %v999_v44, %v1003_v45  ;;  %v17885_v1 = vcombine.low %v1000_v46, %v1004_v47  ;;  %v1047_v45 = vld [vmem:[#allocation6 + $0x1980] sm:$0xff]  ;;  %v1048_v47 = vld [vmem:[#allocation6 + $0x1988] sm:$0xff] }
 0x1ed   :  { %10452 = vmatprep.subr.bf16.mxu0 %v17844_v2  ;;  %11011 = vmatprep.subr.bf16.mxu1 %v17846_v3  ;;  %v17892_v2 = vcombine.high %v1007_v55, %v1011_v56  ;;  %v17894_v3 = vcombine.high %v1008_v57, %v1012_v60  ;;  %v1051_v46 = vld [vmem:[#allocation6 + $0x19a0] sm:$0xff] }
 0x1f0   :  { %10453 = vmatpush1.bf16.msra.mxu0 %v17843_v8  ;;  %11012 = vmatpush1.bf16.msra.mxu1 %v17845_v9  ;;  %v1020_v8 = vld [vmem:[#allocation6 + $0x18a8] sm:$0xff]  ;;  %v17891_v9 = vcombine.low %v1007_v55, %v1011_v56  ;;  %v1059_v55 = vld [vmem:[#allocation6 + $0x19e0] sm:$0xff] }
 0x1f1   :  { %10454 = vmatprep.subr.bf16.mxu0 %v17852_v11  ;;  %11013 = vmatprep.subr.bf16.mxu1 %v17854_v12  ;;  %v17893_v11 = vcombine.low %v1008_v57, %v1012_v60  ;;  %v17900_v12 = vcombine.high %v1015_v4, %v1019_v5  ;;  %v17902_v13 = vcombine.high %v1016_v7, %v1020_v8  ;;  %v1056_v56 = vld [vmem:[#allocation6 + $0x19c8] sm:$0xff] }
 0x1f2   :  { %v1060_v57 = vld [vmem:[#allocation6 + $0x19e8] sm:$0xff]  ;;  %v17931_v60 = vcombine.low %v1047_v45, %v1051_v46 }
 0x1f4   :  { %10455 = vmatpush1.bf16.msra.mxu0 %v17851_v18  ;;  %11014 = vmatpush1.bf16.msra.mxu1 %v17853_v19  ;;  %v1028_v18 = vld [vmem:[#allocation6 + $0x18e8] sm:$0xff]  ;;  %v17899_v19 = vcombine.low %v1015_v4, %v1019_v5 }
 0x1f5   :  { %10456 = vmatprep.subr.bf16.mxu0 %v17860_v20  ;;  %11015 = vmatprep.subr.bf16.mxu1 %v17862_v21  ;;  %v17901_v20 = vcombine.low %v1016_v7, %v1020_v8  ;;  %v17908_v21 = vcombine.high %v1023_v14, %v1027_v16  ;;  %v17910_v22 = vcombine.high %v1024_v17, %v1028_v18  ;;  %v1068_v4 = vld [vmem:[#allocation6 + $0x1a28] sm:$0xff] }
 0x1f6   :  { %v17941_v7 = vcombine.low %v1056_v56, %v1060_v57 }
 0x1f8   :  { %10457 = vmatpush1.bf16.msra.mxu0 %v17859_v28  ;;  %11016 = vmatpush1.bf16.msra.mxu1 %v17861_v29  ;;  %v1036_v28 = vld [vmem:[#allocation6 + $0x1928] sm:$0xff]  ;;  %v17907_v29 = vcombine.low %v1023_v14, %v1027_v16 }
 0x1f9   :  { %10458 = vmatprep.subr.bf16.mxu0 %v17868_v31  ;;  %11017 = vmatprep.subr.bf16.mxu1 %v17870_v32  ;;  %v17909_v31 = vcombine.low %v1024_v17, %v1028_v18  ;;  %v17916_v32 = vcombine.high %v1031_v23, %v1035_v24  ;;  %v17918_v33 = vcombine.high %v1032_v27, %v1036_v28  ;;  %v1076_v14 = vld [vmem:[#allocation6 + $0x1a68] sm:$0xff] }
 0x1fc   :  { %10459 = vmatpush1.bf16.msra.mxu0 %v17867_v39  ;;  %11018 = vmatpush1.bf16.msra.mxu1 %v17869_v40  ;;  %v1044_v39 = vld [vmem:[#allocation6 + $0x1968] sm:$0xff]  ;;  %v17915_v40 = vcombine.low %v1031_v23, %v1035_v24 }
 0x1fd   :  { %10460 = vmatprep.subr.bf16.mxu0 %v17876_v41  ;;  %11019 = vmatprep.subr.bf16.mxu1 %v17878_v42  ;;  %v17917_v41 = vcombine.low %v1032_v27, %v1036_v28  ;;  %v17924_v42 = vcombine.high %v1039_v34, %v1043_v35  ;;  %v17926_v44 = vcombine.high %v1040_v36, %v1044_v39  ;;  %v1084_v23 = vld [vmem:[#allocation6 + $0x1aa8] sm:$0xff] }
 0x1fe   :  { %v17925_v50 = vcombine.low %v1040_v36, %v1044_v39  ;;  %v1092_v34 = vld [vmem:[#allocation6 + $0x1ae8] sm:$0xff] }
 0x200   :  { %10461 = vmatpush1.bf16.msra.mxu0 %v17875_v48  ;;  %11020 = vmatpush1.bf16.msra.mxu1 %v17877_v51  ;;  %v1052_v48 = vld [vmem:[#allocation6 + $0x19a8] sm:$0xff]  ;;  %v17932_v51 = vcombine.high %v1047_v45, %v1051_v46 }
 0x201   :  { %10473 = vmatprep.subr.bf16.mxu0 %v17884_v52  ;;  %11032 = vmatprep.subr.bf16.mxu1 %v17886_v54  ;;  %v17934_v52 = vcombine.high %v1048_v47, %v1052_v48  ;;  %v1055_v54 = vld [vmem:[#allocation6 + $0x19c0] sm:$0xff]  ;;  %v17933_v61 = vcombine.low %v1048_v47, %v1052_v48  ;;  %v1100_v45 = vld [vmem:[#allocation6 + $0x1b28] sm:$0xff] }
 0x202   :  { %v17940_v62 = vcombine.high %v1055_v54, %v1059_v55  ;;  %v17939_v5 = vcombine.low %v1055_v54, %v1059_v55  ;;  %v1108_v54 = vld [vmem:[#allocation6 + $0x1b68] sm:$0xff] }
 0x203   :  { %10463 = vmatmul.mubr.bf16.vlgmr.msra.gmra.mrb[0].mxu0 %v20151_v59  ;;  %11022 = vmatmul.mubr.bf16.vlgmr.msra.gmra.mrb[0].mxu1 %v20151_v59 }
 0x204   :  { %10474 = vmatpush1.bf16.msra.mxu0 %v17883_v63  ;;  %11033 = vmatpush1.bf16.msra.mxu1 %v17885_v1  ;;  %v17942_v63 = vcombine.high %v1056_v56, %v1060_v57  ;;  %v1063_v1 = vld [vmem:[#allocation6 + $0x1a00] sm:$0xff] }
 0x205   :  { %10475 = vmatprep.subr.bf16.mxu0 %v17892_v2  ;;  %11034 = vmatprep.subr.bf16.mxu1 %v17894_v3  ;;  %v1067_v2 = vld [vmem:[#allocation6 + $0x1a20] sm:$0xff]  ;;  %v1064_v3 = vld [vmem:[#allocation6 + $0x1a08] sm:$0xff] }
 0x206   :  { %10505 = vmatprep.mubr.bf16.mxu0 %v20153_v6  ;;  %11064 = vmatprep.mubr.bf16.mxu1 %v20153_v6  ;;  %v17948_v8 = vcombine.high %v1063_v1, %v1067_v2  ;;  %v17947_v16 = vcombine.low %v1063_v1, %v1067_v2  ;;  %v17949_v17 = vcombine.low %v1064_v3, %v1068_v4  ;;  %v1116_v1 = vld [vmem:[#allocation6 + $0x1ba8] sm:$0xff] }
 0x208   :  { %10476 = vmatpush1.bf16.msra.mxu0 %v17891_v9  ;;  %11035 = vmatpush1.bf16.msra.mxu1 %v17893_v11  ;;  %v17950_v9 = vcombine.high %v1064_v3, %v1068_v4  ;;  %v1071_v11 = vld [vmem:[#allocation6 + $0x1a40] sm:$0xff] }
 0x209   :  { %10477 = vmatprep.subr.bf16.mxu0 %v17900_v12  ;;  %11036 = vmatprep.subr.bf16.mxu1 %v17902_v13  ;;  %v1075_v12 = vld [vmem:[#allocation6 + $0x1a60] sm:$0xff]  ;;  %v1072_v13 = vld [vmem:[#allocation6 + $0x1a48] sm:$0xff] }
 0x20a   :  { %v17956_v18 = vcombine.high %v1071_v11, %v1075_v12  ;;  %v17955_v24 = vcombine.low %v1071_v11, %v1075_v12  ;;  %v17957_v27 = vcombine.low %v1072_v13, %v1076_v14  ;;  %v1124_v11 = vld [vmem:[#allocation6 + $0x1be8] sm:$0xff] }
 0x20c   :  { %10478 = vmatpush1.bf16.msra.mxu0 %v17899_v19  ;;  %11037 = vmatpush1.bf16.msra.mxu1 %v17901_v20  ;;  %v17958_v19 = vcombine.high %v1072_v13, %v1076_v14  ;;  %v1079_v20 = vld [vmem:[#allocation6 + $0x1a80] sm:$0xff] }
 0x20d   :  { %10479 = vmatprep.subr.bf16.mxu0 %v17908_v21  ;;  %11038 = vmatprep.subr.bf16.mxu1 %v17910_v22  ;;  %v1083_v21 = vld [vmem:[#allocation6 + $0x1aa0] sm:$0xff]  ;;  %v1080_v22 = vld [vmem:[#allocation6 + $0x1a88] sm:$0xff] }
 0x20e   :  { %v17964_v28 = vcombine.high %v1079_v20, %v1083_v21  ;;  %v17963_v35 = vcombine.low %v1079_v20, %v1083_v21  ;;  %v17965_v36 = vcombine.low %v1080_v22, %v1084_v23  ;;  %v1132_v20 = vld [vmem:[#allocation6 + $0x1c28] sm:$0xff] }
 0x210   :  { %10480 = vmatpush1.bf16.msra.mxu0 %v17907_v29  ;;  %11039 = vmatpush1.bf16.msra.mxu1 %v17909_v31  ;;  %v17966_v29 = vcombine.high %v1080_v22, %v1084_v23  ;;  %v1087_v31 = vld [vmem:[#allocation6 + $0x1ac0] sm:$0xff]  ;;  %v191_v23 = vld [vmem:[#allocation3 + $0x130] sm:$0xff] }
 0x211   :  { %10481 = vmatprep.subr.bf16.mxu0 %v17916_v32  ;;  %11040 = vmatprep.subr.bf16.mxu1 %v17918_v33  ;;  %v1091_v32 = vld [vmem:[#allocation6 + $0x1ae0] sm:$0xff]  ;;  %v1088_v33 = vld [vmem:[#allocation6 + $0x1ac8] sm:$0xff] }
 0x212   :  { %v17972_v39 = vcombine.high %v1087_v31, %v1091_v32  ;;  %v17971_v46 = vcombine.low %v1087_v31, %v1091_v32  ;;  %v17973_v47 = vcombine.low %v1088_v33, %v1092_v34  ;;  %v165_v22 = vld [vmem:[#allocation3 + $0x60] sm:$0xff]  ;;  %v1136_v32 = vld [vmem:[#allocation6 + $0x1c48] sm:$0xff] }
 0x213   :  { %v1139_v31 = vld [vmem:[#allocation6 + $0x1c60] sm:$0xff] }
 0x214   :  { %10482 = vmatpush1.bf16.msra.mxu0 %v17915_v40  ;;  %11041 = vmatpush1.bf16.msra.mxu1 %v17917_v41  ;;  %v17974_v40 = vcombine.high %v1088_v33, %v1092_v34  ;;  %v1095_v41 = vld [vmem:[#allocation6 + $0x1b00] sm:$0xff]  ;;  %v20159_v33 = vpack.c.bf16 %v191_v23, %v165_v22  ;;  %v1140_v34 = vld [vmem:[#allocation6 + $0x1c68] sm:$0xff] }
 0x215   :  { %10483 = vmatprep.subr.bf16.mxu0 %v17924_v42  ;;  %11042 = vmatprep.subr.bf16.mxu1 %v17926_v44  ;;  %v1099_v42 = vld [vmem:[#allocation6 + $0x1b20] sm:$0xff]  ;;  %v1096_v44 = vld [vmem:[#allocation6 + $0x1b08] sm:$0xff] }
 0x216   :  { %v17980_v48 = vcombine.high %v1095_v41, %v1099_v42  ;;  %v17979_v55 = vcombine.low %v1095_v41, %v1099_v42  ;;  %v17981_v56 = vcombine.low %v1096_v44, %v1100_v45  ;;  %v18022_v42 = vcombine.high %v1136_v32, %v1140_v34  ;;  %v1176_v22 = vld [vmem:[#allocation6 + $0x1d88] sm:$0xff] }
 0x217   :  { %v1180_v23 = vld [vmem:[#allocation6 + $0x1da8] sm:$0xff] }
 0x218   :  { %10484 = vmatpush1.bf16.msra.mxu0 %v17923_v49  ;;  %11043 = vmatpush1.bf16.msra.mxu1 %v17925_v50  ;;  %v17982_v49 = vcombine.high %v1096_v44, %v1100_v45  ;;  %v1103_v50 = vld [vmem:[#allocation6 + $0x1b40] sm:$0xff] }
 0x219   :  { %10485 = vmatprep.subr.bf16.mxu0 %v17932_v51  ;;  %11044 = vmatprep.subr.bf16.mxu1 %v17934_v52  ;;  %v1107_v51 = vld [vmem:[#allocation6 + $0x1b60] sm:$0xff]  ;;  %v1104_v52 = vld [vmem:[#allocation6 + $0x1b48] sm:$0xff] }
 0x21a   :  { %v17988_v57 = vcombine.high %v1103_v50, %v1107_v51  ;;  %v17987_v2 = vcombine.low %v1103_v50, %v1107_v51  ;;  %v17989_v3 = vcombine.low %v1104_v52, %v1108_v54  ;;  %v1143_v44 = vld [vmem:[#allocation6 + $0x1c80] sm:$0xff]  ;;  %v18021_v50 = vcombine.low %v1136_v32, %v1140_v34  ;;  %v1184_v34 = vld [vmem:[#allocation6 + $0x1dc8] sm:$0xff] }
 0x21b   :  { %v1147_v45 = vld [vmem:[#allocation6 + $0x1ca0] sm:$0xff] }
 0x21c   :  { %10486 = vmatpush1.bf16.msra.mxu0 %v17931_v60  ;;  %11045 = vmatpush1.bf16.msra.mxu1 %v17933_v61  ;;  %v17990_v60 = vcombine.high %v1104_v52, %v1108_v54  ;;  %v1111_v61 = vld [vmem:[#allocation6 + $0x1b80] sm:$0xff]  ;;  %v18028_v51 = vcombine.high %v1143_v44, %v1147_v45 }
 0x21d   :  { %10487 = vmatprep.subr.bf16.mxu0 %v17940_v62  ;;  %11046 = vmatprep.subr.bf16.mxu1 %v17942_v63  ;;  %v1115_v62 = vld [vmem:[#allocation6 + $0x1ba0] sm:$0xff]  ;;  %v1112_v63 = vld [vmem:[#allocation6 + $0x1b88] sm:$0xff] }
 0x21e   :  { %v17996_v4 = vcombine.high %v1111_v61, %v1115_v62  ;;  %v17995_v12 = vcombine.low %v1111_v61, %v1115_v62  ;;  %v17997_v13 = vcombine.low %v1112_v63, %v1116_v1  ;;  %v1151_v54 = vld [vmem:[#allocation6 + $0x1cc0] sm:$0xff] }
 0x21f   :  { %v1187_v32 = vld [vmem:[#allocation6 + $0x1de0] sm:$0xff] }
 0x220   :  { %10488 = vmatpush1.bf16.msra.mxu0 %v17939_v5  ;;  %11047 = vmatpush1.bf16.msra.mxu1 %v17941_v7  ;;  %v17998_v5 = vcombine.high %v1112_v63, %v1116_v1  ;;  %v1119_v7 = vld [vmem:[#allocation6 + $0x1bc0] sm:$0xff] }
 0x221   :  { %10489 = vmatprep.subr.bf16.mxu0 %v17948_v8  ;;  %11048 = vmatprep.subr.bf16.mxu1 %v17950_v9  ;;  %v1123_v8 = vld [vmem:[#allocation6 + $0x1be0] sm:$0xff]  ;;  %v1120_v9 = vld [vmem:[#allocation6 + $0x1bc8] sm:$0xff] }
 0x222   :  { %v18004_v14 = vcombine.high %v1119_v7, %v1123_v8  ;;  %v18003_v21 = vcombine.low %v1119_v7, %v1123_v8  ;;  %v1159_v1 = vld [vmem:[#allocation6 + $0x1d00] sm:$0xff] }
 0x224   :  { %10490 = vmatpush1.bf16.msra.mxu0 %v17947_v16  ;;  %11049 = vmatpush1.bf16.msra.mxu1 %v17949_v17  ;;  %v18006_v16 = vcombine.high %v1120_v9, %v1124_v11  ;;  %v1127_v17 = vld [vmem:[#allocation6 + $0x1c00] sm:$0xff] }
 0x225   :  { %10491 = vmatprep.subr.bf16.mxu0 %v17956_v18  ;;  %11050 = vmatprep.subr.bf16.mxu1 %v17958_v19  ;;  %v1131_v18 = vld [vmem:[#allocation6 + $0x1c20] sm:$0xff]  ;;  %v1128_v19 = vld [vmem:[#allocation6 + $0x1c08] sm:$0xff] }
 0x228   :  { %10492 = vmatpush1.bf16.msra.mxu0 %v17955_v24  ;;  %11051 = vmatpush1.bf16.msra.mxu1 %v17957_v27  ;;  %v18005_v24 = vcombine.low %v1120_v9, %v1124_v11  ;;  %v18012_v27 = vcombine.high %v1127_v17, %v1131_v18  ;;  %v1167_v11 = vld [vmem:[#allocation6 + $0x1d40] sm:$0xff] }
 0x229   :  { %10493 = vmatprep.subr.bf16.mxu0 %v17964_v28  ;;  %11052 = vmatprep.subr.bf16.mxu1 %v17966_v29  ;;  %v18014_v28 = vcombine.high %v1128_v19, %v1132_v20  ;;  %v1135_v29 = vld [vmem:[#allocation6 + $0x1c40] sm:$0xff] }
 0x22a   :  { %v18020_v41 = vcombine.high %v1135_v29, %v1139_v31 }
 0x22c   :  { %10494 = vmatpush1.bf16.msra.mxu0 %v17963_v35  ;;  %11053 = vmatpush1.bf16.msra.mxu1 %v17965_v36  ;;  %v168_v35 = vld [vmem:[#allocation3 + $0x78] sm:$0xff]  ;;  %v194_v36 = vld [vmem:[#allocation3 + $0x148] sm:$0xff] }
 0x22d   :  { %10495 = vmatprep.subr.bf16.mxu0 %v17972_v39  ;;  %11054 = vmatprep.subr.bf16.mxu1 %v17974_v40  ;;  %v18011_v39 = vcombine.low %v1127_v17, %v1131_v18  ;;  %v18013_v40 = vcombine.low %v1128_v19, %v1132_v20  ;;  %v1175_v20 = vld [vmem:[#allocation6 + $0x1d80] sm:$0xff] }
 0x230   :  { %10496 = vmatpush1.bf16.msra.mxu0 %v17971_v46  ;;  %11055 = vmatpush1.bf16.msra.mxu1 %v17973_v47  ;;  %v20161_v46 = vpack.c.bf16 %v194_v36, %v168_v35  ;;  %v1144_v47 = vld [vmem:[#allocation6 + $0x1c88] sm:$0xff] }
 0x231   :  { %10497 = vmatprep.subr.bf16.mxu0 %v17980_v48  ;;  %11056 = vmatprep.subr.bf16.mxu1 %v17982_v49  ;;  %v1148_v48 = vld [vmem:[#allocation6 + $0x1ca8] sm:$0xff]  ;;  %v18019_v49 = vcombine.low %v1135_v29, %v1139_v31  ;;  %v18062_v29 = vcombine.high %v1176_v22, %v1180_v23  ;;  %v1183_v31 = vld [vmem:[#allocation6 + $0x1dc0] sm:$0xff] }
 0x232   :  { %v18030_v52 = vcombine.high %v1144_v47, %v1148_v48  ;;  %v18029_v61 = vcombine.low %v1144_v47, %v1148_v48  ;;  %v1188_v35 = vld [vmem:[#allocation6 + $0x1de8] sm:$0xff]  ;;  %v18067_v48 = vcombine.low %v1183_v31, %v1187_v32 }
 0x233   :  { %v1196_v47 = vld [vmem:[#allocation6 + $0x1e28] sm:$0xff] }
 0x234   :  { %10498 = vmatpush1.bf16.msra.mxu0 %v17979_v55  ;;  %11057 = vmatpush1.bf16.msra.mxu1 %v17981_v56  ;;  %v1155_v55 = vld [vmem:[#allocation6 + $0x1ce0] sm:$0xff]  ;;  %v1152_v56 = vld [vmem:[#allocation6 + $0x1cc8] sm:$0xff] }
 0x235   :  { %10499 = vmatprep.subr.bf16.mxu0 %v17988_v57  ;;  %11058 = vmatprep.subr.bf16.mxu1 %v17990_v60  ;;  %v1156_v57 = vld [vmem:[#allocation6 + $0x1ce8] sm:$0xff]  ;;  %v18027_v60 = vcombine.low %v1143_v44, %v1147_v45  ;;  %v18036_v62 = vcombine.high %v1151_v54, %v1155_v55  ;;  %v1195_v44 = vld [vmem:[#allocation6 + $0x1e20] sm:$0xff] }
 0x236   :  { %v18038_v63 = vcombine.high %v1152_v56, %v1156_v57  ;;  %v18037_v7 = vcombine.low %v1152_v56, %v1156_v57  ;;  %v1192_v45 = vld [vmem:[#allocation6 + $0x1e08] sm:$0xff] }
 0x237   :  { %v1204_v56 = vld [vmem:[#allocation6 + $0x1e68] sm:$0xff] }
 0x238   :  { %10500 = vmatpush1.bf16.msra.mxu0 %v17987_v2  ;;  %11059 = vmatpush1.bf16.msra.mxu1 %v17989_v3  ;;  %v1163_v2 = vld [vmem:[#allocation6 + $0x1d20] sm:$0xff]  ;;  %v1160_v3 = vld [vmem:[#allocation6 + $0x1d08] sm:$0xff] }
 0x239   :  { %10501 = vmatprep.subr.bf16.mxu0 %v17996_v4  ;;  %11060 = vmatprep.subr.bf16.mxu1 %v17998_v5  ;;  %v1164_v4 = vld [vmem:[#allocation6 + $0x1d28] sm:$0xff]  ;;  %v18035_v5 = vcombine.low %v1151_v54, %v1155_v55  ;;  %v18044_v8 = vcombine.high %v1159_v1, %v1163_v2  ;;  %v1203_v54 = vld [vmem:[#allocation6 + $0x1e60] sm:$0xff] }
 0x23a   :  { %v18046_v9 = vcombine.high %v1160_v3, %v1164_v4  ;;  %v18045_v17 = vcombine.low %v1160_v3, %v1164_v4  ;;  %v1200_v55 = vld [vmem:[#allocation6 + $0x1e48] sm:$0xff] }
 0x23b   :  { %v1212_v3 = vld [vmem:[#allocation6 + $0x1ea8] sm:$0xff] }
 0x23c   :  { %10502 = vmatpush1.bf16.msra.mxu0 %v17995_v12  ;;  %11061 = vmatpush1.bf16.msra.mxu1 %v17997_v13  ;;  %v1171_v12 = vld [vmem:[#allocation6 + $0x1d60] sm:$0xff]  ;;  %v1168_v13 = vld [vmem:[#allocation6 + $0x1d48] sm:$0xff] }
 0x23d   :  { %10503 = vmatprep.subr.bf16.mxu0 %v18004_v14  ;;  %11062 = vmatprep.subr.bf16.mxu1 %v18006_v16  ;;  %v1172_v14 = vld [vmem:[#allocation6 + $0x1d68] sm:$0xff]  ;;  %v18043_v16 = vcombine.low %v1159_v1, %v1163_v2  ;;  %v18052_v18 = vcombine.high %v1167_v11, %v1171_v12  ;;  %v1211_v1 = vld [vmem:[#allocation6 + $0x1ea0] sm:$0xff] }
 0x23e   :  { %v18054_v19 = vcombine.high %v1168_v13, %v1172_v14  ;;  %v1208_v2 = vld [vmem:[#allocation6 + $0x1e88] sm:$0xff] }
 0x240   :  { %10504 = vmatpush1.bf16.msra.mxu0 %v18003_v21  ;;  %11063 = vmatpush1.bf16.msra.mxu1 %v18005_v24  ;;  %v1179_v21 = vld [vmem:[#allocation6 + $0x1da0] sm:$0xff]  ;;  %v18051_v24 = vcombine.low %v1167_v11, %v1171_v12  ;;  %v1216_v12 = vld [vmem:[#allocation6 + $0x1ec8] sm:$0xff] }
 0x241   :  { %10516 = vmatprep.subr.bf16.mxu0 %v18012_v27  ;;  %11075 = vmatprep.subr.bf16.mxu1 %v18014_v28  ;;  %v18053_v27 = vcombine.low %v1168_v13, %v1172_v14  ;;  %v18060_v28 = vcombine.high %v1175_v20, %v1179_v21  ;;  %v18059_v36 = vcombine.low %v1175_v20, %v1179_v21  ;;  %v1219_v11 = vld [vmem:[#allocation6 + $0x1ee0] sm:$0xff]  ;;  %v1220_v13 = vld [vmem:[#allocation6 + $0x1ee8] sm:$0xff] }
 0x242   :  { %v1227_v20 = vld [vmem:[#allocation6 + $0x1f20] sm:$0xff]  ;;  %v1224_v21 = vld [vmem:[#allocation6 + $0x1f08] sm:$0xff] }
 0x243   :  { %10506 = vmatmul.mubr.bf16.vlgmr.msra.gmra.mrb[0].mxu0 %v20159_v33  ;;  %11065 = vmatmul.mubr.bf16.vlgmr.msra.gmra.mrb[0].mxu1 %v20159_v33 }
 0x244   :  { %10517 = vmatpush1.bf16.msra.mxu0 %v18011_v39  ;;  %11076 = vmatpush1.bf16.msra.mxu1 %v18013_v40  ;;  %v18061_v39 = vcombine.low %v1176_v22, %v1180_v23  ;;  %v18068_v40 = vcombine.high %v1183_v31, %v1187_v32  ;;  %v1228_v22 = vld [vmem:[#allocation6 + $0x1f28] sm:$0xff]  ;;  %v1235_v31 = vld [vmem:[#allocation6 + $0x1f60] sm:$0xff] }
 0x245   :  { %10518 = vmatprep.subr.bf16.mxu0 %v18020_v41  ;;  %11077 = vmatprep.subr.bf16.mxu1 %v18022_v42  ;;  %v18070_v41 = vcombine.high %v1184_v34, %v1188_v35  ;;  %v1191_v42 = vld [vmem:[#allocation6 + $0x1e00] sm:$0xff]  ;;  %v1232_v32 = vld [vmem:[#allocation6 + $0x1f48] sm:$0xff] }
 0x246   :  { %10548 = vmatprep.mubr.bf16.mxu0 %v20161_v46  ;;  %11107 = vmatprep.mubr.bf16.mxu1 %v20161_v46  ;;  %v18075_v57 = vcombine.low %v1191_v42, %v1195_v44 }
 0x248   :  { %10519 = vmatpush1.bf16.msra.mxu0 %v18019_v49  ;;  %11078 = vmatpush1.bf16.msra.mxu1 %v18021_v50  ;;  %v18069_v49 = vcombine.low %v1184_v34, %v1188_v35  ;;  %v18076_v50 = vcombine.high %v1191_v42, %v1195_v44  ;;  %v1236_v34 = vld [vmem:[#allocation6 + $0x1f68] sm:$0xff]  ;;  %v1243_v42 = vld [vmem:[#allocation6 + $0x1fa0] sm:$0xff] }
 0x249   :  { %10520 = vmatprep.subr.bf16.mxu0 %v18028_v51  ;;  %11079 = vmatprep.subr.bf16.mxu1 %v18030_v52  ;;  %v18078_v51 = vcombine.high %v1192_v45, %v1196_v47  ;;  %v1199_v52 = vld [vmem:[#allocation6 + $0x1e40] sm:$0xff]  ;;  %v1240_v44 = vld [vmem:[#allocation6 + $0x1f88] sm:$0xff] }
 0x24a   :  { %v18083_v4 = vcombine.low %v1199_v52, %v1203_v54 }
 0x24c   :  { %10521 = vmatpush1.bf16.msra.mxu0 %v18027_v60  ;;  %11080 = vmatpush1.bf16.msra.mxu1 %v18029_v61  ;;  %v18077_v60 = vcombine.low %v1192_v45, %v1196_v47  ;;  %v18084_v61 = vcombine.high %v1199_v52, %v1203_v54  ;;  %v1244_v45 = vld [vmem:[#allocation6 + $0x1fa8] sm:$0xff]  ;;  %v1251_v52 = vld [vmem:[#allocation6 + $0x1fe0] sm:$0xff] }
 0x24d   :  { %10522 = vmatprep.subr.bf16.mxu0 %v18036_v62  ;;  %11081 = vmatprep.subr.bf16.mxu1 %v18038_v63  ;;  %v18086_v62 = vcombine.high %v1200_v55, %v1204_v56  ;;  %v1207_v63 = vld [vmem:[#allocation6 + $0x1e80] sm:$0xff]  ;;  %v1248_v54 = vld [vmem:[#allocation6 + $0x1fc8] sm:$0xff] }
 0x24e   :  { %v18091_v14 = vcombine.low %v1207_v63, %v1211_v1 }
 0x250   :  { %10523 = vmatpush1.bf16.msra.mxu0 %v18035_v5  ;;  %11082 = vmatpush1.bf16.msra.mxu1 %v18037_v7  ;;  %v18085_v5 = vcombine.low %v1200_v55, %v1204_v56  ;;  %v18092_v7 = vcombine.high %v1207_v63, %v1211_v1  ;;  %v1252_v55 = vld [vmem:[#allocation6 + $0x1fe8] sm:$0xff]  ;;  %v1259_v63 = vld [vmem:[#allocation6 + $0x2020] sm:$0xff] }
 0x251   :  { %10524 = vmatprep.subr.bf16.mxu0 %v18044_v8  ;;  %11083 = vmatprep.subr.bf16.mxu1 %v18046_v9  ;;  %v18094_v8 = vcombine.high %v1208_v2, %v1212_v3  ;;  %v1215_v9 = vld [vmem:[#allocation6 + $0x1ec0] sm:$0xff]  ;;  %v1256_v1 = vld [vmem:[#allocation6 + $0x2008] sm:$0xff] }
 0x252   :  { %v18099_v23 = vcombine.low %v1215_v9, %v1219_v11 }
 0x254   :  { %10525 = vmatpush1.bf16.msra.mxu0 %v18043_v16  ;;  %11084 = vmatpush1.bf16.msra.mxu1 %v18045_v17  ;;  %v18093_v16 = vcombine.low %v1208_v2, %v1212_v3  ;;  %v18100_v17 = vcombine.high %v1215_v9, %v1219_v11  ;;  %v1260_v2 = vld [vmem:[#allocation6 + $0x2028] sm:$0xff]  ;;  %v1263_v11 = vld [vmem:[#allocation6 + $0x2040] sm:$0xff] }
 0x255   :  { %10526 = vmatprep.subr.bf16.mxu0 %v18052_v18  ;;  %11085 = vmatprep.subr.bf16.mxu1 %v18054_v19  ;;  %v18102_v18 = vcombine.high %v1216_v12, %v1220_v13  ;;  %v1223_v19 = vld [vmem:[#allocation6 + $0x1f00] sm:$0xff]  ;;  %v18142_v9 = vcombine.high %v1256_v1, %v1260_v2 }
 0x256   :  { %v18107_v35 = vcombine.low %v1223_v19, %v1227_v20 }
 0x258   :  { %10527 = vmatpush1.bf16.msra.mxu0 %v18051_v24  ;;  %11086 = vmatpush1.bf16.msra.mxu1 %v18053_v27  ;;  %v18101_v24 = vcombine.low %v1216_v12, %v1220_v13  ;;  %v18108_v27 = vcombine.high %v1223_v19, %v1227_v20  ;;  %v1267_v12 = vld [vmem:[#allocation6 + $0x2060] sm:$0xff]  ;;  %v1264_v13 = vld [vmem:[#allocation6 + $0x2048] sm:$0xff]  ;;  %v18141_v20 = vcombine.low %v1256_v1, %v1260_v2 }
 0x259   :  { %10528 = vmatprep.subr.bf16.mxu0 %v18060_v28  ;;  %11087 = vmatprep.subr.bf16.mxu1 %v18062_v29  ;;  %v18110_v28 = vcombine.high %v1224_v21, %v1228_v22  ;;  %v1231_v29 = vld [vmem:[#allocation6 + $0x1f40] sm:$0xff] }
 0x25a   :  { %v18115_v47 = vcombine.low %v1231_v29, %v1235_v31 }
 0x25c   :  { %10529 = vmatpush1.bf16.msra.mxu0 %v18059_v36  ;;  %11088 = vmatpush1.bf16.msra.mxu1 %v18061_v39  ;;  %v18109_v36 = vcombine.low %v1224_v21, %v1228_v22  ;;  %v18116_v39 = vcombine.high %v1231_v29, %v1235_v31  ;;  %v18148_v21 = vcombine.high %v1263_v11, %v1267_v12  ;;  %v1276_v29 = vld [vmem:[#allocation6 + $0x20a8] sm:$0xff] }
 0x25d   :  { %10530 = vmatprep.subr.bf16.mxu0 %v18068_v40  ;;  %11089 = vmatprep.subr.bf16.mxu1 %v18070_v41  ;;  %v18118_v40 = vcombine.high %v1232_v32, %v1236_v34  ;;  %v1239_v41 = vld [vmem:[#allocation6 + $0x1f80] sm:$0xff]  ;;  %v18147_v31 = vcombine.low %v1263_v11, %v1267_v12 }
 0x25e   :  { %v18123_v56 = vcombine.low %v1239_v41, %v1243_v42 }
 0x260   :  { %10531 = vmatpush1.bf16.msra.mxu0 %v18067_v48  ;;  %11090 = vmatpush1.bf16.msra.mxu1 %v18069_v49  ;;  %v18117_v48 = vcombine.low %v1232_v32, %v1236_v34  ;;  %v18124_v49 = vcombine.high %v1239_v41, %v1243_v42  ;;  %v1284_v41 = vld [vmem:[#allocation6 + $0x20e8] sm:$0xff] }
 0x261   :  { %10532 = vmatprep.subr.bf16.mxu0 %v18076_v50  ;;  %11091 = vmatprep.subr.bf16.mxu1 %v18078_v51  ;;  %v18126_v50 = vcombine.high %v1240_v44, %v1244_v45  ;;  %v1247_v51 = vld [vmem:[#allocation6 + $0x1fc0] sm:$0xff] }
 0x262   :  { %v18131_v3 = vcombine.low %v1247_v51, %v1251_v52 }
 0x264   :  { %10533 = vmatpush1.bf16.msra.mxu0 %v18075_v57  ;;  %11092 = vmatpush1.bf16.msra.mxu1 %v18077_v60  ;;  %v18125_v57 = vcombine.low %v1240_v44, %v1244_v45  ;;  %v18132_v60 = vcombine.high %v1247_v51, %v1251_v52  ;;  %v1292_v51 = vld [vmem:[#allocation6 + $0x2128] sm:$0xff] }
 0x265   :  { %10534 = vmatprep.subr.bf16.mxu0 %v18084_v61  ;;  %11093 = vmatprep.subr.bf16.mxu1 %v18086_v62  ;;  %v18134_v61 = vcombine.high %v1248_v54, %v1252_v55  ;;  %v1255_v62 = vld [vmem:[#allocation6 + $0x2000] sm:$0xff] }
 0x266   :  { %v18139_v19 = vcombine.low %v1255_v62, %v1259_v63 }
 0x268   :  { %10535 = vmatpush1.bf16.msra.mxu0 %v18083_v4  ;;  %11094 = vmatpush1.bf16.msra.mxu1 %v18085_v5  ;;  %v167_v4 = vld [vmem:[#allocation3 + $0x70] sm:$0xff]  ;;  %v193_v5 = vld [vmem:[#allocation3 + $0x140] sm:$0xff] }
 0x269   :  { %10536 = vmatprep.subr.bf16.mxu0 %v18092_v7  ;;  %11095 = vmatprep.subr.bf16.mxu1 %v18094_v8  ;;  %v18133_v7 = vcombine.low %v1248_v54, %v1252_v55  ;;  %v18140_v8 = vcombine.high %v1255_v62, %v1259_v63  ;;  %v1300_v62 = vld [vmem:[#allocation6 + $0x2168] sm:$0xff] }
 0x26c   :  { %10537 = vmatpush1.bf16.msra.mxu0 %v18091_v14  ;;  %11096 = vmatpush1.bf16.msra.mxu1 %v18093_v16  ;;  %v20167_v14 = vpack.c.bf16 %v193_v5, %v167_v4  ;;  %v1268_v16 = vld [vmem:[#allocation6 + $0x2068] sm:$0xff]  ;;  %v1303_v4 = vld [vmem:[#allocation6 + $0x2180] sm:$0xff] }
 0x26d   :  { %10538 = vmatprep.subr.bf16.mxu0 %v18100_v17  ;;  %11097 = vmatprep.subr.bf16.mxu1 %v18102_v18  ;;  %v170_v17 = vld [vmem:[#allocation3 + $0x88] sm:$0xff]  ;;  %v196_v18 = vld [vmem:[#allocation3 + $0x158] sm:$0xff]  ;;  %v18150_v22 = vcombine.high %v1264_v13, %v1268_v16  ;;  %v18149_v32 = vcombine.low %v1264_v13, %v1268_v16  ;;  %v1307_v5 = vld [vmem:[#allocation6 + $0x21a0] sm:$0xff] }
 0x26e   :  { %v18188_v12 = vcombine.high %v1303_v4, %v1307_v5  ;;  %v1311_v16 = vld [vmem:[#allocation6 + $0x21c0] sm:$0xff] }
 0x270   :  { %10539 = vmatpush1.bf16.msra.mxu0 %v18099_v23  ;;  %11098 = vmatpush1.bf16.msra.mxu1 %v18101_v24  ;;  %v1271_v23 = vld [vmem:[#allocation6 + $0x2080] sm:$0xff] }
 0x271   :  { %10540 = vmatprep.subr.bf16.mxu0 %v18108_v27  ;;  %11099 = vmatprep.subr.bf16.mxu1 %v18110_v28  ;;  %v1275_v24 = vld [vmem:[#allocation6 + $0x20a0] sm:$0xff]  ;;  %v20169_v27 = vpack.c.bf16 %v196_v18, %v170_v17  ;;  %v1272_v28 = vld [vmem:[#allocation6 + $0x2088] sm:$0xff] }
 0x272   :  { %v18156_v34 = vcombine.high %v1271_v23, %v1275_v24  ;;  %v18155_v42 = vcombine.low %v1271_v23, %v1275_v24  ;;  %v18157_v44 = vcombine.low %v1272_v28, %v1276_v29  ;;  %v1315_v17 = vld [vmem:[#allocation6 + $0x21e0] sm:$0xff]  ;;  %v1312_v18 = vld [vmem:[#allocation6 + $0x21c8] sm:$0xff] }
 0x273   :  { %v1319_v24 = vld [vmem:[#allocation6 + $0x2200] sm:$0xff] }
 0x274   :  { %10541 = vmatpush1.bf16.msra.mxu0 %v18107_v35  ;;  %11100 = vmatpush1.bf16.msra.mxu1 %v18109_v36  ;;  %v18158_v35 = vcombine.high %v1272_v28, %v1276_v29  ;;  %v1279_v36 = vld [vmem:[#allocation6 + $0x20c0] sm:$0xff]  ;;  %v1320_v29 = vld [vmem:[#allocation6 + $0x2208] sm:$0xff] }
 0x275   :  { %10542 = vmatprep.subr.bf16.mxu0 %v18116_v39  ;;  %11101 = vmatprep.subr.bf16.mxu1 %v18118_v40  ;;  %v1283_v39 = vld [vmem:[#allocation6 + $0x20e0] sm:$0xff]  ;;  %v1280_v40 = vld [vmem:[#allocation6 + $0x20c8] sm:$0xff] }
 0x276   :  { %v18164_v45 = vcombine.high %v1279_v36, %v1283_v39  ;;  %v18163_v52 = vcombine.low %v1279_v36, %v1283_v39  ;;  %v18165_v54 = vcombine.low %v1280_v40, %v1284_v41  ;;  %v1323_v28 = vld [vmem:[#allocation6 + $0x2220] sm:$0xff] }
 0x277   :  { %v1327_v39 = vld [vmem:[#allocation6 + $0x2240] sm:$0xff] }
 0x278   :  { %10543 = vmatpush1.bf16.msra.mxu0 %v18115_v47  ;;  %11102 = vmatpush1.bf16.msra.mxu1 %v18117_v48  ;;  %v18166_v47 = vcombine.high %v1280_v40, %v1284_v41  ;;  %v1287_v48 = vld [vmem:[#allocation6 + $0x2100] sm:$0xff]  ;;  %v1328_v41 = vld [vmem:[#allocation6 + $0x2248] sm:$0xff] }
 0x279   :  { %10544 = vmatprep.subr.bf16.mxu0 %v18124_v49  ;;  %11103 = vmatprep.subr.bf16.mxu1 %v18126_v50  ;;  %v1291_v49 = vld [vmem:[#allocation6 + $0x2120] sm:$0xff]  ;;  %v1288_v50 = vld [vmem:[#allocation6 + $0x2108] sm:$0xff] }
 0x27a   :  { %v18172_v55 = vcombine.high %v1287_v48, %v1291_v49  ;;  %v18171_v63 = vcombine.low %v1287_v48, %v1291_v49  ;;  %v18173_v1 = vcombine.low %v1288_v50, %v1292_v51  ;;  %v1331_v40 = vld [vmem:[#allocation6 + $0x2260] sm:$0xff] }
 0x27b   :  { %v1335_v49 = vld [vmem:[#allocation6 + $0x2280] sm:$0xff] }
 0x27c   :  { %10545 = vmatpush1.bf16.msra.mxu0 %v18123_v56  ;;  %11104 = vmatpush1.bf16.msra.mxu1 %v18125_v57  ;;  %v18174_v56 = vcombine.high %v1288_v50, %v1292_v51  ;;  %v1295_v57 = vld [vmem:[#allocation6 + $0x2140] sm:$0xff]  ;;  %v1336_v51 = vld [vmem:[#allocation6 + $0x2288] sm:$0xff] }
 0x27d   :  { %10546 = vmatprep.subr.bf16.mxu0 %v18132_v60  ;;  %11105 = vmatprep.subr.bf16.mxu1 %v18134_v61  ;;  %v1299_v60 = vld [vmem:[#allocation6 + $0x2160] sm:$0xff]  ;;  %v1296_v61 = vld [vmem:[#allocation6 + $0x2148] sm:$0xff] }
 0x27e   :  { %v18180_v2 = vcombine.high %v1295_v57, %v1299_v60  ;;  %v18181_v11 = vcombine.low %v1296_v61, %v1300_v62  ;;  %v1339_v50 = vld [vmem:[#allocation6 + $0x22a0] sm:$0xff] }
 0x280   :  { %10547 = vmatpush1.bf16.msra.mxu0 %v18131_v3  ;;  %11106 = vmatpush1.bf16.msra.mxu1 %v18133_v7  ;;  %v18182_v3 = vcombine.high %v1296_v61, %v1300_v62  ;;  %v1304_v7 = vld [vmem:[#allocation6 + $0x2188] sm:$0xff]  ;;  %v1347_v61 = vld [vmem:[#allocation6 + $0x22e0] sm:$0xff] }
 0x281   :  { %10559 = vmatprep.subr.bf16.mxu0 %v18140_v8  ;;  %11118 = vmatprep.subr.bf16.mxu1 %v18142_v9  ;;  %v1308_v8 = vld [vmem:[#allocation6 + $0x21a8] sm:$0xff]  ;;  %v18179_v9 = vcombine.low %v1295_v57, %v1299_v60  ;;  %v1343_v60 = vld [vmem:[#allocation6 + $0x22c0] sm:$0xff] }
 0x282   :  { %v18190_v13 = vcombine.high %v1304_v7, %v1308_v8  ;;  %v1344_v62 = vld [vmem:[#allocation6 + $0x22c8] sm:$0xff] }
 0x283   :  { %10549 = vmatmul.mubr.bf16.vlgmr.msra.gmra.mrb[0].mxu0 %v20167_v14  ;;  %11108 = vmatmul.mubr.bf16.vlgmr.msra.gmra.mrb[0].mxu1 %v20167_v14 }
 0x284   :  { %10560 = vmatpush1.bf16.msra.mxu0 %v18139_v19  ;;  %11119 = vmatpush1.bf16.msra.mxu1 %v18141_v20  ;;  %v1316_v19 = vld [vmem:[#allocation6 + $0x21e8] sm:$0xff]  ;;  %v18187_v20 = vcombine.low %v1303_v4, %v1307_v5  ;;  %v1351_v5 = vld [vmem:[#allocation6 + $0x2300] sm:$0xff] }
 0x285   :  { %10561 = vmatprep.subr.bf16.mxu0 %v18148_v21  ;;  %11120 = vmatprep.subr.bf16.mxu1 %v18150_v22  ;;  %v18189_v21 = vcombine.low %v1304_v7, %v1308_v8  ;;  %v18196_v22 = vcombine.high %v1311_v16, %v1315_v17  ;;  %v18198_v23 = vcombine.high %v1312_v18, %v1316_v19  ;;  %v1355_v7 = vld [vmem:[#allocation6 + $0x2320] sm:$0xff]  ;;  %v1352_v8 = vld [vmem:[#allocation6 + $0x2308] sm:$0xff] }
 0x286   :  { %10591 = vmatprep.mubr.bf16.mxu0 %v20169_v27  ;;  %11150 = vmatprep.mubr.bf16.mxu1 %v20169_v27 }
 0x288   :  { %10562 = vmatpush1.bf16.msra.mxu0 %v18147_v31  ;;  %11121 = vmatpush1.bf16.msra.mxu1 %v18149_v32  ;;  %v1324_v31 = vld [vmem:[#allocation6 + $0x2228] sm:$0xff]  ;;  %v18195_v32 = vcombine.low %v1311_v16, %v1315_v17  ;;  %v1359_v17 = vld [vmem:[#allocation6 + $0x2340] sm:$0xff] }
 0x289   :  { %10563 = vmatprep.subr.bf16.mxu0 %v18156_v34  ;;  %11122 = vmatprep.subr.bf16.mxu1 %v18158_v35  ;;  %v18197_v34 = vcombine.low %v1312_v18, %v1316_v19  ;;  %v18204_v35 = vcombine.high %v1319_v24, %v1323_v28  ;;  %v18206_v36 = vcombine.high %v1320_v29, %v1324_v31  ;;  %v1363_v18 = vld [vmem:[#allocation6 + $0x2360] sm:$0xff]  ;;  %v1360_v19 = vld [vmem:[#allocation6 + $0x2348] sm:$0xff] }
 0x28c   :  { %10564 = vmatpush1.bf16.msra.mxu0 %v18155_v42  ;;  %11123 = vmatpush1.bf16.msra.mxu1 %v18157_v44  ;;  %v1332_v42 = vld [vmem:[#allocation6 + $0x2268] sm:$0xff]  ;;  %v18203_v44 = vcombine.low %v1319_v24, %v1323_v28  ;;  %v1367_v28 = vld [vmem:[#allocation6 + $0x2380] sm:$0xff] }
 0x28d   :  { %10565 = vmatprep.subr.bf16.mxu0 %v18164_v45  ;;  %11124 = vmatprep.subr.bf16.mxu1 %v18166_v47  ;;  %v18205_v45 = vcombine.low %v1320_v29, %v1324_v31  ;;  %v18212_v47 = vcombine.high %v1327_v39, %v1331_v40  ;;  %v18214_v48 = vcombine.high %v1328_v41, %v1332_v42  ;;  %v1371_v29 = vld [vmem:[#allocation6 + $0x23a0] sm:$0xff]  ;;  %v1368_v31 = vld [vmem:[#allocation6 + $0x2388] sm:$0xff] }
 0x290   :  { %10566 = vmatpush1.bf16.msra.mxu0 %v18163_v52  ;;  %11125 = vmatpush1.bf16.msra.mxu1 %v18165_v54  ;;  %v1340_v52 = vld [vmem:[#allocation6 + $0x22a8] sm:$0xff]  ;;  %v18211_v54 = vcombine.low %v1327_v39, %v1331_v40  ;;  %v1375_v40 = vld [vmem:[#allocation6 + $0x23c0] sm:$0xff] }
 0x291   :  { %10567 = vmatprep.subr.bf16.mxu0 %v18172_v55  ;;  %11126 = vmatprep.subr.bf16.mxu1 %v18174_v56  ;;  %v18213_v55 = vcombine.low %v1328_v41, %v1332_v42  ;;  %v18220_v56 = vcombine.high %v1335_v49, %v1339_v50  ;;  %v18222_v57 = vcombine.high %v1336_v51, %v1340_v52  ;;  %v1379_v41 = vld [vmem:[#allocation6 + $0x23e0] sm:$0xff]  ;;  %v1376_v42 = vld [vmem:[#allocation6 + $0x23c8] sm:$0xff] }
 0x294   :  { %10568 = vmatpush1.bf16.msra.mxu0 %v18171_v63  ;;  %11127 = vmatpush1.bf16.msra.mxu1 %v18173_v1  ;;  %v1348_v63 = vld [vmem:[#allocation6 + $0x22e8] sm:$0xff]  ;;  %v18219_v1 = vcombine.low %v1335_v49, %v1339_v50  ;;  %v1383_v50 = vld [vmem:[#allocation6 + $0x2400] sm:$0xff] }
 0x295   :  { %10569 = vmatprep.subr.bf16.mxu0 %v18180_v2  ;;  %11128 = vmatprep.subr.bf16.mxu1 %v18182_v3  ;;  %v18221_v2 = vcombine.low %v1336_v51, %v1340_v52  ;;  %v18228_v3 = vcombine.high %v1343_v60, %v1347_v61  ;;  %v18230_v4 = vcombine.high %v1344_v62, %v1348_v63  ;;  %v1387_v51 = vld [vmem:[#allocation6 + $0x2420] sm:$0xff]  ;;  %v1384_v52 = vld [vmem:[#allocation6 + $0x2408] sm:$0xff] }
 0x298   :  { %10570 = vmatpush1.bf16.msra.mxu0 %v18179_v9  ;;  %11129 = vmatpush1.bf16.msra.mxu1 %v18181_v11  ;;  %v1356_v9 = vld [vmem:[#allocation6 + $0x2328] sm:$0xff]  ;;  %v18227_v11 = vcombine.low %v1343_v60, %v1347_v61  ;;  %v18268_v61 = vcombine.high %v1383_v50, %v1387_v51 }
 0x299   :  { %10571 = vmatprep.subr.bf16.mxu0 %v18188_v12  ;;  %11130 = vmatprep.subr.bf16.mxu1 %v18190_v13  ;;  %v18229_v12 = vcombine.low %v1344_v62, %v1348_v63  ;;  %v18236_v13 = vcombine.high %v1351_v5, %v1355_v7  ;;  %v18238_v16 = vcombine.high %v1352_v8, %v1356_v9  ;;  %v1391_v63 = vld [vmem:[#allocation6 + $0x2440] sm:$0xff] }
 0x29c   :  { %10572 = vmatpush1.bf16.msra.mxu0 %v18187_v20  ;;  %11131 = vmatpush1.bf16.msra.mxu1 %v18189_v21  ;;  %v1364_v20 = vld [vmem:[#allocation6 + $0x2368] sm:$0xff]  ;;  %v18235_v21 = vcombine.low %v1351_v5, %v1355_v7  ;;  %v172_v5 = vld [vmem:[#allocation3 + $0x98] sm:$0xff] }
 0x29d   :  { %10573 = vmatprep.subr.bf16.mxu0 %v18196_v22  ;;  %11132 = vmatprep.subr.bf16.mxu1 %v18198_v23  ;;  %v18237_v22 = vcombine.low %v1352_v8, %v1356_v9  ;;  %v18244_v23 = vcombine.high %v1359_v17, %v1363_v18  ;;  %v18246_v24 = vcombine.high %v1360_v19, %v1364_v20  ;;  %v198_v7 = vld [vmem:[#allocation3 + $0x168] sm:$0xff] }
 0x29e   :  { %v18267_v8 = vcombine.low %v1383_v50, %v1387_v51  ;;  %v1427_v50 = vld [vmem:[#allocation6 + $0x2560] sm:$0xff]  ;;  %v1424_v51 = vld [vmem:[#allocation6 + $0x2548] sm:$0xff] }
 0x2a0   :  { %10574 = vmatpush1.bf16.msra.mxu0 %v18195_v32  ;;  %11133 = vmatpush1.bf16.msra.mxu1 %v18197_v34  ;;  %v1372_v32 = vld [vmem:[#allocation6 + $0x23a8] sm:$0xff]  ;;  %v18243_v34 = vcombine.low %v1359_v17, %v1363_v18  ;;  %v20177_v17 = vpack.c.bf16 %v198_v7, %v172_v5  ;;  %v1439_v7 = vld [vmem:[#allocation6 + $0x25c0] sm:$0xff] }
 0x2a1   :  { %10575 = vmatprep.subr.bf16.mxu0 %v18204_v35  ;;  %11134 = vmatprep.subr.bf16.mxu1 %v18206_v36  ;;  %v18245_v35 = vcombine.low %v1360_v19, %v1364_v20  ;;  %v18252_v36 = vcombine.high %v1367_v28, %v1371_v29  ;;  %v18254_v39 = vcombine.high %v1368_v31, %v1372_v32  ;;  %v1400_v18 = vld [vmem:[#allocation6 + $0x2488] sm:$0xff] }
 0x2a2   :  { %v1404_v19 = vld [vmem:[#allocation6 + $0x24a8] sm:$0xff] }
 0x2a4   :  { %10576 = vmatpush1.bf16.msra.mxu0 %v18203_v44  ;;  %11135 = vmatpush1.bf16.msra.mxu1 %v18205_v45  ;;  %v1380_v44 = vld [vmem:[#allocation6 + $0x23e8] sm:$0xff]  ;;  %v18251_v45 = vcombine.low %v1367_v28, %v1371_v29  ;;  %v1411_v28 = vld [vmem:[#allocation6 + $0x24e0] sm:$0xff] }
 0x2a5   :  { %10577 = vmatprep.subr.bf16.mxu0 %v18212_v47  ;;  %11136 = vmatprep.subr.bf16.mxu1 %v18214_v48  ;;  %v18253_v47 = vcombine.low %v1368_v31, %v1372_v32  ;;  %v18260_v48 = vcombine.high %v1375_v40, %v1379_v41  ;;  %v18262_v49 = vcombine.high %v1376_v42, %v1380_v44  ;;  %v1408_v29 = vld [vmem:[#allocation6 + $0x24c8] sm:$0xff] }
 0x2a6   :  { %v18261_v60 = vcombine.low %v1376_v42, %v1380_v44  ;;  %v1412_v31 = vld [vmem:[#allocation6 + $0x24e8] sm:$0xff] }
 0x2a7   :  { %v1420_v42 = vld [vmem:[#allocation6 + $0x2528] sm:$0xff] }
 0x2a8   :  { %10578 = vmatpush1.bf16.msra.mxu0 %v18211_v54  ;;  %11137 = vmatpush1.bf16.msra.mxu1 %v18213_v55  ;;  %v1388_v54 = vld [vmem:[#allocation6 + $0x2428] sm:$0xff]  ;;  %v18259_v55 = vcombine.low %v1375_v40, %v1379_v41  ;;  %v1419_v40 = vld [vmem:[#allocation6 + $0x2520] sm:$0xff] }
 0x2a9   :  { %10579 = vmatprep.subr.bf16.mxu0 %v18220_v56  ;;  %11138 = vmatprep.subr.bf16.mxu1 %v18222_v57  ;;  %v169_v56 = vld [vmem:[#allocation3 + $0x80] sm:$0xff]  ;;  %v195_v57 = vld [vmem:[#allocation3 + $0x150] sm:$0xff]  ;;  %v18270_v62 = vcombine.high %v1384_v52, %v1388_v54  ;;  %v18269_v9 = vcombine.low %v1384_v52, %v1388_v54  ;;  %v1416_v41 = vld [vmem:[#allocation6 + $0x2508] sm:$0xff] }
 0x2aa   :  { %v1428_v52 = vld [vmem:[#allocation6 + $0x2568] sm:$0xff] }
 0x2ac   :  { %10580 = vmatpush1.bf16.msra.mxu0 %v18219_v1  ;;  %11139 = vmatpush1.bf16.msra.mxu1 %v18221_v2  ;;  %v1395_v1 = vld [vmem:[#allocation6 + $0x2460] sm:$0xff]  ;;  %v1392_v2 = vld [vmem:[#allocation6 + $0x2448] sm:$0xff] }
 0x2ad   :  { %10581 = vmatprep.subr.bf16.mxu0 %v18228_v3  ;;  %11140 = vmatprep.subr.bf16.mxu1 %v18230_v4  ;;  %v20175_v3 = vpack.c.bf16 %v195_v57, %v169_v56  ;;  %v1396_v4 = vld [vmem:[#allocation6 + $0x2468] sm:$0xff]  ;;  %v18275_v20 = vcombine.low %v1391_v63, %v1395_v1  ;;  %v18310_v57 = vcombine.high %v1424_v51, %v1428_v52 }
 0x2b0   :  { %10582 = vmatpush1.bf16.msra.mxu0 %v18227_v11  ;;  %11141 = vmatpush1.bf16.msra.mxu1 %v18229_v12  ;;  %v18276_v11 = vcombine.high %v1391_v63, %v1395_v1  ;;  %v18278_v12 = vcombine.high %v1392_v2, %v1396_v4  ;;  %v1436_v63 = vld [vmem:[#allocation6 + $0x25a8] sm:$0xff] }
 0x2b1   :  { %10583 = vmatprep.subr.bf16.mxu0 %v18236_v13  ;;  %11142 = vmatprep.subr.bf16.mxu1 %v18238_v16  ;;  %v1399_v13 = vld [vmem:[#allocation6 + $0x2480] sm:$0xff] }
 0x2b2   :  { %v1403_v16 = vld [vmem:[#allocation6 + $0x24a0] sm:$0xff] }
 0x2b3   :  { %v18283_v32 = vcombine.low %v1399_v13, %v1403_v16 }
 0x2b4   :  { %10584 = vmatpush1.bf16.msra.mxu0 %v18235_v21  ;;  %11143 = vmatpush1.bf16.msra.mxu1 %v18237_v22  ;;  %v18277_v21 = vcombine.low %v1392_v2, %v1396_v4  ;;  %v18284_v22 = vcombine.high %v1399_v13, %v1403_v16  ;;  %v18309_v2 = vcombine.low %v1424_v51, %v1428_v52  ;;  %v1471_v52 = vld [vmem:[#allocation6 + $0x26c0] sm:$0xff] }
 0x2b5   :  { %10585 = vmatprep.subr.bf16.mxu0 %v18244_v23  ;;  %11144 = vmatprep.subr.bf16.mxu1 %v18246_v24  ;;  %v18286_v23 = vcombine.high %v1400_v18, %v1404_v19  ;;  %v1407_v24 = vld [vmem:[#allocation6 + $0x24c0] sm:$0xff] }
 0x2b6   :  { %v18291_v44 = vcombine.low %v1407_v24, %v1411_v28 }
 0x2b8   :  { %10586 = vmatpush1.bf16.msra.mxu0 %v18243_v34  ;;  %11145 = vmatpush1.bf16.msra.mxu1 %v18245_v35  ;;  %v18285_v34 = vcombine.low %v1400_v18, %v1404_v19  ;;  %v18292_v35 = vcombine.high %v1407_v24, %v1411_v28  ;;  %v1447_v19 = vld [vmem:[#allocation6 + $0x2600] sm:$0xff] }
 0x2b9   :  { %10587 = vmatprep.subr.bf16.mxu0 %v18252_v36  ;;  %11146 = vmatprep.subr.bf16.mxu1 %v18254_v39  ;;  %v18294_v36 = vcombine.high %v1408_v29, %v1412_v31  ;;  %v1415_v39 = vld [vmem:[#allocation6 + $0x2500] sm:$0xff] }
 0x2ba   :  { %v18299_v54 = vcombine.low %v1415_v39, %v1419_v40 }
 0x2bc   :  { %10588 = vmatpush1.bf16.msra.mxu0 %v18251_v45  ;;  %11147 = vmatpush1.bf16.msra.mxu1 %v18253_v47  ;;  %v18293_v45 = vcombine.low %v1408_v29, %v1412_v31  ;;  %v18300_v47 = vcombine.high %v1415_v39, %v1419_v40  ;;  %v1455_v31 = vld [vmem:[#allocation6 + $0x2640] sm:$0xff] }
 0x2bd   :  { %10589 = vmatprep.subr.bf16.mxu0 %v18260_v48  ;;  %11148 = vmatprep.subr.bf16.mxu1 %v18262_v49  ;;  %v18302_v48 = vcombine.high %v1416_v41, %v1420_v42  ;;  %v1423_v49 = vld [vmem:[#allocation6 + $0x2540] sm:$0xff] }
 0x2be   :  { %v18308_v56 = vcombine.high %v1423_v49, %v1427_v50  ;;  %v18307_v1 = vcombine.low %v1423_v49, %v1427_v50 }
 0x2c0   :  { %10590 = vmatpush1.bf16.msra.mxu0 %v18259_v55  ;;  %11149 = vmatpush1.bf16.msra.mxu1 %v18261_v60  ;;  %v18301_v55 = vcombine.low %v1416_v41, %v1420_v42  ;;  %v1431_v60 = vld [vmem:[#allocation6 + $0x2580] sm:$0xff] }
 0x2c1   :  { %10602 = vmatprep.subr.bf16.mxu0 %v18268_v61  ;;  %11161 = vmatprep.subr.bf16.mxu1 %v18270_v62  ;;  %v1435_v61 = vld [vmem:[#allocation6 + $0x25a0] sm:$0xff]  ;;  %v1432_v62 = vld [vmem:[#allocation6 + $0x2588] sm:$0xff] }
 0x2c2   :  { %v18316_v4 = vcombine.high %v1431_v60, %v1435_v61  ;;  %v18318_v5 = vcombine.high %v1432_v62, %v1436_v63  ;;  %v18317_v13 = vcombine.low %v1432_v62, %v1436_v63  ;;  %v1463_v42 = vld [vmem:[#allocation6 + $0x2680] sm:$0xff] }
 0x2c3   :  { %10592 = vmatmul.mubr.bf16.vlgmr.msra.gmra.mrb[0].mxu0 %v20175_v3  ;;  %11151 = vmatmul.mubr.bf16.vlgmr.msra.gmra.mrb[0].mxu1 %v20175_v3  ;;  %v1479_v63 = vld [vmem:[#allocation6 + $0x2700] sm:$0xff] }
 0x2c4   :  { %10603 = vmatpush1.bf16.msra.mxu0 %v18267_v8  ;;  %11162 = vmatpush1.bf16.msra.mxu1 %v18269_v9  ;;  %v1443_v8 = vld [vmem:[#allocation6 + $0x25e0] sm:$0xff]  ;;  %v1440_v9 = vld [vmem:[#allocation6 + $0x25c8] sm:$0xff] }
 0x2c5   :  { %10604 = vmatprep.subr.bf16.mxu0 %v18276_v11  ;;  %11163 = vmatprep.subr.bf16.mxu1 %v18278_v12  ;;  %v1444_v11 = vld [vmem:[#allocation6 + $0x25e8] sm:$0xff]  ;;  %v18315_v12 = vcombine.low %v1431_v60, %v1435_v61  ;;  %v18324_v16 = vcombine.high %v1439_v7, %v1443_v8 }
 0x2c6   :  { %10634 = vmatprep.mubr.bf16.mxu0 %v20177_v17  ;;  %11193 = vmatprep.mubr.bf16.mxu1 %v20177_v17  ;;  %v18326_v18 = vcombine.high %v1440_v9, %v1444_v11  ;;  %v18325_v24 = vcombine.low %v1440_v9, %v1444_v11  ;;  %v1487_v11 = vld [vmem:[#allocation6 + $0x2740] sm:$0xff] }
 0x2c8   :  { %10605 = vmatpush1.bf16.msra.mxu0 %v18275_v20  ;;  %11164 = vmatpush1.bf16.msra.mxu1 %v18277_v21  ;;  %v1451_v20 = vld [vmem:[#allocation6 + $0x2620] sm:$0xff]  ;;  %v1448_v21 = vld [vmem:[#allocation6 + $0x2608] sm:$0xff] }
 0x2c9   :  { %10606 = vmatprep.subr.bf16.mxu0 %v18284_v22  ;;  %11165 = vmatprep.subr.bf16.mxu1 %v18286_v23  ;;  %v1452_v22 = vld [vmem:[#allocation6 + $0x2628] sm:$0xff]  ;;  %v18323_v23 = vcombine.low %v1439_v7, %v1443_v8  ;;  %v18332_v28 = vcombine.high %v1447_v19, %v1451_v20 }
 0x2ca   :  { %v18334_v29 = vcombine.high %v1448_v21, %v1452_v22  ;;  %v18333_v39 = vcombine.low %v1448_v21, %v1452_v22  ;;  %v1495_v22 = vld [vmem:[#allocation6 + $0x2780] sm:$0xff] }
 0x2cc   :  { %10607 = vmatpush1.bf16.msra.mxu0 %v18283_v32  ;;  %11166 = vmatpush1.bf16.msra.mxu1 %v18285_v34  ;;  %v1459_v32 = vld [vmem:[#allocation6 + $0x2660] sm:$0xff]  ;;  %v1456_v34 = vld [vmem:[#allocation6 + $0x2648] sm:$0xff] }
 0x2cd   :  { %10608 = vmatprep.subr.bf16.mxu0 %v18292_v35  ;;  %11167 = vmatprep.subr.bf16.mxu1 %v18294_v36  ;;  %v1460_v35 = vld [vmem:[#allocation6 + $0x2668] sm:$0xff]  ;;  %v18331_v36 = vcombine.low %v1447_v19, %v1451_v20  ;;  %v18340_v40 = vcombine.high %v1455_v31, %v1459_v32 }
 0x2ce   :  { %v18342_v41 = vcombine.high %v1456_v34, %v1460_v35  ;;  %v18341_v49 = vcombine.low %v1456_v34, %v1460_v35  ;;  %v1503_v35 = vld [vmem:[#allocation6 + $0x27c0] sm:$0xff] }
 0x2d0   :  { %10609 = vmatpush1.bf16.msra.mxu0 %v18291_v44  ;;  %11168 = vmatpush1.bf16.msra.mxu1 %v18293_v45  ;;  %v1467_v44 = vld [vmem:[#allocation6 + $0x26a0] sm:$0xff]  ;;  %v1464_v45 = vld [vmem:[#allocation6 + $0x2688] sm:$0xff] }
 0x2d1   :  { %10610 = vmatprep.subr.bf16.mxu0 %v18300_v47  ;;  %11169 = vmatprep.subr.bf16.mxu1 %v18302_v48  ;;  %v1468_v47 = vld [vmem:[#allocation6 + $0x26a8] sm:$0xff]  ;;  %v18339_v48 = vcombine.low %v1455_v31, %v1459_v32  ;;  %v18348_v50 = vcombine.high %v1463_v42, %v1467_v44 }
 0x2d2   :  { %v18350_v51 = vcombine.high %v1464_v45, %v1468_v47  ;;  %v18349_v60 = vcombine.low %v1464_v45, %v1468_v47  ;;  %v1511_v47 = vld [vmem:[#allocation6 + $0x2800] sm:$0xff] }
 0x2d4   :  { %10611 = vmatpush1.bf16.msra.mxu0 %v18299_v54  ;;  %11170 = vmatpush1.bf16.msra.mxu1 %v18301_v55  ;;  %v1475_v54 = vld [vmem:[#allocation6 + $0x26e0] sm:$0xff]  ;;  %v1472_v55 = vld [vmem:[#allocation6 + $0x26c8] sm:$0xff] }
 0x2d5   :  { %10612 = vmatprep.subr.bf16.mxu0 %v18308_v56  ;;  %11171 = vmatprep.subr.bf16.mxu1 %v18310_v57  ;;  %v1476_v56 = vld [vmem:[#allocation6 + $0x26e8] sm:$0xff]  ;;  %v18347_v57 = vcombine.low %v1463_v42, %v1467_v44  ;;  %v18356_v61 = vcombine.high %v1471_v52, %v1475_v54 }
 0x2d6   :  { %v18358_v62 = vcombine.high %v1472_v55, %v1476_v56  ;;  %v18357_v7 = vcombine.low %v1472_v55, %v1476_v56 }
 0x2d8   :  { %10613 = vmatpush1.bf16.msra.mxu0 %v18307_v1  ;;  %11172 = vmatpush1.bf16.msra.mxu1 %v18309_v2  ;;  %v1483_v1 = vld [vmem:[#allocation6 + $0x2720] sm:$0xff]  ;;  %v1480_v2 = vld [vmem:[#allocation6 + $0x2708] sm:$0xff] }
 0x2d9   :  { %10614 = vmatprep.subr.bf16.mxu0 %v18316_v4  ;;  %11173 = vmatprep.subr.bf16.mxu1 %v18318_v5  ;;  %v1484_v4 = vld [vmem:[#allocation6 + $0x2728] sm:$0xff]  ;;  %v18355_v5 = vcombine.low %v1471_v52, %v1475_v54  ;;  %v18364_v8 = vcombine.high %v1479_v63, %v1483_v1  ;;  %v171_v52 = vld [vmem:[#allocation3 + $0x90] sm:$0xff]  ;;  %v197_v54 = vld [vmem:[#allocation3 + $0x160] sm:$0xff] }
 0x2da   :  { %v18366_v9 = vcombine.high %v1480_v2, %v1484_v4  ;;  %v18365_v19 = vcombine.low %v1480_v2, %v1484_v4  ;;  %v174_v2 = vld [vmem:[#allocation3 + $0xa8] sm:$0xff]  ;;  %v200_v4 = vld [vmem:[#allocation3 + $0x178] sm:$0xff] }
 0x2dc   :  { %10615 = vmatpush1.bf16.msra.mxu0 %v18315_v12  ;;  %11174 = vmatpush1.bf16.msra.mxu1 %v18317_v13  ;;  %v1491_v12 = vld [vmem:[#allocation6 + $0x2760] sm:$0xff]  ;;  %v1488_v13 = vld [vmem:[#allocation6 + $0x2748] sm:$0xff] }
 0x2dd   :  { %10616 = vmatprep.subr.bf16.mxu0 %v18324_v16  ;;  %11175 = vmatprep.subr.bf16.mxu1 %v18326_v18  ;;  %v1492_v16 = vld [vmem:[#allocation6 + $0x2768] sm:$0xff]  ;;  %v18363_v18 = vcombine.low %v1479_v63, %v1483_v1  ;;  %v18372_v20 = vcombine.high %v1487_v11, %v1491_v12  ;;  %v20183_v63 = vpack.c.bf16 %v197_v54, %v171_v52 }
 0x2de   :  { %v18374_v21 = vcombine.high %v1488_v13, %v1492_v16  ;;  %v18373_v31 = vcombine.low %v1488_v13, %v1492_v16  ;;  %v1524_v1 = vld [vmem:[#allocation6 + $0x2868] sm:$0xff]  ;;  %v20185_v13 = vpack.c.bf16 %v200_v4, %v174_v2 }
 0x2df   :  { %v1528_v16 = vld [vmem:[#allocation6 + $0x2888] sm:$0xff] }
 0x2e0   :  { %10617 = vmatpush1.bf16.msra.mxu0 %v18323_v23  ;;  %11176 = vmatpush1.bf16.msra.mxu1 %v18325_v24  ;;  %v1499_v23 = vld [vmem:[#allocation6 + $0x27a0] sm:$0xff]  ;;  %v1496_v24 = vld [vmem:[#allocation6 + $0x2788] sm:$0xff] }
 0x2e1   :  { %10618 = vmatprep.subr.bf16.mxu0 %v18332_v28  ;;  %11177 = vmatprep.subr.bf16.mxu1 %v18334_v29  ;;  %v1500_v28 = vld [vmem:[#allocation6 + $0x27a8] sm:$0xff]  ;;  %v18371_v29 = vcombine.low %v1487_v11, %v1491_v12  ;;  %v18380_v32 = vcombine.high %v1495_v22, %v1499_v23  ;;  %v1527_v11 = vld [vmem:[#allocation6 + $0x2880] sm:$0xff] }
 0x2e2   :  { %v18382_v34 = vcombine.high %v1496_v24, %v1500_v28  ;;  %v18381_v42 = vcombine.low %v1496_v24, %v1500_v28  ;;  %v1531_v12 = vld [vmem:[#allocation6 + $0x28a0] sm:$0xff]  ;;  %v1536_v28 = vld [vmem:[#allocation6 + $0x28c8] sm:$0xff] }
 0x2e3   :  { %v1539_v24 = vld [vmem:[#allocation6 + $0x28e0] sm:$0xff] }
 0x2e4   :  { %10619 = vmatpush1.bf16.msra.mxu0 %v18331_v36  ;;  %11178 = vmatpush1.bf16.msra.mxu1 %v18333_v39  ;;  %v1507_v36 = vld [vmem:[#allocation6 + $0x27e0] sm:$0xff]  ;;  %v1504_v39 = vld [vmem:[#allocation6 + $0x27c8] sm:$0xff] }
 0x2e5   :  { %10620 = vmatprep.subr.bf16.mxu0 %v18340_v40  ;;  %11179 = vmatprep.subr.bf16.mxu1 %v18342_v41  ;;  %v1508_v40 = vld [vmem:[#allocation6 + $0x27e8] sm:$0xff]  ;;  %v18379_v41 = vcombine.low %v1495_v22, %v1499_v23  ;;  %v18388_v44 = vcombine.high %v1503_v35, %v1507_v36  ;;  %v1535_v23 = vld [vmem:[#allocation6 + $0x28c0] sm:$0xff] }
 0x2e6   :  { %v18390_v45 = vcombine.high %v1504_v39, %v1508_v40  ;;  %v18389_v55 = vcombine.low %v1504_v39, %v1508_v40  ;;  %v1547_v39 = vld [vmem:[#allocation6 + $0x2920] sm:$0xff]  ;;  %v1544_v40 = vld [vmem:[#allocation6 + $0x2908] sm:$0xff] }
 0x2e8   :  { %10621 = vmatpush1.bf16.msra.mxu0 %v18339_v48  ;;  %11180 = vmatpush1.bf16.msra.mxu1 %v18341_v49  ;;  %v1515_v48 = vld [vmem:[#allocation6 + $0x2820] sm:$0xff]  ;;  %v1512_v49 = vld [vmem:[#allocation6 + $0x2808] sm:$0xff] }
 0x2e9   :  { %10622 = vmatprep.subr.bf16.mxu0 %v18348_v50  ;;  %11181 = vmatprep.subr.bf16.mxu1 %v18350_v51  ;;  %v1516_v50 = vld [vmem:[#allocation6 + $0x2828] sm:$0xff]  ;;  %v18387_v51 = vcombine.low %v1503_v35, %v1507_v36  ;;  %v18396_v56 = vcombine.high %v1511_v47, %v1515_v48  ;;  %v1543_v36 = vld [vmem:[#allocation6 + $0x2900] sm:$0xff] }
 0x2ea   :  { %v18427_v52 = vcombine.low %v1543_v36, %v1547_v39 }
 0x2ec   :  { %10623 = vmatpush1.bf16.msra.mxu0 %v18347_v57  ;;  %11182 = vmatpush1.bf16.msra.mxu1 %v18349_v60  ;;  %v18398_v57 = vcombine.high %v1512_v49, %v1516_v50  ;;  %v1519_v60 = vld [vmem:[#allocation6 + $0x2840] sm:$0xff] }
 0x2ed   :  { %10624 = vmatprep.subr.bf16.mxu0 %v18356_v61  ;;  %11183 = vmatprep.subr.bf16.mxu1 %v18358_v62  ;;  %v1523_v61 = vld [vmem:[#allocation6 + $0x2860] sm:$0xff]  ;;  %v1520_v62 = vld [vmem:[#allocation6 + $0x2848] sm:$0xff] }
 0x2f0   :  { %10625 = vmatpush1.bf16.msra.mxu0 %v18355_v5  ;;  %11184 = vmatpush1.bf16.msra.mxu1 %v18357_v7  ;;  %v18395_v5 = vcombine.low %v1511_v47, %v1515_v48  ;;  %v18397_v7 = vcombine.low %v1512_v49, %v1516_v50  ;;  %v1551_v48 = vld [vmem:[#allocation6 + $0x2940] sm:$0xff]  ;;  %v1552_v50 = vld [vmem:[#allocation6 + $0x2948] sm:$0xff] }
 0x2f1   :  { %10626 = vmatprep.subr.bf16.mxu0 %v18364_v8  ;;  %11185 = vmatprep.subr.bf16.mxu1 %v18366_v9  ;;  %v18404_v8 = vcombine.high %v1519_v60, %v1523_v61  ;;  %v18406_v9 = vcombine.high %v1520_v62, %v1524_v1  ;;  %v1555_v49 = vld [vmem:[#allocation6 + $0x2960] sm:$0xff] }
 0x2f4   :  { %10627 = vmatpush1.bf16.msra.mxu0 %v18363_v18  ;;  %11186 = vmatpush1.bf16.msra.mxu1 %v18365_v19  ;;  %v1532_v18 = vld [vmem:[#allocation6 + $0x28a8] sm:$0xff]  ;;  %v18403_v19 = vcombine.low %v1519_v60, %v1523_v61  ;;  %v1563_v60 = vld [vmem:[#allocation6 + $0x29a0] sm:$0xff] }
 0x2f5   :  { %10628 = vmatprep.subr.bf16.mxu0 %v18372_v20  ;;  %11187 = vmatprep.subr.bf16.mxu1 %v18374_v21  ;;  %v18405_v20 = vcombine.low %v1520_v62, %v1524_v1  ;;  %v18412_v21 = vcombine.high %v1527_v11, %v1531_v12  ;;  %v18414_v22 = vcombine.high %v1528_v16, %v1532_v18  ;;  %v1560_v61 = vld [vmem:[#allocation6 + $0x2988] sm:$0xff] }
 0x2f6   :  { %v1564_v62 = vld [vmem:[#allocation6 + $0x29a8] sm:$0xff]  ;;  %v18435_v1 = vcombine.low %v1551_v48, %v1555_v49 }
 0x2f8   :  { %10629 = vmatpush1.bf16.msra.mxu0 %v18371_v29  ;;  %11188 = vmatpush1.bf16.msra.mxu1 %v18373_v31  ;;  %v1540_v29 = vld [vmem:[#allocation6 + $0x28e8] sm:$0xff]  ;;  %v18411_v31 = vcombine.low %v1527_v11, %v1531_v12 }
 0x2f9   :  { %10630 = vmatprep.subr.bf16.mxu0 %v18380_v32  ;;  %11189 = vmatprep.subr.bf16.mxu1 %v18382_v34  ;;  %v18413_v32 = vcombine.low %v1528_v16, %v1532_v18  ;;  %v18420_v34 = vcombine.high %v1535_v23, %v1539_v24  ;;  %v18422_v35 = vcombine.high %v1536_v28, %v1540_v29  ;;  %v1572_v11 = vld [vmem:[#allocation6 + $0x29e8] sm:$0xff] }
 0x2fa   :  { %v18445_v16 = vcombine.low %v1560_v61, %v1564_v62 }
 0x2fc   :  { %10631 = vmatpush1.bf16.msra.mxu0 %v18379_v41  ;;  %11190 = vmatpush1.bf16.msra.mxu1 %v18381_v42  ;;  %v1548_v41 = vld [vmem:[#allocation6 + $0x2928] sm:$0xff]  ;;  %v18419_v42 = vcombine.low %v1535_v23, %v1539_v24 }
 0x2fd   :  { %10632 = vmatprep.subr.bf16.mxu0 %v18388_v44  ;;  %11191 = vmatprep.subr.bf16.mxu1 %v18390_v45  ;;  %v18421_v44 = vcombine.low %v1536_v28, %v1540_v29  ;;  %v18428_v45 = vcombine.high %v1543_v36, %v1547_v39  ;;  %v18430_v47 = vcombine.high %v1544_v40, %v1548_v41  ;;  %v1580_v23 = vld [vmem:[#allocation6 + $0x2a28] sm:$0xff] }
 0x2fe   :  { %v18429_v54 = vcombine.low %v1544_v40, %v1548_v41  ;;  %v1588_v36 = vld [vmem:[#allocation6 + $0x2a68] sm:$0xff] }
 0x300   :  { %10633 = vmatpush1.bf16.msra.mxu0 %v18387_v51  ;;  %11192 = vmatpush1.bf16.msra.mxu1 %v18389_v55  ;;  %v1556_v51 = vld [vmem:[#allocation6 + $0x2968] sm:$0xff]  ;;  %v18436_v55 = vcombine.high %v1551_v48, %v1555_v49 }
 0x301   :  { %10645 = vmatprep.subr.bf16.mxu0 %v18396_v56  ;;  %11204 = vmatprep.subr.bf16.mxu1 %v18398_v57  ;;  %v18438_v56 = vcombine.high %v1552_v50, %v1556_v51  ;;  %v1559_v57 = vld [vmem:[#allocation6 + $0x2980] sm:$0xff]  ;;  %v18437_v2 = vcombine.low %v1552_v50, %v1556_v51  ;;  %v1596_v48 = vld [vmem:[#allocation6 + $0x2aa8] sm:$0xff] }
 0x302   :  { %v18444_v4 = vcombine.high %v1559_v57, %v1563_v60  ;;  %v18443_v12 = vcombine.low %v1559_v57, %v1563_v60  ;;  %v1604_v57 = vld [vmem:[#allocation6 + $0x2ae8] sm:$0xff] }
 0x303   :  { %10635 = vmatmul.mubr.bf16.vlgmr.msra.gmra.mrb[0].mxu0 %v20183_v63  ;;  %11194 = vmatmul.mubr.bf16.vlgmr.msra.gmra.mrb[0].mxu1 %v20183_v63 }
 0x304   :  { %10646 = vmatpush1.bf16.msra.mxu0 %v18395_v5  ;;  %11205 = vmatpush1.bf16.msra.mxu1 %v18397_v7  ;;  %v18446_v5 = vcombine.high %v1560_v61, %v1564_v62  ;;  %v1567_v7 = vld [vmem:[#allocation6 + $0x29c0] sm:$0xff] }
 0x305   :  { %10647 = vmatprep.subr.bf16.mxu0 %v18404_v8  ;;  %11206 = vmatprep.subr.bf16.mxu1 %v18406_v9  ;;  %v1571_v8 = vld [vmem:[#allocation6 + $0x29e0] sm:$0xff]  ;;  %v1568_v9 = vld [vmem:[#allocation6 + $0x29c8] sm:$0xff] }
 0x306   :  { %10677 = vmatprep.mubr.bf16.mxu0 %v20185_v13  ;;  %11236 = vmatprep.mubr.bf16.mxu1 %v20185_v13  ;;  %v18452_v18 = vcombine.high %v1567_v7, %v1571_v8  ;;  %v18451_v24 = vcombine.low %v1567_v7, %v1571_v8  ;;  %v18453_v28 = vcombine.low %v1568_v9, %v1572_v11  ;;  %v1612_v7 = vld [vmem:[#allocation6 + $0x2b28] sm:$0xff] }
 0x308   :  { %10648 = vmatpush1.bf16.msra.mxu0 %v18403_v19  ;;  %11207 = vmatpush1.bf16.msra.mxu1 %v18405_v20  ;;  %v18454_v19 = vcombine.high %v1568_v9, %v1572_v11  ;;  %v1575_v20 = vld [vmem:[#allocation6 + $0x2a00] sm:$0xff] }
 0x309   :  { %10649 = vmatprep.subr.bf16.mxu0 %v18412_v21  ;;  %11208 = vmatprep.subr.bf16.mxu1 %v18414_v22  ;;  %v1579_v21 = vld [vmem:[#allocation6 + $0x2a20] sm:$0xff]  ;;  %v1576_v22 = vld [vmem:[#allocation6 + $0x2a08] sm:$0xff] }
 0x30a   :  { %v18460_v29 = vcombine.high %v1575_v20, %v1579_v21  ;;  %v18459_v39 = vcombine.low %v1575_v20, %v1579_v21  ;;  %v18461_v40 = vcombine.low %v1576_v22, %v1580_v23  ;;  %v1620_v20 = vld [vmem:[#allocation6 + $0x2b68] sm:$0xff] }
 0x30c   :  { %10650 = vmatpush1.bf16.msra.mxu0 %v18411_v31  ;;  %11209 = vmatpush1.bf16.msra.mxu1 %v18413_v32  ;;  %v18462_v31 = vcombine.high %v1576_v22, %v1580_v23  ;;  %v1583_v32 = vld [vmem:[#allocation6 + $0x2a40] sm:$0xff] }
 0x30d   :  { %10651 = vmatprep.subr.bf16.mxu0 %v18420_v34  ;;  %11210 = vmatprep.subr.bf16.mxu1 %v18422_v35  ;;  %v1587_v34 = vld [vmem:[#allocation6 + $0x2a60] sm:$0xff]  ;;  %v1584_v35 = vld [vmem:[#allocation6 + $0x2a48] sm:$0xff] }
 0x30e   :  { %v18468_v41 = vcombine.high %v1583_v32, %v1587_v34  ;;  %v18467_v49 = vcombine.low %v1583_v32, %v1587_v34  ;;  %v18469_v50 = vcombine.low %v1584_v35, %v1588_v36  ;;  %v1628_v32 = vld [vmem:[#allocation6 + $0x2ba8] sm:$0xff] }
 0x310   :  { %10652 = vmatpush1.bf16.msra.mxu0 %v18419_v42  ;;  %11211 = vmatpush1.bf16.msra.mxu1 %v18421_v44  ;;  %v18470_v42 = vcombine.high %v1584_v35, %v1588_v36  ;;  %v1591_v44 = vld [vmem:[#allocation6 + $0x2a80] sm:$0xff] }
 0x311   :  { %10653 = vmatprep.subr.bf16.mxu0 %v18428_v45  ;;  %11212 = vmatprep.subr.bf16.mxu1 %v18430_v47  ;;  %v1595_v45 = vld [vmem:[#allocation6 + $0x2aa0] sm:$0xff]  ;;  %v1592_v47 = vld [vmem:[#allocation6 + $0x2a88] sm:$0xff] }
 0x312   :  { %v18476_v51 = vcombine.high %v1591_v44, %v1595_v45  ;;  %v18475_v60 = vcombine.low %v1591_v44, %v1595_v45  ;;  %v18477_v61 = vcombine.low %v1592_v47, %v1596_v48  ;;  %v1636_v44 = vld [vmem:[#allocation6 + $0x2be8] sm:$0xff] }
 0x314   :  { %10654 = vmatpush1.bf16.msra.mxu0 %v18427_v52  ;;  %11213 = vmatpush1.bf16.msra.mxu1 %v18429_v54  ;;  %v18478_v52 = vcombine.high %v1592_v47, %v1596_v48  ;;  %v1599_v54 = vld [vmem:[#allocation6 + $0x2ac0] sm:$0xff] }
 0x315   :  { %10655 = vmatprep.subr.bf16.mxu0 %v18436_v55  ;;  %11214 = vmatprep.subr.bf16.mxu1 %v18438_v56  ;;  %v1603_v55 = vld [vmem:[#allocation6 + $0x2ae0] sm:$0xff]  ;;  %v1600_v56 = vld [vmem:[#allocation6 + $0x2ac8] sm:$0xff] }
 0x316   :  { %v18484_v62 = vcombine.high %v1599_v54, %v1603_v55  ;;  %v18483_v8 = vcombine.low %v1599_v54, %v1603_v55  ;;  %v18485_v9 = vcombine.low %v1600_v56, %v1604_v57  ;;  %v1644_v54 = vld [vmem:[#allocation6 + $0x2c28] sm:$0xff] }
 0x318   :  { %10656 = vmatpush1.bf16.msra.mxu0 %v18435_v1  ;;  %11215 = vmatpush1.bf16.msra.mxu1 %v18437_v2  ;;  %v18486_v1 = vcombine.high %v1600_v56, %v1604_v57  ;;  %v1607_v2 = vld [vmem:[#allocation6 + $0x2b00] sm:$0xff]  ;;  %v199_v57 = vld [vmem:[#allocation3 + $0x170] sm:$0xff] }
 0x319   :  { %10657 = vmatprep.subr.bf16.mxu0 %v18444_v4  ;;  %11216 = vmatprep.subr.bf16.mxu1 %v18446_v5  ;;  %v1611_v4 = vld [vmem:[#allocation6 + $0x2b20] sm:$0xff]  ;;  %v1608_v5 = vld [vmem:[#allocation6 + $0x2b08] sm:$0xff] }
 0x31a   :  { %v18492_v11 = vcombine.high %v1607_v2, %v1611_v4  ;;  %v18491_v21 = vcombine.low %v1607_v2, %v1611_v4  ;;  %v18493_v22 = vcombine.low %v1608_v5, %v1612_v7  ;;  %v173_v56 = vld [vmem:[#allocation3 + $0xa0] sm:$0xff]  ;;  %v1648_v4 = vld [vmem:[#allocation6 + $0x2c48] sm:$0xff] }
 0x31b   :  { %v1651_v2 = vld [vmem:[#allocation6 + $0x2c60] sm:$0xff] }
 0x31c   :  { %10658 = vmatpush1.bf16.msra.mxu0 %v18443_v12  ;;  %11217 = vmatpush1.bf16.msra.mxu1 %v18445_v16  ;;  %v18494_v12 = vcombine.high %v1608_v5, %v1612_v7  ;;  %v1615_v16 = vld [vmem:[#allocation6 + $0x2b40] sm:$0xff]  ;;  %v20191_v5 = vpack.c.bf16 %v199_v57, %v173_v56  ;;  %v1652_v7 = vld [vmem:[#allocation6 + $0x2c68] sm:$0xff] }
 0x31d   :  { %10659 = vmatprep.subr.bf16.mxu0 %v18452_v18  ;;  %11218 = vmatprep.subr.bf16.mxu1 %v18454_v19  ;;  %v1619_v18 = vld [vmem:[#allocation6 + $0x2b60] sm:$0xff]  ;;  %v1616_v19 = vld [vmem:[#allocation6 + $0x2b48] sm:$0xff] }
 0x31e   :  { %v18500_v23 = vcombine.high %v1615_v16, %v1619_v18  ;;  %v18499_v34 = vcombine.low %v1615_v16, %v1619_v18  ;;  %v18501_v35 = vcombine.low %v1616_v19, %v1620_v20  ;;  %v18534_v18 = vcombine.high %v1648_v4, %v1652_v7  ;;  %v1680_v56 = vld [vmem:[#allocation6 + $0x2d48] sm:$0xff] }
 0x31f   :  { %v1684_v57 = vld [vmem:[#allocation6 + $0x2d68] sm:$0xff] }
 0x320   :  { %10660 = vmatpush1.bf16.msra.mxu0 %v18451_v24  ;;  %11219 = vmatpush1.bf16.msra.mxu1 %v18453_v28  ;;  %v18502_v24 = vcombine.high %v1616_v19, %v1620_v20  ;;  %v1623_v28 = vld [vmem:[#allocation6 + $0x2b80] sm:$0xff] }
 0x321   :  { %10661 = vmatprep.subr.bf16.mxu0 %v18460_v29  ;;  %11220 = vmatprep.subr.bf16.mxu1 %v18462_v31  ;;  %v1627_v29 = vld [vmem:[#allocation6 + $0x2ba0] sm:$0xff]  ;;  %v1624_v31 = vld [vmem:[#allocation6 + $0x2b88] sm:$0xff] }
 0x322   :  { %v18508_v36 = vcombine.high %v1623_v28, %v1627_v29  ;;  %v18507_v45 = vcombine.low %v1623_v28, %v1627_v29  ;;  %v18509_v47 = vcombine.low %v1624_v31, %v1628_v32  ;;  %v1655_v19 = vld [vmem:[#allocation6 + $0x2c80] sm:$0xff]  ;;  %v18533_v28 = vcombine.low %v1648_v4, %v1652_v7  ;;  %v1688_v7 = vld [vmem:[#allocation6 + $0x2d88] sm:$0xff] }
 0x323   :  { %v1659_v20 = vld [vmem:[#allocation6 + $0x2ca0] sm:$0xff] }
 0x324   :  { %10662 = vmatpush1.bf16.msra.mxu0 %v18459_v39  ;;  %11221 = vmatpush1.bf16.msra.mxu1 %v18461_v40  ;;  %v18510_v39 = vcombine.high %v1624_v31, %v1628_v32  ;;  %v1631_v40 = vld [vmem:[#allocation6 + $0x2bc0] sm:$0xff]  ;;  %v18540_v29 = vcombine.high %v1655_v19, %v1659_v20 }
 0x325   :  { %10663 = vmatprep.subr.bf16.mxu0 %v18468_v41  ;;  %11222 = vmatprep.subr.bf16.mxu1 %v18470_v42  ;;  %v1635_v41 = vld [vmem:[#allocation6 + $0x2be0] sm:$0xff]  ;;  %v1632_v42 = vld [vmem:[#allocation6 + $0x2bc8] sm:$0xff] }
 0x326   :  { %v18516_v48 = vcombine.high %v1631_v40, %v1635_v41  ;;  %v18515_v55 = vcombine.low %v1631_v40, %v1635_v41  ;;  %v1663_v32 = vld [vmem:[#allocation6 + $0x2cc0] sm:$0xff] }
 0x327   :  { %v1691_v4 = vld [vmem:[#allocation6 + $0x2da0] sm:$0xff] }
 0x328   :  { %10664 = vmatpush1.bf16.msra.mxu0 %v18467_v49  ;;  %11223 = vmatpush1.bf16.msra.mxu1 %v18469_v50  ;;  %v18518_v49 = vcombine.high %v1632_v42, %v1636_v44  ;;  %v1639_v50 = vld [vmem:[#allocation6 + $0x2c00] sm:$0xff] }
 0x329   :  { %10665 = vmatprep.subr.bf16.mxu0 %v18476_v51  ;;  %11224 = vmatprep.subr.bf16.mxu1 %v18478_v52  ;;  %v1643_v51 = vld [vmem:[#allocation6 + $0x2c20] sm:$0xff]  ;;  %v1640_v52 = vld [vmem:[#allocation6 + $0x2c08] sm:$0xff] }
 0x32c   :  { %10666 = vmatpush1.bf16.msra.mxu0 %v18475_v60  ;;  %11225 = vmatpush1.bf16.msra.mxu1 %v18477_v61  ;;  %v18517_v60 = vcombine.low %v1632_v42, %v1636_v44  ;;  %v18524_v61 = vcombine.high %v1639_v50, %v1643_v51  ;;  %v1671_v44 = vld [vmem:[#allocation6 + $0x2d00] sm:$0xff] }
 0x32d   :  { %10667 = vmatprep.subr.bf16.mxu0 %v18484_v62  ;;  %11226 = vmatprep.subr.bf16.mxu1 %v18486_v1  ;;  %v18526_v62 = vcombine.high %v1640_v52, %v1644_v54  ;;  %v1647_v1 = vld [vmem:[#allocation6 + $0x2c40] sm:$0xff] }
 0x32e   :  { %v18532_v16 = vcombine.high %v1647_v1, %v1651_v2 }
 0x330   :  { %10668 = vmatpush1.bf16.msra.mxu0 %v18483_v8  ;;  %11227 = vmatpush1.bf16.msra.mxu1 %v18485_v9  ;;  %v176_v8 = vld [vmem:[#allocation3 + $0xb8] sm:$0xff]  ;;  %v202_v9 = vld [vmem:[#allocation3 + $0x188] sm:$0xff] }
 0x331   :  { %10669 = vmatprep.subr.bf16.mxu0 %v18492_v11  ;;  %11228 = vmatprep.subr.bf16.mxu1 %v18494_v12  ;;  %v18523_v11 = vcombine.low %v1639_v50, %v1643_v51  ;;  %v18525_v12 = vcombine.low %v1640_v52, %v1644_v54  ;;  %v1679_v54 = vld [vmem:[#allocation6 + $0x2d40] sm:$0xff] }
 0x334   :  { %10670 = vmatpush1.bf16.msra.mxu0 %v18491_v21  ;;  %11229 = vmatpush1.bf16.msra.mxu1 %v18493_v22  ;;  %v20193_v21 = vpack.c.bf16 %v202_v9, %v176_v8  ;;  %v1656_v22 = vld [vmem:[#allocation6 + $0x2c88] sm:$0xff] }
 0x335   :  { %10671 = vmatprep.subr.bf16.mxu0 %v18500_v23  ;;  %11230 = vmatprep.subr.bf16.mxu1 %v18502_v24  ;;  %v1660_v23 = vld [vmem:[#allocation6 + $0x2ca8] sm:$0xff]  ;;  %v18531_v24 = vcombine.low %v1647_v1, %v1651_v2  ;;  %v18566_v1 = vcombine.high %v1680_v56, %v1684_v57  ;;  %v1687_v2 = vld [vmem:[#allocation6 + $0x2d80] sm:$0xff] }
 0x336   :  { %v18542_v31 = vcombine.high %v1656_v22, %v1660_v23  ;;  %v18541_v40 = vcombine.low %v1656_v22, %v1660_v23  ;;  %v1692_v8 = vld [vmem:[#allocation6 + $0x2da8] sm:$0xff]  ;;  %v18571_v23 = vcombine.low %v1687_v2, %v1691_v4 }
 0x337   :  { %v1700_v22 = vld [vmem:[#allocation6 + $0x2de8] sm:$0xff] }
 0x338   :  { %10672 = vmatpush1.bf16.msra.mxu0 %v18499_v34  ;;  %11231 = vmatpush1.bf16.msra.mxu1 %v18501_v35  ;;  %v1667_v34 = vld [vmem:[#allocation6 + $0x2ce0] sm:$0xff]  ;;  %v1664_v35 = vld [vmem:[#allocation6 + $0x2cc8] sm:$0xff] }
 0x339   :  { %10673 = vmatprep.subr.bf16.mxu0 %v18508_v36  ;;  %11232 = vmatprep.subr.bf16.mxu1 %v18510_v39  ;;  %v1668_v36 = vld [vmem:[#allocation6 + $0x2ce8] sm:$0xff]  ;;  %v18539_v39 = vcombine.low %v1655_v19, %v1659_v20  ;;  %v18548_v41 = vcombine.high %v1663_v32, %v1667_v34  ;;  %v1699_v19 = vld [vmem:[#allocation6 + $0x2de0] sm:$0xff] }
 0x33a   :  { %v18550_v42 = vcombine.high %v1664_v35, %v1668_v36  ;;  %v18549_v50 = vcombine.low %v1664_v35, %v1668_v36  ;;  %v1696_v20 = vld [vmem:[#allocation6 + $0x2dc8] sm:$0xff] }
 0x33b   :  { %v1708_v35 = vld [vmem:[#allocation6 + $0x2e28] sm:$0xff] }
 0x33c   :  { %10674 = vmatpush1.bf16.msra.mxu0 %v18507_v45  ;;  %11233 = vmatpush1.bf16.msra.mxu1 %v18509_v47  ;;  %v1675_v45 = vld [vmem:[#allocation6 + $0x2d20] sm:$0xff]  ;;  %v1672_v47 = vld [vmem:[#allocation6 + $0x2d08] sm:$0xff] }
 0x33d   :  { %10675 = vmatprep.subr.bf16.mxu0 %v18516_v48  ;;  %11234 = vmatprep.subr.bf16.mxu1 %v18518_v49  ;;  %v1676_v48 = vld [vmem:[#allocation6 + $0x2d28] sm:$0xff]  ;;  %v18547_v49 = vcombine.low %v1663_v32, %v1667_v34  ;;  %v18556_v51 = vcombine.high %v1671_v44, %v1675_v45  ;;  %v1707_v32 = vld [vmem:[#allocation6 + $0x2e20] sm:$0xff] }
 0x33e   :  { %v18558_v52 = vcombine.high %v1672_v47, %v1676_v48  ;;  %v1704_v34 = vld [vmem:[#allocation6 + $0x2e08] sm:$0xff] }
 0x340   :  { %10676 = vmatpush1.bf16.msra.mxu0 %v18515_v55  ;;  %11235 = vmatpush1.bf16.msra.mxu1 %v18517_v60  ;;  %v1683_v55 = vld [vmem:[#allocation6 + $0x2d60] sm:$0xff]  ;;  %v18555_v60 = vcombine.low %v1671_v44, %v1675_v45  ;;  %v1712_v45 = vld [vmem:[#allocation6 + $0x2e48] sm:$0xff] }
 0x341   :  { %10688 = vmatprep.subr.bf16.mxu0 %v18524_v61  ;;  %11247 = vmatprep.subr.bf16.mxu1 %v18526_v62  ;;  %v18557_v61 = vcombine.low %v1672_v47, %v1676_v48  ;;  %v18564_v62 = vcombine.high %v1679_v54, %v1683_v55  ;;  %v18563_v9 = vcombine.low %v1679_v54, %v1683_v55  ;;  %v1715_v44 = vld [vmem:[#allocation6 + $0x2e60] sm:$0xff]  ;;  %v1716_v47 = vld [vmem:[#allocation6 + $0x2e68] sm:$0xff] }
 0x342   :  { %v1723_v54 = vld [vmem:[#allocation6 + $0x2ea0] sm:$0xff]  ;;  %v1720_v55 = vld [vmem:[#allocation6 + $0x2e88] sm:$0xff] }
 0x343   :  { %10678 = vmatmul.mubr.bf16.vlgmr.msra.gmra.mrb[0].mxu0 %v20191_v5  ;;  %11237 = vmatmul.mubr.bf16.vlgmr.msra.gmra.mrb[0].mxu1 %v20191_v5 }
 0x344   :  { %10689 = vmatpush1.bf16.msra.mxu0 %v18523_v11  ;;  %11248 = vmatpush1.bf16.msra.mxu1 %v18525_v12  ;;  %v18565_v11 = vcombine.low %v1680_v56, %v1684_v57  ;;  %v18572_v12 = vcombine.high %v1687_v2, %v1691_v4  ;;  %v1724_v56 = vld [vmem:[#allocation6 + $0x2ea8] sm:$0xff]  ;;  %v1731_v2 = vld [vmem:[#allocation6 + $0x2ee0] sm:$0xff] }
 0x345   :  { %10690 = vmatprep.subr.bf16.mxu0 %v18532_v16  ;;  %11249 = vmatprep.subr.bf16.mxu1 %v18534_v18  ;;  %v18574_v16 = vcombine.high %v1688_v7, %v1692_v8  ;;  %v1695_v18 = vld [vmem:[#allocation6 + $0x2dc0] sm:$0xff]  ;;  %v1728_v4 = vld [vmem:[#allocation6 + $0x2ec8] sm:$0xff] }
 0x346   :  { %10720 = vmatprep.mubr.bf16.mxu0 %v20193_v21  ;;  %11279 = vmatprep.mubr.bf16.mxu1 %v20193_v21  ;;  %v18579_v36 = vcombine.low %v1695_v18, %v1699_v19 }
 0x348   :  { %10691 = vmatpush1.bf16.msra.mxu0 %v18531_v24  ;;  %11250 = vmatpush1.bf16.msra.mxu1 %v18533_v28  ;;  %v18573_v24 = vcombine.low %v1688_v7, %v1692_v8  ;;  %v18580_v28 = vcombine.high %v1695_v18, %v1699_v19  ;;  %v1732_v7 = vld [vmem:[#allocation6 + $0x2ee8] sm:$0xff]  ;;  %v1739_v18 = vld [vmem:[#allocation6 + $0x2f20] sm:$0xff] }
 0x349   :  { %10692 = vmatprep.subr.bf16.mxu0 %v18540_v29  ;;  %11251 = vmatprep.subr.bf16.mxu1 %v18542_v31  ;;  %v18582_v29 = vcombine.high %v1696_v20, %v1700_v22  ;;  %v1703_v31 = vld [vmem:[#allocation6 + $0x2e00] sm:$0xff]  ;;  %v1736_v19 = vld [vmem:[#allocation6 + $0x2f08] sm:$0xff] }
 0x34a   :  { %v18587_v48 = vcombine.low %v1703_v31, %v1707_v32 }
 0x34c   :  { %10693 = vmatpush1.bf16.msra.mxu0 %v18539_v39  ;;  %11252 = vmatpush1.bf16.msra.mxu1 %v18541_v40  ;;  %v18581_v39 = vcombine.low %v1696_v20, %v1700_v22  ;;  %v18588_v40 = vcombine.high %v1703_v31, %v1707_v32  ;;  %v1740_v20 = vld [vmem:[#allocation6 + $0x2f28] sm:$0xff]  ;;  %v1747_v31 = vld [vmem:[#allocation6 + $0x2f60] sm:$0xff] }
 0x34d   :  { %10694 = vmatprep.subr.bf16.mxu0 %v18548_v41  ;;  %11253 = vmatprep.subr.bf16.mxu1 %v18550_v42  ;;  %v18590_v41 = vcombine.high %v1704_v34, %v1708_v35  ;;  %v1711_v42 = vld [vmem:[#allocation6 + $0x2e40] sm:$0xff]  ;;  %v1744_v32 = vld [vmem:[#allocation6 + $0x2f48] sm:$0xff] }
 0x34e   :  { %v18595_v57 = vcombine.low %v1711_v42, %v1715_v44 }
 0x350   :  { %10695 = vmatpush1.bf16.msra.mxu0 %v18547_v49  ;;  %11254 = vmatpush1.bf16.msra.mxu1 %v18549_v50  ;;  %v18589_v49 = vcombine.low %v1704_v34, %v1708_v35  ;;  %v18596_v50 = vcombine.high %v1711_v42, %v1715_v44  ;;  %v1748_v34 = vld [vmem:[#allocation6 + $0x2f68] sm:$0xff]  ;;  %v1755_v42 = vld [vmem:[#allocation6 + $0x2fa0] sm:$0xff] }
 0x351   :  { %10696 = vmatprep.subr.bf16.mxu0 %v18556_v51  ;;  %11255 = vmatprep.subr.bf16.mxu1 %v18558_v52  ;;  %v18598_v51 = vcombine.high %v1712_v45, %v1716_v47  ;;  %v1719_v52 = vld [vmem:[#allocation6 + $0x2e80] sm:$0xff]  ;;  %v1752_v44 = vld [vmem:[#allocation6 + $0x2f88] sm:$0xff] }
 0x352   :  { %v18603_v8 = vcombine.low %v1719_v52, %v1723_v54 }
 0x354   :  { %10697 = vmatpush1.bf16.msra.mxu0 %v18555_v60  ;;  %11256 = vmatpush1.bf16.msra.mxu1 %v18557_v61  ;;  %v18597_v60 = vcombine.low %v1712_v45, %v1716_v47  ;;  %v18604_v61 = vcombine.high %v1719_v52, %v1723_v54  ;;  %v1756_v45 = vld [vmem:[#allocation6 + $0x2fa8] sm:$0xff]  ;;  %v1763_v52 = vld [vmem:[#allocation6 + $0x2fe0] sm:$0xff] }
 0x355   :  { %10698 = vmatprep.subr.bf16.mxu0 %v18564_v62  ;;  %11257 = vmatprep.subr.bf16.mxu1 %v18566_v1  ;;  %v18606_v62 = vcombine.high %v1720_v55, %v1724_v56  ;;  %v1727_v1 = vld [vmem:[#allocation6 + $0x2ec0] sm:$0xff]  ;;  %v1760_v54 = vld [vmem:[#allocation6 + $0x2fc8] sm:$0xff] }
 0x356   :  { %v18611_v22 = vcombine.low %v1727_v1, %v1731_v2 }
 0x358   :  { %10699 = vmatpush1.bf16.msra.mxu0 %v18563_v9  ;;  %11258 = vmatpush1.bf16.msra.mxu1 %v18565_v11  ;;  %v18605_v9 = vcombine.low %v1720_v55, %v1724_v56  ;;  %v18612_v11 = vcombine.high %v1727_v1, %v1731_v2  ;;  %v1764_v55 = vld [vmem:[#allocation6 + $0x2fe8] sm:$0xff]  ;;  %v1771_v1 = vld [vmem:[#allocation6 + $0x3020] sm:$0xff] }
 0x359   :  { %10700 = vmatprep.subr.bf16.mxu0 %v18572_v12  ;;  %11259 = vmatprep.subr.bf16.mxu1 %v18574_v16  ;;  %v18614_v12 = vcombine.high %v1728_v4, %v1732_v7  ;;  %v1735_v16 = vld [vmem:[#allocation6 + $0x2f00] sm:$0xff]  ;;  %v1768_v2 = vld [vmem:[#allocation6 + $0x3008] sm:$0xff] }
 0x35a   :  { %v18619_v35 = vcombine.low %v1735_v16, %v1739_v18 }
 0x35c   :  { %10701 = vmatpush1.bf16.msra.mxu0 %v18571_v23  ;;  %11260 = vmatpush1.bf16.msra.mxu1 %v18573_v24  ;;  %v18613_v23 = vcombine.low %v1728_v4, %v1732_v7  ;;  %v18620_v24 = vcombine.high %v1735_v16, %v1739_v18  ;;  %v1772_v4 = vld [vmem:[#allocation6 + $0x3028] sm:$0xff]  ;;  %v1775_v18 = vld [vmem:[#allocation6 + $0x3040] sm:$0xff] }
 0x35d   :  { %10702 = vmatprep.subr.bf16.mxu0 %v18580_v28  ;;  %11261 = vmatprep.subr.bf16.mxu1 %v18582_v29  ;;  %v18622_v28 = vcombine.high %v1736_v19, %v1740_v20  ;;  %v1743_v29 = vld [vmem:[#allocation6 + $0x2f40] sm:$0xff]  ;;  %v18654_v16 = vcombine.high %v1768_v2, %v1772_v4 }
 0x35e   :  { %v18627_v47 = vcombine.low %v1743_v29, %v1747_v31 }
 0x360   :  { %10703 = vmatpush1.bf16.msra.mxu0 %v18579_v36  ;;  %11262 = vmatpush1.bf16.msra.mxu1 %v18581_v39  ;;  %v18621_v36 = vcombine.low %v1736_v19, %v1740_v20  ;;  %v18628_v39 = vcombine.high %v1743_v29, %v1747_v31  ;;  %v1779_v19 = vld [vmem:[#allocation6 + $0x3060] sm:$0xff]  ;;  %v1776_v20 = vld [vmem:[#allocation6 + $0x3048] sm:$0xff]  ;;  %v18653_v31 = vcombine.low %v1768_v2, %v1772_v4 }
 0x361   :  { %10704 = vmatprep.subr.bf16.mxu0 %v18588_v40  ;;  %11263 = vmatprep.subr.bf16.mxu1 %v18590_v41  ;;  %v18630_v40 = vcombine.high %v1744_v32, %v1748_v34  ;;  %v1751_v41 = vld [vmem:[#allocation6 + $0x2f80] sm:$0xff] }
 0x362   :  { %v18635_v56 = vcombine.low %v1751_v41, %v1755_v42 }
 0x364   :  { %10705 = vmatpush1.bf16.msra.mxu0 %v18587_v48  ;;  %11264 = vmatpush1.bf16.msra.mxu1 %v18589_v49  ;;  %v18629_v48 = vcombine.low %v1744_v32, %v1748_v34  ;;  %v18636_v49 = vcombine.high %v1751_v41, %v1755_v42  ;;  %v18660_v32 = vcombine.high %v1775_v18, %v1779_v19  ;;  %v1788_v41 = vld [vmem:[#allocation6 + $0x30a8] sm:$0xff] }
 0x365   :  { %10706 = vmatprep.subr.bf16.mxu0 %v18596_v50  ;;  %11265 = vmatprep.subr.bf16.mxu1 %v18598_v51  ;;  %v18638_v50 = vcombine.high %v1752_v44, %v1756_v45  ;;  %v1759_v51 = vld [vmem:[#allocation6 + $0x2fc0] sm:$0xff]  ;;  %v18659_v42 = vcombine.low %v1775_v18, %v1779_v19 }
 0x366   :  { %v18643_v7 = vcombine.low %v1759_v51, %v1763_v52 }
 0x368   :  { %10707 = vmatpush1.bf16.msra.mxu0 %v18595_v57  ;;  %11266 = vmatpush1.bf16.msra.mxu1 %v18597_v60  ;;  %v18637_v57 = vcombine.low %v1752_v44, %v1756_v45  ;;  %v18644_v60 = vcombine.high %v1759_v51, %v1763_v52  ;;  %v1796_v51 = vld [vmem:[#allocation6 + $0x30e8] sm:$0xff] }
 0x369   :  { %10708 = vmatprep.subr.bf16.mxu0 %v18604_v61  ;;  %11267 = vmatprep.subr.bf16.mxu1 %v18606_v62  ;;  %v18646_v61 = vcombine.high %v1760_v54, %v1764_v55  ;;  %v1767_v62 = vld [vmem:[#allocation6 + $0x3000] sm:$0xff] }
 0x36a   :  { %v18651_v29 = vcombine.low %v1767_v62, %v1771_v1 }
 0x36c   :  { %10709 = vmatpush1.bf16.msra.mxu0 %v18603_v8  ;;  %11268 = vmatpush1.bf16.msra.mxu1 %v18605_v9  ;;  %v175_v8 = vld [vmem:[#allocation3 + $0xb0] sm:$0xff]  ;;  %v201_v9 = vld [vmem:[#allocation3 + $0x180] sm:$0xff] }
 0x36d   :  { %10710 = vmatprep.subr.bf16.mxu0 %v18612_v11  ;;  %11269 = vmatprep.subr.bf16.mxu1 %v18614_v12  ;;  %v18645_v11 = vcombine.low %v1760_v54, %v1764_v55  ;;  %v18652_v12 = vcombine.high %v1767_v62, %v1771_v1  ;;  %v1804_v62 = vld [vmem:[#allocation6 + $0x3128] sm:$0xff] }
 0x370   :  { %10711 = vmatpush1.bf16.msra.mxu0 %v18611_v22  ;;  %11270 = vmatpush1.bf16.msra.mxu1 %v18613_v23  ;;  %v20199_v22 = vpack.c.bf16 %v201_v9, %v175_v8  ;;  %v1780_v23 = vld [vmem:[#allocation6 + $0x3068] sm:$0xff]  ;;  %v1807_v8 = vld [vmem:[#allocation6 + $0x3140] sm:$0xff] }
 0x371   :  { %10712 = vmatprep.subr.bf16.mxu0 %v18620_v24  ;;  %11271 = vmatprep.subr.bf16.mxu1 %v18622_v28  ;;  %v178_v24 = vld [vmem:[#allocation3 + $0xc8] sm:$0xff]  ;;  %v204_v28 = vld [vmem:[#allocation3 + $0x198] sm:$0xff]  ;;  %v18662_v34 = vcombine.high %v1776_v20, %v1780_v23  ;;  %v18661_v44 = vcombine.low %v1776_v20, %v1780_v23  ;;  %v1811_v9 = vld [vmem:[#allocation6 + $0x3160] sm:$0xff] }
 0x372   :  { %v18692_v19 = vcombine.high %v1807_v8, %v1811_v9  ;;  %v1815_v23 = vld [vmem:[#allocation6 + $0x3180] sm:$0xff] }
 0x374   :  { %10713 = vmatpush1.bf16.msra.mxu0 %v18619_v35  ;;  %11272 = vmatpush1.bf16.msra.mxu1 %v18621_v36  ;;  %v1783_v35 = vld [vmem:[#allocation6 + $0x3080] sm:$0xff] }
 0x375   :  { %10714 = vmatprep.subr.bf16.mxu0 %v18628_v39  ;;  %11273 = vmatprep.subr.bf16.mxu1 %v18630_v40  ;;  %v1787_v36 = vld [vmem:[#allocation6 + $0x30a0] sm:$0xff]  ;;  %v20201_v39 = vpack.c.bf16 %v204_v28, %v178_v24  ;;  %v1784_v40 = vld [vmem:[#allocation6 + $0x3088] sm:$0xff] }
 0x376   :  { %v18668_v45 = vcombine.high %v1783_v35, %v1787_v36  ;;  %v18667_v52 = vcombine.low %v1783_v35, %v1787_v36  ;;  %v18669_v54 = vcombine.low %v1784_v40, %v1788_v41  ;;  %v1819_v24 = vld [vmem:[#allocation6 + $0x31a0] sm:$0xff]  ;;  %v1816_v28 = vld [vmem:[#allocation6 + $0x3188] sm:$0xff] }
 0x377   :  { %v1823_v36 = vld [vmem:[#allocation6 + $0x31c0] sm:$0xff] }
 0x378   :  { %10715 = vmatpush1.bf16.msra.mxu0 %v18627_v47  ;;  %11274 = vmatpush1.bf16.msra.mxu1 %v18629_v48  ;;  %v18670_v47 = vcombine.high %v1784_v40, %v1788_v41  ;;  %v1791_v48 = vld [vmem:[#allocation6 + $0x30c0] sm:$0xff]  ;;  %v1824_v41 = vld [vmem:[#allocation6 + $0x31c8] sm:$0xff] }
 0x379   :  { %10716 = vmatprep.subr.bf16.mxu0 %v18636_v49  ;;  %11275 = vmatprep.subr.bf16.mxu1 %v18638_v50  ;;  %v1795_v49 = vld [vmem:[#allocation6 + $0x30e0] sm:$0xff]  ;;  %v1792_v50 = vld [vmem:[#allocation6 + $0x30c8] sm:$0xff] }
 0x37a   :  { %v18676_v55 = vcombine.high %v1791_v48, %v1795_v49  ;;  %v18675_v1 = vcombine.low %v1791_v48, %v1795_v49  ;;  %v18677_v2 = vcombine.low %v1792_v50, %v1796_v51  ;;  %v1827_v40 = vld [vmem:[#allocation6 + $0x31e0] sm:$0xff] }
 0x37b   :  { %v1831_v49 = vld [vmem:[#allocation6 + $0x3200] sm:$0xff] }
 0x37c   :  { %10717 = vmatpush1.bf16.msra.mxu0 %v18635_v56  ;;  %11276 = vmatpush1.bf16.msra.mxu1 %v18637_v57  ;;  %v18678_v56 = vcombine.high %v1792_v50, %v1796_v51  ;;  %v1799_v57 = vld [vmem:[#allocation6 + $0x3100] sm:$0xff]  ;;  %v1832_v51 = vld [vmem:[#allocation6 + $0x3208] sm:$0xff] }
 0x37d   :  { %10718 = vmatprep.subr.bf16.mxu0 %v18644_v60  ;;  %11277 = vmatprep.subr.bf16.mxu1 %v18646_v61  ;;  %v1803_v60 = vld [vmem:[#allocation6 + $0x3120] sm:$0xff]  ;;  %v1800_v61 = vld [vmem:[#allocation6 + $0x3108] sm:$0xff] }
 0x37e   :  { %v18684_v4 = vcombine.high %v1799_v57, %v1803_v60  ;;  %v18685_v18 = vcombine.low %v1800_v61, %v1804_v62  ;;  %v1835_v50 = vld [vmem:[#allocation6 + $0x3220] sm:$0xff] }
 0x380   :  { %10719 = vmatpush1.bf16.msra.mxu0 %v18643_v7  ;;  %11278 = vmatpush1.bf16.msra.mxu1 %v18645_v11  ;;  %v18686_v7 = vcombine.high %v1800_v61, %v1804_v62  ;;  %v1808_v11 = vld [vmem:[#allocation6 + $0x3148] sm:$0xff]  ;;  %v1843_v61 = vld [vmem:[#allocation6 + $0x3260] sm:$0xff] }
 0x381   :  { %10731 = vmatprep.subr.bf16.mxu0 %v18652_v12  ;;  %11290 = vmatprep.subr.bf16.mxu1 %v18654_v16  ;;  %v1812_v12 = vld [vmem:[#allocation6 + $0x3168] sm:$0xff]  ;;  %v18683_v16 = vcombine.low %v1799_v57, %v1803_v60  ;;  %v1839_v60 = vld [vmem:[#allocation6 + $0x3240] sm:$0xff] }
 0x382   :  { %v18694_v20 = vcombine.high %v1808_v11, %v1812_v12  ;;  %v1840_v62 = vld [vmem:[#allocation6 + $0x3248] sm:$0xff] }
 0x383   :  { %10721 = vmatmul.mubr.bf16.vlgmr.msra.gmra.mrb[0].mxu0 %v20199_v22  ;;  %11280 = vmatmul.mubr.bf16.vlgmr.msra.gmra.mrb[0].mxu1 %v20199_v22 }
 0x384   :  { %10732 = vmatpush1.bf16.msra.mxu0 %v18651_v29  ;;  %11291 = vmatpush1.bf16.msra.mxu1 %v18653_v31  ;;  %v1820_v29 = vld [vmem:[#allocation6 + $0x31a8] sm:$0xff]  ;;  %v18691_v31 = vcombine.low %v1807_v8, %v1811_v9  ;;  %v1847_v9 = vld [vmem:[#allocation6 + $0x3280] sm:$0xff] }
 0x385   :  { %10733 = vmatprep.subr.bf16.mxu0 %v18660_v32  ;;  %11292 = vmatprep.subr.bf16.mxu1 %v18662_v34  ;;  %v18693_v32 = vcombine.low %v1808_v11, %v1812_v12  ;;  %v18700_v34 = vcombine.high %v1815_v23, %v1819_v24  ;;  %v18702_v35 = vcombine.high %v1816_v28, %v1820_v29  ;;  %v1851_v11 = vld [vmem:[#allocation6 + $0x32a0] sm:$0xff]  ;;  %v1848_v12 = vld [vmem:[#allocation6 + $0x3288] sm:$0xff] }
 0x386   :  { %10763 = vmatprep.mubr.bf16.mxu0 %v20201_v39  ;;  %11322 = vmatprep.mubr.bf16.mxu1 %v20201_v39 }
 0x388   :  { %10734 = vmatpush1.bf16.msra.mxu0 %v18659_v42  ;;  %11293 = vmatpush1.bf16.msra.mxu1 %v18661_v44  ;;  %v1828_v42 = vld [vmem:[#allocation6 + $0x31e8] sm:$0xff]  ;;  %v18699_v44 = vcombine.low %v1815_v23, %v1819_v24  ;;  %v1855_v24 = vld [vmem:[#allocation6 + $0x32c0] sm:$0xff] }
 0x389   :  { %10735 = vmatprep.subr.bf16.mxu0 %v18668_v45  ;;  %11294 = vmatprep.subr.bf16.mxu1 %v18670_v47  ;;  %v18701_v45 = vcombine.low %v1816_v28, %v1820_v29  ;;  %v18708_v47 = vcombine.high %v1823_v36, %v1827_v40  ;;  %v18710_v48 = vcombine.high %v1824_v41, %v1828_v42  ;;  %v1859_v28 = vld [vmem:[#allocation6 + $0x32e0] sm:$0xff]  ;;  %v1856_v29 = vld [vmem:[#allocation6 + $0x32c8] sm:$0xff] }
 0x38c   :  { %10736 = vmatpush1.bf16.msra.mxu0 %v18667_v52  ;;  %11295 = vmatpush1.bf16.msra.mxu1 %v18669_v54  ;;  %v1836_v52 = vld [vmem:[#allocation6 + $0x3228] sm:$0xff]  ;;  %v18707_v54 = vcombine.low %v1823_v36, %v1827_v40  ;;  %v1863_v40 = vld [vmem:[#allocation6 + $0x3300] sm:$0xff] }
 0x38d   :  { %10737 = vmatprep.subr.bf16.mxu0 %v18676_v55  ;;  %11296 = vmatprep.subr.bf16.mxu1 %v18678_v56  ;;  %v18709_v55 = vcombine.low %v1824_v41, %v1828_v42  ;;  %v18716_v56 = vcombine.high %v1831_v49, %v1835_v50  ;;  %v18718_v57 = vcombine.high %v1832_v51, %v1836_v52  ;;  %v1867_v41 = vld [vmem:[#allocation6 + $0x3320] sm:$0xff]  ;;  %v1864_v42 = vld [vmem:[#allocation6 + $0x3308] sm:$0xff] }
 0x390   :  { %10738 = vmatpush1.bf16.msra.mxu0 %v18675_v1  ;;  %11297 = vmatpush1.bf16.msra.mxu1 %v18677_v2  ;;  %v1844_v1 = vld [vmem:[#allocation6 + $0x3268] sm:$0xff]  ;;  %v18715_v2 = vcombine.low %v1831_v49, %v1835_v50  ;;  %v1871_v50 = vld [vmem:[#allocation6 + $0x3340] sm:$0xff] }
 0x391   :  { %10739 = vmatprep.subr.bf16.mxu0 %v18684_v4  ;;  %11298 = vmatprep.subr.bf16.mxu1 %v18686_v7  ;;  %v18717_v4 = vcombine.low %v1832_v51, %v1836_v52  ;;  %v18724_v7 = vcombine.high %v1839_v60, %v1843_v61  ;;  %v18726_v8 = vcombine.high %v1840_v62, %v1844_v1  ;;  %v1875_v51 = vld [vmem:[#allocation6 + $0x3360] sm:$0xff]  ;;  %v1872_v52 = vld [vmem:[#allocation6 + $0x3348] sm:$0xff] }
 0x394   :  { %10740 = vmatpush1.bf16.msra.mxu0 %v18683_v16  ;;  %11299 = vmatpush1.bf16.msra.mxu1 %v18685_v18  ;;  %v1852_v16 = vld [vmem:[#allocation6 + $0x32a8] sm:$0xff]  ;;  %v18723_v18 = vcombine.low %v1839_v60, %v1843_v61  ;;  %v1879_v61 = vld [vmem:[#allocation6 + $0x3380] sm:$0xff] }
 0x395   :  { %10741 = vmatprep.subr.bf16.mxu0 %v18692_v19  ;;  %11300 = vmatprep.subr.bf16.mxu1 %v18694_v20  ;;  %v18725_v19 = vcombine.low %v1840_v62, %v1844_v1  ;;  %v18732_v20 = vcombine.high %v1847_v9, %v1851_v11  ;;  %v18734_v23 = vcombine.high %v1848_v12, %v1852_v16  ;;  %v1883_v62 = vld [vmem:[#allocation6 + $0x33a0] sm:$0xff]  ;;  %v1880_v1 = vld [vmem:[#allocation6 + $0x3388] sm:$0xff] }
 0x398   :  { %10742 = vmatpush1.bf16.msra.mxu0 %v18691_v31  ;;  %11301 = vmatpush1.bf16.msra.mxu1 %v18693_v32  ;;  %v1860_v31 = vld [vmem:[#allocation6 + $0x32e8] sm:$0xff]  ;;  %v18731_v32 = vcombine.low %v1847_v9, %v1851_v11  ;;  %v1887_v11 = vld [vmem:[#allocation6 + $0x33c0] sm:$0xff] }
 0x399   :  { %10743 = vmatprep.subr.bf16.mxu0 %v18700_v34  ;;  %11302 = vmatprep.subr.bf16.mxu1 %v18702_v35  ;;  %v18733_v34 = vcombine.low %v1848_v12, %v1852_v16  ;;  %v18740_v35 = vcombine.high %v1855_v24, %v1859_v28  ;;  %v18742_v36 = vcombine.high %v1856_v29, %v1860_v31  ;;  %v1891_v12 = vld [vmem:[#allocation6 + $0x33e0] sm:$0xff]  ;;  %v1888_v16 = vld [vmem:[#allocation6 + $0x33c8] sm:$0xff] }
 0x39c   :  { %10744 = vmatpush1.bf16.msra.mxu0 %v18699_v44  ;;  %11303 = vmatpush1.bf16.msra.mxu1 %v18701_v45  ;;  %v1868_v44 = vld [vmem:[#allocation6 + $0x3328] sm:$0xff]  ;;  %v18739_v45 = vcombine.low %v1855_v24, %v1859_v28  ;;  %v233_v28 = vld [vmem:[#allocation6 + $0x10] sm:$0xff] }
 0x39d   :  { %10745 = vmatprep.subr.bf16.mxu0 %v18708_v47  ;;  %11304 = vmatprep.subr.bf16.mxu1 %v18710_v48  ;;  %v18741_v47 = vcombine.low %v1856_v29, %v1860_v31  ;;  %v18748_v48 = vcombine.high %v1863_v40, %v1867_v41  ;;  %v18750_v49 = vcombine.high %v1864_v42, %v1868_v44  ;;  %v237_v29 = vld [vmem:[#allocation6 + $0x30] sm:$0xff]  ;;  %v234_v31 = vld [vmem:[#allocation6 + $0x18] sm:$0xff] }
 0x3a0   :  { %10746 = vmatpush1.bf16.msra.mxu0 %v18707_v54  ;;  %11305 = vmatpush1.bf16.msra.mxu1 %v18709_v55  ;;  %v1876_v54 = vld [vmem:[#allocation6 + $0x3368] sm:$0xff]  ;;  %v18747_v55 = vcombine.low %v1863_v40, %v1867_v41  ;;  %v17120_v41 = vcombine.high %v233_v28, %v237_v29 }
 0x3a1   :  { %10747 = vmatprep.subr.bf16.mxu0 %v18716_v56  ;;  %11306 = vmatprep.subr.bf16.mxu1 %v18718_v57  ;;  %v18749_v56 = vcombine.low %v1864_v42, %v1868_v44  ;;  %v18756_v57 = vcombine.high %v1871_v50, %v1875_v51  ;;  %v18758_v60 = vcombine.high %v1872_v52, %v1876_v54  ;;  %v241_v44 = vld [vmem:[#allocation6 + $0x50] sm:$0xff] }
 0x3a4   :  { %10748 = vmatpush1.bf16.msra.mxu0 %v18715_v2  ;;  %11307 = vmatpush1.bf16.msra.mxu1 %v18717_v4  ;;  %v1884_v2 = vld [vmem:[#allocation6 + $0x33a8] sm:$0xff]  ;;  %v18755_v4 = vcombine.low %v1871_v50, %v1875_v51  ;;  %v17119_v50 = vcombine.low %v233_v28, %v237_v29 }
 0x3a5   :  { %10749 = vmatprep.subr.bf16.mxu0 %v18724_v7  ;;  %11308 = vmatprep.subr.bf16.mxu1 %v18726_v8  ;;  %v18757_v7 = vcombine.low %v1872_v52, %v1876_v54  ;;  %v18764_v8 = vcombine.high %v1879_v61, %v1883_v62  ;;  %v18766_v9 = vcombine.high %v1880_v1, %v1884_v2 }
 0x3a8   :  { %10750 = vmatpush1.bf16.msra.mxu0 %v18723_v18  ;;  %11309 = vmatpush1.bf16.msra.mxu1 %v18725_v19  ;;  %v1892_v18 = vld [vmem:[#allocation6 + $0x33e8] sm:$0xff]  ;;  %v18763_v19 = vcombine.low %v1879_v61, %v1883_v62 }
 0x3a9   :  { %10751 = vmatprep.subr.bf16.mxu0 %v18732_v20  ;;  %11310 = vmatprep.subr.bf16.mxu1 %v18734_v23  ;;  %v18765_v20 = vcombine.low %v1880_v1, %v1884_v2  ;;  %v18772_v23 = vcombine.high %v1887_v11, %v1891_v12  ;;  %v18774_v24 = vcombine.high %v1888_v16, %v1892_v18 }
 0x3aa   :  { %v18773_v40 = vcombine.low %v1888_v16, %v1892_v18 }
 0x3ac   :  { %10752 = vmatpush1.bf16.msra.mxu0 %v18731_v32  ;;  %11311 = vmatpush1.bf16.msra.mxu1 %v18733_v34  ;;  %v238_v32 = vld [vmem:[#allocation6 + $0x38] sm:$0xff]  ;;  %v18771_v34 = vcombine.low %v1887_v11, %v1891_v12 }
 0x3ad   :  { %10753 = vmatprep.subr.bf16.mxu0 %v18740_v35  ;;  %11312 = vmatprep.subr.bf16.mxu1 %v18742_v36  ;;  %v177_v35 = vld [vmem:[#allocation3 + $0xc0] sm:$0xff]  ;;  %v203_v36 = vld [vmem:[#allocation3 + $0x190] sm:$0xff]  ;;  %v17122_v42 = vcombine.high %v234_v31, %v238_v32  ;;  %v17121_v51 = vcombine.low %v234_v31, %v238_v32 }
 0x3ae   :  { %v273_v32 = vld [vmem:[#allocation6 + $0x150] sm:$0xff] }
 0x3b0   :  { %10754 = vmatpush1.bf16.msra.mxu0 %v18739_v45  ;;  %11313 = vmatpush1.bf16.msra.mxu1 %v18741_v47  ;;  %v245_v45 = vld [vmem:[#allocation6 + $0x70] sm:$0xff]  ;;  %v20207_v47 = vpack.c.bf16 %v203_v36, %v177_v35  ;;  %v274_v35 = vld [vmem:[#allocation6 + $0x158] sm:$0xff] }
 0x3b1   :  { %10755 = vmatprep.subr.bf16.mxu0 %v18748_v48  ;;  %11314 = vmatprep.subr.bf16.mxu1 %v18750_v49  ;;  %v242_v48 = vld [vmem:[#allocation6 + $0x58] sm:$0xff]  ;;  %v17128_v52 = vcombine.high %v241_v44, %v245_v45  ;;  %v17127_v61 = vcombine.low %v241_v44, %v245_v45  ;;  %v281_v45 = vld [vmem:[#allocation6 + $0x190] sm:$0xff] }
 0x3b2   :  { %v246_v49 = vld [vmem:[#allocation6 + $0x78] sm:$0xff] }
 0x3b3   :  { %v17130_v54 = vcombine.high %v242_v48, %v246_v49  ;;  %v17129_v62 = vcombine.low %v242_v48, %v246_v49  ;;  %v278_v36 = vld [vmem:[#allocation6 + $0x178] sm:$0xff]  ;;  %v285_v48 = vld [vmem:[#allocation6 + $0x1b0] sm:$0xff] }
 0x3b4   :  { %10756 = vmatpush1.bf16.msra.mxu0 %v18747_v55  ;;  %11315 = vmatpush1.bf16.msra.mxu1 %v18749_v56  ;;  %v249_v55 = vld [vmem:[#allocation6 + $0x90] sm:$0xff]  ;;  %v17162_v44 = vcombine.high %v274_v35, %v278_v36  ;;  %v282_v49 = vld [vmem:[#allocation6 + $0x198] sm:$0xff] }
 0x3b5   :  { %10757 = vmatprep.subr.bf16.mxu0 %v18756_v57  ;;  %11316 = vmatprep.subr.bf16.mxu1 %v18758_v60  ;;  %v253_v56 = vld [vmem:[#allocation6 + $0xb0] sm:$0xff]  ;;  %v250_v57 = vld [vmem:[#allocation6 + $0x98] sm:$0xff] }
 0x3b6   :  { %v254_v60 = vld [vmem:[#allocation6 + $0xb8] sm:$0xff]  ;;  %v17136_v1 = vcombine.high %v249_v55, %v253_v56  ;;  %v17135_v11 = vcombine.low %v249_v55, %v253_v56  ;;  %v289_v56 = vld [vmem:[#allocation6 + $0x1d0] sm:$0xff] }
 0x3b7   :  { %v17138_v2 = vcombine.high %v250_v57, %v254_v60  ;;  %v17137_v12 = vcombine.low %v250_v57, %v254_v60  ;;  %v293_v57 = vld [vmem:[#allocation6 + $0x1f0] sm:$0xff]  ;;  %v290_v60 = vld [vmem:[#allocation6 + $0x1d8] sm:$0xff] }
 0x3b8   :  { %10758 = vmatpush1.bf16.msra.mxu0 %v18755_v4  ;;  %11317 = vmatpush1.bf16.msra.mxu1 %v18757_v7  ;;  %v257_v4 = vld [vmem:[#allocation6 + $0xd0] sm:$0xff] }
 0x3b9   :  { %10759 = vmatprep.subr.bf16.mxu0 %v18764_v8  ;;  %11318 = vmatprep.subr.bf16.mxu1 %v18766_v9  ;;  %v261_v7 = vld [vmem:[#allocation6 + $0xf0] sm:$0xff]  ;;  %v258_v8 = vld [vmem:[#allocation6 + $0xd8] sm:$0xff] }
 0x3ba   :  { %v262_v9 = vld [vmem:[#allocation6 + $0xf8] sm:$0xff]  ;;  %v17144_v16 = vcombine.high %v257_v4, %v261_v7  ;;  %v17143_v28 = vcombine.low %v257_v4, %v261_v7  ;;  %v297_v7 = vld [vmem:[#allocation6 + $0x210] sm:$0xff] }
 0x3bb   :  { %v17146_v18 = vcombine.high %v258_v8, %v262_v9  ;;  %v17145_v29 = vcombine.low %v258_v8, %v262_v9  ;;  %v301_v8 = vld [vmem:[#allocation6 + $0x230] sm:$0xff]  ;;  %v298_v9 = vld [vmem:[#allocation6 + $0x218] sm:$0xff] }
 0x3bc   :  { %10760 = vmatpush1.bf16.msra.mxu0 %v18763_v19  ;;  %11319 = vmatpush1.bf16.msra.mxu1 %v18765_v20  ;;  %v265_v19 = vld [vmem:[#allocation6 + $0x110] sm:$0xff] }
 0x3bd   :  { %10761 = vmatprep.subr.bf16.mxu0 %v18772_v23  ;;  %11320 = vmatprep.subr.bf16.mxu1 %v18774_v24  ;;  %v269_v20 = vld [vmem:[#allocation6 + $0x130] sm:$0xff]  ;;  %v266_v23 = vld [vmem:[#allocation6 + $0x118] sm:$0xff] }
 0x3be   :  { %v270_v24 = vld [vmem:[#allocation6 + $0x138] sm:$0xff]  ;;  %v17152_v31 = vcombine.high %v265_v19, %v269_v20 }
 0x3c0   :  { %10762 = vmatpush1.bf16.msra.mxu0 %v18771_v34  ;;  %11321 = vmatpush1.bf16.msra.mxu1 %v18773_v40  ;;  %v277_v34 = vld [vmem:[#allocation6 + $0x170] sm:$0xff]  ;;  %v17151_v40 = vcombine.low %v265_v19, %v269_v20 }
 0x3c1   :  { %11333 = vmatprep.subr.bf16.mxu0 %v17120_v41  ;;  %11892 = vmatprep.subr.bf16.mxu1 %v17122_v42  ;;  %v17153_v41 = vcombine.low %v266_v23, %v270_v24  ;;  %v17160_v42 = vcombine.high %v273_v32, %v277_v34  ;;  %v305_v20 = vld [vmem:[#allocation6 + $0x250] sm:$0xff] }
 0x3c3   :  { %10764 = vmatmul.mubr.bf16.vlgmr.msra.gmra.mrb[0].mxu0 %v20207_v47  ;;  %11323 = vmatmul.mubr.bf16.vlgmr.msra.gmra.mrb[0].mxu1 %v20207_v47 }
 0x3c4   :  { %11334 = vmatpush1.bf16.msra.mxu0 %v17119_v50  ;;  %11893 = vmatpush1.bf16.msra.mxu1 %v17121_v51  ;;  %v286_v50 = vld [vmem:[#allocation6 + $0x1b8] sm:$0xff]  ;;  %v17159_v51 = vcombine.low %v273_v32, %v277_v34  ;;  %v313_v34 = vld [vmem:[#allocation6 + $0x290] sm:$0xff] }
 0x3c5   :  { %11335 = vmatprep.subr.bf16.mxu0 %v17128_v52  ;;  %11894 = vmatprep.subr.bf16.mxu1 %v17130_v54  ;;  %v17161_v52 = vcombine.low %v274_v35, %v278_v36  ;;  %v17168_v54 = vcombine.high %v281_v45, %v285_v48  ;;  %v17170_v55 = vcombine.high %v282_v49, %v286_v50  ;;  %v317_v35 = vld [vmem:[#allocation6 + $0x2b0] sm:$0xff]  ;;  %v314_v36 = vld [vmem:[#allocation6 + $0x298] sm:$0xff] }
 0x3c6   :  { %11365 = vmatprep.mubr.bf16.mxu0 %v20107_v58  ;;  %11924 = vmatprep.mubr.bf16.mxu1 %v20107_v58  ;;  %v17154_v58 = vcombine.high %v266_v23, %v270_v24  ;;  %v309_v23 = vld [vmem:[#allocation6 + $0x270] sm:$0xff]  ;;  %v306_v24 = vld [vmem:[#allocation6 + $0x258] sm:$0xff] }
 0x3c8   :  { %11336 = vmatpush1.bf16.msra.mxu0 %v17127_v61  ;;  %11895 = vmatpush1.bf16.msra.mxu1 %v17129_v62  ;;  %v294_v61 = vld [vmem:[#allocation6 + $0x1f8] sm:$0xff]  ;;  %v17167_v62 = vcombine.low %v281_v45, %v285_v48  ;;  %v321_v48 = vld [vmem:[#allocation6 + $0x2d0] sm:$0xff] }
 0x3c9   :  { %11337 = vmatprep.subr.bf16.mxu0 %v17136_v1  ;;  %11896 = vmatprep.subr.bf16.mxu1 %v17138_v2  ;;  %v17169_v1 = vcombine.low %v282_v49, %v286_v50  ;;  %v17176_v2 = vcombine.high %v289_v56, %v293_v57  ;;  %v17178_v4 = vcombine.high %v290_v60, %v294_v61  ;;  %v325_v49 = vld [vmem:[#allocation6 + $0x2f0] sm:$0xff]  ;;  %v322_v50 = vld [vmem:[#allocation6 + $0x2d8] sm:$0xff] }
 0x3cc   :  { %11338 = vmatpush1.bf16.msra.mxu0 %v17135_v11  ;;  %11897 = vmatpush1.bf16.msra.mxu1 %v17137_v12  ;;  %v302_v11 = vld [vmem:[#allocation6 + $0x238] sm:$0xff]  ;;  %v17175_v12 = vcombine.low %v289_v56, %v293_v57  ;;  %v329_v57 = vld [vmem:[#allocation6 + $0x310] sm:$0xff] }
 0x3cd   :  { %11339 = vmatprep.subr.bf16.mxu0 %v17144_v16  ;;  %11898 = vmatprep.subr.bf16.mxu1 %v17146_v18  ;;  %v17177_v16 = vcombine.low %v290_v60, %v294_v61  ;;  %v17184_v18 = vcombine.high %v297_v7, %v301_v8  ;;  %v17186_v19 = vcombine.high %v298_v9, %v302_v11  ;;  %v333_v60 = vld [vmem:[#allocation6 + $0x330] sm:$0xff]  ;;  %v330_v61 = vld [vmem:[#allocation6 + $0x318] sm:$0xff] }
 0x3d0   :  { %11340 = vmatpush1.bf16.msra.mxu0 %v17143_v28  ;;  %11899 = vmatpush1.bf16.msra.mxu1 %v17145_v29  ;;  %v310_v28 = vld [vmem:[#allocation6 + $0x278] sm:$0xff]  ;;  %v17183_v29 = vcombine.low %v297_v7, %v301_v8  ;;  %v337_v8 = vld [vmem:[#allocation6 + $0x350] sm:$0xff] }
 0x3d1   :  { %11341 = vmatprep.subr.bf16.mxu0 %v17152_v31  ;;  %11900 = vmatprep.subr.bf16.mxu1 %v17154_v58  ;;  %v17185_v31 = vcombine.low %v298_v9, %v302_v11  ;;  %v17192_v58 = vcombine.high %v305_v20, %v309_v23  ;;  %v17194_v32 = vcombine.high %v306_v24, %v310_v28  ;;  %v341_v9 = vld [vmem:[#allocation6 + $0x370] sm:$0xff]  ;;  %v338_v11 = vld [vmem:[#allocation6 + $0x358] sm:$0xff] }
 0x3d4   :  { %11342 = vmatpush1.bf16.msra.mxu0 %v17151_v40  ;;  %11901 = vmatpush1.bf16.msra.mxu1 %v17153_v41  ;;  %v318_v40 = vld [vmem:[#allocation6 + $0x2b8] sm:$0xff]  ;;  %v17191_v41 = vcombine.low %v305_v20, %v309_v23  ;;  %v345_v23 = vld [vmem:[#allocation6 + $0x390] sm:$0xff] }
 0x3d5   :  { %11343 = vmatprep.subr.bf16.mxu0 %v17160_v42  ;;  %11902 = vmatprep.subr.bf16.mxu1 %v17162_v44  ;;  %v17193_v42 = vcombine.low %v306_v24, %v310_v28  ;;  %v17200_v44 = vcombine.high %v313_v34, %v317_v35  ;;  %v17202_v45 = vcombine.high %v314_v36, %v318_v40  ;;  %v349_v24 = vld [vmem:[#allocation6 + $0x3b0] sm:$0xff]  ;;  %v346_v28 = vld [vmem:[#allocation6 + $0x398] sm:$0xff] }
 0x3d8   :  { %11344 = vmatpush1.bf16.msra.mxu0 %v17159_v51  ;;  %11903 = vmatpush1.bf16.msra.mxu1 %v17161_v52  ;;  %v326_v51 = vld [vmem:[#allocation6 + $0x2f8] sm:$0xff]  ;;  %v17199_v52 = vcombine.low %v313_v34, %v317_v35  ;;  %v353_v35 = vld [vmem:[#allocation6 + $0x3d0] sm:$0xff] }
 0x3d9   :  { %11345 = vmatprep.subr.bf16.mxu0 %v17168_v54  ;;  %11904 = vmatprep.subr.bf16.mxu1 %v17170_v55  ;;  %v17201_v54 = vcombine.low %v314_v36, %v318_v40  ;;  %v17208_v55 = vcombine.high %v321_v48, %v325_v49  ;;  %v17210_v56 = vcombine.high %v322_v50, %v326_v51  ;;  %v357_v36 = vld [vmem:[#allocation6 + $0x3f0] sm:$0xff]  ;;  %v354_v40 = vld [vmem:[#allocation6 + $0x3d8] sm:$0xff] }
 0x3dc   :  { %11346 = vmatpush1.bf16.msra.mxu0 %v17167_v62  ;;  %11905 = vmatpush1.bf16.msra.mxu1 %v17169_v1  ;;  %v334_v62 = vld [vmem:[#allocation6 + $0x338] sm:$0xff]  ;;  %v17207_v1 = vcombine.low %v321_v48, %v325_v49  ;;  %v361_v49 = vld [vmem:[#allocation6 + $0x410] sm:$0xff] }
 0x3dd   :  { %11347 = vmatprep.subr.bf16.mxu0 %v17176_v2  ;;  %11906 = vmatprep.subr.bf16.mxu1 %v17178_v4  ;;  %v17209_v2 = vcombine.low %v322_v50, %v326_v51  ;;  %v17216_v4 = vcombine.high %v329_v57, %v333_v60  ;;  %v17218_v7 = vcombine.high %v330_v61, %v334_v62  ;;  %v365_v50 = vld [vmem:[#allocation6 + $0x430] sm:$0xff]  ;;  %v362_v51 = vld [vmem:[#allocation6 + $0x418] sm:$0xff] }
 0x3e0   :  { %11348 = vmatpush1.bf16.msra.mxu0 %v17175_v12  ;;  %11907 = vmatpush1.bf16.msra.mxu1 %v17177_v16  ;;  %v342_v12 = vld [vmem:[#allocation6 + $0x378] sm:$0xff]  ;;  %v17215_v16 = vcombine.low %v329_v57, %v333_v60  ;;  %v369_v60 = vld [vmem:[#allocation6 + $0x450] sm:$0xff] }
 0x3e1   :  { %11349 = vmatprep.subr.bf16.mxu0 %v17184_v18  ;;  %11908 = vmatprep.subr.bf16.mxu1 %v17186_v19  ;;  %v17217_v18 = vcombine.low %v330_v61, %v334_v62  ;;  %v17224_v19 = vcombine.high %v337_v8, %v341_v9  ;;  %v17226_v20 = vcombine.high %v338_v11, %v342_v12  ;;  %v373_v61 = vld [vmem:[#allocation6 + $0x470] sm:$0xff]  ;;  %v370_v62 = vld [vmem:[#allocation6 + $0x458] sm:$0xff] }
 0x3e4   :  { %11350 = vmatpush1.bf16.msra.mxu0 %v17183_v29  ;;  %11909 = vmatpush1.bf16.msra.mxu1 %v17185_v31  ;;  %v350_v29 = vld [vmem:[#allocation6 + $0x3b8] sm:$0xff]  ;;  %v17223_v31 = vcombine.low %v337_v8, %v341_v9  ;;  %v377_v9 = vld [vmem:[#allocation6 + $0x490] sm:$0xff] }
 0x3e5   :  { %11351 = vmatprep.subr.bf16.mxu0 %v17192_v58  ;;  %11910 = vmatprep.subr.bf16.mxu1 %v17194_v32  ;;  %v17225_v58 = vcombine.low %v338_v11, %v342_v12  ;;  %v17232_v32 = vcombine.high %v345_v23, %v349_v24  ;;  %v17234_v34 = vcombine.high %v346_v28, %v350_v29  ;;  %v381_v11 = vld [vmem:[#allocation6 + $0x4b0] sm:$0xff]  ;;  %v378_v12 = vld [vmem:[#allocation6 + $0x498] sm:$0xff] }
 0x3e8   :  { %11352 = vmatpush1.bf16.msra.mxu0 %v17191_v41  ;;  %11911 = vmatpush1.bf16.msra.mxu1 %v17193_v42  ;;  %v358_v41 = vld [vmem:[#allocation6 + $0x3f8] sm:$0xff]  ;;  %v17231_v42 = vcombine.low %v345_v23, %v349_v24  ;;  %v385_v24 = vld [vmem:[#allocation6 + $0x4d0] sm:$0xff] }
 0x3e9   :  { %11353 = vmatprep.subr.bf16.mxu0 %v17200_v44  ;;  %11912 = vmatprep.subr.bf16.mxu1 %v17202_v45  ;;  %v17233_v44 = vcombine.low %v346_v28, %v350_v29  ;;  %v17240_v45 = vcombine.high %v353_v35, %v357_v36  ;;  %v17242_v48 = vcombine.high %v354_v40, %v358_v41  ;;  %v389_v28 = vld [vmem:[#allocation6 + $0x4f0] sm:$0xff]  ;;  %v386_v29 = vld [vmem:[#allocation6 + $0x4d8] sm:$0xff] }
 0x3ec   :  { %11354 = vmatpush1.bf16.msra.mxu0 %v17199_v52  ;;  %11913 = vmatpush1.bf16.msra.mxu1 %v17201_v54  ;;  %v366_v52 = vld [vmem:[#allocation6 + $0x438] sm:$0xff]  ;;  %v17239_v54 = vcombine.low %v353_v35, %v357_v36  ;;  %v393_v35 = vld [vmem:[#allocation6 + $0x510] sm:$0xff] }
 0x3ed   :  { %11355 = vmatprep.subr.bf16.mxu0 %v17208_v55  ;;  %11914 = vmatprep.subr.bf16.mxu1 %v17210_v56  ;;  %v17241_v55 = vcombine.low %v354_v40, %v358_v41  ;;  %v17248_v56 = vcombine.high %v361_v49, %v365_v50  ;;  %v17250_v57 = vcombine.high %v362_v51, %v366_v52  ;;  %v397_v36 = vld [vmem:[#allocation6 + $0x530] sm:$0xff]  ;;  %v394_v40 = vld [vmem:[#allocation6 + $0x518] sm:$0xff] }
 0x3ee   :  { %v398_v41 = vld [vmem:[#allocation6 + $0x538] sm:$0xff] }
 0x3f0   :  { %11356 = vmatpush1.bf16.msra.mxu0 %v17207_v1  ;;  %11915 = vmatpush1.bf16.msra.mxu1 %v17209_v2  ;;  %v374_v1 = vld [vmem:[#allocation6 + $0x478] sm:$0xff]  ;;  %v17247_v2 = vcombine.low %v361_v49, %v365_v50  ;;  %v405_v49 = vld [vmem:[#allocation6 + $0x570] sm:$0xff] }
 0x3f1   :  { %11357 = vmatprep.subr.bf16.mxu0 %v17216_v4  ;;  %11916 = vmatprep.subr.bf16.mxu1 %v17218_v7  ;;  %v17249_v4 = vcombine.low %v362_v51, %v366_v52  ;;  %v17256_v7 = vcombine.high %v369_v60, %v373_v61  ;;  %v17258_v8 = vcombine.high %v370_v62, %v374_v1  ;;  %v402_v50 = vld [vmem:[#allocation6 + $0x558] sm:$0xff] }
 0x3f2   :  { %v406_v51 = vld [vmem:[#allocation6 + $0x578] sm:$0xff]  ;;  %v17279_v52 = vcombine.low %v393_v35, %v397_v36 }
 0x3f4   :  { %11358 = vmatpush1.bf16.msra.mxu0 %v17215_v16  ;;  %11917 = vmatpush1.bf16.msra.mxu1 %v17217_v18  ;;  %v382_v16 = vld [vmem:[#allocation6 + $0x4b8] sm:$0xff]  ;;  %v17255_v18 = vcombine.low %v369_v60, %v373_v61  ;;  %v413_v60 = vld [vmem:[#allocation6 + $0x5b0] sm:$0xff] }
 0x3f5   :  { %11359 = vmatprep.subr.bf16.mxu0 %v17224_v19  ;;  %11918 = vmatprep.subr.bf16.mxu1 %v17226_v20  ;;  %v17257_v19 = vcombine.low %v370_v62, %v374_v1  ;;  %v17264_v20 = vcombine.high %v377_v9, %v381_v11  ;;  %v17266_v23 = vcombine.high %v378_v12, %v382_v16  ;;  %v410_v61 = vld [vmem:[#allocation6 + $0x598] sm:$0xff] }
 0x3f6   :  { %v414_v62 = vld [vmem:[#allocation6 + $0x5b8] sm:$0xff] }
 0x3f8   :  { %11360 = vmatpush1.bf16.msra.mxu0 %v17223_v31  ;;  %11919 = vmatpush1.bf16.msra.mxu1 %v17225_v58  ;;  %v390_v31 = vld [vmem:[#allocation6 + $0x4f8] sm:$0xff]  ;;  %v17263_v58 = vcombine.low %v377_v9, %v381_v11  ;;  %v421_v9 = vld [vmem:[#allocation6 + $0x5f0] sm:$0xff] }
 0x3f9   :  { %11361 = vmatprep.subr.bf16.mxu0 %v17232_v32  ;;  %11920 = vmatprep.subr.bf16.mxu1 %v17234_v34  ;;  %v17272_v32 = vcombine.high %v385_v24, %v389_v28  ;;  %v17274_v34 = vcombine.high %v386_v29, %v390_v31  ;;  %v418_v11 = vld [vmem:[#allocation6 + $0x5d8] sm:$0xff] }
 0x3fc   :  { %11362 = vmatpush1.bf16.msra.mxu0 %v17231_v42  ;;  %11921 = vmatpush1.bf16.msra.mxu1 %v17233_v44  ;;  %v17271_v42 = vcombine.low %v385_v24, %v389_v28  ;;  %v17273_v44 = vcombine.low %v386_v29, %v390_v31  ;;  %v429_v24 = vld [vmem:[#allocation6 + $0x630] sm:$0xff]  ;;  %v426_v28 = vld [vmem:[#allocation6 + $0x618] sm:$0xff] }
 0x3fd   :  { %11363 = vmatprep.subr.bf16.mxu0 %v17240_v45  ;;  %11922 = vmatprep.subr.bf16.mxu1 %v17242_v48  ;;  %v17280_v45 = vcombine.high %v393_v35, %v397_v36  ;;  %v401_v48 = vld [vmem:[#allocation6 + $0x550] sm:$0xff]  ;;  %v430_v29 = vld [vmem:[#allocation6 + $0x638] sm:$0xff] }
 0x3fe   :  { %v17287_v1 = vcombine.low %v401_v48, %v405_v49  ;;  %v437_v35 = vld [vmem:[#allocation6 + $0x670] sm:$0xff]  ;;  %v434_v36 = vld [vmem:[#allocation6 + $0x658] sm:$0xff] }
 0x400   :  { %11364 = vmatpush1.bf16.msra.mxu0 %v17239_v54  ;;  %11923 = vmatpush1.bf16.msra.mxu1 %v17241_v55  ;;  %v17281_v54 = vcombine.low %v394_v40, %v398_v41  ;;  %v17288_v55 = vcombine.high %v401_v48, %v405_v49  ;;  %v445_v48 = vld [vmem:[#allocation6 + $0x6b0] sm:$0xff]  ;;  %v442_v49 = vld [vmem:[#allocation6 + $0x698] sm:$0xff] }
 0x401   :  { %11376 = vmatprep.subr.bf16.mxu0 %v17248_v56  ;;  %11935 = vmatprep.subr.bf16.mxu1 %v17250_v57  ;;  %v17290_v56 = vcombine.high %v402_v50, %v406_v51  ;;  %v409_v57 = vld [vmem:[#allocation6 + $0x590] sm:$0xff] }
 0x403   :  { %11366 = vmatmul.mubr.bf16.vlgmr.msra.gmra.mrb[4].mxu0 %v20111_v15  ;;  %11925 = vmatmul.mubr.bf16.vlgmr.msra.gmra.mrb[4].mxu1 %v20111_v15  ;;  %v17265_v15 = vcombine.low %v378_v12, %v382_v16  ;;  %v422_v12 = vld [vmem:[#allocation6 + $0x5f8] sm:$0xff]  ;;  %v17295_v16 = vcombine.low %v409_v57, %v413_v60 }
 0x404   :  { %11377 = vmatpush1.bf16.msra.mxu0 %v17247_v2  ;;  %11936 = vmatpush1.bf16.msra.mxu1 %v17249_v4  ;;  %v17289_v2 = vcombine.low %v402_v50, %v406_v51  ;;  %v17296_v4 = vcombine.high %v409_v57, %v413_v60  ;;  %v446_v50 = vld [vmem:[#allocation6 + $0x6b8] sm:$0xff]  ;;  %v453_v57 = vld [vmem:[#allocation6 + $0x6f0] sm:$0xff] }
 0x405   :  { %11378 = vmatprep.subr.bf16.mxu0 %v17256_v7  ;;  %11937 = vmatprep.subr.bf16.mxu1 %v17258_v8  ;;  %v17298_v7 = vcombine.high %v410_v61, %v414_v62  ;;  %v417_v8 = vld [vmem:[#allocation6 + $0x5d0] sm:$0xff]  ;;  %v450_v60 = vld [vmem:[#allocation6 + $0x6d8] sm:$0xff] }
 0x406   :  { %11408 = vmatprep.mubr.bf16.mxu0 %v20113_v25  ;;  %11967 = vmatprep.mubr.bf16.mxu1 %v20113_v25  ;;  %v17282_v25 = vcombine.high %v394_v40, %v398_v41  ;;  %v17303_v31 = vcombine.low %v417_v8, %v421_v9  ;;  %v438_v40 = vld [vmem:[#allocation6 + $0x678] sm:$0xff] }
 0x408   :  { %11379 = vmatpush1.bf16.msra.mxu0 %v17255_v18  ;;  %11938 = vmatpush1.bf16.msra.mxu1 %v17257_v19  ;;  %v17297_v18 = vcombine.low %v410_v61, %v414_v62  ;;  %v17304_v19 = vcombine.high %v417_v8, %v421_v9  ;;  %v454_v61 = vld [vmem:[#allocation6 + $0x6f8] sm:$0xff]  ;;  %v461_v8 = vld [vmem:[#allocation6 + $0x730] sm:$0xff] }
 0x409   :  { %11380 = vmatprep.subr.bf16.mxu0 %v17264_v20  ;;  %11939 = vmatprep.subr.bf16.mxu1 %v17266_v23  ;;  %v17306_v20 = vcombine.high %v418_v11, %v422_v12  ;;  %v425_v23 = vld [vmem:[#allocation6 + $0x610] sm:$0xff]  ;;  %v458_v9 = vld [vmem:[#allocation6 + $0x718] sm:$0xff] }
 0x40a   :  { %v17311_v41 = vcombine.low %v425_v23, %v429_v24 }
 0x40c   :  { %11381 = vmatpush1.bf16.msra.mxu0 %v17263_v58  ;;  %11940 = vmatpush1.bf16.msra.mxu1 %v17265_v15  ;;  %v17305_v58 = vcombine.low %v418_v11, %v422_v12  ;;  %v17312_v15 = vcombine.high %v425_v23, %v429_v24  ;;  %v462_v11 = vld [vmem:[#allocation6 + $0x738] sm:$0xff]  ;;  %v469_v23 = vld [vmem:[#allocation6 + $0x770] sm:$0xff] }
 0x40d   :  { %11382 = vmatprep.subr.bf16.mxu0 %v17272_v32  ;;  %11941 = vmatprep.subr.bf16.mxu1 %v17274_v34  ;;  %v17314_v32 = vcombine.high %v426_v28, %v430_v29  ;;  %v433_v34 = vld [vmem:[#allocation6 + $0x650] sm:$0xff]  ;;  %v466_v24 = vld [vmem:[#allocation6 + $0x758] sm:$0xff] }
 0x40e   :  { %v17319_v51 = vcombine.low %v433_v34, %v437_v35 }
 0x410   :  { %11383 = vmatpush1.bf16.msra.mxu0 %v17271_v42  ;;  %11942 = vmatpush1.bf16.msra.mxu1 %v17273_v44  ;;  %v17313_v42 = vcombine.low %v426_v28, %v430_v29  ;;  %v17320_v44 = vcombine.high %v433_v34, %v437_v35  ;;  %v470_v28 = vld [vmem:[#allocation6 + $0x778] sm:$0xff]  ;;  %v477_v34 = vld [vmem:[#allocation6 + $0x7b0] sm:$0xff] }
 0x411   :  { %11384 = vmatprep.subr.bf16.mxu0 %v17280_v45  ;;  %11943 = vmatprep.subr.bf16.mxu1 %v17282_v25  ;;  %v17322_v45 = vcombine.high %v434_v36, %v438_v40  ;;  %v441_v25 = vld [vmem:[#allocation6 + $0x690] sm:$0xff]  ;;  %v474_v35 = vld [vmem:[#allocation6 + $0x798] sm:$0xff] }
 0x412   :  { %v17327_v62 = vcombine.low %v441_v25, %v445_v48 }
 0x414   :  { %11385 = vmatpush1.bf16.msra.mxu0 %v17279_v52  ;;  %11944 = vmatpush1.bf16.msra.mxu1 %v17281_v54  ;;  %v17321_v52 = vcombine.low %v434_v36, %v438_v40  ;;  %v17328_v54 = vcombine.high %v441_v25, %v445_v48  ;;  %v478_v36 = vld [vmem:[#allocation6 + $0x7b8] sm:$0xff]  ;;  %v485_v25 = vld [vmem:[#allocation6 + $0x7f0] sm:$0xff] }
 0x415   :  { %11386 = vmatprep.subr.bf16.mxu0 %v17288_v55  ;;  %11945 = vmatprep.subr.bf16.mxu1 %v17290_v56  ;;  %v17330_v55 = vcombine.high %v442_v49, %v446_v50  ;;  %v449_v56 = vld [vmem:[#allocation6 + $0x6d0] sm:$0xff]  ;;  %v482_v48 = vld [vmem:[#allocation6 + $0x7d8] sm:$0xff] }
 0x416   :  { %v17335_v12 = vcombine.low %v449_v56, %v453_v57 }
 0x418   :  { %11387 = vmatpush1.bf16.msra.mxu0 %v17287_v1  ;;  %11946 = vmatpush1.bf16.msra.mxu1 %v17289_v2  ;;  %v17329_v1 = vcombine.low %v442_v49, %v446_v50  ;;  %v17336_v2 = vcombine.high %v449_v56, %v453_v57  ;;  %v486_v49 = vld [vmem:[#allocation6 + $0x7f8] sm:$0xff]  ;;  %v493_v56 = vld [vmem:[#allocation6 + $0x830] sm:$0xff] }
 0x419   :  { %11388 = vmatprep.subr.bf16.mxu0 %v17296_v4  ;;  %11947 = vmatprep.subr.bf16.mxu1 %v17298_v7  ;;  %v17338_v4 = vcombine.high %v450_v60, %v454_v61  ;;  %v457_v7 = vld [vmem:[#allocation6 + $0x710] sm:$0xff]  ;;  %v490_v57 = vld [vmem:[#allocation6 + $0x818] sm:$0xff] }
 0x41a   :  { %v17343_v29 = vcombine.low %v457_v7, %v461_v8 }
 0x41c   :  { %11389 = vmatpush1.bf16.msra.mxu0 %v17295_v16  ;;  %11948 = vmatpush1.bf16.msra.mxu1 %v17297_v18  ;;  %v17337_v16 = vcombine.low %v450_v60, %v454_v61  ;;  %v17344_v18 = vcombine.high %v457_v7, %v461_v8  ;;  %v494_v60 = vld [vmem:[#allocation6 + $0x838] sm:$0xff]  ;;  %v501_v7 = vld [vmem:[#allocation6 + $0x870] sm:$0xff] }
 0x41d   :  { %11390 = vmatprep.subr.bf16.mxu0 %v17304_v19  ;;  %11949 = vmatprep.subr.bf16.mxu1 %v17306_v20  ;;  %v17346_v19 = vcombine.high %v458_v9, %v462_v11  ;;  %v465_v20 = vld [vmem:[#allocation6 + $0x750] sm:$0xff]  ;;  %v498_v8 = vld [vmem:[#allocation6 + $0x858] sm:$0xff] }
 0x41e   :  { %v17351_v40 = vcombine.low %v465_v20, %v469_v23 }
 0x420   :  { %11391 = vmatpush1.bf16.msra.mxu0 %v17303_v31  ;;  %11950 = vmatpush1.bf16.msra.mxu1 %v17305_v58  ;;  %v17345_v31 = vcombine.low %v458_v9, %v462_v11  ;;  %v17352_v58 = vcombine.high %v465_v20, %v469_v23  ;;  %v502_v9 = vld [vmem:[#allocation6 + $0x878] sm:$0xff]  ;;  %v509_v20 = vld [vmem:[#allocation6 + $0x8b0] sm:$0xff] }
 0x421   :  { %11392 = vmatprep.subr.bf16.mxu0 %v17312_v15  ;;  %11951 = vmatprep.subr.bf16.mxu1 %v17314_v32  ;;  %v17354_v15 = vcombine.high %v466_v24, %v470_v28  ;;  %v473_v32 = vld [vmem:[#allocation6 + $0x790] sm:$0xff]  ;;  %v506_v23 = vld [vmem:[#allocation6 + $0x898] sm:$0xff] }
 0x422   :  { %v17359_v50 = vcombine.low %v473_v32, %v477_v34 }
 0x424   :  { %11393 = vmatpush1.bf16.msra.mxu0 %v17311_v41  ;;  %11952 = vmatpush1.bf16.msra.mxu1 %v17313_v42  ;;  %v17353_v41 = vcombine.low %v466_v24, %v470_v28  ;;  %v17360_v42 = vcombine.high %v473_v32, %v477_v34  ;;  %v510_v24 = vld [vmem:[#allocation6 + $0x8b8] sm:$0xff]  ;;  %v517_v32 = vld [vmem:[#allocation6 + $0x8f0] sm:$0xff] }
 0x425   :  { %11394 = vmatprep.subr.bf16.mxu0 %v17320_v44  ;;  %11953 = vmatprep.subr.bf16.mxu1 %v17322_v45  ;;  %v17362_v44 = vcombine.high %v474_v35, %v478_v36  ;;  %v481_v45 = vld [vmem:[#allocation6 + $0x7d0] sm:$0xff]  ;;  %v514_v34 = vld [vmem:[#allocation6 + $0x8d8] sm:$0xff] }
 0x426   :  { %v17367_v61 = vcombine.low %v481_v45, %v485_v25 }
 0x428   :  { %11395 = vmatpush1.bf16.msra.mxu0 %v17319_v51  ;;  %11954 = vmatpush1.bf16.msra.mxu1 %v17321_v52  ;;  %v17361_v51 = vcombine.low %v474_v35, %v478_v36  ;;  %v17368_v52 = vcombine.high %v481_v45, %v485_v25  ;;  %v518_v35 = vld [vmem:[#allocation6 + $0x8f8] sm:$0xff] }
 0x429   :  { %11396 = vmatprep.subr.bf16.mxu0 %v17328_v54  ;;  %11955 = vmatprep.subr.bf16.mxu1 %v17330_v55  ;;  %v17370_v54 = vcombine.high %v482_v48, %v486_v49  ;;  %v489_v55 = vld [vmem:[#allocation6 + $0x810] sm:$0xff]  ;;  %v522_v45 = vld [vmem:[#allocation6 + $0x918] sm:$0xff] }
 0x42a   :  { %v17375_v11 = vcombine.low %v489_v55, %v493_v56  ;;  %v526_v25 = vld [vmem:[#allocation6 + $0x938] sm:$0xff] }
 0x42c   :  { %11397 = vmatpush1.bf16.msra.mxu0 %v17327_v62  ;;  %11956 = vmatpush1.bf16.msra.mxu1 %v17329_v1  ;;  %v17369_v62 = vcombine.low %v482_v48, %v486_v49  ;;  %v17376_v1 = vcombine.high %v489_v55, %v493_v56  ;;  %v17401_v49 = vcombine.low %v514_v34, %v518_v35  ;;  %v534_v55 = vld [vmem:[#allocation6 + $0x978] sm:$0xff] }
 0x42d   :  { %11398 = vmatprep.subr.bf16.mxu0 %v17336_v2  ;;  %11957 = vmatprep.subr.bf16.mxu1 %v17338_v4  ;;  %v17378_v2 = vcombine.high %v490_v57, %v494_v60  ;;  %v497_v4 = vld [vmem:[#allocation6 + $0x850] sm:$0xff] }
 0x42e   :  { %v17383_v28 = vcombine.low %v497_v4, %v501_v7 }
 0x430   :  { %11399 = vmatpush1.bf16.msra.mxu0 %v17335_v12  ;;  %11958 = vmatpush1.bf16.msra.mxu1 %v17337_v16  ;;  %v17377_v12 = vcombine.low %v490_v57, %v494_v60  ;;  %v17384_v16 = vcombine.high %v497_v4, %v501_v7  ;;  %v17409_v57 = vcombine.low %v522_v45, %v526_v25  ;;  %v542_v4 = vld [vmem:[#allocation6 + $0x9b8] sm:$0xff] }
 0x431   :  { %11400 = vmatprep.subr.bf16.mxu0 %v17344_v18  ;;  %11959 = vmatprep.subr.bf16.mxu1 %v17346_v19  ;;  %v17386_v18 = vcombine.high %v498_v8, %v502_v9  ;;  %v505_v19 = vld [vmem:[#allocation6 + $0x890] sm:$0xff] }
 0x432   :  { %v17391_v36 = vcombine.low %v505_v19, %v509_v20 }
 0x434   :  { %11401 = vmatpush1.bf16.msra.mxu0 %v17343_v29  ;;  %11960 = vmatpush1.bf16.msra.mxu1 %v17345_v31  ;;  %v17385_v29 = vcombine.low %v498_v8, %v502_v9  ;;  %v17392_v31 = vcombine.high %v505_v19, %v509_v20  ;;  %v550_v19 = vld [vmem:[#allocation6 + $0x9f8] sm:$0xff] }
 0x435   :  { %11402 = vmatprep.subr.bf16.mxu0 %v17352_v58  ;;  %11961 = vmatprep.subr.bf16.mxu1 %v17354_v15  ;;  %v17394_v58 = vcombine.high %v506_v23, %v510_v24  ;;  %v513_v15 = vld [vmem:[#allocation6 + $0x8d0] sm:$0xff] }
 0x436   :  { %v17399_v48 = vcombine.low %v513_v15, %v517_v32 }
 0x438   :  { %11403 = vmatpush1.bf16.msra.mxu0 %v17351_v40  ;;  %11962 = vmatpush1.bf16.msra.mxu1 %v17353_v41  ;;  %v17400_v40 = vcombine.high %v513_v15, %v517_v32  ;;  %v17402_v41 = vcombine.high %v514_v34, %v518_v35  ;;  %v558_v15 = vld [vmem:[#allocation6 + $0xa38] sm:$0xff] }
 0x439   :  { %11404 = vmatprep.subr.bf16.mxu0 %v17360_v42  ;;  %11963 = vmatprep.subr.bf16.mxu1 %v17362_v44  ;;  %v521_v42 = vld [vmem:[#allocation6 + $0x910] sm:$0xff] }
 0x43a   :  { %v525_v44 = vld [vmem:[#allocation6 + $0x930] sm:$0xff] }
 0x43b   :  { %v17407_v56 = vcombine.low %v521_v42, %v525_v44 }
 0x43c   :  { %11405 = vmatpush1.bf16.msra.mxu0 %v17359_v50  ;;  %11964 = vmatpush1.bf16.msra.mxu1 %v17361_v51  ;;  %v17408_v50 = vcombine.high %v521_v42, %v525_v44  ;;  %v529_v51 = vld [vmem:[#allocation6 + $0x950] sm:$0xff]  ;;  %v566_v42 = vld [vmem:[#allocation6 + $0xa78] sm:$0xff] }
 0x43d   :  { %11406 = vmatprep.subr.bf16.mxu0 %v17368_v52  ;;  %11965 = vmatprep.subr.bf16.mxu1 %v17370_v54  ;;  %v533_v52 = vld [vmem:[#allocation6 + $0x970] sm:$0xff]  ;;  %v530_v54 = vld [vmem:[#allocation6 + $0x958] sm:$0xff] }
 0x43e   :  { %v17416_v60 = vcombine.high %v529_v51, %v533_v52  ;;  %v17415_v7 = vcombine.low %v529_v51, %v533_v52  ;;  %v17417_v8 = vcombine.low %v530_v54, %v534_v55  ;;  %v574_v51 = vld [vmem:[#allocation6 + $0xab8] sm:$0xff] }
 0x440   :  { %11407 = vmatpush1.bf16.msra.mxu0 %v17367_v61  ;;  %11966 = vmatpush1.bf16.msra.mxu1 %v17369_v62  ;;  %v17418_v61 = vcombine.high %v530_v54, %v534_v55  ;;  %v537_v62 = vld [vmem:[#allocation6 + $0x990] sm:$0xff] }
 0x441   :  { %11419 = vmatprep.subr.bf16.mxu0 %v17376_v1  ;;  %11978 = vmatprep.subr.bf16.mxu1 %v17378_v2  ;;  %v541_v1 = vld [vmem:[#allocation6 + $0x9b0] sm:$0xff]  ;;  %v538_v2 = vld [vmem:[#allocation6 + $0x998] sm:$0xff] }
 0x442   :  { %v17424_v9 = vcombine.high %v537_v62, %v541_v1  ;;  %v17423_v20 = vcombine.low %v537_v62, %v541_v1  ;;  %v582_v62 = vld [vmem:[#allocation6 + $0xaf8] sm:$0xff] }
 0x443   :  { %11409 = vmatmul.mubr.bf16.vlgmr.msra.gmra.mrb[4].mxu0 %v20119_v30  ;;  %11968 = vmatmul.mubr.bf16.vlgmr.msra.gmra.mrb[4].mxu1 %v20119_v30  ;;  %v17393_v30 = vcombine.low %v506_v23, %v510_v24  ;;  %v17425_v23 = vcombine.low %v538_v2, %v542_v4 }
 0x444   :  { %11420 = vmatpush1.bf16.msra.mxu0 %v17375_v11  ;;  %11979 = vmatpush1.bf16.msra.mxu1 %v17377_v12  ;;  %v17426_v11 = vcombine.high %v538_v2, %v542_v4  ;;  %v545_v12 = vld [vmem:[#allocation6 + $0x9d0] sm:$0xff] }
 0x445   :  { %11421 = vmatprep.subr.bf16.mxu0 %v17384_v16  ;;  %11980 = vmatprep.subr.bf16.mxu1 %v17386_v18  ;;  %v549_v16 = vld [vmem:[#allocation6 + $0x9f0] sm:$0xff]  ;;  %v546_v18 = vld [vmem:[#allocation6 + $0x9d8] sm:$0xff] }
 0x446   :  { %11451 = vmatprep.mubr.bf16.mxu0 %v20121_v37  ;;  %12010 = vmatprep.mubr.bf16.mxu1 %v20121_v37  ;;  %v17410_v37 = vcombine.high %v522_v45, %v526_v25  ;;  %v17432_v24 = vcombine.high %v545_v12, %v549_v16  ;;  %v17431_v32 = vcombine.low %v545_v12, %v549_v16  ;;  %v590_v12 = vld [vmem:[#allocation6 + $0xb38] sm:$0xff] }
 0x447   :  { %v17433_v34 = vcombine.low %v546_v18, %v550_v19 }
 0x448   :  { %11422 = vmatpush1.bf16.msra.mxu0 %v17383_v28  ;;  %11981 = vmatpush1.bf16.msra.mxu1 %v17385_v29  ;;  %v17434_v28 = vcombine.high %v546_v18, %v550_v19  ;;  %v553_v29 = vld [vmem:[#allocation6 + $0xa10] sm:$0xff] }
 0x449   :  { %11423 = vmatprep.subr.bf16.mxu0 %v17392_v31  ;;  %11982 = vmatprep.subr.bf16.mxu1 %v17394_v58  ;;  %v557_v31 = vld [vmem:[#allocation6 + $0xa30] sm:$0xff]  ;;  %v554_v58 = vld [vmem:[#allocation6 + $0xa18] sm:$0xff] }
 0x44a   :  { %v17440_v35 = vcombine.high %v553_v29, %v557_v31  ;;  %v17439_v44 = vcombine.low %v553_v29, %v557_v31  ;;  %v17441_v45 = vcombine.low %v554_v58, %v558_v15  ;;  %v598_v29 = vld [vmem:[#allocation6 + $0xb78] sm:$0xff] }
 0x44c   :  { %11424 = vmatpush1.bf16.msra.mxu0 %v17391_v36  ;;  %11983 = vmatpush1.bf16.msra.mxu1 %v17393_v30  ;;  %v17442_v36 = vcombine.high %v554_v58, %v558_v15  ;;  %v561_v30 = vld [vmem:[#allocation6 + $0xa50] sm:$0xff] }
 0x44d   :  { %11425 = vmatprep.subr.bf16.mxu0 %v17400_v40  ;;  %11984 = vmatprep.subr.bf16.mxu1 %v17402_v41  ;;  %v565_v40 = vld [vmem:[#allocation6 + $0xa70] sm:$0xff]  ;;  %v562_v41 = vld [vmem:[#allocation6 + $0xa58] sm:$0xff] }
 0x44e   :  { %v17448_v25 = vcombine.high %v561_v30, %v565_v40  ;;  %v17447_v52 = vcombine.low %v561_v30, %v565_v40  ;;  %v17449_v54 = vcombine.low %v562_v41, %v566_v42  ;;  %v606_v30 = vld [vmem:[#allocation6 + $0xbb8] sm:$0xff] }
 0x450   :  { %11426 = vmatpush1.bf16.msra.mxu0 %v17399_v48  ;;  %11985 = vmatpush1.bf16.msra.mxu1 %v17401_v49  ;;  %v17450_v48 = vcombine.high %v562_v41, %v566_v42  ;;  %v569_v49 = vld [vmem:[#allocation6 + $0xa90] sm:$0xff] }
 0x451   :  { %11427 = vmatprep.subr.bf16.mxu0 %v17408_v50  ;;  %11986 = vmatprep.subr.bf16.mxu1 %v17410_v37  ;;  %v573_v50 = vld [vmem:[#allocation6 + $0xab0] sm:$0xff]  ;;  %v570_v37 = vld [vmem:[#allocation6 + $0xa98] sm:$0xff] }
 0x452   :  { %v17456_v55 = vcombine.high %v569_v49, %v573_v50  ;;  %v17455_v1 = vcombine.low %v569_v49, %v573_v50  ;;  %v17457_v2 = vcombine.low %v570_v37, %v574_v51  ;;  %v614_v49 = vld [vmem:[#allocation6 + $0xbf8] sm:$0xff] }
 0x454   :  { %11428 = vmatpush1.bf16.msra.mxu0 %v17407_v56  ;;  %11987 = vmatpush1.bf16.msra.mxu1 %v17409_v57  ;;  %v17458_v56 = vcombine.high %v570_v37, %v574_v51  ;;  %v577_v57 = vld [vmem:[#allocation6 + $0xad0] sm:$0xff] }
 0x455   :  { %11429 = vmatprep.subr.bf16.mxu0 %v17416_v60  ;;  %11988 = vmatprep.subr.bf16.mxu1 %v17418_v61  ;;  %v581_v60 = vld [vmem:[#allocation6 + $0xaf0] sm:$0xff]  ;;  %v578_v61 = vld [vmem:[#allocation6 + $0xad8] sm:$0xff] }
 0x456   :  { %v17464_v4 = vcombine.high %v577_v57, %v581_v60  ;;  %v17463_v16 = vcombine.low %v577_v57, %v581_v60  ;;  %v17465_v18 = vcombine.low %v578_v61, %v582_v62  ;;  %v622_v57 = vld [vmem:[#allocation6 + $0xc38] sm:$0xff] }
 0x458   :  { %11430 = vmatpush1.bf16.msra.mxu0 %v17415_v7  ;;  %11989 = vmatpush1.bf16.msra.mxu1 %v17417_v8  ;;  %v17466_v7 = vcombine.high %v578_v61, %v582_v62  ;;  %v585_v8 = vld [vmem:[#allocation6 + $0xb10] sm:$0xff] }
 0x459   :  { %11431 = vmatprep.subr.bf16.mxu0 %v17424_v9  ;;  %11990 = vmatprep.subr.bf16.mxu1 %v17426_v11  ;;  %v589_v9 = vld [vmem:[#allocation6 + $0xb30] sm:$0xff]  ;;  %v586_v11 = vld [vmem:[#allocation6 + $0xb18] sm:$0xff] }
 0x45a   :  { %v17472_v19 = vcombine.high %v585_v8, %v589_v9  ;;  %v17471_v31 = vcombine.low %v585_v8, %v589_v9  ;;  %v17473_v58 = vcombine.low %v586_v11, %v590_v12  ;;  %v630_v8 = vld [vmem:[#allocation6 + $0xc78] sm:$0xff] }
 0x45c   :  { %11432 = vmatpush1.bf16.msra.mxu0 %v17423_v20  ;;  %11991 = vmatpush1.bf16.msra.mxu1 %v17425_v23  ;;  %v17474_v20 = vcombine.high %v586_v11, %v590_v12  ;;  %v593_v23 = vld [vmem:[#allocation6 + $0xb50] sm:$0xff] }
 0x45d   :  { %11433 = vmatprep.subr.bf16.mxu0 %v17432_v24  ;;  %11992 = vmatprep.subr.bf16.mxu1 %v17434_v28  ;;  %v597_v24 = vld [vmem:[#allocation6 + $0xb70] sm:$0xff]  ;;  %v594_v28 = vld [vmem:[#allocation6 + $0xb58] sm:$0xff] }
 0x45e   :  { %v17480_v15 = vcombine.high %v593_v23, %v597_v24  ;;  %v17479_v40 = vcombine.low %v593_v23, %v597_v24  ;;  %v17481_v41 = vcombine.low %v594_v28, %v598_v29  ;;  %v638_v23 = vld [vmem:[#allocation6 + $0xcb8] sm:$0xff] }
 0x460   :  { %11434 = vmatpush1.bf16.msra.mxu0 %v17431_v32  ;;  %11993 = vmatpush1.bf16.msra.mxu1 %v17433_v34  ;;  %v17482_v32 = vcombine.high %v594_v28, %v598_v29  ;;  %v601_v34 = vld [vmem:[#allocation6 + $0xb90] sm:$0xff] }
 0x461   :  { %11435 = vmatprep.subr.bf16.mxu0 %v17440_v35  ;;  %11994 = vmatprep.subr.bf16.mxu1 %v17442_v36  ;;  %v605_v35 = vld [vmem:[#allocation6 + $0xbb0] sm:$0xff]  ;;  %v602_v36 = vld [vmem:[#allocation6 + $0xb98] sm:$0xff] }
 0x462   :  { %v17488_v42 = vcombine.high %v601_v34, %v605_v35  ;;  %v17487_v50 = vcombine.low %v601_v34, %v605_v35  ;;  %v17489_v37 = vcombine.low %v602_v36, %v606_v30  ;;  %v646_v34 = vld [vmem:[#allocation6 + $0xcf8] sm:$0xff]  ;;  %v12504_v35 = vlaneseq }
 0x464   :  { %11436 = vmatpush1.bf16.msra.mxu0 %v17439_v44  ;;  %11995 = vmatpush1.bf16.msra.mxu1 %v17441_v45  ;;  %v17490_v44 = vcombine.high %v602_v36, %v606_v30  ;;  %v609_v45 = vld [vmem:[#allocation6 + $0xbd0] sm:$0xff] }
 0x465   :  { %11437 = vmatprep.subr.bf16.mxu0 %v17448_v25  ;;  %11996 = vmatprep.subr.bf16.mxu1 %v17450_v48  ;;  %v613_v25 = vld [vmem:[#allocation6 + $0xbf0] sm:$0xff]  ;;  %v610_v48 = vld [vmem:[#allocation6 + $0xbd8] sm:$0xff] }
 0x466   :  { %v17496_v51 = vcombine.high %v609_v45, %v613_v25  ;;  %v17495_v60 = vcombine.low %v609_v45, %v613_v25  ;;  %v17497_v61 = vcombine.low %v610_v48, %v614_v49  ;;  %v654_v45 = vld [vmem:[#allocation6 + $0xd38] sm:$0xff]  ;;  %v20225_v25 = vshrl.u32 %v12504_v35, 7 }
 0x467   :  { %v674_v35 = vld [vmem:[#allocation6 + $0xdd8] sm:$0xff] }
 0x468   :  { %11438 = vmatpush1.bf16.msra.mxu0 %v17447_v52  ;;  %11997 = vmatpush1.bf16.msra.mxu1 %v17449_v54  ;;  %v17498_v52 = vcombine.high %v610_v48, %v614_v49  ;;  %v617_v54 = vld [vmem:[#allocation6 + $0xc10] sm:$0xff] }
 0x469   :  { %11439 = vmatprep.subr.bf16.mxu0 %v17456_v55  ;;  %11998 = vmatprep.subr.bf16.mxu1 %v17458_v56  ;;  %v621_v55 = vld [vmem:[#allocation6 + $0xc30] sm:$0xff]  ;;  %v618_v56 = vld [vmem:[#allocation6 + $0xc18] sm:$0xff] }
 0x46a   :  { %v17504_v62 = vcombine.high %v617_v54, %v621_v55  ;;  %v17503_v9 = vcombine.low %v617_v54, %v621_v55  ;;  %v17505_v11 = vcombine.low %v618_v56, %v622_v57  ;;  %v658_v54 = vld [vmem:[#allocation6 + $0xd58] sm:$0xff] }
 0x46b   :  { %v662_v55 = vld [vmem:[#allocation6 + $0xd78] sm:$0xff] }
 0x46c   :  { %11440 = vmatpush1.bf16.msra.mxu0 %v17455_v1  ;;  %11999 = vmatpush1.bf16.msra.mxu1 %v17457_v2  ;;  %v17506_v1 = vcombine.high %v618_v56, %v622_v57  ;;  %v625_v2 = vld [vmem:[#allocation6 + $0xc50] sm:$0xff]  ;;  %v12502_v57 = vld [vmem:[#allocation8] sm:$0xff] }
 0x46d   :  { %11441 = vmatprep.subr.bf16.mxu0 %v17464_v4  ;;  %12000 = vmatprep.subr.bf16.mxu1 %v17466_v7  ;;  %v629_v4 = vld [vmem:[#allocation6 + $0xc70] sm:$0xff]  ;;  %v626_v7 = vld [vmem:[#allocation6 + $0xc58] sm:$0xff] }
 0x46e   :  { %v17512_v12 = vcombine.high %v625_v2, %v629_v4  ;;  %v17511_v24 = vcombine.low %v625_v2, %v629_v4  ;;  %v17513_v28 = vcombine.low %v626_v7, %v630_v8  ;;  %v17546_v4 = vcombine.high %v658_v54, %v662_v55 }
 0x470   :  { %11442 = vmatpush1.bf16.msra.mxu0 %v17463_v16  ;;  %12001 = vmatpush1.bf16.msra.mxu1 %v17465_v18  ;;  %v17514_v16 = vcombine.high %v626_v7, %v630_v8  ;;  %v633_v18 = vld [vmem:[#allocation6 + $0xc90] sm:$0xff] }
 0x471   :  { %11443 = vmatprep.subr.bf16.mxu0 %v17472_v19  ;;  %12002 = vmatprep.subr.bf16.mxu1 %v17474_v20  ;;  %v637_v19 = vld [vmem:[#allocation6 + $0xcb0] sm:$0xff]  ;;  %v634_v20 = vld [vmem:[#allocation6 + $0xc98] sm:$0xff] }
 0x472   :  { %v17520_v29 = vcombine.high %v633_v18, %v637_v19  ;;  %v17519_v36 = vcombine.low %v633_v18, %v637_v19  ;;  %v665_v7 = vld [vmem:[#allocation6 + $0xd90] sm:$0xff] }
 0x473   :  { %v669_v8 = vld [vmem:[#allocation6 + $0xdb0] sm:$0xff] }
 0x474   :  { %11444 = vmatpush1.bf16.msra.mxu0 %v17471_v31  ;;  %12003 = vmatpush1.bf16.msra.mxu1 %v17473_v58  ;;  %v17522_v31 = vcombine.high %v634_v20, %v638_v23  ;;  %v641_v58 = vld [vmem:[#allocation6 + $0xcd0] sm:$0xff] }
 0x475   :  { %11445 = vmatprep.subr.bf16.mxu0 %v17480_v15  ;;  %12004 = vmatprep.subr.bf16.mxu1 %v17482_v32  ;;  %v645_v15 = vld [vmem:[#allocation6 + $0xcf0] sm:$0xff]  ;;  %v642_v32 = vld [vmem:[#allocation6 + $0xcd8] sm:$0xff] }
 0x476   :  { %v17528_v30 = vcombine.high %v641_v58, %v645_v15  ;;  %v17527_v48 = vcombine.low %v641_v58, %v645_v15  ;;  %v17529_v49 = vcombine.low %v642_v32, %v646_v34  ;;  %v677_v58 = vld [vmem:[#allocation6 + $0xdf0] sm:$0xff] }
 0x478   :  { %11446 = vmatpush1.bf16.msra.mxu0 %v17479_v40  ;;  %12005 = vmatpush1.bf16.msra.mxu1 %v17481_v41  ;;  %v17530_v40 = vcombine.high %v642_v32, %v646_v34  ;;  %v649_v41 = vld [vmem:[#allocation6 + $0xd10] sm:$0xff] }
 0x479   :  { %11447 = vmatprep.subr.bf16.mxu0 %v17488_v42  ;;  %12006 = vmatprep.subr.bf16.mxu1 %v17490_v44  ;;  %v653_v42 = vld [vmem:[#allocation6 + $0xd30] sm:$0xff]  ;;  %v650_v44 = vld [vmem:[#allocation6 + $0xd18] sm:$0xff] }
 0x47a   :  { %v17535_v56 = vcombine.low %v649_v41, %v653_v42 }
 0x47c   :  { %11448 = vmatpush1.bf16.msra.mxu0 %v17487_v50  ;;  %12007 = vmatpush1.bf16.msra.mxu1 %v17489_v37  ;;  %v17538_v50 = vcombine.high %v650_v44, %v654_v45  ;;  %v657_v37 = vld [vmem:[#allocation6 + $0xd50] sm:$0xff] }
 0x47d   :  { %11449 = vmatprep.subr.bf16.mxu0 %v17496_v51  ;;  %12008 = vmatprep.subr.bf16.mxu1 %v17498_v52  ;;  %v661_v51 = vld [vmem:[#allocation6 + $0xd70] sm:$0xff]  ;;  %v12506_v52 = vsub.s32 0, %v20225_v25 }
 0x47e   :  { %v17544_v2 = vcombine.high %v657_v37, %v661_v51  ;;  %v17543_v19 = vcombine.low %v657_v37, %v661_v51 }
 0x480   :  { %11450 = vmatpush1.bf16.msra.mxu0 %v17495_v60  ;;  %12009 = vmatpush1.bf16.msra.mxu1 %v17497_v61  ;;  %v12514_v60 = vsub.s32 2, %v20225_v25  ;;  %v12510_v61 = vsub.s32 1, %v20225_v25 }
 0x481   :  { %11462 = vmatprep.subr.bf16.mxu0 %v17504_v62  ;;  %12021 = vmatprep.subr.bf16.mxu1 %v17506_v1  ;;  %v17537_v62 = vcombine.low %v650_v44, %v654_v45  ;;  %v12518_v1 = vsub.s32 3, %v20225_v25 }
 0x482   :  { %v12511_v18 = vrot.slane %v12502_v57, %v12510_v61 }
 0x483   :  { %11452 = vmatmul.mubr.bf16.vlgmr.msra.gmra.mrb[4].mxu0 %v20127_v43  ;;  %12011 = vmatmul.mubr.bf16.vlgmr.msra.gmra.mrb[4].mxu1 %v20127_v43  ;;  %v17521_v43 = vcombine.low %v634_v20, %v638_v23  ;;  %v12519_v20 = vrot.slane %v12502_v57, %v12518_v1  ;;  %v17545_v23 = vcombine.low %v658_v54, %v662_v55 }
 0x484   :  { %11463 = vmatpush1.bf16.msra.mxu0 %v17503_v9  ;;  %12022 = vmatpush1.bf16.msra.mxu1 %v17505_v11  ;;  %v12507_v9 = vrot.slane %v12502_v57, %v12506_v52  ;;  %v666_v11 = vld [vmem:[#allocation6 + $0xd98] sm:$0xff] }
 0x485   :  { %11464 = vmatprep.subr.bf16.mxu0 %v17512_v12  ;;  %12023 = vmatprep.subr.bf16.mxu1 %v17514_v16  ;;  %v670_v12 = vld [vmem:[#allocation6 + $0xdb8] sm:$0xff]  ;;  %v12515_v16 = vrot.slane %v12502_v57, %v12514_v60  ;;  %v681_v57 = vld [vmem:[#allocation6 + $0xe10] sm:$0xff] }
 0x486   :  { %11494 = vmatprep.mubr.bf16.mxu0 %v20129_v53  ;;  %12053 = vmatprep.mubr.bf16.mxu1 %v20129_v53  ;;  %v17536_v53 = vcombine.high %v649_v41, %v653_v42  ;;  %v17551_v42 = vcombine.low %v665_v7, %v669_v8  ;;  %v17553_v44 = vcombine.low %v666_v11, %v670_v12 }
 0x488   :  { %11465 = vmatpush1.bf16.msra.mxu0 %v17511_v24  ;;  %12024 = vmatpush1.bf16.msra.mxu1 %v17513_v28  ;;  %v17552_v24 = vcombine.high %v665_v7, %v669_v8  ;;  %v682_v8 = vld [vmem:[#allocation6 + $0xe18] sm:$0xff] }
 0x489   :  { %11466 = vmatprep.subr.bf16.mxu0 %v17520_v29  ;;  %12025 = vmatprep.subr.bf16.mxu1 %v17522_v31  ;;  %v17554_v29 = vcombine.high %v666_v11, %v670_v12  ;;  %v673_v31 = vld [vmem:[#allocation6 + $0xdd0] sm:$0xff]  ;;  %v686_v11 = vld [vmem:[#allocation6 + $0xe38] sm:$0xff] }
 0x48a   :  { %v17559_v55 = vcombine.low %v673_v31, %v677_v58 }
 0x48c   :  { %11467 = vmatpush1.bf16.msra.mxu0 %v17519_v36  ;;  %12026 = vmatpush1.bf16.msra.mxu1 %v17521_v43  ;;  %v678_v36 = vld [vmem:[#allocation6 + $0xdf8] sm:$0xff] }
 0x48d   :  { %11468 = vmatprep.subr.bf16.mxu0 %v17528_v30  ;;  %12027 = vmatprep.subr.bf16.mxu1 %v17530_v40  ;;  %v17561_v7 = vcombine.low %v674_v35, %v678_v36 }
 0x490   :  { %11469 = vmatpush1.bf16.msra.mxu0 %v17527_v48  ;;  %12028 = vmatpush1.bf16.msra.mxu1 %v17529_v49 }
 0x491   :  { %11470 = vmatprep.subr.bf16.mxu0 %v17536_v53  ;;  %12029 = vmatprep.subr.bf16.mxu1 %v17538_v50  ;;  %v17560_v50 = vcombine.high %v673_v31, %v677_v58 }
 0x494   :  { %11471 = vmatpush1.bf16.msra.mxu0 %v17535_v56  ;;  %12030 = vmatpush1.bf16.msra.mxu1 %v17537_v62  ;;  %v17562_v56 = vcombine.high %v674_v35, %v678_v36  ;;  %v685_v62 = vld [vmem:[#allocation6 + $0xe30] sm:$0xff]  ;;  %v690_v35 = vld [vmem:[#allocation6 + $0xe58] sm:$0xff] }
 0x495   :  { %11472 = vmatprep.subr.bf16.mxu0 %v17544_v2  ;;  %12031 = vmatprep.subr.bf16.mxu1 %v17546_v4  ;;  %v694_v36 = vld [vmem:[#allocation6 + $0xe78] sm:$0xff] }
 0x496   :  { %v10765_v28 = vpop.f32.mrb[0].mxu0  ;;  %v11324_v32 = vpop.f32.mrb[0].mxu1 }
 0x497   :  { %v12544_v15 = vadd.f32 %v12507_v9, %v10765_v28  ;;  %v10767_v34 = vpop.f32.mrb[1].mxu0  ;;  %v12546_v43 = vadd.f32 %v12515_v16, %v11324_v32  ;;  %v11326_v40 = vpop.f32.mrb[1].mxu1  ;;  %v693_v32 = vld [vmem:[#allocation6 + $0xe70] sm:$0xff] }
 0x498   :  { %v12545_v30 = vadd.f32 %v12511_v18, %v10767_v34  ;;  %v10769_v41 = vpop.f32.mrb[2].mxu0  ;;  %11473 = vmatpush1.bf16.msra.mxu0 %v17543_v19  ;;  %v12547_v45 = vadd.f32 %v12519_v20, %v11326_v40  ;;  %v11328_v49 = vpop.f32.mrb[2].mxu1  ;;  %12032 = vmatpush1.bf16.msra.mxu1 %v17545_v23 }
 0x499   :  { %v12552_v48 = vadd.f32 %v12507_v9, %v10769_v41  ;;  %v10771_v53 = vpop.f32.mrb[3].mxu0  ;;  %11474 = vmatprep.subr.bf16.mxu0 %v17552_v24  ;;  %v12554_v37 = vadd.f32 %v12515_v16, %v11328_v49  ;;  %v11330_v54 = vpop.f32.mrb[3].mxu1  ;;  %12033 = vmatprep.subr.bf16.mxu1 %v17554_v29  ;;  %v12560_v2 = vmax.f32 %v12544_v15, 0.0  ;;  %v12562_v9 = vmax.f32 %v12546_v43, 0.0  ;;  %v689_v15 = vld [vmem:[#allocation6 + $0xe50] sm:$0xff] }
 0x49a   :  { %v12553_v51 = vadd.f32 %v12511_v18, %v10771_v53  ;;  %v12555_v19 = vadd.f32 %v12519_v20, %v11330_v54  ;;  %v12561_v12 = vmax.f32 %v12545_v30, 0.0  ;;  %v12563_v24 = vmax.f32 %v12547_v45, 0.0  ;;  %v698_v45 = vld [vmem:[#allocation6 + $0xe98] sm:$0xff]  ;;  %v709_v54 = vld [vmem:[#allocation6 + $0xef0] sm:$0xff] }
 0x49b   :  { %v12568_v4 = vmax.f32 %v12552_v48, 0.0  ;;  %v12570_v23 = vmax.f32 %v12554_v37, 0.0  ;;  %v17568_v29 = vcombine.high %v681_v57, %v685_v62  ;;  %v17570_v20 = vcombine.high %v682_v8, %v686_v11  ;;  %v702_v48 = vld [vmem:[#allocation6 + $0xeb8] sm:$0xff] }
 0x49c   :  { %v12569_v28 = vmax.f32 %v12553_v51, 0.0  ;;  %11475 = vmatpush1.bf16.msra.mxu0 %v17551_v42  ;;  %v12571_v18 = vmax.f32 %v12555_v19, 0.0  ;;  %12034 = vmatpush1.bf16.msra.mxu1 %v17553_v44  ;;  %v17567_v43 = vcombine.low %v681_v57, %v685_v62  ;;  %v17569_v30 = vcombine.low %v682_v8, %v686_v11  ;;  %v697_v42 = vld [vmem:[#allocation6 + $0xe90] sm:$0xff]  ;;  %v714_v8 = vld [vmem:[#allocation6 + $0xf18] sm:$0xff] }
 0x49d   :  { %v20239_v16 = vpack.c.bf16 %v12568_v4, %v12560_v2  ;;  %11476 = vmatprep.subr.bf16.mxu0 %v17560_v50  ;;  %v20241_v31 = vpack.c.bf16 %v12570_v23, %v12562_v9  ;;  %12035 = vmatprep.subr.bf16.mxu1 %v17562_v56  ;;  %v17576_v40 = vcombine.high %v689_v15, %v693_v32  ;;  %v701_v44 = vld [vmem:[#allocation6 + $0xeb0] sm:$0xff]  ;;  %v710_v56 = vld [vmem:[#allocation6 + $0xef8] sm:$0xff] }
 0x49e   :  { %v20243_v58 = vpack.c.bf16 %v12569_v28, %v12561_v12  ;;  %v20245_v34 = vpack.c.bf16 %v12571_v18, %v12563_v24  ;;  %v17578_v41 = vcombine.high %v690_v35, %v694_v36  ;;  %v17575_v49 = vcombine.low %v689_v15, %v693_v32  ;;  %v705_v51 = vld [vmem:[#allocation6 + $0xed0] sm:$0xff]  ;;  %v718_v11 = vld [vmem:[#allocation6 + $0xf38] sm:$0xff] }
 0x49f   :  { %v17577_v53 = vcombine.low %v690_v35, %v694_v36  ;;  %v17584_v50 = vcombine.high %v697_v42, %v701_v44  ;;  %v17586_v37 = vcombine.high %v698_v45, %v702_v48  ;;  %v17583_v57 = vcombine.low %v697_v42, %v701_v44  ;;  %v713_v19 = vld [vmem:[#allocation6 + $0xf10] sm:$0xff] }
 0x4a0   :  { %11477 = vmatpush1.bf16.msra.mxu0 %v17559_v55  ;;  %12036 = vmatpush1.bf16.msra.mxu1 %v17561_v7  ;;  %v706_v55 = vld [vmem:[#allocation6 + $0xed8] sm:$0xff]  ;;  %v17585_v62 = vcombine.low %v698_v45, %v702_v48  ;;  %v17592_v2 = vcombine.high %v705_v51, %v709_v54  ;;  %v717_v7 = vld [vmem:[#allocation6 + $0xf30] sm:$0xff]  ;;  %v17591_v9 = vcombine.low %v705_v51, %v709_v54 }
 0x4a1   :  { %11478 = vmatprep.subr.bf16.mxu0 %v17568_v29  ;;  %12037 = vmatprep.subr.bf16.mxu1 %v17570_v20  ;;  %v17594_v4 = vcombine.high %v706_v55, %v710_v56  ;;  %v17593_v12 = vcombine.low %v706_v55, %v710_v56  ;;  %v17600_v23 = vcombine.high %v713_v19, %v717_v7  ;;  %v721_v24 = vld [vmem:[#allocation6 + $0xf50] sm:$0xff]  ;;  %v722_v29 = vld [vmem:[#allocation6 + $0xf58] sm:$0xff] }
 0x4a2   :  { %v17602_v28 = vcombine.high %v714_v8, %v718_v11  ;;  %v725_v18 = vld [vmem:[#allocation6 + $0xf70] sm:$0xff]  ;;  %v726_v20 = vld [vmem:[#allocation6 + $0xf78] sm:$0xff]  ;;  %v17599_v15 = vcombine.low %v713_v19, %v717_v7  ;;  %v17601_v32 = vcombine.low %v714_v8, %v718_v11 }
 0x4a3   :  { %v17608_v35 = vcombine.high %v721_v24, %v725_v18  ;;  %v17610_v36 = vcombine.high %v722_v29, %v726_v20  ;;  %v17607_v42 = vcombine.low %v721_v24, %v725_v18  ;;  %v17609_v44 = vcombine.low %v722_v29, %v726_v20 }
 0x4a4   :  { %11479 = vmatpush1.bf16.msra.mxu0 %v17567_v43  ;;  %12038 = vmatpush1.bf16.msra.mxu1 %v17569_v30  ;;  %v729_v43 = vld [vmem:[#allocation6 + $0xf90] sm:$0xff] }
 0x4a5   :  { %11480 = vmatprep.subr.bf16.mxu0 %v17576_v40  ;;  %12039 = vmatprep.subr.bf16.mxu1 %v17578_v41  ;;  %v733_v30 = vld [vmem:[#allocation6 + $0xfb0] sm:$0xff]  ;;  %v730_v40 = vld [vmem:[#allocation6 + $0xf98] sm:$0xff] }
 0x4a6   :  { %v734_v41 = vld [vmem:[#allocation6 + $0xfb8] sm:$0xff]  ;;  %v17616_v45 = vcombine.high %v729_v43, %v733_v30  ;;  %v17615_v51 = vcombine.low %v729_v43, %v733_v30 }
 0x4a7   :  { %v17618_v48 = vcombine.high %v730_v40, %v734_v41  ;;  %v17617_v54 = vcombine.low %v730_v40, %v734_v41 }
 0x4a8   :  { %11481 = vmatpush1.bf16.msra.mxu0 %v17575_v49  ;;  %12040 = vmatpush1.bf16.msra.mxu1 %v17577_v53  ;;  %v737_v49 = vld [vmem:[#allocation6 + $0xfd0] sm:$0xff] }
 0x4a9   :  { %11482 = vmatprep.subr.bf16.mxu0 %v17584_v50  ;;  %12041 = vmatprep.subr.bf16.mxu1 %v17586_v37  ;;  %v741_v53 = vld [vmem:[#allocation6 + $0xff0] sm:$0xff]  ;;  %v738_v50 = vld [vmem:[#allocation6 + $0xfd8] sm:$0xff] }
 0x4aa   :  { %v742_v37 = vld [vmem:[#allocation6 + $0xff8] sm:$0xff]  ;;  %v17624_v55 = vcombine.high %v737_v49, %v741_v53  ;;  %v17623_v19 = vcombine.low %v737_v49, %v741_v53 }
 0x4ab   :  { %v17626_v56 = vcombine.high %v738_v50, %v742_v37  ;;  %v17625_v7 = vcombine.low %v738_v50, %v742_v37  ;;  %v777_v37 = vld [vmem:[#allocation6 + $0x1110] sm:$0xff] }
 0x4ac   :  { %11483 = vmatpush1.bf16.msra.mxu0 %v17583_v57  ;;  %12042 = vmatpush1.bf16.msra.mxu1 %v17585_v62  ;;  %v745_v57 = vld [vmem:[#allocation6 + $0x1010] sm:$0xff] }
 0x4ad   :  { %11484 = vmatprep.subr.bf16.mxu0 %v17592_v2  ;;  %12043 = vmatprep.subr.bf16.mxu1 %v17594_v4  ;;  %v749_v62 = vld [vmem:[#allocation6 + $0x1030] sm:$0xff]  ;;  %v746_v2 = vld [vmem:[#allocation6 + $0x1018] sm:$0xff] }
 0x4ae   :  { %v750_v4 = vld [vmem:[#allocation6 + $0x1038] sm:$0xff]  ;;  %v17632_v8 = vcombine.high %v745_v57, %v749_v62  ;;  %v17631_v24 = vcombine.low %v745_v57, %v749_v62 }
 0x4af   :  { %v17634_v11 = vcombine.high %v746_v2, %v750_v4  ;;  %v17633_v18 = vcombine.low %v746_v2, %v750_v4  ;;  %v785_v2 = vld [vmem:[#allocation6 + $0x1150] sm:$0xff] }
 0x4b0   :  { %11485 = vmatpush1.bf16.msra.mxu0 %v17591_v9  ;;  %12044 = vmatpush1.bf16.msra.mxu1 %v17593_v12  ;;  %v753_v9 = vld [vmem:[#allocation6 + $0x1050] sm:$0xff] }
 0x4b1   :  { %11486 = vmatprep.subr.bf16.mxu0 %v17600_v23  ;;  %12045 = vmatprep.subr.bf16.mxu1 %v17602_v28  ;;  %v757_v12 = vld [vmem:[#allocation6 + $0x1070] sm:$0xff]  ;;  %v754_v23 = vld [vmem:[#allocation6 + $0x1058] sm:$0xff] }
 0x4b2   :  { %v758_v28 = vld [vmem:[#allocation6 + $0x1078] sm:$0xff]  ;;  %v17640_v29 = vcombine.high %v753_v9, %v757_v12  ;;  %v17639_v43 = vcombine.low %v753_v9, %v757_v12  ;;  %v789_v4 = vld [vmem:[#allocation6 + $0x1170] sm:$0xff] }
 0x4b3   :  { %v17642_v20 = vcombine.high %v754_v23, %v758_v28  ;;  %v17641_v30 = vcombine.low %v754_v23, %v758_v28  ;;  %v17672_v9 = vcombine.high %v785_v2, %v789_v4  ;;  %v793_v23 = vld [vmem:[#allocation6 + $0x1190] sm:$0xff] }
 0x4b4   :  { %11487 = vmatpush1.bf16.msra.mxu0 %v17599_v15  ;;  %12046 = vmatpush1.bf16.msra.mxu1 %v17601_v32  ;;  %v761_v15 = vld [vmem:[#allocation6 + $0x1090] sm:$0xff] }
 0x4b5   :  { %11488 = vmatprep.subr.bf16.mxu0 %v17608_v35  ;;  %12047 = vmatprep.subr.bf16.mxu1 %v17610_v36  ;;  %v765_v32 = vld [vmem:[#allocation6 + $0x10b0] sm:$0xff]  ;;  %v762_v35 = vld [vmem:[#allocation6 + $0x1098] sm:$0xff] }
 0x4b6   :  { %v766_v36 = vld [vmem:[#allocation6 + $0x10b8] sm:$0xff]  ;;  %v17648_v40 = vcombine.high %v761_v15, %v765_v32  ;;  %v17647_v49 = vcombine.low %v761_v15, %v765_v32  ;;  %v797_v28 = vld [vmem:[#allocation6 + $0x11b0] sm:$0xff] }
 0x4b7   :  { %v17650_v41 = vcombine.high %v762_v35, %v766_v36  ;;  %v17680_v15 = vcombine.high %v793_v23, %v797_v28 }
 0x4b8   :  { %11489 = vmatpush1.bf16.msra.mxu0 %v17607_v42  ;;  %12048 = vmatpush1.bf16.msra.mxu1 %v17609_v44  ;;  %v769_v42 = vld [vmem:[#allocation6 + $0x10d0] sm:$0xff] }
 0x4b9   :  { %11490 = vmatprep.subr.bf16.mxu0 %v17616_v45  ;;  %12049 = vmatprep.subr.bf16.mxu1 %v17618_v48  ;;  %v773_v44 = vld [vmem:[#allocation6 + $0x10f0] sm:$0xff]  ;;  %v770_v45 = vld [vmem:[#allocation6 + $0x10d8] sm:$0xff] }
 0x4ba   :  { %v774_v48 = vld [vmem:[#allocation6 + $0x10f8] sm:$0xff]  ;;  %v17656_v53 = vcombine.high %v769_v42, %v773_v44 }
 0x4bb   :  { %v17658_v50 = vcombine.high %v770_v45, %v774_v48  ;;  %v17657_v57 = vcombine.low %v770_v45, %v774_v48  ;;  %v809_v45 = vld [vmem:[#allocation6 + $0x1210] sm:$0xff] }
 0x4bc   :  { %11491 = vmatpush1.bf16.msra.mxu0 %v17615_v51  ;;  %12050 = vmatpush1.bf16.msra.mxu1 %v17617_v54  ;;  %v781_v51 = vld [vmem:[#allocation6 + $0x1130] sm:$0xff]  ;;  %v778_v54 = vld [vmem:[#allocation6 + $0x1118] sm:$0xff] }
 0x4bd   :  { %11492 = vmatprep.subr.bf16.mxu0 %v17624_v55  ;;  %12051 = vmatprep.subr.bf16.mxu1 %v17626_v56  ;;  %v782_v55 = vld [vmem:[#allocation6 + $0x1138] sm:$0xff]  ;;  %v17655_v56 = vcombine.low %v769_v42, %v773_v44  ;;  %v17664_v62 = vcombine.high %v777_v37, %v781_v51  ;;  %v813_v48 = vld [vmem:[#allocation6 + $0x1230] sm:$0xff] }
 0x4c0   :  { %11493 = vmatpush1.bf16.msra.mxu0 %v17623_v19  ;;  %12052 = vmatpush1.bf16.msra.mxu1 %v17625_v7  ;;  %v786_v19 = vld [vmem:[#allocation6 + $0x1158] sm:$0xff] }
 0x4c1   :  { %11505 = vmatprep.subr.bf16.mxu0 %v17632_v8  ;;  %12064 = vmatprep.subr.bf16.mxu1 %v17634_v11  ;;  %v790_v7 = vld [vmem:[#allocation6 + $0x1178] sm:$0xff]  ;;  %v17663_v8 = vcombine.low %v777_v37, %v781_v51  ;;  %v17665_v11 = vcombine.low %v778_v54, %v782_v55  ;;  %v17696_v37 = vcombine.high %v809_v45, %v813_v48 }
 0x4c2   :  { %v17674_v12 = vcombine.high %v786_v19, %v790_v7 }
 0x4c3   :  { %11495 = vmatmul.mubr.bf16.vlgmr.msra.gmra.mrb[4].mxu0 %v20135_v0  ;;  %12054 = vmatmul.mubr.bf16.vlgmr.msra.gmra.mrb[4].mxu1 %v20135_v0  ;;  %v17649_v0 = vcombine.low %v762_v35, %v766_v36  ;;  %v801_v35 = vld [vmem:[#allocation6 + $0x11d0] sm:$0xff] }
 0x4c4   :  { %11506 = vmatpush1.bf16.msra.mxu0 %v17631_v24  ;;  %12065 = vmatpush1.bf16.msra.mxu1 %v17633_v18  ;;  %v794_v24 = vld [vmem:[#allocation6 + $0x1198] sm:$0xff]  ;;  %v805_v36 = vld [vmem:[#allocation6 + $0x11f0] sm:$0xff] }
 0x4c5   :  { %11507 = vmatprep.subr.bf16.mxu0 %v17640_v29  ;;  %12066 = vmatprep.subr.bf16.mxu1 %v17642_v20  ;;  %v798_v18 = vld [vmem:[#allocation6 + $0x11b8] sm:$0xff]  ;;  %v17671_v29 = vcombine.low %v785_v2, %v789_v4  ;;  %v17673_v20 = vcombine.low %v786_v19, %v790_v7  ;;  %v17688_v42 = vcombine.high %v801_v35, %v805_v36  ;;  %v825_v19 = vld [vmem:[#allocation6 + $0x1290] sm:$0xff] }
 0x4c6   :  { %11537 = vmatprep.mubr.bf16.mxu0 %v20137_v10  ;;  %12096 = vmatprep.mubr.bf16.mxu1 %v20137_v10  ;;  %v17666_v10 = vcombine.high %v778_v54, %v782_v55  ;;  %v17682_v32 = vcombine.high %v794_v24, %v798_v18  ;;  %v817_v54 = vld [vmem:[#allocation6 + $0x1250] sm:$0xff] }
 0x4c7   :  { %v821_v55 = vld [vmem:[#allocation6 + $0x1270] sm:$0xff] }
 0x4c8   :  { %11508 = vmatpush1.bf16.msra.mxu0 %v17639_v43  ;;  %12067 = vmatpush1.bf16.msra.mxu1 %v17641_v30  ;;  %v802_v43 = vld [vmem:[#allocation6 + $0x11d8] sm:$0xff]  ;;  %v17704_v2 = vcombine.high %v817_v54, %v821_v55  ;;  %v829_v7 = vld [vmem:[#allocation6 + $0x12b0] sm:$0xff] }
 0x4c9   :  { %11509 = vmatprep.subr.bf16.mxu0 %v17648_v40  ;;  %12068 = vmatprep.subr.bf16.mxu1 %v17650_v41  ;;  %v806_v30 = vld [vmem:[#allocation6 + $0x11f8] sm:$0xff]  ;;  %v17679_v40 = vcombine.low %v793_v23, %v797_v28  ;;  %v17681_v41 = vcombine.low %v794_v24, %v798_v18  ;;  %v17712_v23 = vcombine.high %v825_v19, %v829_v7  ;;  %v833_v24 = vld [vmem:[#allocation6 + $0x12d0] sm:$0xff] }
 0x4ca   :  { %v17690_v44 = vcombine.high %v802_v43, %v806_v30  ;;  %v837_v18 = vld [vmem:[#allocation6 + $0x12f0] sm:$0xff] }
 0x4cc   :  { %11510 = vmatpush1.bf16.msra.mxu0 %v17647_v49  ;;  %12069 = vmatpush1.bf16.msra.mxu1 %v17649_v0  ;;  %v810_v49 = vld [vmem:[#allocation6 + $0x1218] sm:$0xff] }
 0x4cd   :  { %11511 = vmatprep.subr.bf16.mxu0 %v17656_v53  ;;  %12070 = vmatprep.subr.bf16.mxu1 %v17658_v50  ;;  %v814_v0 = vld [vmem:[#allocation6 + $0x1238] sm:$0xff]  ;;  %v17687_v53 = vcombine.low %v801_v35, %v805_v36  ;;  %v17689_v50 = vcombine.low %v802_v43, %v806_v30  ;;  %v17720_v35 = vcombine.high %v833_v24, %v837_v18  ;;  %v841_v43 = vld [vmem:[#allocation6 + $0x1310] sm:$0xff] }
 0x4ce   :  { %v17698_v51 = vcombine.high %v810_v49, %v814_v0  ;;  %v845_v30 = vld [vmem:[#allocation6 + $0x1330] sm:$0xff] }
 0x4d0   :  { %11512 = vmatpush1.bf16.msra.mxu0 %v17655_v56  ;;  %12071 = vmatpush1.bf16.msra.mxu1 %v17657_v57  ;;  %v818_v56 = vld [vmem:[#allocation6 + $0x1258] sm:$0xff] }
 0x4d1   :  { %11513 = vmatprep.subr.bf16.mxu0 %v17664_v62  ;;  %12072 = vmatprep.subr.bf16.mxu1 %v17666_v10  ;;  %v822_v57 = vld [vmem:[#allocation6 + $0x1278] sm:$0xff]  ;;  %v17695_v62 = vcombine.low %v809_v45, %v813_v48  ;;  %v17697_v10 = vcombine.low %v810_v49, %v814_v0  ;;  %v17728_v45 = vcombine.high %v841_v43, %v845_v30  ;;  %v849_v49 = vld [vmem:[#allocation6 + $0x1350] sm:$0xff] }
 0x4d2   :  { %v17706_v4 = vcombine.high %v818_v56, %v822_v57  ;;  %v853_v0 = vld [vmem:[#allocation6 + $0x1370] sm:$0xff] }
 0x4d4   :  { %11514 = vmatpush1.bf16.msra.mxu0 %v17663_v8  ;;  %12073 = vmatpush1.bf16.msra.mxu1 %v17665_v11  ;;  %v826_v8 = vld [vmem:[#allocation6 + $0x1298] sm:$0xff] }
 0x4d5   :  { %11515 = vmatprep.subr.bf16.mxu0 %v17672_v9  ;;  %12074 = vmatprep.subr.bf16.mxu1 %v17674_v12  ;;  %v830_v11 = vld [vmem:[#allocation6 + $0x12b8] sm:$0xff]  ;;  %v17703_v9 = vcombine.low %v817_v54, %v821_v55  ;;  %v17705_v12 = vcombine.low %v818_v56, %v822_v57  ;;  %v17736_v54 = vcombine.high %v849_v49, %v853_v0  ;;  %v857_v56 = vld [vmem:[#allocation6 + $0x1390] sm:$0xff] }
 0x4d6   :  { %v17714_v28 = vcombine.high %v826_v8, %v830_v11  ;;  %v861_v57 = vld [vmem:[#allocation6 + $0x13b0] sm:$0xff] }
 0x4d8   :  { %11516 = vmatpush1.bf16.msra.mxu0 %v17671_v29  ;;  %12075 = vmatpush1.bf16.msra.mxu1 %v17673_v20  ;;  %v834_v29 = vld [vmem:[#allocation6 + $0x12d8] sm:$0xff] }
 0x4d9   :  { %11517 = vmatprep.subr.bf16.mxu0 %v17680_v15  ;;  %12076 = vmatprep.subr.bf16.mxu1 %v17682_v32  ;;  %v838_v20 = vld [vmem:[#allocation6 + $0x12f8] sm:$0xff]  ;;  %v17711_v15 = vcombine.low %v825_v19, %v829_v7  ;;  %v17713_v32 = vcombine.low %v826_v8, %v830_v11  ;;  %v17744_v19 = vcombine.high %v857_v56, %v861_v57  ;;  %v865_v8 = vld [vmem:[#allocation6 + $0x13d0] sm:$0xff] }
 0x4da   :  { %v17722_v36 = vcombine.high %v834_v29, %v838_v20  ;;  %v869_v11 = vld [vmem:[#allocation6 + $0x13f0] sm:$0xff] }
 0x4dc   :  { %11518 = vmatpush1.bf16.msra.mxu0 %v17679_v40  ;;  %12077 = vmatpush1.bf16.msra.mxu1 %v17681_v41  ;;  %v842_v40 = vld [vmem:[#allocation6 + $0x1318] sm:$0xff] }
 0x4dd   :  { %11519 = vmatprep.subr.bf16.mxu0 %v17688_v42  ;;  %12078 = vmatprep.subr.bf16.mxu1 %v17690_v44  ;;  %v846_v41 = vld [vmem:[#allocation6 + $0x1338] sm:$0xff]  ;;  %v17719_v42 = vcombine.low %v833_v24, %v837_v18  ;;  %v17721_v44 = vcombine.low %v834_v29, %v838_v20  ;;  %v17752_v24 = vcombine.high %v865_v8, %v869_v11  ;;  %v873_v29 = vld [vmem:[#allocation6 + $0x1410] sm:$0xff] }
 0x4de   :  { %v17730_v48 = vcombine.high %v842_v40, %v846_v41  ;;  %v877_v20 = vld [vmem:[#allocation6 + $0x1430] sm:$0xff] }
 0x4e0   :  { %11520 = vmatpush1.bf16.msra.mxu0 %v17687_v53  ;;  %12079 = vmatpush1.bf16.msra.mxu1 %v17689_v50  ;;  %v850_v53 = vld [vmem:[#allocation6 + $0x1358] sm:$0xff] }
 0x4e1   :  { %11521 = vmatprep.subr.bf16.mxu0 %v17696_v37  ;;  %12080 = vmatprep.subr.bf16.mxu1 %v17698_v51  ;;  %v854_v50 = vld [vmem:[#allocation6 + $0x1378] sm:$0xff]  ;;  %v17727_v37 = vcombine.low %v841_v43, %v845_v30  ;;  %v17729_v51 = vcombine.low %v842_v40, %v846_v41  ;;  %v17760_v43 = vcombine.high %v873_v29, %v877_v20  ;;  %v881_v40 = vld [vmem:[#allocation6 + $0x1450] sm:$0xff] }
 0x4e2   :  { %v17738_v55 = vcombine.high %v850_v53, %v854_v50  ;;  %v885_v41 = vld [vmem:[#allocation6 + $0x1470] sm:$0xff] }
 0x4e4   :  { %11522 = vmatpush1.bf16.msra.mxu0 %v17695_v62  ;;  %12081 = vmatpush1.bf16.msra.mxu1 %v17697_v10  ;;  %v858_v62 = vld [vmem:[#allocation6 + $0x1398] sm:$0xff] }
 0x4e5   :  { %11523 = vmatprep.subr.bf16.mxu0 %v17704_v2  ;;  %12082 = vmatprep.subr.bf16.mxu1 %v17706_v4  ;;  %v862_v10 = vld [vmem:[#allocation6 + $0x13b8] sm:$0xff]  ;;  %v17735_v2 = vcombine.low %v849_v49, %v853_v0  ;;  %v17737_v4 = vcombine.low %v850_v53, %v854_v50  ;;  %v17768_v49 = vcombine.high %v881_v40, %v885_v41  ;;  %v889_v53 = vld [vmem:[#allocation6 + $0x1490] sm:$0xff] }
 0x4e6   :  { %v17746_v7 = vcombine.high %v858_v62, %v862_v10  ;;  %v893_v50 = vld [vmem:[#allocation6 + $0x14b0] sm:$0xff] }
 0x4e8   :  { %11524 = vmatpush1.bf16.msra.mxu0 %v17703_v9  ;;  %12083 = vmatpush1.bf16.msra.mxu1 %v17705_v12  ;;  %v866_v9 = vld [vmem:[#allocation6 + $0x13d8] sm:$0xff] }
 0x4e9   :  { %11525 = vmatprep.subr.bf16.mxu0 %v17712_v23  ;;  %12084 = vmatprep.subr.bf16.mxu1 %v17714_v28  ;;  %v870_v12 = vld [vmem:[#allocation6 + $0x13f8] sm:$0xff]  ;;  %v17743_v23 = vcombine.low %v857_v56, %v861_v57  ;;  %v17745_v28 = vcombine.low %v858_v62, %v862_v10  ;;  %v17776_v56 = vcombine.high %v889_v53, %v893_v50  ;;  %v897_v62 = vld [vmem:[#allocation6 + $0x14d0] sm:$0xff] }
 0x4ea   :  { %v17754_v18 = vcombine.high %v866_v9, %v870_v12  ;;  %v901_v10 = vld [vmem:[#allocation6 + $0x14f0] sm:$0xff] }
 0x4ec   :  { %11526 = vmatpush1.bf16.msra.mxu0 %v17711_v15  ;;  %12085 = vmatpush1.bf16.msra.mxu1 %v17713_v32  ;;  %v874_v15 = vld [vmem:[#allocation6 + $0x1418] sm:$0xff] }
 0x4ed   :  { %11527 = vmatprep.subr.bf16.mxu0 %v17720_v35  ;;  %12086 = vmatprep.subr.bf16.mxu1 %v17722_v36  ;;  %v878_v32 = vld [vmem:[#allocation6 + $0x1438] sm:$0xff]  ;;  %v17751_v35 = vcombine.low %v865_v8, %v869_v11  ;;  %v17753_v36 = vcombine.low %v866_v9, %v870_v12  ;;  %v905_v11 = vld [vmem:[#allocation6 + $0x1510] sm:$0xff] }
 0x4ee   :  { %v17762_v30 = vcombine.high %v874_v15, %v878_v32  ;;  %v909_v9 = vld [vmem:[#allocation6 + $0x1530] sm:$0xff]  ;;  %v906_v12 = vld [vmem:[#allocation6 + $0x1518] sm:$0xff] }
 0x4f0   :  { %11528 = vmatpush1.bf16.msra.mxu0 %v17719_v42  ;;  %12087 = vmatpush1.bf16.msra.mxu1 %v17721_v44  ;;  %v882_v42 = vld [vmem:[#allocation6 + $0x1458] sm:$0xff] }
 0x4f1   :  { %11529 = vmatprep.subr.bf16.mxu0 %v17728_v45  ;;  %12088 = vmatprep.subr.bf16.mxu1 %v17730_v48  ;;  %v886_v44 = vld [vmem:[#allocation6 + $0x1478] sm:$0xff]  ;;  %v17759_v45 = vcombine.low %v873_v29, %v877_v20  ;;  %v17761_v48 = vcombine.low %v874_v15, %v878_v32  ;;  %v913_v29 = vld [vmem:[#allocation6 + $0x1550] sm:$0xff] }
 0x4f2   :  { %v17770_v0 = vcombine.high %v882_v42, %v886_v44  ;;  %v917_v20 = vld [vmem:[#allocation6 + $0x1570] sm:$0xff]  ;;  %v914_v15 = vld [vmem:[#allocation6 + $0x1558] sm:$0xff] }
 0x4f3   :  { %v918_v32 = vld [vmem:[#allocation6 + $0x1578] sm:$0xff] }
 0x4f4   :  { %11530 = vmatpush1.bf16.msra.mxu0 %v17727_v37  ;;  %12089 = vmatpush1.bf16.msra.mxu1 %v17729_v51  ;;  %v890_v37 = vld [vmem:[#allocation6 + $0x1498] sm:$0xff] }
 0x4f5   :  { %11531 = vmatprep.subr.bf16.mxu0 %v17736_v54  ;;  %12090 = vmatprep.subr.bf16.mxu1 %v17738_v55  ;;  %v894_v51 = vld [vmem:[#allocation6 + $0x14b8] sm:$0xff]  ;;  %v17767_v54 = vcombine.low %v881_v40, %v885_v41  ;;  %v17769_v55 = vcombine.low %v882_v42, %v886_v44  ;;  %v921_v40 = vld [vmem:[#allocation6 + $0x1590] sm:$0xff] }
 0x4f6   :  { %v17778_v57 = vcombine.high %v890_v37, %v894_v51  ;;  %v925_v41 = vld [vmem:[#allocation6 + $0x15b0] sm:$0xff]  ;;  %v922_v42 = vld [vmem:[#allocation6 + $0x1598] sm:$0xff] }
 0x4f7   :  { %v926_v44 = vld [vmem:[#allocation6 + $0x15b8] sm:$0xff] }
 0x4f8   :  { %11532 = vmatpush1.bf16.msra.mxu0 %v17735_v2  ;;  %12091 = vmatpush1.bf16.msra.mxu1 %v17737_v4  ;;  %v898_v2 = vld [vmem:[#allocation6 + $0x14d8] sm:$0xff] }
 0x4f9   :  { %11533 = vmatprep.subr.bf16.mxu0 %v17744_v19  ;;  %12092 = vmatprep.subr.bf16.mxu1 %v17746_v7  ;;  %v902_v4 = vld [vmem:[#allocation6 + $0x14f8] sm:$0xff]  ;;  %v17775_v19 = vcombine.low %v889_v53, %v893_v50  ;;  %v17784_v7 = vcombine.high %v897_v62, %v901_v10  ;;  %v929_v53 = vld [vmem:[#allocation6 + $0x15d0] sm:$0xff] }
 0x4fa   :  { %v17786_v8 = vcombine.high %v898_v2, %v902_v4  ;;  %v933_v50 = vld [vmem:[#allocation6 + $0x15f0] sm:$0xff] }
 0x4fc   :  { %11534 = vmatpush1.bf16.msra.mxu0 %v17743_v23  ;;  %12093 = vmatpush1.bf16.msra.mxu1 %v17745_v28  ;;  %v910_v23 = vld [vmem:[#allocation6 + $0x1538] sm:$0xff]  ;;  %v17783_v28 = vcombine.low %v897_v62, %v901_v10  ;;  %v937_v62 = vld [vmem:[#allocation6 + $0x1610] sm:$0xff] }
 0x4fd   :  { %11535 = vmatprep.subr.bf16.mxu0 %v17752_v24  ;;  %12094 = vmatprep.subr.bf16.mxu1 %v17754_v18  ;;  %v17785_v24 = vcombine.low %v898_v2, %v902_v4  ;;  %v17792_v18 = vcombine.high %v905_v11, %v909_v9  ;;  %v941_v10 = vld [vmem:[#allocation6 + $0x1630] sm:$0xff]  ;;  %v938_v2 = vld [vmem:[#allocation6 + $0x1618] sm:$0xff] }
 0x4fe   :  { %v942_v4 = vld [vmem:[#allocation6 + $0x1638] sm:$0xff] }
 0x500   :  { %11536 = vmatpush1.bf16.msra.mxu0 %v17751_v35  ;;  %12095 = vmatpush1.bf16.msra.mxu1 %v17753_v36  ;;  %v17791_v35 = vcombine.low %v905_v11, %v909_v9  ;;  %v17793_v36 = vcombine.low %v906_v12, %v910_v23  ;;  %v945_v11 = vld [vmem:[#allocation6 + $0x1650] sm:$0xff] }
 0x501   :  { %11548 = vmatprep.subr.bf16.mxu0 %v17760_v43  ;;  %12107 = vmatprep.subr.bf16.mxu1 %v17762_v30  ;;  %v17800_v43 = vcombine.high %v913_v29, %v917_v20  ;;  %v17802_v30 = vcombine.high %v914_v15, %v918_v32  ;;  %v949_v9 = vld [vmem:[#allocation6 + $0x1670] sm:$0xff] }
 0x503   :  { %11538 = vmatmul.mubr.bf16.vlgmr.msra.gmra.mrb[4].mxu0 %v20143_v26  ;;  %12097 = vmatmul.mubr.bf16.vlgmr.msra.gmra.mrb[4].mxu1 %v20143_v26  ;;  %v17777_v26 = vcombine.low %v890_v37, %v894_v51  ;;  %v930_v37 = vld [vmem:[#allocation6 + $0x15d8] sm:$0xff] }
 0x504   :  { %11549 = vmatpush1.bf16.msra.mxu0 %v17759_v45  ;;  %12108 = vmatpush1.bf16.msra.mxu1 %v17761_v48  ;;  %v17799_v45 = vcombine.low %v913_v29, %v917_v20  ;;  %v17801_v48 = vcombine.low %v914_v15, %v918_v32  ;;  %v934_v51 = vld [vmem:[#allocation6 + $0x15f8] sm:$0xff]  ;;  %v953_v29 = vld [vmem:[#allocation6 + $0x1690] sm:$0xff] }
 0x505   :  { %11550 = vmatprep.subr.bf16.mxu0 %v17768_v49  ;;  %12109 = vmatprep.subr.bf16.mxu1 %v17770_v0  ;;  %v17808_v49 = vcombine.high %v921_v40, %v925_v41  ;;  %v17810_v0 = vcombine.high %v922_v42, %v926_v44  ;;  %v957_v20 = vld [vmem:[#allocation6 + $0x16b0] sm:$0xff]  ;;  %v954_v15 = vld [vmem:[#allocation6 + $0x1698] sm:$0xff] }
 0x506   :  { %11580 = vmatprep.mubr.bf16.mxu0 %v20145_v38  ;;  %12139 = vmatprep.mubr.bf16.mxu1 %v20145_v38  ;;  %v17794_v38 = vcombine.high %v906_v12, %v910_v23  ;;  %v946_v12 = vld [vmem:[#allocation6 + $0x1658] sm:$0xff] }
 0x507   :  { %v950_v23 = vld [vmem:[#allocation6 + $0x1678] sm:$0xff] }
 0x508   :  { %11551 = vmatpush1.bf16.msra.mxu0 %v17767_v54  ;;  %12110 = vmatpush1.bf16.msra.mxu1 %v17769_v55  ;;  %v17807_v54 = vcombine.low %v921_v40, %v925_v41  ;;  %v17809_v55 = vcombine.low %v922_v42, %v926_v44  ;;  %v958_v32 = vld [vmem:[#allocation6 + $0x16b8] sm:$0xff]  ;;  %v961_v40 = vld [vmem:[#allocation6 + $0x16d0] sm:$0xff] }
 0x509   :  { %11552 = vmatprep.subr.bf16.mxu0 %v17776_v56  ;;  %12111 = vmatprep.subr.bf16.mxu1 %v17778_v57  ;;  %v17816_v56 = vcombine.high %v929_v53, %v933_v50  ;;  %v17818_v57 = vcombine.high %v930_v37, %v934_v51  ;;  %v965_v41 = vld [vmem:[#allocation6 + $0x16f0] sm:$0xff]  ;;  %v962_v42 = vld [vmem:[#allocation6 + $0x16d8] sm:$0xff] }
 0x50a   :  { %v966_v44 = vld [vmem:[#allocation6 + $0x16f8] sm:$0xff] }
 0x50c   :  { %11553 = vmatpush1.bf16.msra.mxu0 %v17775_v19  ;;  %12112 = vmatpush1.bf16.msra.mxu1 %v17777_v26  ;;  %v17815_v19 = vcombine.low %v929_v53, %v933_v50  ;;  %v17817_v26 = vcombine.low %v930_v37, %v934_v51  ;;  %v969_v53 = vld [vmem:[#allocation6 + $0x1710] sm:$0xff]  ;;  %v970_v37 = vld [vmem:[#allocation6 + $0x1718] sm:$0xff] }
 0x50d   :  { %11554 = vmatprep.subr.bf16.mxu0 %v17784_v7  ;;  %12113 = vmatprep.subr.bf16.mxu1 %v17786_v8  ;;  %v17824_v7 = vcombine.high %v937_v62, %v941_v10  ;;  %v17826_v8 = vcombine.high %v938_v2, %v942_v4  ;;  %v973_v50 = vld [vmem:[#allocation6 + $0x1730] sm:$0xff]  ;;  %v974_v51 = vld [vmem:[#allocation6 + $0x1738] sm:$0xff] }
 0x510   :  { %11555 = vmatpush1.bf16.msra.mxu0 %v17783_v28  ;;  %12114 = vmatpush1.bf16.msra.mxu1 %v17785_v24  ;;  %v17823_v28 = vcombine.low %v937_v62, %v941_v10  ;;  %v17825_v24 = vcombine.low %v938_v2, %v942_v4  ;;  %v977_v62 = vld [vmem:[#allocation6 + $0x1750] sm:$0xff]  ;;  %v978_v2 = vld [vmem:[#allocation6 + $0x1758] sm:$0xff] }
 0x511   :  { %11556 = vmatprep.subr.bf16.mxu0 %v17792_v18  ;;  %12115 = vmatprep.subr.bf16.mxu1 %v17794_v38  ;;  %v17832_v18 = vcombine.high %v945_v11, %v949_v9  ;;  %v17834_v38 = vcombine.high %v946_v12, %v950_v23  ;;  %v981_v10 = vld [vmem:[#allocation6 + $0x1770] sm:$0xff]  ;;  %v982_v4 = vld [vmem:[#allocation6 + $0x1778] sm:$0xff] }
 0x514   :  { %11557 = vmatpush1.bf16.msra.mxu0 %v17791_v35  ;;  %12116 = vmatpush1.bf16.msra.mxu1 %v17793_v36  ;;  %v17831_v35 = vcombine.low %v945_v11, %v949_v9  ;;  %v17833_v36 = vcombine.low %v946_v12, %v950_v23  ;;  %v985_v11 = vld [vmem:[#allocation6 + $0x1790] sm:$0xff]  ;;  %v986_v12 = vld [vmem:[#allocation6 + $0x1798] sm:$0xff] }
 0x515   :  { %11558 = vmatprep.subr.bf16.mxu0 %v17800_v43  ;;  %12117 = vmatprep.subr.bf16.mxu1 %v17802_v30  ;;  %v17840_v43 = vcombine.high %v953_v29, %v957_v20  ;;  %v17842_v30 = vcombine.high %v954_v15, %v958_v32  ;;  %v989_v9 = vld [vmem:[#allocation6 + $0x17b0] sm:$0xff]  ;;  %v990_v23 = vld [vmem:[#allocation6 + $0x17b8] sm:$0xff] }
 0x518   :  { %11559 = vmatpush1.bf16.msra.mxu0 %v17799_v45  ;;  %12118 = vmatpush1.bf16.msra.mxu1 %v17801_v48  ;;  %v17839_v45 = vcombine.low %v953_v29, %v957_v20  ;;  %v17841_v48 = vcombine.low %v954_v15, %v958_v32  ;;  %v993_v29 = vld [vmem:[#allocation6 + $0x17d0] sm:$0xff]  ;;  %v994_v15 = vld [vmem:[#allocation6 + $0x17d8] sm:$0xff] }
 0x519   :  { %11560 = vmatprep.subr.bf16.mxu0 %v17808_v49  ;;  %12119 = vmatprep.subr.bf16.mxu1 %v17810_v0  ;;  %v17848_v49 = vcombine.high %v961_v40, %v965_v41  ;;  %v17850_v0 = vcombine.high %v962_v42, %v966_v44  ;;  %v997_v20 = vld [vmem:[#allocation6 + $0x17f0] sm:$0xff]  ;;  %v998_v32 = vld [vmem:[#allocation6 + $0x17f8] sm:$0xff] }
 0x51c   :  { %11561 = vmatpush1.bf16.msra.mxu0 %v17807_v54  ;;  %12120 = vmatpush1.bf16.msra.mxu1 %v17809_v55  ;;  %v17847_v54 = vcombine.low %v961_v40, %v965_v41  ;;  %v17849_v55 = vcombine.low %v962_v42, %v966_v44  ;;  %v1001_v40 = vld [vmem:[#allocation6 + $0x1810] sm:$0xff]  ;;  %v1002_v42 = vld [vmem:[#allocation6 + $0x1818] sm:$0xff] }
 0x51d   :  { %11562 = vmatprep.subr.bf16.mxu0 %v17816_v56  ;;  %12121 = vmatprep.subr.bf16.mxu1 %v17818_v57  ;;  %v17856_v56 = vcombine.high %v969_v53, %v973_v50  ;;  %v17858_v57 = vcombine.high %v970_v37, %v974_v51  ;;  %v1005_v41 = vld [vmem:[#allocation6 + $0x1830] sm:$0xff]  ;;  %v1006_v44 = vld [vmem:[#allocation6 + $0x1838] sm:$0xff] }
 0x520   :  { %11563 = vmatpush1.bf16.msra.mxu0 %v17815_v19  ;;  %12122 = vmatpush1.bf16.msra.mxu1 %v17817_v26  ;;  %v17855_v19 = vcombine.low %v969_v53, %v973_v50  ;;  %v17857_v26 = vcombine.low %v970_v37, %v974_v51  ;;  %v1009_v53 = vld [vmem:[#allocation6 + $0x1850] sm:$0xff]  ;;  %v1010_v37 = vld [vmem:[#allocation6 + $0x1858] sm:$0xff] }
 0x521   :  { %11564 = vmatprep.subr.bf16.mxu0 %v17824_v7  ;;  %12123 = vmatprep.subr.bf16.mxu1 %v17826_v8  ;;  %v17864_v7 = vcombine.high %v977_v62, %v981_v10  ;;  %v17866_v8 = vcombine.high %v978_v2, %v982_v4  ;;  %v1013_v50 = vld [vmem:[#allocation6 + $0x1870] sm:$0xff]  ;;  %v1014_v51 = vld [vmem:[#allocation6 + $0x1878] sm:$0xff] }
 0x524   :  { %11565 = vmatpush1.bf16.msra.mxu0 %v17823_v28  ;;  %12124 = vmatpush1.bf16.msra.mxu1 %v17825_v24  ;;  %v17863_v28 = vcombine.low %v977_v62, %v981_v10  ;;  %v17865_v24 = vcombine.low %v978_v2, %v982_v4  ;;  %v1017_v62 = vld [vmem:[#allocation6 + $0x1890] sm:$0xff]  ;;  %v1018_v2 = vld [vmem:[#allocation6 + $0x1898] sm:$0xff] }
 0x525   :  { %11566 = vmatprep.subr.bf16.mxu0 %v17832_v18  ;;  %12125 = vmatprep.subr.bf16.mxu1 %v17834_v38  ;;  %v17872_v18 = vcombine.high %v985_v11, %v989_v9  ;;  %v17874_v38 = vcombine.high %v986_v12, %v990_v23  ;;  %v1021_v10 = vld [vmem:[#allocation6 + $0x18b0] sm:$0xff]  ;;  %v1022_v4 = vld [vmem:[#allocation6 + $0x18b8] sm:$0xff] }
 0x528   :  { %11567 = vmatpush1.bf16.msra.mxu0 %v17831_v35  ;;  %12126 = vmatpush1.bf16.msra.mxu1 %v17833_v36  ;;  %v17871_v35 = vcombine.low %v985_v11, %v989_v9  ;;  %v17873_v36 = vcombine.low %v986_v12, %v990_v23  ;;  %v1025_v11 = vld [vmem:[#allocation6 + $0x18d0] sm:$0xff]  ;;  %v1026_v12 = vld [vmem:[#allocation6 + $0x18d8] sm:$0xff] }
 0x529   :  { %11568 = vmatprep.subr.bf16.mxu0 %v17840_v43  ;;  %12127 = vmatprep.subr.bf16.mxu1 %v17842_v30  ;;  %v17880_v43 = vcombine.high %v993_v29, %v997_v20  ;;  %v17882_v30 = vcombine.high %v994_v15, %v998_v32  ;;  %v1029_v9 = vld [vmem:[#allocation6 + $0x18f0] sm:$0xff]  ;;  %v1030_v23 = vld [vmem:[#allocation6 + $0x18f8] sm:$0xff] }
 0x52c   :  { %11569 = vmatpush1.bf16.msra.mxu0 %v17839_v45  ;;  %12128 = vmatpush1.bf16.msra.mxu1 %v17841_v48  ;;  %v17879_v45 = vcombine.low %v993_v29, %v997_v20  ;;  %v17881_v48 = vcombine.low %v994_v15, %v998_v32  ;;  %v1037_v29 = vld [vmem:[#allocation6 + $0x1930] sm:$0xff]  ;;  %v1034_v20 = vld [vmem:[#allocation6 + $0x1918] sm:$0xff]  ;;  %v17911_v32 = vcombine.low %v1025_v11, %v1029_v9 }
 0x52d   :  { %11570 = vmatprep.subr.bf16.mxu0 %v17848_v49  ;;  %12129 = vmatprep.subr.bf16.mxu1 %v17850_v0  ;;  %v17888_v49 = vcombine.high %v1001_v40, %v1005_v41  ;;  %v17890_v0 = vcombine.high %v1002_v42, %v1006_v44  ;;  %v1038_v15 = vld [vmem:[#allocation6 + $0x1938] sm:$0xff] }
 0x530   :  { %11571 = vmatpush1.bf16.msra.mxu0 %v17847_v54  ;;  %12130 = vmatpush1.bf16.msra.mxu1 %v17849_v55  ;;  %v17887_v54 = vcombine.low %v1001_v40, %v1005_v41  ;;  %v17889_v55 = vcombine.low %v1002_v42, %v1006_v44  ;;  %v1042_v40 = vld [vmem:[#allocation6 + $0x1958] sm:$0xff]  ;;  %v17921_v44 = vcombine.low %v1034_v20, %v1038_v15 }
 0x531   :  { %11572 = vmatprep.subr.bf16.mxu0 %v17856_v56  ;;  %12131 = vmatprep.subr.bf16.mxu1 %v17858_v57  ;;  %v17896_v56 = vcombine.high %v1009_v53, %v1013_v50  ;;  %v17898_v57 = vcombine.high %v1010_v37, %v1014_v51  ;;  %v1046_v41 = vld [vmem:[#allocation6 + $0x1978] sm:$0xff] }
 0x534   :  { %11573 = vmatpush1.bf16.msra.mxu0 %v17855_v19  ;;  %12132 = vmatpush1.bf16.msra.mxu1 %v17857_v26  ;;  %v17895_v19 = vcombine.low %v1009_v53, %v1013_v50  ;;  %v17897_v26 = vcombine.low %v1010_v37, %v1014_v51  ;;  %v1050_v53 = vld [vmem:[#allocation6 + $0x1998] sm:$0xff]  ;;  %v17929_v51 = vcombine.low %v1042_v40, %v1046_v41 }
 0x535   :  { %11574 = vmatprep.subr.bf16.mxu0 %v17864_v7  ;;  %12133 = vmatprep.subr.bf16.mxu1 %v17866_v8  ;;  %v17904_v7 = vcombine.high %v1017_v62, %v1021_v10  ;;  %v17906_v8 = vcombine.high %v1018_v2, %v1022_v4  ;;  %v1054_v50 = vld [vmem:[#allocation6 + $0x19b8] sm:$0xff] }
 0x538   :  { %11575 = vmatpush1.bf16.msra.mxu0 %v17863_v28  ;;  %12134 = vmatpush1.bf16.msra.mxu1 %v17865_v24  ;;  %v17903_v28 = vcombine.low %v1017_v62, %v1021_v10  ;;  %v17912_v24 = vcombine.high %v1025_v11, %v1029_v9  ;;  %v1058_v62 = vld [vmem:[#allocation6 + $0x19d8] sm:$0xff] }
 0x539   :  { %11576 = vmatprep.subr.bf16.mxu0 %v17872_v18  ;;  %12135 = vmatprep.subr.bf16.mxu1 %v17874_v38  ;;  %v17914_v18 = vcombine.high %v1026_v12, %v1030_v23  ;;  %v1033_v38 = vld [vmem:[#allocation6 + $0x1910] sm:$0xff]  ;;  %v1062_v10 = vld [vmem:[#allocation6 + $0x19f8] sm:$0xff] }
 0x53a   :  { %v17919_v42 = vcombine.low %v1033_v38, %v1037_v29  ;;  %v1066_v11 = vld [vmem:[#allocation6 + $0x1a18] sm:$0xff] }
 0x53b   :  { %v1070_v9 = vld [vmem:[#allocation6 + $0x1a38] sm:$0xff] }
 0x53c   :  { %11577 = vmatpush1.bf16.msra.mxu0 %v17871_v35  ;;  %12136 = vmatpush1.bf16.msra.mxu1 %v17873_v36  ;;  %v17913_v35 = vcombine.low %v1026_v12, %v1030_v23  ;;  %v17920_v36 = vcombine.high %v1033_v38, %v1037_v29  ;;  %v17945_v23 = vcombine.low %v1058_v62, %v1062_v10  ;;  %v1074_v38 = vld [vmem:[#allocation6 + $0x1a58] sm:$0xff] }
 0x53d   :  { %11578 = vmatprep.subr.bf16.mxu0 %v17880_v43  ;;  %12137 = vmatprep.subr.bf16.mxu1 %v17882_v30  ;;  %v1041_v43 = vld [vmem:[#allocation6 + $0x1950] sm:$0xff]  ;;  %v1078_v29 = vld [vmem:[#allocation6 + $0x1a78] sm:$0xff] }
 0x53e   :  { %v1045_v30 = vld [vmem:[#allocation6 + $0x1970] sm:$0xff] }
 0x53f   :  { %v17927_v37 = vcombine.low %v1041_v43, %v1045_v30 }
 0x540   :  { %11579 = vmatpush1.bf16.msra.mxu0 %v17879_v45  ;;  %12138 = vmatpush1.bf16.msra.mxu1 %v17881_v48  ;;  %v17928_v45 = vcombine.high %v1041_v43, %v1045_v30  ;;  %v17930_v48 = vcombine.high %v1042_v40, %v1046_v41  ;;  %v1082_v43 = vld [vmem:[#allocation6 + $0x1a98] sm:$0xff]  ;;  %v17961_v41 = vcombine.low %v1074_v38, %v1078_v29 }
 0x541   :  { %11591 = vmatprep.subr.bf16.mxu0 %v17888_v49  ;;  %12150 = vmatprep.subr.bf16.mxu1 %v17890_v0  ;;  %v1049_v49 = vld [vmem:[#allocation6 + $0x1990] sm:$0xff]  ;;  %v1086_v30 = vld [vmem:[#allocation6 + $0x1ab8] sm:$0xff] }
 0x542   :  { %v1053_v0 = vld [vmem:[#allocation6 + $0x19b0] sm:$0xff] }
 0x543   :  { %11581 = vmatmul.mubr.bf16.vlgmr.msra.gmra.mrb[4].mxu0 %v20151_v59  ;;  %12140 = vmatmul.mubr.bf16.vlgmr.msra.gmra.mrb[4].mxu1 %v20151_v59  ;;  %v17905_v59 = vcombine.low %v1018_v2, %v1022_v4  ;;  %v17935_v2 = vcombine.low %v1049_v49, %v1053_v0  ;;  %v17937_v4 = vcombine.low %v1050_v53, %v1054_v50 }
 0x544   :  { %11592 = vmatpush1.bf16.msra.mxu0 %v17887_v54  ;;  %12151 = vmatpush1.bf16.msra.mxu1 %v17889_v55  ;;  %v17936_v54 = vcombine.high %v1049_v49, %v1053_v0  ;;  %v17938_v55 = vcombine.high %v1050_v53, %v1054_v50  ;;  %v1090_v49 = vld [vmem:[#allocation6 + $0x1ad8] sm:$0xff]  ;;  %v17969_v50 = vcombine.low %v1082_v43, %v1086_v30 }
 0x545   :  { %11593 = vmatprep.subr.bf16.mxu0 %v17896_v56  ;;  %12152 = vmatprep.subr.bf16.mxu1 %v17898_v57  ;;  %v1057_v56 = vld [vmem:[#allocation6 + $0x19d0] sm:$0xff]  ;;  %v1094_v0 = vld [vmem:[#allocation6 + $0x1af8] sm:$0xff] }
 0x546   :  { %11623 = vmatprep.mubr.bf16.mxu0 %v20153_v6  ;;  %12182 = vmatprep.mubr.bf16.mxu1 %v20153_v6  ;;  %v17922_v6 = vcombine.high %v1034_v20, %v1038_v15  ;;  %v1061_v57 = vld [vmem:[#allocation6 + $0x19f0] sm:$0xff]  ;;  %v17953_v15 = vcombine.low %v1066_v11, %v1070_v9 }
 0x547   :  { %v17943_v12 = vcombine.low %v1057_v56, %v1061_v57 }
 0x548   :  { %11594 = vmatpush1.bf16.msra.mxu0 %v17895_v19  ;;  %12153 = vmatpush1.bf16.msra.mxu1 %v17897_v26  ;;  %v17944_v19 = vcombine.high %v1057_v56, %v1061_v57  ;;  %v17946_v26 = vcombine.high %v1058_v62, %v1062_v10  ;;  %v1098_v56 = vld [vmem:[#allocation6 + $0x1b18] sm:$0xff]  ;;  %v17977_v10 = vcombine.low %v1090_v49, %v1094_v0 }
 0x549   :  { %11595 = vmatprep.subr.bf16.mxu0 %v17904_v7  ;;  %12154 = vmatprep.subr.bf16.mxu1 %v17906_v8  ;;  %v1065_v7 = vld [vmem:[#allocation6 + $0x1a10] sm:$0xff]  ;;  %v1102_v57 = vld [vmem:[#allocation6 + $0x1b38] sm:$0xff] }
 0x54a   :  { %v1069_v8 = vld [vmem:[#allocation6 + $0x1a30] sm:$0xff] }
 0x54b   :  { %v17951_v20 = vcombine.low %v1065_v7, %v1069_v8 }
 0x54c   :  { %11596 = vmatpush1.bf16.msra.mxu0 %v17903_v28  ;;  %12155 = vmatpush1.bf16.msra.mxu1 %v17905_v59  ;;  %v17952_v28 = vcombine.high %v1065_v7, %v1069_v8  ;;  %v17954_v59 = vcombine.high %v1066_v11, %v1070_v9  ;;  %v1106_v7 = vld [vmem:[#allocation6 + $0x1b58] sm:$0xff]  ;;  %v17985_v9 = vcombine.low %v1098_v56, %v1102_v57 }
 0x54d   :  { %11597 = vmatprep.subr.bf16.mxu0 %v17912_v24  ;;  %12156 = vmatprep.subr.bf16.mxu1 %v17914_v18  ;;  %v1073_v24 = vld [vmem:[#allocation6 + $0x1a50] sm:$0xff]  ;;  %v1110_v8 = vld [vmem:[#allocation6 + $0x1b78] sm:$0xff] }
 0x54e   :  { %v1077_v18 = vld [vmem:[#allocation6 + $0x1a70] sm:$0xff] }
 0x54f   :  { %v17959_v40 = vcombine.low %v1073_v24, %v1077_v18 }
 0x550   :  { %11598 = vmatpush1.bf16.msra.mxu0 %v17911_v32  ;;  %12157 = vmatpush1.bf16.msra.mxu1 %v17913_v35  ;;  %v17960_v32 = vcombine.high %v1073_v24, %v1077_v18  ;;  %v17962_v35 = vcombine.high %v1074_v38, %v1078_v29  ;;  %v1114_v24 = vld [vmem:[#allocation6 + $0x1b98] sm:$0xff]  ;;  %v17993_v29 = vcombine.low %v1106_v7, %v1110_v8 }
 0x551   :  { %11599 = vmatprep.subr.bf16.mxu0 %v17920_v36  ;;  %12158 = vmatprep.subr.bf16.mxu1 %v17922_v6  ;;  %v1081_v36 = vld [vmem:[#allocation6 + $0x1a90] sm:$0xff]  ;;  %v1118_v18 = vld [vmem:[#allocation6 + $0x1bb8] sm:$0xff] }
 0x552   :  { %v1085_v6 = vld [vmem:[#allocation6 + $0x1ab0] sm:$0xff] }
 0x553   :  { %v17967_v53 = vcombine.low %v1081_v36, %v1085_v6 }
 0x554   :  { %11600 = vmatpush1.bf16.msra.mxu0 %v17919_v42  ;;  %12159 = vmatpush1.bf16.msra.mxu1 %v17921_v44  ;;  %v17968_v42 = vcombine.high %v1081_v36, %v1085_v6  ;;  %v17970_v44 = vcombine.high %v1082_v43, %v1086_v30  ;;  %v1122_v36 = vld [vmem:[#allocation6 + $0x1bd8] sm:$0xff]  ;;  %v18001_v30 = vcombine.low %v1114_v24, %v1118_v18 }
 0x555   :  { %11601 = vmatprep.subr.bf16.mxu0 %v17928_v45  ;;  %12160 = vmatprep.subr.bf16.mxu1 %v17930_v48  ;;  %v1089_v45 = vld [vmem:[#allocation6 + $0x1ad0] sm:$0xff]  ;;  %v1126_v6 = vld [vmem:[#allocation6 + $0x1bf8] sm:$0xff] }
 0x556   :  { %v1093_v48 = vld [vmem:[#allocation6 + $0x1af0] sm:$0xff] }
 0x557   :  { %v17975_v62 = vcombine.low %v1089_v45, %v1093_v48 }
 0x558   :  { %11602 = vmatpush1.bf16.msra.mxu0 %v17927_v37  ;;  %12161 = vmatpush1.bf16.msra.mxu1 %v17929_v51  ;;  %v17976_v37 = vcombine.high %v1089_v45, %v1093_v48  ;;  %v17978_v51 = vcombine.high %v1090_v49, %v1094_v0  ;;  %v1130_v45 = vld [vmem:[#allocation6 + $0x1c18] sm:$0xff]  ;;  %v18009_v0 = vcombine.low %v1122_v36, %v1126_v6 }
 0x559   :  { %11603 = vmatprep.subr.bf16.mxu0 %v17936_v54  ;;  %12162 = vmatprep.subr.bf16.mxu1 %v17938_v55  ;;  %v1097_v54 = vld [vmem:[#allocation6 + $0x1b10] sm:$0xff]  ;;  %v1134_v48 = vld [vmem:[#allocation6 + $0x1c38] sm:$0xff] }
 0x55a   :  { %v1101_v55 = vld [vmem:[#allocation6 + $0x1b30] sm:$0xff] }
 0x55b   :  { %v17983_v11 = vcombine.low %v1097_v54, %v1101_v55 }
 0x55c   :  { %11604 = vmatpush1.bf16.msra.mxu0 %v17935_v2  ;;  %12163 = vmatpush1.bf16.msra.mxu1 %v17937_v4  ;;  %v17984_v2 = vcombine.high %v1097_v54, %v1101_v55  ;;  %v17986_v4 = vcombine.high %v1098_v56, %v1102_v57  ;;  %v1138_v54 = vld [vmem:[#allocation6 + $0x1c58] sm:$0xff]  ;;  %v18017_v57 = vcombine.low %v1130_v45, %v1134_v48 }
 0x55d   :  { %11605 = vmatprep.subr.bf16.mxu0 %v17944_v19  ;;  %12164 = vmatprep.subr.bf16.mxu1 %v17946_v26  ;;  %v1105_v19 = vld [vmem:[#allocation6 + $0x1b50] sm:$0xff]  ;;  %v1142_v55 = vld [vmem:[#allocation6 + $0x1c78] sm:$0xff] }
 0x55e   :  { %v1109_v26 = vld [vmem:[#allocation6 + $0x1b70] sm:$0xff] }
 0x55f   :  { %v17991_v38 = vcombine.low %v1105_v19, %v1109_v26 }
 0x560   :  { %11606 = vmatpush1.bf16.msra.mxu0 %v17943_v12  ;;  %12165 = vmatpush1.bf16.msra.mxu1 %v17945_v23  ;;  %v17992_v12 = vcombine.high %v1105_v19, %v1109_v26  ;;  %v17994_v23 = vcombine.high %v1106_v7, %v1110_v8  ;;  %v1146_v19 = vld [vmem:[#allocation6 + $0x1c98] sm:$0xff]  ;;  %v18025_v8 = vcombine.low %v1138_v54, %v1142_v55 }
 0x561   :  { %11607 = vmatprep.subr.bf16.mxu0 %v17952_v28  ;;  %12166 = vmatprep.subr.bf16.mxu1 %v17954_v59  ;;  %v1113_v28 = vld [vmem:[#allocation6 + $0x1b90] sm:$0xff]  ;;  %v1150_v26 = vld [vmem:[#allocation6 + $0x1cb8] sm:$0xff] }
 0x562   :  { %v1117_v59 = vld [vmem:[#allocation6 + $0x1bb0] sm:$0xff] }
 0x563   :  { %v17999_v43 = vcombine.low %v1113_v28, %v1117_v59 }
 0x564   :  { %11608 = vmatpush1.bf16.msra.mxu0 %v17951_v20  ;;  %12167 = vmatpush1.bf16.msra.mxu1 %v17953_v15  ;;  %v18000_v20 = vcombine.high %v1113_v28, %v1117_v59  ;;  %v18002_v15 = vcombine.high %v1114_v24, %v1118_v18  ;;  %v1154_v28 = vld [vmem:[#allocation6 + $0x1cd8] sm:$0xff] }
 0x565   :  { %11609 = vmatprep.subr.bf16.mxu0 %v17960_v32  ;;  %12168 = vmatprep.subr.bf16.mxu1 %v17962_v35  ;;  %v1121_v32 = vld [vmem:[#allocation6 + $0x1bd0] sm:$0xff]  ;;  %v1158_v59 = vld [vmem:[#allocation6 + $0x1cf8] sm:$0xff] }
 0x566   :  { %v1125_v35 = vld [vmem:[#allocation6 + $0x1bf0] sm:$0xff] }
 0x567   :  { %v18007_v49 = vcombine.low %v1121_v32, %v1125_v35 }
 0x568   :  { %11610 = vmatpush1.bf16.msra.mxu0 %v17959_v40  ;;  %12169 = vmatpush1.bf16.msra.mxu1 %v17961_v41  ;;  %v18008_v40 = vcombine.high %v1121_v32, %v1125_v35  ;;  %v18010_v41 = vcombine.high %v1122_v36, %v1126_v6  ;;  %v1166_v32 = vld [vmem:[#allocation6 + $0x1d38] sm:$0xff]  ;;  %v18041_v36 = vcombine.low %v1154_v28, %v1158_v59 }
 0x569   :  { %11611 = vmatprep.subr.bf16.mxu0 %v17968_v42  ;;  %12170 = vmatprep.subr.bf16.mxu1 %v17970_v44  ;;  %v1129_v42 = vld [vmem:[#allocation6 + $0x1c10] sm:$0xff] }
 0x56a   :  { %v1133_v44 = vld [vmem:[#allocation6 + $0x1c30] sm:$0xff] }
 0x56b   :  { %v18015_v56 = vcombine.low %v1129_v42, %v1133_v44 }
 0x56c   :  { %11612 = vmatpush1.bf16.msra.mxu0 %v17967_v53  ;;  %12171 = vmatpush1.bf16.msra.mxu1 %v17969_v50  ;;  %v18016_v53 = vcombine.high %v1129_v42, %v1133_v44  ;;  %v18018_v50 = vcombine.high %v1130_v45, %v1134_v48 }
 0x56d   :  { %11613 = vmatprep.subr.bf16.mxu0 %v17976_v37  ;;  %12172 = vmatprep.subr.bf16.mxu1 %v17978_v51  ;;  %v1137_v37 = vld [vmem:[#allocation6 + $0x1c50] sm:$0xff] }
 0x56e   :  { %v1141_v51 = vld [vmem:[#allocation6 + $0x1c70] sm:$0xff] }
 0x56f   :  { %v18023_v7 = vcombine.low %v1137_v37, %v1141_v51 }
 0x570   :  { %11614 = vmatpush1.bf16.msra.mxu0 %v17975_v62  ;;  %12173 = vmatpush1.bf16.msra.mxu1 %v17977_v10  ;;  %v18024_v62 = vcombine.high %v1137_v37, %v1141_v51  ;;  %v18026_v10 = vcombine.high %v1138_v54, %v1142_v55 }
 0x571   :  { %11615 = vmatprep.subr.bf16.mxu0 %v17984_v2  ;;  %12174 = vmatprep.subr.bf16.mxu1 %v17986_v4  ;;  %v1145_v2 = vld [vmem:[#allocation6 + $0x1c90] sm:$0xff] }
 0x572   :  { %v1149_v4 = vld [vmem:[#allocation6 + $0x1cb0] sm:$0xff] }
 0x573   :  { %v18031_v24 = vcombine.low %v1145_v2, %v1149_v4 }
 0x574   :  { %11616 = vmatpush1.bf16.msra.mxu0 %v17983_v11  ;;  %12175 = vmatpush1.bf16.msra.mxu1 %v17985_v9  ;;  %v18032_v11 = vcombine.high %v1145_v2, %v1149_v4  ;;  %v18034_v9 = vcombine.high %v1146_v19, %v1150_v26 }
 0x575   :  { %11617 = vmatprep.subr.bf16.mxu0 %v17992_v12  ;;  %12176 = vmatprep.subr.bf16.mxu1 %v17994_v23  ;;  %v1153_v12 = vld [vmem:[#allocation6 + $0x1cd0] sm:$0xff] }
 0x576   :  { %v1157_v23 = vld [vmem:[#allocation6 + $0x1cf0] sm:$0xff] }
 0x577   :  { %v18040_v18 = vcombine.high %v1153_v12, %v1157_v23  ;;  %v18039_v35 = vcombine.low %v1153_v12, %v1157_v23 }
 0x578   :  { %11618 = vmatpush1.bf16.msra.mxu0 %v17991_v38  ;;  %12177 = vmatpush1.bf16.msra.mxu1 %v17993_v29  ;;  %v18042_v38 = vcombine.high %v1154_v28, %v1158_v59  ;;  %v1161_v29 = vld [vmem:[#allocation6 + $0x1d10] sm:$0xff] }
 0x579   :  { %11619 = vmatprep.subr.bf16.mxu0 %v18000_v20  ;;  %12178 = vmatprep.subr.bf16.mxu1 %v18002_v15  ;;  %v1165_v20 = vld [vmem:[#allocation6 + $0x1d30] sm:$0xff]  ;;  %v1162_v15 = vld [vmem:[#allocation6 + $0x1d18] sm:$0xff] }
 0x57a   :  { %v18048_v6 = vcombine.high %v1161_v29, %v1165_v20  ;;  %v18047_v42 = vcombine.low %v1161_v29, %v1165_v20  ;;  %v18049_v44 = vcombine.low %v1162_v15, %v1166_v32 }
 0x57c   :  { %11620 = vmatpush1.bf16.msra.mxu0 %v17999_v43  ;;  %12179 = vmatpush1.bf16.msra.mxu1 %v18001_v30  ;;  %v1169_v43 = vld [vmem:[#allocation6 + $0x1d50] sm:$0xff] }
 0x57d   :  { %11621 = vmatprep.subr.bf16.mxu0 %v18008_v40  ;;  %12180 = vmatprep.subr.bf16.mxu1 %v18010_v41  ;;  %v1173_v30 = vld [vmem:[#allocation6 + $0x1d70] sm:$0xff]  ;;  %v1170_v40 = vld [vmem:[#allocation6 + $0x1d58] sm:$0xff] }
 0x57e   :  { %v1174_v41 = vld [vmem:[#allocation6 + $0x1d78] sm:$0xff]  ;;  %v18056_v45 = vcombine.high %v1169_v43, %v1173_v30  ;;  %v18055_v37 = vcombine.low %v1169_v43, %v1173_v30 }
 0x57f   :  { %v18058_v48 = vcombine.high %v1170_v40, %v1174_v41  ;;  %v18057_v51 = vcombine.low %v1170_v40, %v1174_v41 }
 0x580   :  { %11622 = vmatpush1.bf16.msra.mxu0 %v18007_v49  ;;  %12181 = vmatpush1.bf16.msra.mxu1 %v18009_v0  ;;  %v1177_v49 = vld [vmem:[#allocation6 + $0x1d90] sm:$0xff] }
 0x581   :  { %11634 = vmatprep.subr.bf16.mxu0 %v18016_v53  ;;  %12193 = vmatprep.subr.bf16.mxu1 %v18018_v50  ;;  %v1181_v0 = vld [vmem:[#allocation6 + $0x1db0] sm:$0xff]  ;;  %v1178_v53 = vld [vmem:[#allocation6 + $0x1d98] sm:$0xff] }
 0x582   :  { %v1182_v50 = vld [vmem:[#allocation6 + $0x1db8] sm:$0xff]  ;;  %v18064_v54 = vcombine.high %v1177_v49, %v1181_v0  ;;  %v18063_v2 = vcombine.low %v1177_v49, %v1181_v0 }
 0x583   :  { %11624 = vmatmul.mubr.bf16.vlgmr.msra.gmra.mrb[4].mxu0 %v20159_v33  ;;  %12183 = vmatmul.mubr.bf16.vlgmr.msra.gmra.mrb[4].mxu1 %v20159_v33  ;;  %v18033_v33 = vcombine.low %v1146_v19, %v1150_v26  ;;  %v18066_v55 = vcombine.high %v1178_v53, %v1182_v50  ;;  %v18065_v4 = vcombine.low %v1178_v53, %v1182_v50 }
 0x584   :  { %11635 = vmatpush1.bf16.msra.mxu0 %v18015_v56  ;;  %12194 = vmatpush1.bf16.msra.mxu1 %v18017_v57  ;;  %v1185_v56 = vld [vmem:[#allocation6 + $0x1dd0] sm:$0xff] }
 0x585   :  { %11636 = vmatprep.subr.bf16.mxu0 %v18024_v62  ;;  %12195 = vmatprep.subr.bf16.mxu1 %v18026_v10  ;;  %v1189_v57 = vld [vmem:[#allocation6 + $0x1df0] sm:$0xff]  ;;  %v1186_v62 = vld [vmem:[#allocation6 + $0x1dd8] sm:$0xff] }
 0x586   :  { %11666 = vmatprep.mubr.bf16.mxu0 %v20161_v46  ;;  %12225 = vmatprep.mubr.bf16.mxu1 %v20161_v46  ;;  %v18050_v46 = vcombine.high %v1162_v15, %v1166_v32  ;;  %v1190_v10 = vld [vmem:[#allocation6 + $0x1df8] sm:$0xff]  ;;  %v18072_v19 = vcombine.high %v1185_v56, %v1189_v57  ;;  %v18071_v12 = vcombine.low %v1185_v56, %v1189_v57 }
 0x587   :  { %v18074_v26 = vcombine.high %v1186_v62, %v1190_v10  ;;  %v18073_v23 = vcombine.low %v1186_v62, %v1190_v10 }
 0x588   :  { %11637 = vmatpush1.bf16.msra.mxu0 %v18023_v7  ;;  %12196 = vmatpush1.bf16.msra.mxu1 %v18025_v8  ;;  %v1193_v7 = vld [vmem:[#allocation6 + $0x1e10] sm:$0xff] }
 0x589   :  { %11638 = vmatprep.subr.bf16.mxu0 %v18032_v11  ;;  %12197 = vmatprep.subr.bf16.mxu1 %v18034_v9  ;;  %v1197_v8 = vld [vmem:[#allocation6 + $0x1e30] sm:$0xff]  ;;  %v1194_v11 = vld [vmem:[#allocation6 + $0x1e18] sm:$0xff] }
 0x58a   :  { %v1198_v9 = vld [vmem:[#allocation6 + $0x1e38] sm:$0xff]  ;;  %v18080_v28 = vcombine.high %v1193_v7, %v1197_v8  ;;  %v18079_v29 = vcombine.low %v1193_v7, %v1197_v8 }
 0x58b   :  { %v18082_v59 = vcombine.high %v1194_v11, %v1198_v9  ;;  %v18081_v20 = vcombine.low %v1194_v11, %v1198_v9 }
 0x58c   :  { %11639 = vmatpush1.bf16.msra.mxu0 %v18031_v24  ;;  %12198 = vmatpush1.bf16.msra.mxu1 %v18033_v33  ;;  %v1201_v24 = vld [vmem:[#allocation6 + $0x1e50] sm:$0xff] }
 0x58d   :  { %11640 = vmatprep.subr.bf16.mxu0 %v18040_v18  ;;  %12199 = vmatprep.subr.bf16.mxu1 %v18042_v38  ;;  %v1205_v33 = vld [vmem:[#allocation6 + $0x1e70] sm:$0xff]  ;;  %v1202_v18 = vld [vmem:[#allocation6 + $0x1e58] sm:$0xff] }
 0x58e   :  { %v1206_v38 = vld [vmem:[#allocation6 + $0x1e78] sm:$0xff]  ;;  %v18088_v15 = vcombine.high %v1201_v24, %v1205_v33  ;;  %v18087_v43 = vcombine.low %v1201_v24, %v1205_v33 }
 0x58f   :  { %v18090_v32 = vcombine.high %v1202_v18, %v1206_v38  ;;  %v18089_v30 = vcombine.low %v1202_v18, %v1206_v38 }
 0x590   :  { %11641 = vmatpush1.bf16.msra.mxu0 %v18039_v35  ;;  %12200 = vmatpush1.bf16.msra.mxu1 %v18041_v36  ;;  %v1209_v35 = vld [vmem:[#allocation6 + $0x1e90] sm:$0xff] }
 0x591   :  { %11642 = vmatprep.subr.bf16.mxu0 %v18048_v6  ;;  %12201 = vmatprep.subr.bf16.mxu1 %v18050_v46  ;;  %v1213_v36 = vld [vmem:[#allocation6 + $0x1eb0] sm:$0xff]  ;;  %v1210_v6 = vld [vmem:[#allocation6 + $0x1e98] sm:$0xff] }
 0x592   :  { %v1214_v46 = vld [vmem:[#allocation6 + $0x1eb8] sm:$0xff]  ;;  %v18096_v40 = vcombine.high %v1209_v35, %v1213_v36  ;;  %v18095_v49 = vcombine.low %v1209_v35, %v1213_v36 }
 0x593   :  { %v18098_v41 = vcombine.high %v1210_v6, %v1214_v46  ;;  %v18097_v0 = vcombine.low %v1210_v6, %v1214_v46 }
 0x594   :  { %11643 = vmatpush1.bf16.msra.mxu0 %v18047_v42  ;;  %12202 = vmatpush1.bf16.msra.mxu1 %v18049_v44  ;;  %v1217_v42 = vld [vmem:[#allocation6 + $0x1ed0] sm:$0xff] }
 0x595   :  { %11644 = vmatprep.subr.bf16.mxu0 %v18056_v45  ;;  %12203 = vmatprep.subr.bf16.mxu1 %v18058_v48  ;;  %v1221_v44 = vld [vmem:[#allocation6 + $0x1ef0] sm:$0xff]  ;;  %v1218_v45 = vld [vmem:[#allocation6 + $0x1ed8] sm:$0xff] }
 0x596   :  { %v1222_v48 = vld [vmem:[#allocation6 + $0x1ef8] sm:$0xff]  ;;  %v18104_v53 = vcombine.high %v1217_v42, %v1221_v44  ;;  %v18103_v56 = vcombine.low %v1217_v42, %v1221_v44 }
 0x597   :  { %v18106_v50 = vcombine.high %v1218_v45, %v1222_v48  ;;  %v18105_v57 = vcombine.low %v1218_v45, %v1222_v48 }
 0x598   :  { %11645 = vmatpush1.bf16.msra.mxu0 %v18055_v37  ;;  %12204 = vmatpush1.bf16.msra.mxu1 %v18057_v51  ;;  %v1225_v37 = vld [vmem:[#allocation6 + $0x1f10] sm:$0xff] }
 0x599   :  { %11646 = vmatprep.subr.bf16.mxu0 %v18064_v54  ;;  %12205 = vmatprep.subr.bf16.mxu1 %v18066_v55  ;;  %v1229_v51 = vld [vmem:[#allocation6 + $0x1f30] sm:$0xff]  ;;  %v1226_v54 = vld [vmem:[#allocation6 + $0x1f18] sm:$0xff] }
 0x59a   :  { %v1230_v55 = vld [vmem:[#allocation6 + $0x1f38] sm:$0xff]  ;;  %v18112_v62 = vcombine.high %v1225_v37, %v1229_v51  ;;  %v18111_v7 = vcombine.low %v1225_v37, %v1229_v51 }
 0x59b   :  { %v18114_v10 = vcombine.high %v1226_v54, %v1230_v55  ;;  %v18113_v8 = vcombine.low %v1226_v54, %v1230_v55 }
 0x59c   :  { %11647 = vmatpush1.bf16.msra.mxu0 %v18063_v2  ;;  %12206 = vmatpush1.bf16.msra.mxu1 %v18065_v4  ;;  %v1233_v2 = vld [vmem:[#allocation6 + $0x1f50] sm:$0xff] }
 0x59d   :  { %11648 = vmatprep.subr.bf16.mxu0 %v18072_v19  ;;  %12207 = vmatprep.subr.bf16.mxu1 %v18074_v26  ;;  %v1237_v4 = vld [vmem:[#allocation6 + $0x1f70] sm:$0xff]  ;;  %v1234_v19 = vld [vmem:[#allocation6 + $0x1f58] sm:$0xff] }
 0x59e   :  { %v1238_v26 = vld [vmem:[#allocation6 + $0x1f78] sm:$0xff]  ;;  %v18120_v11 = vcombine.high %v1233_v2, %v1237_v4  ;;  %v18119_v24 = vcombine.low %v1233_v2, %v1237_v4 }
 0x59f   :  { %v18122_v9 = vcombine.high %v1234_v19, %v1238_v26  ;;  %v18121_v33 = vcombine.low %v1234_v19, %v1238_v26 }
 0x5a0   :  { %11649 = vmatpush1.bf16.msra.mxu0 %v18071_v12  ;;  %12208 = vmatpush1.bf16.msra.mxu1 %v18073_v23  ;;  %v1241_v12 = vld [vmem:[#allocation6 + $0x1f90] sm:$0xff] }
 0x5a1   :  { %11650 = vmatprep.subr.bf16.mxu0 %v18080_v28  ;;  %12209 = vmatprep.subr.bf16.mxu1 %v18082_v59  ;;  %v1245_v23 = vld [vmem:[#allocation6 + $0x1fb0] sm:$0xff]  ;;  %v1242_v28 = vld [vmem:[#allocation6 + $0x1f98] sm:$0xff] }
 0x5a2   :  { %v1246_v59 = vld [vmem:[#allocation6 + $0x1fb8] sm:$0xff]  ;;  %v18128_v18 = vcombine.high %v1241_v12, %v1245_v23  ;;  %v18127_v35 = vcombine.low %v1241_v12, %v1245_v23 }
 0x5a3   :  { %v18130_v38 = vcombine.high %v1242_v28, %v1246_v59  ;;  %v18129_v36 = vcombine.low %v1242_v28, %v1246_v59  ;;  %v1289_v59 = vld [vmem:[#allocation6 + $0x2110] sm:$0xff] }
 0x5a4   :  { %11651 = vmatpush1.bf16.msra.mxu0 %v18079_v29  ;;  %12210 = vmatpush1.bf16.msra.mxu1 %v18081_v20  ;;  %v1249_v29 = vld [vmem:[#allocation6 + $0x1fd0] sm:$0xff] }
 0x5a5   :  { %11652 = vmatprep.subr.bf16.mxu0 %v18088_v15  ;;  %12211 = vmatprep.subr.bf16.mxu1 %v18090_v32  ;;  %v1253_v20 = vld [vmem:[#allocation6 + $0x1ff0] sm:$0xff]  ;;  %v1250_v15 = vld [vmem:[#allocation6 + $0x1fd8] sm:$0xff] }
 0x5a6   :  { %v1254_v32 = vld [vmem:[#allocation6 + $0x1ff8] sm:$0xff]  ;;  %v18136_v6 = vcombine.high %v1249_v29, %v1253_v20  ;;  %v18135_v42 = vcombine.low %v1249_v29, %v1253_v20 }
 0x5a7   :  { %v18138_v46 = vcombine.high %v1250_v15, %v1254_v32  ;;  %v18137_v44 = vcombine.low %v1250_v15, %v1254_v32  ;;  %v1297_v15 = vld [vmem:[#allocation6 + $0x2150] sm:$0xff] }
 0x5a8   :  { %11653 = vmatpush1.bf16.msra.mxu0 %v18087_v43  ;;  %12212 = vmatpush1.bf16.msra.mxu1 %v18089_v30  ;;  %v1257_v43 = vld [vmem:[#allocation6 + $0x2010] sm:$0xff] }
 0x5a9   :  { %11654 = vmatprep.subr.bf16.mxu0 %v18096_v40  ;;  %12213 = vmatprep.subr.bf16.mxu1 %v18098_v41  ;;  %v1261_v30 = vld [vmem:[#allocation6 + $0x2030] sm:$0xff]  ;;  %v1258_v40 = vld [vmem:[#allocation6 + $0x2018] sm:$0xff] }
 0x5aa   :  { %v1262_v41 = vld [vmem:[#allocation6 + $0x2038] sm:$0xff]  ;;  %v18144_v45 = vcombine.high %v1257_v43, %v1261_v30  ;;  %v18143_v37 = vcombine.low %v1257_v43, %v1261_v30  ;;  %v1301_v32 = vld [vmem:[#allocation6 + $0x2170] sm:$0xff] }
 0x5ab   :  { %v18146_v48 = vcombine.high %v1258_v40, %v1262_v41  ;;  %v18145_v51 = vcombine.low %v1258_v40, %v1262_v41  ;;  %v18184_v43 = vcombine.high %v1297_v15, %v1301_v32  ;;  %v1305_v40 = vld [vmem:[#allocation6 + $0x2190] sm:$0xff] }
 0x5ac   :  { %11655 = vmatpush1.bf16.msra.mxu0 %v18095_v49  ;;  %12214 = vmatpush1.bf16.msra.mxu1 %v18097_v0  ;;  %v1265_v49 = vld [vmem:[#allocation6 + $0x2050] sm:$0xff] }
 0x5ad   :  { %11656 = vmatprep.subr.bf16.mxu0 %v18104_v53  ;;  %12215 = vmatprep.subr.bf16.mxu1 %v18106_v50  ;;  %v1269_v0 = vld [vmem:[#allocation6 + $0x2070] sm:$0xff]  ;;  %v1266_v53 = vld [vmem:[#allocation6 + $0x2058] sm:$0xff] }
 0x5ae   :  { %v1270_v50 = vld [vmem:[#allocation6 + $0x2078] sm:$0xff]  ;;  %v18152_v54 = vcombine.high %v1265_v49, %v1269_v0  ;;  %v18151_v2 = vcombine.low %v1265_v49, %v1269_v0  ;;  %v1309_v41 = vld [vmem:[#allocation6 + $0x21b0] sm:$0xff] }
 0x5af   :  { %v18154_v55 = vcombine.high %v1266_v53, %v1270_v50  ;;  %v18153_v4 = vcombine.low %v1266_v53, %v1270_v50  ;;  %v18192_v49 = vcombine.high %v1305_v40, %v1309_v41  ;;  %v1313_v53 = vld [vmem:[#allocation6 + $0x21d0] sm:$0xff] }
 0x5b0   :  { %11657 = vmatpush1.bf16.msra.mxu0 %v18103_v56  ;;  %12216 = vmatpush1.bf16.msra.mxu1 %v18105_v57  ;;  %v1273_v56 = vld [vmem:[#allocation6 + $0x2090] sm:$0xff] }
 0x5b1   :  { %11658 = vmatprep.subr.bf16.mxu0 %v18112_v62  ;;  %12217 = vmatprep.subr.bf16.mxu1 %v18114_v10  ;;  %v1277_v57 = vld [vmem:[#allocation6 + $0x20b0] sm:$0xff]  ;;  %v1274_v62 = vld [vmem:[#allocation6 + $0x2098] sm:$0xff] }
 0x5b2   :  { %v1278_v10 = vld [vmem:[#allocation6 + $0x20b8] sm:$0xff]  ;;  %v18160_v19 = vcombine.high %v1273_v56, %v1277_v57  ;;  %v18159_v12 = vcombine.low %v1273_v56, %v1277_v57  ;;  %v1317_v50 = vld [vmem:[#allocation6 + $0x21f0] sm:$0xff] }
 0x5b3   :  { %v18162_v26 = vcombine.high %v1274_v62, %v1278_v10  ;;  %v18200_v56 = vcombine.high %v1313_v53, %v1317_v50 }
 0x5b4   :  { %11659 = vmatpush1.bf16.msra.mxu0 %v18111_v7  ;;  %12218 = vmatpush1.bf16.msra.mxu1 %v18113_v8  ;;  %v1281_v7 = vld [vmem:[#allocation6 + $0x20d0] sm:$0xff] }
 0x5b5   :  { %11660 = vmatprep.subr.bf16.mxu0 %v18120_v11  ;;  %12219 = vmatprep.subr.bf16.mxu1 %v18122_v9  ;;  %v1285_v8 = vld [vmem:[#allocation6 + $0x20f0] sm:$0xff]  ;;  %v1282_v11 = vld [vmem:[#allocation6 + $0x20d8] sm:$0xff] }
 0x5b6   :  { %v1286_v9 = vld [vmem:[#allocation6 + $0x20f8] sm:$0xff]  ;;  %v18168_v23 = vcombine.high %v1281_v7, %v1285_v8 }
 0x5b7   :  { %v18170_v28 = vcombine.high %v1282_v11, %v1286_v9  ;;  %v18169_v29 = vcombine.low %v1282_v11, %v1286_v9  ;;  %v1329_v11 = vld [vmem:[#allocation6 + $0x2250] sm:$0xff] }
 0x5b8   :  { %11661 = vmatpush1.bf16.msra.mxu0 %v18119_v24  ;;  %12220 = vmatpush1.bf16.msra.mxu1 %v18121_v33  ;;  %v1293_v24 = vld [vmem:[#allocation6 + $0x2130] sm:$0xff]  ;;  %v1290_v33 = vld [vmem:[#allocation6 + $0x2118] sm:$0xff] }
 0x5b9   :  { %11662 = vmatprep.subr.bf16.mxu0 %v18128_v18  ;;  %12221 = vmatprep.subr.bf16.mxu1 %v18130_v38  ;;  %v1294_v18 = vld [vmem:[#allocation6 + $0x2138] sm:$0xff]  ;;  %v18167_v38 = vcombine.low %v1281_v7, %v1285_v8  ;;  %v18176_v20 = vcombine.high %v1289_v59, %v1293_v24  ;;  %v1333_v9 = vld [vmem:[#allocation6 + $0x2270] sm:$0xff] }
 0x5bc   :  { %11663 = vmatpush1.bf16.msra.mxu0 %v18127_v35  ;;  %12222 = vmatpush1.bf16.msra.mxu1 %v18129_v36  ;;  %v1298_v35 = vld [vmem:[#allocation6 + $0x2158] sm:$0xff] }
 0x5bd   :  { %11664 = vmatprep.subr.bf16.mxu0 %v18136_v6  ;;  %12223 = vmatprep.subr.bf16.mxu1 %v18138_v46  ;;  %v1302_v36 = vld [vmem:[#allocation6 + $0x2178] sm:$0xff]  ;;  %v18175_v6 = vcombine.low %v1289_v59, %v1293_v24  ;;  %v18177_v46 = vcombine.low %v1290_v33, %v1294_v18  ;;  %v18216_v59 = vcombine.high %v1329_v11, %v1333_v9 }
 0x5be   :  { %v18186_v30 = vcombine.high %v1298_v35, %v1302_v36 }
 0x5c0   :  { %11665 = vmatpush1.bf16.msra.mxu0 %v18135_v42  ;;  %12224 = vmatpush1.bf16.msra.mxu1 %v18137_v44  ;;  %v1306_v42 = vld [vmem:[#allocation6 + $0x2198] sm:$0xff] }
 0x5c1   :  { %11677 = vmatprep.subr.bf16.mxu0 %v18144_v45  ;;  %12236 = vmatprep.subr.bf16.mxu1 %v18146_v48  ;;  %v1310_v44 = vld [vmem:[#allocation6 + $0x21b8] sm:$0xff]  ;;  %v18183_v45 = vcombine.low %v1297_v15, %v1301_v32  ;;  %v18185_v48 = vcombine.low %v1298_v35, %v1302_v36  ;;  %v1345_v35 = vld [vmem:[#allocation6 + $0x22d0] sm:$0xff] }
 0x5c2   :  { %v18194_v0 = vcombine.high %v1306_v42, %v1310_v44  ;;  %v1349_v36 = vld [vmem:[#allocation6 + $0x22f0] sm:$0xff] }
 0x5c3   :  { %11667 = vmatmul.mubr.bf16.vlgmr.msra.gmra.mrb[4].mxu0 %v20167_v14  ;;  %12226 = vmatmul.mubr.bf16.vlgmr.msra.gmra.mrb[4].mxu1 %v20167_v14  ;;  %v18161_v14 = vcombine.low %v1274_v62, %v1278_v10  ;;  %v1321_v62 = vld [vmem:[#allocation6 + $0x2210] sm:$0xff] }
 0x5c4   :  { %11678 = vmatpush1.bf16.msra.mxu0 %v18143_v37  ;;  %12237 = vmatpush1.bf16.msra.mxu1 %v18145_v51  ;;  %v1314_v37 = vld [vmem:[#allocation6 + $0x21d8] sm:$0xff]  ;;  %v1325_v10 = vld [vmem:[#allocation6 + $0x2230] sm:$0xff] }
 0x5c5   :  { %11679 = vmatprep.subr.bf16.mxu0 %v18152_v54  ;;  %12238 = vmatprep.subr.bf16.mxu1 %v18154_v55  ;;  %v1318_v51 = vld [vmem:[#allocation6 + $0x21f8] sm:$0xff]  ;;  %v18191_v54 = vcombine.low %v1305_v40, %v1309_v41  ;;  %v18193_v55 = vcombine.low %v1306_v42, %v1310_v44  ;;  %v18208_v7 = vcombine.high %v1321_v62, %v1325_v10  ;;  %v1353_v42 = vld [vmem:[#allocation6 + $0x2310] sm:$0xff] }
 0x5c6   :  { %11709 = vmatprep.mubr.bf16.mxu0 %v20169_v27  ;;  %12268 = vmatprep.mubr.bf16.mxu1 %v20169_v27  ;;  %v18178_v27 = vcombine.high %v1290_v33, %v1294_v18  ;;  %v18202_v57 = vcombine.high %v1314_v37, %v1318_v51  ;;  %v1337_v33 = vld [vmem:[#allocation6 + $0x2290] sm:$0xff]  ;;  %v18232_v40 = vcombine.high %v1345_v35, %v1349_v36 }
 0x5c7   :  { %v1341_v18 = vld [vmem:[#allocation6 + $0x22b0] sm:$0xff] }
 0x5c8   :  { %11680 = vmatpush1.bf16.msra.mxu0 %v18151_v2  ;;  %12239 = vmatpush1.bf16.msra.mxu1 %v18153_v4  ;;  %v1322_v2 = vld [vmem:[#allocation6 + $0x2218] sm:$0xff]  ;;  %v18224_v15 = vcombine.high %v1337_v33, %v1341_v18  ;;  %v1357_v44 = vld [vmem:[#allocation6 + $0x2330] sm:$0xff] }
 0x5c9   :  { %11681 = vmatprep.subr.bf16.mxu0 %v18160_v19  ;;  %12240 = vmatprep.subr.bf16.mxu1 %v18162_v26  ;;  %v1326_v4 = vld [vmem:[#allocation6 + $0x2238] sm:$0xff]  ;;  %v18199_v19 = vcombine.low %v1313_v53, %v1317_v50  ;;  %v18201_v26 = vcombine.low %v1314_v37, %v1318_v51  ;;  %v18240_v53 = vcombine.high %v1353_v42, %v1357_v44  ;;  %v1361_v37 = vld [vmem:[#allocation6 + $0x2350] sm:$0xff] }
 0x5ca   :  { %v18210_v8 = vcombine.high %v1322_v2, %v1326_v4  ;;  %v1365_v51 = vld [vmem:[#allocation6 + $0x2370] sm:$0xff] }
 0x5cc   :  { %11682 = vmatpush1.bf16.msra.mxu0 %v18159_v12  ;;  %12241 = vmatpush1.bf16.msra.mxu1 %v18161_v14  ;;  %v1330_v12 = vld [vmem:[#allocation6 + $0x2258] sm:$0xff] }
 0x5cd   :  { %11683 = vmatprep.subr.bf16.mxu0 %v18168_v23  ;;  %12242 = vmatprep.subr.bf16.mxu1 %v18170_v28  ;;  %v1334_v14 = vld [vmem:[#allocation6 + $0x2278] sm:$0xff]  ;;  %v18207_v23 = vcombine.low %v1321_v62, %v1325_v10  ;;  %v18209_v28 = vcombine.low %v1322_v2, %v1326_v4  ;;  %v18248_v62 = vcombine.high %v1361_v37, %v1365_v51  ;;  %v1369_v2 = vld [vmem:[#allocation6 + $0x2390] sm:$0xff] }
 0x5ce   :  { %v18218_v24 = vcombine.high %v1330_v12, %v1334_v14  ;;  %v1373_v4 = vld [vmem:[#allocation6 + $0x23b0] sm:$0xff] }
 0x5d0   :  { %11684 = vmatpush1.bf16.msra.mxu0 %v18167_v38  ;;  %12243 = vmatpush1.bf16.msra.mxu1 %v18169_v29  ;;  %v1338_v38 = vld [vmem:[#allocation6 + $0x2298] sm:$0xff] }
 0x5d1   :  { %11685 = vmatprep.subr.bf16.mxu0 %v18176_v20  ;;  %12244 = vmatprep.subr.bf16.mxu1 %v18178_v27  ;;  %v1342_v29 = vld [vmem:[#allocation6 + $0x22b8] sm:$0xff]  ;;  %v18215_v20 = vcombine.low %v1329_v11, %v1333_v9  ;;  %v18217_v27 = vcombine.low %v1330_v12, %v1334_v14  ;;  %v18256_v11 = vcombine.high %v1369_v2, %v1373_v4  ;;  %v1377_v12 = vld [vmem:[#allocation6 + $0x23d0] sm:$0xff] }
 0x5d2   :  { %v18226_v32 = vcombine.high %v1338_v38, %v1342_v29  ;;  %v1381_v14 = vld [vmem:[#allocation6 + $0x23f0] sm:$0xff] }
 0x5d4   :  { %11686 = vmatpush1.bf16.msra.mxu0 %v18175_v6  ;;  %12245 = vmatpush1.bf16.msra.mxu1 %v18177_v46  ;;  %v1346_v6 = vld [vmem:[#allocation6 + $0x22d8] sm:$0xff] }
 0x5d5   :  { %11687 = vmatprep.subr.bf16.mxu0 %v18184_v43  ;;  %12246 = vmatprep.subr.bf16.mxu1 %v18186_v30  ;;  %v1350_v46 = vld [vmem:[#allocation6 + $0x22f8] sm:$0xff]  ;;  %v18223_v43 = vcombine.low %v1337_v33, %v1341_v18  ;;  %v18225_v30 = vcombine.low %v1338_v38, %v1342_v29  ;;  %v18264_v33 = vcombine.high %v1377_v12, %v1381_v14  ;;  %v1385_v38 = vld [vmem:[#allocation6 + $0x2410] sm:$0xff] }
 0x5d6   :  { %v18234_v41 = vcombine.high %v1346_v6, %v1350_v46  ;;  %v1389_v29 = vld [vmem:[#allocation6 + $0x2430] sm:$0xff] }
 0x5d8   :  { %11688 = vmatpush1.bf16.msra.mxu0 %v18183_v45  ;;  %12247 = vmatpush1.bf16.msra.mxu1 %v18185_v48  ;;  %v1354_v45 = vld [vmem:[#allocation6 + $0x2318] sm:$0xff] }
 0x5d9   :  { %11689 = vmatprep.subr.bf16.mxu0 %v18192_v49  ;;  %12248 = vmatprep.subr.bf16.mxu1 %v18194_v0  ;;  %v1358_v48 = vld [vmem:[#allocation6 + $0x2338] sm:$0xff]  ;;  %v18231_v49 = vcombine.low %v1345_v35, %v1349_v36  ;;  %v18233_v0 = vcombine.low %v1346_v6, %v1350_v46  ;;  %v18272_v35 = vcombine.high %v1385_v38, %v1389_v29  ;;  %v1393_v6 = vld [vmem:[#allocation6 + $0x2450] sm:$0xff] }
 0x5da   :  { %v18242_v50 = vcombine.high %v1354_v45, %v1358_v48  ;;  %v1397_v46 = vld [vmem:[#allocation6 + $0x2470] sm:$0xff] }
 0x5dc   :  { %11690 = vmatpush1.bf16.msra.mxu0 %v18191_v54  ;;  %12249 = vmatpush1.bf16.msra.mxu1 %v18193_v55  ;;  %v1362_v54 = vld [vmem:[#allocation6 + $0x2358] sm:$0xff] }
 0x5dd   :  { %11691 = vmatprep.subr.bf16.mxu0 %v18200_v56  ;;  %12250 = vmatprep.subr.bf16.mxu1 %v18202_v57  ;;  %v1366_v55 = vld [vmem:[#allocation6 + $0x2378] sm:$0xff]  ;;  %v18239_v56 = vcombine.low %v1353_v42, %v1357_v44  ;;  %v18241_v57 = vcombine.low %v1354_v45, %v1358_v48  ;;  %v18280_v42 = vcombine.high %v1393_v6, %v1397_v46  ;;  %v1401_v45 = vld [vmem:[#allocation6 + $0x2490] sm:$0xff] }
 0x5de   :  { %v18250_v10 = vcombine.high %v1362_v54, %v1366_v55  ;;  %v1405_v48 = vld [vmem:[#allocation6 + $0x24b0] sm:$0xff] }
 0x5e0   :  { %11692 = vmatpush1.bf16.msra.mxu0 %v18199_v19  ;;  %12251 = vmatpush1.bf16.msra.mxu1 %v18201_v26  ;;  %v1370_v19 = vld [vmem:[#allocation6 + $0x2398] sm:$0xff] }
 0x5e1   :  { %11693 = vmatprep.subr.bf16.mxu0 %v18208_v7  ;;  %12252 = vmatprep.subr.bf16.mxu1 %v18210_v8  ;;  %v1374_v26 = vld [vmem:[#allocation6 + $0x23b8] sm:$0xff]  ;;  %v18247_v7 = vcombine.low %v1361_v37, %v1365_v51  ;;  %v18249_v8 = vcombine.low %v1362_v54, %v1366_v55  ;;  %v18288_v37 = vcombine.high %v1401_v45, %v1405_v48  ;;  %v1409_v54 = vld [vmem:[#allocation6 + $0x24d0] sm:$0xff] }
 0x5e2   :  { %v18258_v9 = vcombine.high %v1370_v19, %v1374_v26  ;;  %v1413_v55 = vld [vmem:[#allocation6 + $0x24f0] sm:$0xff] }
 0x5e4   :  { %11694 = vmatpush1.bf16.msra.mxu0 %v18207_v23  ;;  %12253 = vmatpush1.bf16.msra.mxu1 %v18209_v28  ;;  %v1378_v23 = vld [vmem:[#allocation6 + $0x23d8] sm:$0xff] }
 0x5e5   :  { %11695 = vmatprep.subr.bf16.mxu0 %v18216_v59  ;;  %12254 = vmatprep.subr.bf16.mxu1 %v18218_v24  ;;  %v1382_v28 = vld [vmem:[#allocation6 + $0x23f8] sm:$0xff]  ;;  %v18255_v59 = vcombine.low %v1369_v2, %v1373_v4  ;;  %v18257_v24 = vcombine.low %v1370_v19, %v1374_v26  ;;  %v1417_v4 = vld [vmem:[#allocation6 + $0x2510] sm:$0xff] }
 0x5e6   :  { %v18266_v18 = vcombine.high %v1378_v23, %v1382_v28  ;;  %v1421_v19 = vld [vmem:[#allocation6 + $0x2530] sm:$0xff]  ;;  %v1418_v26 = vld [vmem:[#allocation6 + $0x2518] sm:$0xff] }
 0x5e8   :  { %11696 = vmatpush1.bf16.msra.mxu0 %v18215_v20  ;;  %12255 = vmatpush1.bf16.msra.mxu1 %v18217_v27  ;;  %v1386_v20 = vld [vmem:[#allocation6 + $0x2418] sm:$0xff] }
 0x5e9   :  { %11697 = vmatprep.subr.bf16.mxu0 %v18224_v15  ;;  %12256 = vmatprep.subr.bf16.mxu1 %v18226_v32  ;;  %v1390_v27 = vld [vmem:[#allocation6 + $0x2438] sm:$0xff]  ;;  %v18263_v15 = vcombine.low %v1377_v12, %v1381_v14  ;;  %v18265_v32 = vcombine.low %v1378_v23, %v1382_v28  ;;  %v1425_v12 = vld [vmem:[#allocation6 + $0x2550] sm:$0xff] }
 0x5ea   :  { %v18274_v36 = vcombine.high %v1386_v20, %v1390_v27  ;;  %v1429_v14 = vld [vmem:[#allocation6 + $0x2570] sm:$0xff]  ;;  %v1426_v23 = vld [vmem:[#allocation6 + $0x2558] sm:$0xff] }
 0x5eb   :  { %v1430_v28 = vld [vmem:[#allocation6 + $0x2578] sm:$0xff] }
 0x5ec   :  { %11698 = vmatpush1.bf16.msra.mxu0 %v18223_v43  ;;  %12257 = vmatpush1.bf16.msra.mxu1 %v18225_v30  ;;  %v1394_v43 = vld [vmem:[#allocation6 + $0x2458] sm:$0xff] }
 0x5ed   :  { %11699 = vmatprep.subr.bf16.mxu0 %v18232_v40  ;;  %12258 = vmatprep.subr.bf16.mxu1 %v18234_v41  ;;  %v1398_v30 = vld [vmem:[#allocation6 + $0x2478] sm:$0xff]  ;;  %v18271_v40 = vcombine.low %v1385_v38, %v1389_v29  ;;  %v18273_v41 = vcombine.low %v1386_v20, %v1390_v27  ;;  %v1433_v38 = vld [vmem:[#allocation6 + $0x2590] sm:$0xff] }
 0x5ee   :  { %v18282_v44 = vcombine.high %v1394_v43, %v1398_v30  ;;  %v1437_v29 = vld [vmem:[#allocation6 + $0x25b0] sm:$0xff]  ;;  %v1434_v20 = vld [vmem:[#allocation6 + $0x2598] sm:$0xff] }
 0x5ef   :  { %v1438_v27 = vld [vmem:[#allocation6 + $0x25b8] sm:$0xff] }
 0x5f0   :  { %11700 = vmatpush1.bf16.msra.mxu0 %v18231_v49  ;;  %12259 = vmatpush1.bf16.msra.mxu1 %v18233_v0  ;;  %v1402_v49 = vld [vmem:[#allocation6 + $0x2498] sm:$0xff] }
 0x5f1   :  { %11701 = vmatprep.subr.bf16.mxu0 %v18240_v53  ;;  %12260 = vmatprep.subr.bf16.mxu1 %v18242_v50  ;;  %v1406_v0 = vld [vmem:[#allocation6 + $0x24b8] sm:$0xff]  ;;  %v18279_v53 = vcombine.low %v1393_v6, %v1397_v46  ;;  %v18281_v50 = vcombine.low %v1394_v43, %v1398_v30  ;;  %v1441_v6 = vld [vmem:[#allocation6 + $0x25d0] sm:$0xff] }
 0x5f2   :  { %v18290_v51 = vcombine.high %v1402_v49, %v1406_v0  ;;  %v1445_v46 = vld [vmem:[#allocation6 + $0x25f0] sm:$0xff]  ;;  %v1442_v43 = vld [vmem:[#allocation6 + $0x25d8] sm:$0xff] }
 0x5f3   :  { %v1446_v30 = vld [vmem:[#allocation6 + $0x25f8] sm:$0xff] }
 0x5f4   :  { %11702 = vmatpush1.bf16.msra.mxu0 %v18239_v56  ;;  %12261 = vmatpush1.bf16.msra.mxu1 %v18241_v57  ;;  %v1410_v56 = vld [vmem:[#allocation6 + $0x24d8] sm:$0xff] }
 0x5f5   :  { %11703 = vmatprep.subr.bf16.mxu0 %v18248_v62  ;;  %12262 = vmatprep.subr.bf16.mxu1 %v18250_v10  ;;  %v1414_v57 = vld [vmem:[#allocation6 + $0x24f8] sm:$0xff]  ;;  %v18287_v62 = vcombine.low %v1401_v45, %v1405_v48  ;;  %v18296_v10 = vcombine.high %v1409_v54, %v1413_v55  ;;  %v1449_v45 = vld [vmem:[#allocation6 + $0x2610] sm:$0xff] }
 0x5f6   :  { %v18298_v2 = vcombine.high %v1410_v56, %v1414_v57  ;;  %v1453_v48 = vld [vmem:[#allocation6 + $0x2630] sm:$0xff] }
 0x5f8   :  { %11704 = vmatpush1.bf16.msra.mxu0 %v18247_v7  ;;  %12263 = vmatpush1.bf16.msra.mxu1 %v18249_v8  ;;  %v1422_v7 = vld [vmem:[#allocation6 + $0x2538] sm:$0xff]  ;;  %v18295_v8 = vcombine.low %v1409_v54, %v1413_v55  ;;  %v1457_v54 = vld [vmem:[#allocation6 + $0x2650] sm:$0xff] }
 0x5f9   :  { %11705 = vmatprep.subr.bf16.mxu0 %v18256_v11  ;;  %12264 = vmatprep.subr.bf16.mxu1 %v18258_v9  ;;  %v18297_v11 = vcombine.low %v1410_v56, %v1414_v57  ;;  %v18304_v9 = vcombine.high %v1417_v4, %v1421_v19  ;;  %v1461_v55 = vld [vmem:[#allocation6 + $0x2670] sm:$0xff]  ;;  %v1458_v56 = vld [vmem:[#allocation6 + $0x2658] sm:$0xff] }
 0x5fa   :  { %v1462_v57 = vld [vmem:[#allocation6 + $0x2678] sm:$0xff] }
 0x5fc   :  { %11706 = vmatpush1.bf16.msra.mxu0 %v18255_v59  ;;  %12265 = vmatpush1.bf16.msra.mxu1 %v18257_v24  ;;  %v18303_v59 = vcombine.low %v1417_v4, %v1421_v19  ;;  %v18305_v24 = vcombine.low %v1418_v26, %v1422_v7  ;;  %v1465_v4 = vld [vmem:[#allocation6 + $0x2690] sm:$0xff] }
 0x5fd   :  { %11707 = vmatprep.subr.bf16.mxu0 %v18264_v33  ;;  %12266 = vmatprep.subr.bf16.mxu1 %v18266_v18  ;;  %v18312_v33 = vcombine.high %v1425_v12, %v1429_v14  ;;  %v18314_v18 = vcombine.high %v1426_v23, %v1430_v28  ;;  %v1469_v19 = vld [vmem:[#allocation6 + $0x26b0] sm:$0xff] }
 0x600   :  { %11708 = vmatpush1.bf16.msra.mxu0 %v18263_v15  ;;  %12267 = vmatpush1.bf16.msra.mxu1 %v18265_v32  ;;  %v18311_v15 = vcombine.low %v1425_v12, %v1429_v14  ;;  %v18313_v32 = vcombine.low %v1426_v23, %v1430_v28  ;;  %v1473_v12 = vld [vmem:[#allocation6 + $0x26d0] sm:$0xff]  ;;  %v1474_v23 = vld [vmem:[#allocation6 + $0x26d8] sm:$0xff] }
 0x601   :  { %11720 = vmatprep.subr.bf16.mxu0 %v18272_v35  ;;  %12279 = vmatprep.subr.bf16.mxu1 %v18274_v36  ;;  %v18320_v35 = vcombine.high %v1433_v38, %v1437_v29  ;;  %v18322_v36 = vcombine.high %v1434_v20, %v1438_v27  ;;  %v1477_v14 = vld [vmem:[#allocation6 + $0x26f0] sm:$0xff]  ;;  %v1478_v28 = vld [vmem:[#allocation6 + $0x26f8] sm:$0xff] }
 0x603   :  { %11710 = vmatmul.mubr.bf16.vlgmr.msra.gmra.mrb[4].mxu0 %v20175_v3  ;;  %12269 = vmatmul.mubr.bf16.vlgmr.msra.gmra.mrb[4].mxu1 %v20175_v3  ;;  %v18289_v3 = vcombine.low %v1402_v49, %v1406_v0  ;;  %v1450_v49 = vld [vmem:[#allocation6 + $0x2618] sm:$0xff] }
 0x604   :  { %11721 = vmatpush1.bf16.msra.mxu0 %v18271_v40  ;;  %12280 = vmatpush1.bf16.msra.mxu1 %v18273_v41  ;;  %v18319_v40 = vcombine.low %v1433_v38, %v1437_v29  ;;  %v18321_v41 = vcombine.low %v1434_v20, %v1438_v27  ;;  %v1454_v0 = vld [vmem:[#allocation6 + $0x2638] sm:$0xff]  ;;  %v1481_v38 = vld [vmem:[#allocation6 + $0x2710] sm:$0xff] }
 0x605   :  { %11722 = vmatprep.subr.bf16.mxu0 %v18280_v42  ;;  %12281 = vmatprep.subr.bf16.mxu1 %v18282_v44  ;;  %v18328_v42 = vcombine.high %v1441_v6, %v1445_v46  ;;  %v18330_v44 = vcombine.high %v1442_v43, %v1446_v30  ;;  %v1485_v29 = vld [vmem:[#allocation6 + $0x2730] sm:$0xff]  ;;  %v1482_v20 = vld [vmem:[#allocation6 + $0x2718] sm:$0xff] }
 0x606   :  { %11752 = vmatprep.mubr.bf16.mxu0 %v20177_v17  ;;  %12311 = vmatprep.mubr.bf16.mxu1 %v20177_v17  ;;  %v18306_v17 = vcombine.high %v1418_v26, %v1422_v7  ;;  %v1466_v26 = vld [vmem:[#allocation6 + $0x2698] sm:$0xff] }
 0x607   :  { %v1470_v7 = vld [vmem:[#allocation6 + $0x26b8] sm:$0xff] }
 0x608   :  { %11723 = vmatpush1.bf16.msra.mxu0 %v18279_v53  ;;  %12282 = vmatpush1.bf16.msra.mxu1 %v18281_v50  ;;  %v18327_v53 = vcombine.low %v1441_v6, %v1445_v46  ;;  %v18329_v50 = vcombine.low %v1442_v43, %v1446_v30  ;;  %v1486_v27 = vld [vmem:[#allocation6 + $0x2738] sm:$0xff]  ;;  %v1489_v6 = vld [vmem:[#allocation6 + $0x2750] sm:$0xff] }
 0x609   :  { %11724 = vmatprep.subr.bf16.mxu0 %v18288_v37  ;;  %12283 = vmatprep.subr.bf16.mxu1 %v18290_v51  ;;  %v18336_v37 = vcombine.high %v1449_v45, %v1453_v48  ;;  %v18338_v51 = vcombine.high %v1450_v49, %v1454_v0  ;;  %v1493_v46 = vld [vmem:[#allocation6 + $0x2770] sm:$0xff]  ;;  %v1490_v43 = vld [vmem:[#allocation6 + $0x2758] sm:$0xff] }
 0x60a   :  { %v1494_v30 = vld [vmem:[#allocation6 + $0x2778] sm:$0xff] }
 0x60c   :  { %11725 = vmatpush1.bf16.msra.mxu0 %v18287_v62  ;;  %12284 = vmatpush1.bf16.msra.mxu1 %v18289_v3  ;;  %v18335_v62 = vcombine.low %v1449_v45, %v1453_v48  ;;  %v18337_v3 = vcombine.low %v1450_v49, %v1454_v0  ;;  %v1497_v45 = vld [vmem:[#allocation6 + $0x2790] sm:$0xff]  ;;  %v1498_v49 = vld [vmem:[#allocation6 + $0x2798] sm:$0xff] }
 0x60d   :  { %11726 = vmatprep.subr.bf16.mxu0 %v18296_v10  ;;  %12285 = vmatprep.subr.bf16.mxu1 %v18298_v2  ;;  %v18344_v10 = vcombine.high %v1457_v54, %v1461_v55  ;;  %v18346_v2 = vcombine.high %v1458_v56, %v1462_v57  ;;  %v1501_v48 = vld [vmem:[#allocation6 + $0x27b0] sm:$0xff]  ;;  %v1502_v0 = vld [vmem:[#allocation6 + $0x27b8] sm:$0xff] }
 0x610   :  { %11727 = vmatpush1.bf16.msra.mxu0 %v18295_v8  ;;  %12286 = vmatpush1.bf16.msra.mxu1 %v18297_v11  ;;  %v18343_v8 = vcombine.low %v1457_v54, %v1461_v55  ;;  %v18345_v11 = vcombine.low %v1458_v56, %v1462_v57  ;;  %v1505_v54 = vld [vmem:[#allocation6 + $0x27d0] sm:$0xff]  ;;  %v1506_v56 = vld [vmem:[#allocation6 + $0x27d8] sm:$0xff] }
 0x611   :  { %11728 = vmatprep.subr.bf16.mxu0 %v18304_v9  ;;  %12287 = vmatprep.subr.bf16.mxu1 %v18306_v17  ;;  %v18352_v9 = vcombine.high %v1465_v4, %v1469_v19  ;;  %v18354_v17 = vcombine.high %v1466_v26, %v1470_v7  ;;  %v1509_v55 = vld [vmem:[#allocation6 + $0x27f0] sm:$0xff]  ;;  %v1510_v57 = vld [vmem:[#allocation6 + $0x27f8] sm:$0xff] }
 0x614   :  { %11729 = vmatpush1.bf16.msra.mxu0 %v18303_v59  ;;  %12288 = vmatpush1.bf16.msra.mxu1 %v18305_v24  ;;  %v18351_v59 = vcombine.low %v1465_v4, %v1469_v19  ;;  %v18353_v24 = vcombine.low %v1466_v26, %v1470_v7  ;;  %v1513_v4 = vld [vmem:[#allocation6 + $0x2810] sm:$0xff]  ;;  %v1514_v26 = vld [vmem:[#allocation6 + $0x2818] sm:$0xff] }
 0x615   :  { %11730 = vmatprep.subr.bf16.mxu0 %v18312_v33  ;;  %12289 = vmatprep.subr.bf16.mxu1 %v18314_v18  ;;  %v18360_v33 = vcombine.high %v1473_v12, %v1477_v14  ;;  %v18362_v18 = vcombine.high %v1474_v23, %v1478_v28  ;;  %v1517_v19 = vld [vmem:[#allocation6 + $0x2830] sm:$0xff]  ;;  %v1518_v7 = vld [vmem:[#allocation6 + $0x2838] sm:$0xff] }
 0x618   :  { %11731 = vmatpush1.bf16.msra.mxu0 %v18311_v15  ;;  %12290 = vmatpush1.bf16.msra.mxu1 %v18313_v32  ;;  %v18359_v15 = vcombine.low %v1473_v12, %v1477_v14  ;;  %v18361_v32 = vcombine.low %v1474_v23, %v1478_v28  ;;  %v1521_v12 = vld [vmem:[#allocation6 + $0x2850] sm:$0xff]  ;;  %v1522_v23 = vld [vmem:[#allocation6 + $0x2858] sm:$0xff] }
 0x619   :  { %11732 = vmatprep.subr.bf16.mxu0 %v18320_v35  ;;  %12291 = vmatprep.subr.bf16.mxu1 %v18322_v36  ;;  %v18368_v35 = vcombine.high %v1481_v38, %v1485_v29  ;;  %v18370_v36 = vcombine.high %v1482_v20, %v1486_v27  ;;  %v1525_v14 = vld [vmem:[#allocation6 + $0x2870] sm:$0xff]  ;;  %v1526_v28 = vld [vmem:[#allocation6 + $0x2878] sm:$0xff] }
 0x61c   :  { %11733 = vmatpush1.bf16.msra.mxu0 %v18319_v40  ;;  %12292 = vmatpush1.bf16.msra.mxu1 %v18321_v41  ;;  %v18367_v40 = vcombine.low %v1481_v38, %v1485_v29  ;;  %v18369_v41 = vcombine.low %v1482_v20, %v1486_v27  ;;  %v1529_v38 = vld [vmem:[#allocation6 + $0x2890] sm:$0xff]  ;;  %v1530_v20 = vld [vmem:[#allocation6 + $0x2898] sm:$0xff] }
 0x61d   :  { %11734 = vmatprep.subr.bf16.mxu0 %v18328_v42  ;;  %12293 = vmatprep.subr.bf16.mxu1 %v18330_v44  ;;  %v18376_v42 = vcombine.high %v1489_v6, %v1493_v46  ;;  %v18378_v44 = vcombine.high %v1490_v43, %v1494_v30  ;;  %v1533_v29 = vld [vmem:[#allocation6 + $0x28b0] sm:$0xff]  ;;  %v1534_v27 = vld [vmem:[#allocation6 + $0x28b8] sm:$0xff] }
 0x620   :  { %11735 = vmatpush1.bf16.msra.mxu0 %v18327_v53  ;;  %12294 = vmatpush1.bf16.msra.mxu1 %v18329_v50  ;;  %v18375_v53 = vcombine.low %v1489_v6, %v1493_v46  ;;  %v18377_v50 = vcombine.low %v1490_v43, %v1494_v30  ;;  %v1537_v6 = vld [vmem:[#allocation6 + $0x28d0] sm:$0xff]  ;;  %v1538_v43 = vld [vmem:[#allocation6 + $0x28d8] sm:$0xff] }
 0x621   :  { %11736 = vmatprep.subr.bf16.mxu0 %v18336_v37  ;;  %12295 = vmatprep.subr.bf16.mxu1 %v18338_v51  ;;  %v18384_v37 = vcombine.high %v1497_v45, %v1501_v48  ;;  %v18386_v51 = vcombine.high %v1498_v49, %v1502_v0  ;;  %v1541_v46 = vld [vmem:[#allocation6 + $0x28f0] sm:$0xff]  ;;  %v1542_v30 = vld [vmem:[#allocation6 + $0x28f8] sm:$0xff] }
 0x624   :  { %11737 = vmatpush1.bf16.msra.mxu0 %v18335_v62  ;;  %12296 = vmatpush1.bf16.msra.mxu1 %v18337_v3  ;;  %v18383_v62 = vcombine.low %v1497_v45, %v1501_v48  ;;  %v18385_v3 = vcombine.low %v1498_v49, %v1502_v0  ;;  %v1549_v45 = vld [vmem:[#allocation6 + $0x2930] sm:$0xff]  ;;  %v1546_v48 = vld [vmem:[#allocation6 + $0x2918] sm:$0xff]  ;;  %v18423_v0 = vcombine.low %v1537_v6, %v1541_v46 }
 0x625   :  { %11738 = vmatprep.subr.bf16.mxu0 %v18344_v10  ;;  %12297 = vmatprep.subr.bf16.mxu1 %v18346_v2  ;;  %v18392_v10 = vcombine.high %v1505_v54, %v1509_v55  ;;  %v18394_v2 = vcombine.high %v1506_v56, %v1510_v57  ;;  %v1550_v49 = vld [vmem:[#allocation6 + $0x2938] sm:$0xff] }
 0x628   :  { %11739 = vmatpush1.bf16.msra.mxu0 %v18343_v8  ;;  %12298 = vmatpush1.bf16.msra.mxu1 %v18345_v11  ;;  %v18391_v8 = vcombine.low %v1505_v54, %v1509_v55  ;;  %v18393_v11 = vcombine.low %v1506_v56, %v1510_v57  ;;  %v1554_v54 = vld [vmem:[#allocation6 + $0x2958] sm:$0xff]  ;;  %v18433_v57 = vcombine.low %v1546_v48, %v1550_v49 }
 0x629   :  { %11740 = vmatprep.subr.bf16.mxu0 %v18352_v9  ;;  %12299 = vmatprep.subr.bf16.mxu1 %v18354_v17  ;;  %v18400_v9 = vcombine.high %v1513_v4, %v1517_v19  ;;  %v18402_v17 = vcombine.high %v1514_v26, %v1518_v7  ;;  %v1558_v55 = vld [vmem:[#allocation6 + $0x2978] sm:$0xff] }
 0x62c   :  { %11741 = vmatpush1.bf16.msra.mxu0 %v18351_v59  ;;  %12300 = vmatpush1.bf16.msra.mxu1 %v18353_v24  ;;  %v18399_v59 = vcombine.low %v1513_v4, %v1517_v19  ;;  %v18401_v24 = vcombine.low %v1514_v26, %v1518_v7  ;;  %v1562_v4 = vld [vmem:[#allocation6 + $0x2998] sm:$0xff]  ;;  %v18441_v7 = vcombine.low %v1554_v54, %v1558_v55 }
 0x62d   :  { %11742 = vmatprep.subr.bf16.mxu0 %v18360_v33  ;;  %12301 = vmatprep.subr.bf16.mxu1 %v18362_v18  ;;  %v18408_v33 = vcombine.high %v1521_v12, %v1525_v14  ;;  %v18410_v18 = vcombine.high %v1522_v23, %v1526_v28  ;;  %v1566_v19 = vld [vmem:[#allocation6 + $0x29b8] sm:$0xff] }
 0x630   :  { %11743 = vmatpush1.bf16.msra.mxu0 %v18359_v15  ;;  %12302 = vmatpush1.bf16.msra.mxu1 %v18361_v32  ;;  %v18407_v15 = vcombine.low %v1521_v12, %v1525_v14  ;;  %v18409_v32 = vcombine.low %v1522_v23, %v1526_v28  ;;  %v1570_v12 = vld [vmem:[#allocation6 + $0x29d8] sm:$0xff]  ;;  %v18449_v28 = vcombine.low %v1562_v4, %v1566_v19 }
 0x631   :  { %11744 = vmatprep.subr.bf16.mxu0 %v18368_v35  ;;  %12303 = vmatprep.subr.bf16.mxu1 %v18370_v36  ;;  %v18416_v35 = vcombine.high %v1529_v38, %v1533_v29  ;;  %v18418_v36 = vcombine.high %v1530_v20, %v1534_v27  ;;  %v1574_v14 = vld [vmem:[#allocation6 + $0x29f8] sm:$0xff] }
 0x634   :  { %11745 = vmatpush1.bf16.msra.mxu0 %v18367_v40  ;;  %12304 = vmatpush1.bf16.msra.mxu1 %v18369_v41  ;;  %v18415_v40 = vcombine.low %v1529_v38, %v1533_v29  ;;  %v18424_v41 = vcombine.high %v1537_v6, %v1541_v46  ;;  %v1578_v38 = vld [vmem:[#allocation6 + $0x2a18] sm:$0xff] }
 0x635   :  { %11746 = vmatprep.subr.bf16.mxu0 %v18376_v42  ;;  %12305 = vmatprep.subr.bf16.mxu1 %v18378_v44  ;;  %v18426_v42 = vcombine.high %v1538_v43, %v1542_v30  ;;  %v1545_v44 = vld [vmem:[#allocation6 + $0x2910] sm:$0xff]  ;;  %v1582_v29 = vld [vmem:[#allocation6 + $0x2a38] sm:$0xff] }
 0x636   :  { %v18431_v56 = vcombine.low %v1545_v44, %v1549_v45  ;;  %v1586_v6 = vld [vmem:[#allocation6 + $0x2a58] sm:$0xff] }
 0x637   :  { %v1590_v46 = vld [vmem:[#allocation6 + $0x2a78] sm:$0xff] }
 0x638   :  { %11747 = vmatpush1.bf16.msra.mxu0 %v18375_v53  ;;  %12306 = vmatpush1.bf16.msra.mxu1 %v18377_v50  ;;  %v18425_v53 = vcombine.low %v1538_v43, %v1542_v30  ;;  %v18432_v50 = vcombine.high %v1545_v44, %v1549_v45  ;;  %v18465_v30 = vcombine.low %v1578_v38, %v1582_v29  ;;  %v1594_v44 = vld [vmem:[#allocation6 + $0x2a98] sm:$0xff] }
 0x639   :  { %11748 = vmatprep.subr.bf16.mxu0 %v18384_v37  ;;  %12307 = vmatprep.subr.bf16.mxu1 %v18386_v51  ;;  %v1553_v37 = vld [vmem:[#allocation6 + $0x2950] sm:$0xff]  ;;  %v1598_v45 = vld [vmem:[#allocation6 + $0x2ab8] sm:$0xff] }
 0x63a   :  { %v1557_v51 = vld [vmem:[#allocation6 + $0x2970] sm:$0xff] }
 0x63b   :  { %v18439_v26 = vcombine.low %v1553_v37, %v1557_v51 }
 0x63c   :  { %11749 = vmatpush1.bf16.msra.mxu0 %v18383_v62  ;;  %12308 = vmatpush1.bf16.msra.mxu1 %v18385_v3  ;;  %v18440_v62 = vcombine.high %v1553_v37, %v1557_v51  ;;  %v18442_v3 = vcombine.high %v1554_v54, %v1558_v55  ;;  %v1602_v37 = vld [vmem:[#allocation6 + $0x2ad8] sm:$0xff]  ;;  %v18481_v55 = vcombine.low %v1594_v44, %v1598_v45 }
 0x63d   :  { %11750 = vmatprep.subr.bf16.mxu0 %v18392_v10  ;;  %12309 = vmatprep.subr.bf16.mxu1 %v18394_v2  ;;  %v1561_v10 = vld [vmem:[#allocation6 + $0x2990] sm:$0xff]  ;;  %v1606_v51 = vld [vmem:[#allocation6 + $0x2af8] sm:$0xff] }
 0x63e   :  { %v1565_v2 = vld [vmem:[#allocation6 + $0x29b0] sm:$0xff] }
 0x63f   :  { %v18447_v23 = vcombine.low %v1561_v10, %v1565_v2 }
 0x640   :  { %11751 = vmatpush1.bf16.msra.mxu0 %v18391_v8  ;;  %12310 = vmatpush1.bf16.msra.mxu1 %v18393_v11  ;;  %v18448_v8 = vcombine.high %v1561_v10, %v1565_v2  ;;  %v18450_v11 = vcombine.high %v1562_v4, %v1566_v19  ;;  %v1610_v10 = vld [vmem:[#allocation6 + $0x2b18] sm:$0xff]  ;;  %v18489_v19 = vcombine.low %v1602_v37, %v1606_v51 }
 0x641   :  { %11763 = vmatprep.subr.bf16.mxu0 %v18400_v9  ;;  %12322 = vmatprep.subr.bf16.mxu1 %v18402_v17  ;;  %v1569_v9 = vld [vmem:[#allocation6 + $0x29d0] sm:$0xff]  ;;  %v1614_v2 = vld [vmem:[#allocation6 + $0x2b38] sm:$0xff] }
 0x642   :  { %v1573_v17 = vld [vmem:[#allocation6 + $0x29f0] sm:$0xff] }
 0x643   :  { %11753 = vmatmul.mubr.bf16.vlgmr.msra.gmra.mrb[4].mxu0 %v20183_v63  ;;  %12312 = vmatmul.mubr.bf16.vlgmr.msra.gmra.mrb[4].mxu1 %v20183_v63  ;;  %v18417_v63 = vcombine.low %v1530_v20, %v1534_v27  ;;  %v18455_v20 = vcombine.low %v1569_v9, %v1573_v17  ;;  %v18457_v27 = vcombine.low %v1570_v12, %v1574_v14 }
 0x644   :  { %11764 = vmatpush1.bf16.msra.mxu0 %v18399_v59  ;;  %12323 = vmatpush1.bf16.msra.mxu1 %v18401_v24  ;;  %v18456_v59 = vcombine.high %v1569_v9, %v1573_v17  ;;  %v18458_v24 = vcombine.high %v1570_v12, %v1574_v14  ;;  %v1618_v9 = vld [vmem:[#allocation6 + $0x2b58] sm:$0xff]  ;;  %v18497_v14 = vcombine.low %v1610_v10, %v1614_v2 }
 0x645   :  { %11765 = vmatprep.subr.bf16.mxu0 %v18408_v33  ;;  %12324 = vmatprep.subr.bf16.mxu1 %v18410_v18  ;;  %v1577_v33 = vld [vmem:[#allocation6 + $0x2a10] sm:$0xff]  ;;  %v1622_v17 = vld [vmem:[#allocation6 + $0x2b78] sm:$0xff] }
 0x646   :  { %11795 = vmatprep.mubr.bf16.mxu0 %v20185_v13  ;;  %12354 = vmatprep.mubr.bf16.mxu1 %v20185_v13  ;;  %v18434_v13 = vcombine.high %v1546_v48, %v1550_v49  ;;  %v1581_v18 = vld [vmem:[#allocation6 + $0x2a30] sm:$0xff]  ;;  %v18473_v49 = vcombine.low %v1586_v6, %v1590_v46 }
 0x647   :  { %v18463_v43 = vcombine.low %v1577_v33, %v1581_v18 }
 0x648   :  { %11766 = vmatpush1.bf16.msra.mxu0 %v18407_v15  ;;  %12325 = vmatpush1.bf16.msra.mxu1 %v18409_v32  ;;  %v18464_v15 = vcombine.high %v1577_v33, %v1581_v18  ;;  %v18466_v32 = vcombine.high %v1578_v38, %v1582_v29  ;;  %v1626_v33 = vld [vmem:[#allocation6 + $0x2b98] sm:$0xff]  ;;  %v18505_v29 = vcombine.low %v1618_v9, %v1622_v17 }
 0x649   :  { %11767 = vmatprep.subr.bf16.mxu0 %v18416_v35  ;;  %12326 = vmatprep.subr.bf16.mxu1 %v18418_v36  ;;  %v1585_v35 = vld [vmem:[#allocation6 + $0x2a50] sm:$0xff]  ;;  %v1630_v18 = vld [vmem:[#allocation6 + $0x2bb8] sm:$0xff] }
 0x64a   :  { %v1589_v36 = vld [vmem:[#allocation6 + $0x2a70] sm:$0xff] }
 0x64b   :  { %v18471_v48 = vcombine.low %v1585_v35, %v1589_v36 }
 0x64c   :  { %11768 = vmatpush1.bf16.msra.mxu0 %v18415_v40  ;;  %12327 = vmatpush1.bf16.msra.mxu1 %v18417_v63  ;;  %v18472_v40 = vcombine.high %v1585_v35, %v1589_v36  ;;  %v18474_v63 = vcombine.high %v1586_v6, %v1590_v46  ;;  %v1634_v35 = vld [vmem:[#allocation6 + $0x2bd8] sm:$0xff]  ;;  %v18513_v46 = vcombine.low %v1626_v33, %v1630_v18 }
 0x64d   :  { %11769 = vmatprep.subr.bf16.mxu0 %v18424_v41  ;;  %12328 = vmatprep.subr.bf16.mxu1 %v18426_v42  ;;  %v1593_v41 = vld [vmem:[#allocation6 + $0x2a90] sm:$0xff]  ;;  %v1638_v36 = vld [vmem:[#allocation6 + $0x2bf8] sm:$0xff] }
 0x64e   :  { %v1597_v42 = vld [vmem:[#allocation6 + $0x2ab0] sm:$0xff] }
 0x64f   :  { %v18479_v54 = vcombine.low %v1593_v41, %v1597_v42 }
 0x650   :  { %11770 = vmatpush1.bf16.msra.mxu0 %v18423_v0  ;;  %12329 = vmatpush1.bf16.msra.mxu1 %v18425_v53  ;;  %v18480_v0 = vcombine.high %v1593_v41, %v1597_v42  ;;  %v18482_v53 = vcombine.high %v1594_v44, %v1598_v45  ;;  %v1642_v41 = vld [vmem:[#allocation6 + $0x2c18] sm:$0xff]  ;;  %v18521_v45 = vcombine.low %v1634_v35, %v1638_v36 }
 0x651   :  { %11771 = vmatprep.subr.bf16.mxu0 %v18432_v50  ;;  %12330 = vmatprep.subr.bf16.mxu1 %v18434_v13  ;;  %v1601_v50 = vld [vmem:[#allocation6 + $0x2ad0] sm:$0xff]  ;;  %v1646_v42 = vld [vmem:[#allocation6 + $0x2c38] sm:$0xff] }
 0x652   :  { %v1605_v13 = vld [vmem:[#allocation6 + $0x2af0] sm:$0xff] }
 0x653   :  { %v18487_v4 = vcombine.low %v1601_v50, %v1605_v13 }
 0x654   :  { %11772 = vmatpush1.bf16.msra.mxu0 %v18431_v56  ;;  %12331 = vmatpush1.bf16.msra.mxu1 %v18433_v57  ;;  %v18488_v56 = vcombine.high %v1601_v50, %v1605_v13  ;;  %v18490_v57 = vcombine.high %v1602_v37, %v1606_v51  ;;  %v1650_v50 = vld [vmem:[#allocation6 + $0x2c58] sm:$0xff]  ;;  %v18529_v51 = vcombine.low %v1642_v41, %v1646_v42 }
 0x655   :  { %11773 = vmatprep.subr.bf16.mxu0 %v18440_v62  ;;  %12332 = vmatprep.subr.bf16.mxu1 %v18442_v3  ;;  %v1609_v62 = vld [vmem:[#allocation6 + $0x2b10] sm:$0xff]  ;;  %v1654_v13 = vld [vmem:[#allocation6 + $0x2c78] sm:$0xff] }
 0x656   :  { %v1613_v3 = vld [vmem:[#allocation6 + $0x2b30] sm:$0xff] }
 0x657   :  { %v18495_v12 = vcombine.low %v1609_v62, %v1613_v3 }
 0x658   :  { %11774 = vmatpush1.bf16.msra.mxu0 %v18439_v26  ;;  %12333 = vmatpush1.bf16.msra.mxu1 %v18441_v7  ;;  %v18496_v26 = vcombine.high %v1609_v62, %v1613_v3  ;;  %v18498_v7 = vcombine.high %v1610_v10, %v1614_v2  ;;  %v1658_v62 = vld [vmem:[#allocation6 + $0x2c98] sm:$0xff]  ;;  %v18537_v2 = vcombine.low %v1650_v50, %v1654_v13 }
 0x659   :  { %11775 = vmatprep.subr.bf16.mxu0 %v18448_v8  ;;  %12334 = vmatprep.subr.bf16.mxu1 %v18450_v11  ;;  %v1617_v8 = vld [vmem:[#allocation6 + $0x2b50] sm:$0xff]  ;;  %v1662_v3 = vld [vmem:[#allocation6 + $0x2cb8] sm:$0xff] }
 0x65a   :  { %v1621_v11 = vld [vmem:[#allocation6 + $0x2b70] sm:$0xff] }
 0x65b   :  { %v18503_v38 = vcombine.low %v1617_v8, %v1621_v11 }
 0x65c   :  { %11776 = vmatpush1.bf16.msra.mxu0 %v18447_v23  ;;  %12335 = vmatpush1.bf16.msra.mxu1 %v18449_v28  ;;  %v18504_v23 = vcombine.high %v1617_v8, %v1621_v11  ;;  %v18506_v28 = vcombine.high %v1618_v9, %v1622_v17  ;;  %v1666_v8 = vld [vmem:[#allocation6 + $0x2cd8] sm:$0xff] }
 0x65d   :  { %11777 = vmatprep.subr.bf16.mxu0 %v18456_v59  ;;  %12336 = vmatprep.subr.bf16.mxu1 %v18458_v24  ;;  %v1625_v59 = vld [vmem:[#allocation6 + $0x2b90] sm:$0xff]  ;;  %v1670_v11 = vld [vmem:[#allocation6 + $0x2cf8] sm:$0xff] }
 0x65e   :  { %v1629_v24 = vld [vmem:[#allocation6 + $0x2bb0] sm:$0xff] }
 0x65f   :  { %v18511_v6 = vcombine.low %v1625_v59, %v1629_v24 }
 0x660   :  { %11778 = vmatpush1.bf16.msra.mxu0 %v18455_v20  ;;  %12337 = vmatpush1.bf16.msra.mxu1 %v18457_v27  ;;  %v18512_v20 = vcombine.high %v1625_v59, %v1629_v24  ;;  %v18514_v27 = vcombine.high %v1626_v33, %v1630_v18  ;;  %v1678_v59 = vld [vmem:[#allocation6 + $0x2d38] sm:$0xff]  ;;  %v18553_v33 = vcombine.low %v1666_v8, %v1670_v11 }
 0x661   :  { %11779 = vmatprep.subr.bf16.mxu0 %v18464_v15  ;;  %12338 = vmatprep.subr.bf16.mxu1 %v18466_v32  ;;  %v1633_v15 = vld [vmem:[#allocation6 + $0x2bd0] sm:$0xff] }
 0x662   :  { %v1637_v32 = vld [vmem:[#allocation6 + $0x2bf0] sm:$0xff] }
 0x663   :  { %v18519_v44 = vcombine.low %v1633_v15, %v1637_v32 }
 0x664   :  { %11780 = vmatpush1.bf16.msra.mxu0 %v18463_v43  ;;  %12339 = vmatpush1.bf16.msra.mxu1 %v18465_v30  ;;  %v18520_v43 = vcombine.high %v1633_v15, %v1637_v32  ;;  %v18522_v30 = vcombine.high %v1634_v35, %v1638_v36 }
 0x665   :  { %11781 = vmatprep.subr.bf16.mxu0 %v18472_v40  ;;  %12340 = vmatprep.subr.bf16.mxu1 %v18474_v63  ;;  %v1641_v40 = vld [vmem:[#allocation6 + $0x2c10] sm:$0xff] }
 0x666   :  { %v1645_v63 = vld [vmem:[#allocation6 + $0x2c30] sm:$0xff] }
 0x667   :  { %v18527_v37 = vcombine.low %v1641_v40, %v1645_v63 }
 0x668   :  { %11782 = vmatpush1.bf16.msra.mxu0 %v18471_v48  ;;  %12341 = vmatpush1.bf16.msra.mxu1 %v18473_v49  ;;  %v18528_v48 = vcombine.high %v1641_v40, %v1645_v63  ;;  %v18530_v49 = vcombine.high %v1642_v41, %v1646_v42 }
 0x669   :  { %11783 = vmatprep.subr.bf16.mxu0 %v18480_v0  ;;  %12342 = vmatprep.subr.bf16.mxu1 %v18482_v53  ;;  %v1649_v0 = vld [vmem:[#allocation6 + $0x2c50] sm:$0xff] }
 0x66a   :  { %v1653_v53 = vld [vmem:[#allocation6 + $0x2c70] sm:$0xff] }
 0x66b   :  { %v18535_v10 = vcombine.low %v1649_v0, %v1653_v53 }
 0x66c   :  { %11784 = vmatpush1.bf16.msra.mxu0 %v18479_v54  ;;  %12343 = vmatpush1.bf16.msra.mxu1 %v18481_v55  ;;  %v18536_v54 = vcombine.high %v1649_v0, %v1653_v53  ;;  %v18538_v55 = vcombine.high %v1650_v50, %v1654_v13 }
 0x66d   :  { %11785 = vmatprep.subr.bf16.mxu0 %v18488_v56  ;;  %12344 = vmatprep.subr.bf16.mxu1 %v18490_v57  ;;  %v1657_v56 = vld [vmem:[#allocation6 + $0x2c90] sm:$0xff] }
 0x66e   :  { %v1661_v57 = vld [vmem:[#allocation6 + $0x2cb0] sm:$0xff] }
 0x66f   :  { %v18543_v9 = vcombine.low %v1657_v56, %v1661_v57 }
 0x670   :  { %11786 = vmatpush1.bf16.msra.mxu0 %v18487_v4  ;;  %12345 = vmatpush1.bf16.msra.mxu1 %v18489_v19  ;;  %v18544_v4 = vcombine.high %v1657_v56, %v1661_v57  ;;  %v18546_v19 = vcombine.high %v1658_v62, %v1662_v3 }
 0x671   :  { %11787 = vmatprep.subr.bf16.mxu0 %v18496_v26  ;;  %12346 = vmatprep.subr.bf16.mxu1 %v18498_v7  ;;  %v1665_v26 = vld [vmem:[#allocation6 + $0x2cd0] sm:$0xff] }
 0x672   :  { %v1669_v7 = vld [vmem:[#allocation6 + $0x2cf0] sm:$0xff] }
 0x673   :  { %v18552_v17 = vcombine.high %v1665_v26, %v1669_v7  ;;  %v18551_v24 = vcombine.low %v1665_v26, %v1669_v7 }
 0x674   :  { %11788 = vmatpush1.bf16.msra.mxu0 %v18495_v12  ;;  %12347 = vmatpush1.bf16.msra.mxu1 %v18497_v14  ;;  %v18554_v12 = vcombine.high %v1666_v8, %v1670_v11  ;;  %v1673_v14 = vld [vmem:[#allocation6 + $0x2d10] sm:$0xff] }
 0x675   :  { %11789 = vmatprep.subr.bf16.mxu0 %v18504_v23  ;;  %12348 = vmatprep.subr.bf16.mxu1 %v18506_v28  ;;  %v1677_v23 = vld [vmem:[#allocation6 + $0x2d30] sm:$0xff]  ;;  %v1674_v28 = vld [vmem:[#allocation6 + $0x2d18] sm:$0xff] }
 0x676   :  { %v18560_v18 = vcombine.high %v1673_v14, %v1677_v23  ;;  %v18559_v15 = vcombine.low %v1673_v14, %v1677_v23  ;;  %v18561_v32 = vcombine.low %v1674_v28, %v1678_v59 }
 0x678   :  { %11790 = vmatpush1.bf16.msra.mxu0 %v18503_v38  ;;  %12349 = vmatpush1.bf16.msra.mxu1 %v18505_v29  ;;  %v1681_v38 = vld [vmem:[#allocation6 + $0x2d50] sm:$0xff] }
 0x679   :  { %11791 = vmatprep.subr.bf16.mxu0 %v18512_v20  ;;  %12350 = vmatprep.subr.bf16.mxu1 %v18514_v27  ;;  %v1685_v29 = vld [vmem:[#allocation6 + $0x2d70] sm:$0xff]  ;;  %v1682_v20 = vld [vmem:[#allocation6 + $0x2d58] sm:$0xff] }
 0x67a   :  { %v1686_v27 = vld [vmem:[#allocation6 + $0x2d78] sm:$0xff]  ;;  %v18568_v35 = vcombine.high %v1681_v38, %v1685_v29  ;;  %v18567_v40 = vcombine.low %v1681_v38, %v1685_v29 }
 0x67b   :  { %v18570_v36 = vcombine.high %v1682_v20, %v1686_v27  ;;  %v18569_v63 = vcombine.low %v1682_v20, %v1686_v27 }
 0x67c   :  { %11792 = vmatpush1.bf16.msra.mxu0 %v18511_v6  ;;  %12351 = vmatpush1.bf16.msra.mxu1 %v18513_v46  ;;  %v1689_v6 = vld [vmem:[#allocation6 + $0x2d90] sm:$0xff] }
 0x67d   :  { %11793 = vmatprep.subr.bf16.mxu0 %v18520_v43  ;;  %12352 = vmatprep.subr.bf16.mxu1 %v18522_v30  ;;  %v1693_v46 = vld [vmem:[#allocation6 + $0x2db0] sm:$0xff]  ;;  %v1690_v43 = vld [vmem:[#allocation6 + $0x2d98] sm:$0xff] }
 0x67e   :  { %v1694_v30 = vld [vmem:[#allocation6 + $0x2db8] sm:$0xff]  ;;  %v18576_v41 = vcombine.high %v1689_v6, %v1693_v46  ;;  %v18575_v0 = vcombine.low %v1689_v6, %v1693_v46 }
 0x67f   :  { %v18578_v42 = vcombine.high %v1690_v43, %v1694_v30  ;;  %v18577_v53 = vcombine.low %v1690_v43, %v1694_v30 }
 0x680   :  { %11794 = vmatpush1.bf16.msra.mxu0 %v18519_v44  ;;  %12353 = vmatpush1.bf16.msra.mxu1 %v18521_v45  ;;  %v1697_v44 = vld [vmem:[#allocation6 + $0x2dd0] sm:$0xff] }
 0x681   :  { %11806 = vmatprep.subr.bf16.mxu0 %v18528_v48  ;;  %12365 = vmatprep.subr.bf16.mxu1 %v18530_v49  ;;  %v1701_v45 = vld [vmem:[#allocation6 + $0x2df0] sm:$0xff]  ;;  %v1698_v48 = vld [vmem:[#allocation6 + $0x2dd8] sm:$0xff] }
 0x682   :  { %v1702_v49 = vld [vmem:[#allocation6 + $0x2df8] sm:$0xff]  ;;  %v18584_v50 = vcombine.high %v1697_v44, %v1701_v45  ;;  %v18583_v56 = vcombine.low %v1697_v44, %v1701_v45 }
 0x683   :  { %11796 = vmatmul.mubr.bf16.vlgmr.msra.gmra.mrb[4].mxu0 %v20191_v5  ;;  %12355 = vmatmul.mubr.bf16.vlgmr.msra.gmra.mrb[4].mxu1 %v20191_v5  ;;  %v18545_v5 = vcombine.low %v1658_v62, %v1662_v3  ;;  %v18586_v13 = vcombine.high %v1698_v48, %v1702_v49  ;;  %v18585_v57 = vcombine.low %v1698_v48, %v1702_v49 }
 0x684   :  { %11807 = vmatpush1.bf16.msra.mxu0 %v18527_v37  ;;  %12366 = vmatpush1.bf16.msra.mxu1 %v18529_v51  ;;  %v1705_v37 = vld [vmem:[#allocation6 + $0x2e10] sm:$0xff] }
 0x685   :  { %11808 = vmatprep.subr.bf16.mxu0 %v18536_v54  ;;  %12367 = vmatprep.subr.bf16.mxu1 %v18538_v55  ;;  %v1709_v51 = vld [vmem:[#allocation6 + $0x2e30] sm:$0xff]  ;;  %v1706_v54 = vld [vmem:[#allocation6 + $0x2e18] sm:$0xff] }
 0x686   :  { %11838 = vmatprep.mubr.bf16.mxu0 %v20193_v21  ;;  %12397 = vmatprep.mubr.bf16.mxu1 %v20193_v21  ;;  %v18562_v21 = vcombine.high %v1674_v28, %v1678_v59  ;;  %v1710_v55 = vld [vmem:[#allocation6 + $0x2e38] sm:$0xff]  ;;  %v18592_v62 = vcombine.high %v1705_v37, %v1709_v51  ;;  %v18591_v26 = vcombine.low %v1705_v37, %v1709_v51 }
 0x687   :  { %v18594_v3 = vcombine.high %v1706_v54, %v1710_v55  ;;  %v18593_v7 = vcombine.low %v1706_v54, %v1710_v55 }
 0x688   :  { %11809 = vmatpush1.bf16.msra.mxu0 %v18535_v10  ;;  %12368 = vmatpush1.bf16.msra.mxu1 %v18537_v2  ;;  %v1713_v10 = vld [vmem:[#allocation6 + $0x2e50] sm:$0xff] }
 0x689   :  { %11810 = vmatprep.subr.bf16.mxu0 %v18544_v4  ;;  %12369 = vmatprep.subr.bf16.mxu1 %v18546_v19  ;;  %v1717_v2 = vld [vmem:[#allocation6 + $0x2e70] sm:$0xff]  ;;  %v1714_v4 = vld [vmem:[#allocation6 + $0x2e58] sm:$0xff] }
 0x68a   :  { %v1718_v19 = vld [vmem:[#allocation6 + $0x2e78] sm:$0xff]  ;;  %v18600_v8 = vcombine.high %v1713_v10, %v1717_v2  ;;  %v18599_v14 = vcombine.low %v1713_v10, %v1717_v2 }
 0x68b   :  { %v18602_v11 = vcombine.high %v1714_v4, %v1718_v19  ;;  %v18601_v23 = vcombine.low %v1714_v4, %v1718_v19 }
 0x68c   :  { %11811 = vmatpush1.bf16.msra.mxu0 %v18543_v9  ;;  %12370 = vmatpush1.bf16.msra.mxu1 %v18545_v5  ;;  %v1721_v9 = vld [vmem:[#allocation6 + $0x2e90] sm:$0xff] }
 0x68d   :  { %11812 = vmatprep.subr.bf16.mxu0 %v18552_v17  ;;  %12371 = vmatprep.subr.bf16.mxu1 %v18554_v12  ;;  %v1725_v5 = vld [vmem:[#allocation6 + $0x2eb0] sm:$0xff]  ;;  %v1722_v17 = vld [vmem:[#allocation6 + $0x2e98] sm:$0xff] }
 0x68e   :  { %v1726_v12 = vld [vmem:[#allocation6 + $0x2eb8] sm:$0xff]  ;;  %v18608_v28 = vcombine.high %v1721_v9, %v1725_v5  ;;  %v18607_v38 = vcombine.low %v1721_v9, %v1725_v5 }
 0x68f   :  { %v18610_v59 = vcombine.high %v1722_v17, %v1726_v12  ;;  %v18609_v29 = vcombine.low %v1722_v17, %v1726_v12 }
 0x690   :  { %11813 = vmatpush1.bf16.msra.mxu0 %v18551_v24  ;;  %12372 = vmatpush1.bf16.msra.mxu1 %v18553_v33  ;;  %v1729_v24 = vld [vmem:[#allocation6 + $0x2ed0] sm:$0xff] }
 0x691   :  { %11814 = vmatprep.subr.bf16.mxu0 %v18560_v18  ;;  %12373 = vmatprep.subr.bf16.mxu1 %v18562_v21  ;;  %v1733_v33 = vld [vmem:[#allocation6 + $0x2ef0] sm:$0xff]  ;;  %v1730_v18 = vld [vmem:[#allocation6 + $0x2ed8] sm:$0xff] }
 0x692   :  { %v1734_v21 = vld [vmem:[#allocation6 + $0x2ef8] sm:$0xff]  ;;  %v18616_v20 = vcombine.high %v1729_v24, %v1733_v33  ;;  %v18615_v6 = vcombine.low %v1729_v24, %v1733_v33 }
 0x693   :  { %v18618_v27 = vcombine.high %v1730_v18, %v1734_v21  ;;  %v18617_v46 = vcombine.low %v1730_v18, %v1734_v21 }
 0x694   :  { %11815 = vmatpush1.bf16.msra.mxu0 %v18559_v15  ;;  %12374 = vmatpush1.bf16.msra.mxu1 %v18561_v32  ;;  %v1737_v15 = vld [vmem:[#allocation6 + $0x2f10] sm:$0xff] }
 0x695   :  { %11816 = vmatprep.subr.bf16.mxu0 %v18568_v35  ;;  %12375 = vmatprep.subr.bf16.mxu1 %v18570_v36  ;;  %v1741_v32 = vld [vmem:[#allocation6 + $0x2f30] sm:$0xff]  ;;  %v1738_v35 = vld [vmem:[#allocation6 + $0x2f18] sm:$0xff] }
 0x696   :  { %v1742_v36 = vld [vmem:[#allocation6 + $0x2f38] sm:$0xff]  ;;  %v18624_v43 = vcombine.high %v1737_v15, %v1741_v32  ;;  %v18623_v44 = vcombine.low %v1737_v15, %v1741_v32 }
 0x697   :  { %v18626_v30 = vcombine.high %v1738_v35, %v1742_v36  ;;  %v18625_v45 = vcombine.low %v1738_v35, %v1742_v36 }
 0x698   :  { %11817 = vmatpush1.bf16.msra.mxu0 %v18567_v40  ;;  %12376 = vmatpush1.bf16.msra.mxu1 %v18569_v63  ;;  %v1745_v40 = vld [vmem:[#allocation6 + $0x2f50] sm:$0xff] }
 0x699   :  { %11818 = vmatprep.subr.bf16.mxu0 %v18576_v41  ;;  %12377 = vmatprep.subr.bf16.mxu1 %v18578_v42  ;;  %v1749_v63 = vld [vmem:[#allocation6 + $0x2f70] sm:$0xff]  ;;  %v1746_v41 = vld [vmem:[#allocation6 + $0x2f58] sm:$0xff] }
 0x69a   :  { %v1750_v42 = vld [vmem:[#allocation6 + $0x2f78] sm:$0xff]  ;;  %v18632_v48 = vcombine.high %v1745_v40, %v1749_v63  ;;  %v18631_v37 = vcombine.low %v1745_v40, %v1749_v63 }
 0x69b   :  { %v18634_v49 = vcombine.high %v1746_v41, %v1750_v42  ;;  %v18633_v51 = vcombine.low %v1746_v41, %v1750_v42  ;;  %v1801_v42 = vld [vmem:[#allocation6 + $0x3110] sm:$0xff] }
 0x69c   :  { %11819 = vmatpush1.bf16.msra.mxu0 %v18575_v0  ;;  %12378 = vmatpush1.bf16.msra.mxu1 %v18577_v53  ;;  %v1753_v0 = vld [vmem:[#allocation6 + $0x2f90] sm:$0xff] }
 0x69d   :  { %11820 = vmatprep.subr.bf16.mxu0 %v18584_v50  ;;  %12379 = vmatprep.subr.bf16.mxu1 %v18586_v13  ;;  %v1757_v53 = vld [vmem:[#allocation6 + $0x2fb0] sm:$0xff]  ;;  %v1754_v50 = vld [vmem:[#allocation6 + $0x2f98] sm:$0xff] }
 0x69e   :  { %v1758_v13 = vld [vmem:[#allocation6 + $0x2fb8] sm:$0xff]  ;;  %v18640_v54 = vcombine.high %v1753_v0, %v1757_v53  ;;  %v18639_v10 = vcombine.low %v1753_v0, %v1757_v53 }
 0x69f   :  { %v18642_v55 = vcombine.high %v1754_v50, %v1758_v13  ;;  %v18641_v2 = vcombine.low %v1754_v50, %v1758_v13  ;;  %v1809_v50 = vld [vmem:[#allocation6 + $0x3150] sm:$0xff] }
 0x6a0   :  { %11821 = vmatpush1.bf16.msra.mxu0 %v18583_v56  ;;  %12380 = vmatpush1.bf16.msra.mxu1 %v18585_v57  ;;  %v1761_v56 = vld [vmem:[#allocation6 + $0x2fd0] sm:$0xff] }
 0x6a1   :  { %11822 = vmatprep.subr.bf16.mxu0 %v18592_v62  ;;  %12381 = vmatprep.subr.bf16.mxu1 %v18594_v3  ;;  %v1765_v57 = vld [vmem:[#allocation6 + $0x2ff0] sm:$0xff]  ;;  %v1762_v62 = vld [vmem:[#allocation6 + $0x2fd8] sm:$0xff] }
 0x6a2   :  { %v1766_v3 = vld [vmem:[#allocation6 + $0x2ff8] sm:$0xff]  ;;  %v18648_v4 = vcombine.high %v1761_v56, %v1765_v57  ;;  %v18647_v9 = vcombine.low %v1761_v56, %v1765_v57  ;;  %v1813_v13 = vld [vmem:[#allocation6 + $0x3170] sm:$0xff] }
 0x6a3   :  { %v18650_v19 = vcombine.high %v1762_v62, %v1766_v3  ;;  %v18649_v5 = vcombine.low %v1762_v62, %v1766_v3  ;;  %v18696_v56 = vcombine.high %v1809_v50, %v1813_v13  ;;  %v1817_v62 = vld [vmem:[#allocation6 + $0x3190] sm:$0xff] }
 0x6a4   :  { %11823 = vmatpush1.bf16.msra.mxu0 %v18591_v26  ;;  %12382 = vmatpush1.bf16.msra.mxu1 %v18593_v7  ;;  %v1769_v26 = vld [vmem:[#allocation6 + $0x3010] sm:$0xff] }
 0x6a5   :  { %11824 = vmatprep.subr.bf16.mxu0 %v18600_v8  ;;  %12383 = vmatprep.subr.bf16.mxu1 %v18602_v11  ;;  %v1773_v7 = vld [vmem:[#allocation6 + $0x3030] sm:$0xff]  ;;  %v1770_v8 = vld [vmem:[#allocation6 + $0x3018] sm:$0xff] }
 0x6a6   :  { %v1774_v11 = vld [vmem:[#allocation6 + $0x3038] sm:$0xff]  ;;  %v18656_v17 = vcombine.high %v1769_v26, %v1773_v7  ;;  %v18655_v24 = vcombine.low %v1769_v26, %v1773_v7  ;;  %v1821_v3 = vld [vmem:[#allocation6 + $0x31b0] sm:$0xff] }
 0x6a7   :  { %v18658_v12 = vcombine.high %v1770_v8, %v1774_v11  ;;  %v18657_v33 = vcombine.low %v1770_v8, %v1774_v11  ;;  %v18704_v26 = vcombine.high %v1817_v62, %v1821_v3  ;;  %v1825_v8 = vld [vmem:[#allocation6 + $0x31d0] sm:$0xff] }
 0x6a8   :  { %11825 = vmatpush1.bf16.msra.mxu0 %v18599_v14  ;;  %12384 = vmatpush1.bf16.msra.mxu1 %v18601_v23  ;;  %v1777_v14 = vld [vmem:[#allocation6 + $0x3050] sm:$0xff] }
 0x6a9   :  { %11826 = vmatprep.subr.bf16.mxu0 %v18608_v28  ;;  %12385 = vmatprep.subr.bf16.mxu1 %v18610_v59  ;;  %v1781_v23 = vld [vmem:[#allocation6 + $0x3070] sm:$0xff]  ;;  %v1778_v28 = vld [vmem:[#allocation6 + $0x3058] sm:$0xff] }
 0x6aa   :  { %v1782_v59 = vld [vmem:[#allocation6 + $0x3078] sm:$0xff]  ;;  %v18664_v18 = vcombine.high %v1777_v14, %v1781_v23  ;;  %v18663_v15 = vcombine.low %v1777_v14, %v1781_v23  ;;  %v1829_v11 = vld [vmem:[#allocation6 + $0x31f0] sm:$0xff] }
 0x6ab   :  { %v18666_v21 = vcombine.high %v1778_v28, %v1782_v59  ;;  %v18665_v32 = vcombine.low %v1778_v28, %v1782_v59  ;;  %v18712_v14 = vcombine.high %v1825_v8, %v1829_v11  ;;  %v1833_v28 = vld [vmem:[#allocation6 + $0x3210] sm:$0xff] }
 0x6ac   :  { %11827 = vmatpush1.bf16.msra.mxu0 %v18607_v38  ;;  %12386 = vmatpush1.bf16.msra.mxu1 %v18609_v29  ;;  %v1785_v38 = vld [vmem:[#allocation6 + $0x3090] sm:$0xff] }
 0x6ad   :  { %11828 = vmatprep.subr.bf16.mxu0 %v18616_v20  ;;  %12387 = vmatprep.subr.bf16.mxu1 %v18618_v27  ;;  %v1789_v29 = vld [vmem:[#allocation6 + $0x30b0] sm:$0xff]  ;;  %v1786_v20 = vld [vmem:[#allocation6 + $0x3098] sm:$0xff] }
 0x6ae   :  { %v1790_v27 = vld [vmem:[#allocation6 + $0x30b8] sm:$0xff]  ;;  %v18672_v35 = vcombine.high %v1785_v38, %v1789_v29  ;;  %v18671_v40 = vcombine.low %v1785_v38, %v1789_v29  ;;  %v1837_v59 = vld [vmem:[#allocation6 + $0x3230] sm:$0xff] }
 0x6af   :  { %v18674_v36 = vcombine.high %v1786_v20, %v1790_v27  ;;  %v18720_v38 = vcombine.high %v1833_v28, %v1837_v59 }
 0x6b0   :  { %11829 = vmatpush1.bf16.msra.mxu0 %v18615_v6  ;;  %12388 = vmatpush1.bf16.msra.mxu1 %v18617_v46  ;;  %v1793_v6 = vld [vmem:[#allocation6 + $0x30d0] sm:$0xff] }
 0x6b1   :  { %11830 = vmatprep.subr.bf16.mxu0 %v18624_v43  ;;  %12389 = vmatprep.subr.bf16.mxu1 %v18626_v30  ;;  %v1797_v46 = vld [vmem:[#allocation6 + $0x30f0] sm:$0xff]  ;;  %v1794_v43 = vld [vmem:[#allocation6 + $0x30d8] sm:$0xff] }
 0x6b2   :  { %v1798_v30 = vld [vmem:[#allocation6 + $0x30f8] sm:$0xff]  ;;  %v18680_v63 = vcombine.high %v1793_v6, %v1797_v46 }
 0x6b3   :  { %v18682_v41 = vcombine.high %v1794_v43, %v1798_v30  ;;  %v18681_v0 = vcombine.low %v1794_v43, %v1798_v30  ;;  %v1849_v43 = vld [vmem:[#allocation6 + $0x3290] sm:$0xff] }
 0x6b4   :  { %11831 = vmatpush1.bf16.msra.mxu0 %v18623_v44  ;;  %12390 = vmatpush1.bf16.msra.mxu1 %v18625_v45  ;;  %v1805_v44 = vld [vmem:[#allocation6 + $0x3130] sm:$0xff]  ;;  %v1802_v45 = vld [vmem:[#allocation6 + $0x3118] sm:$0xff] }
 0x6b5   :  { %11832 = vmatprep.subr.bf16.mxu0 %v18632_v48  ;;  %12391 = vmatprep.subr.bf16.mxu1 %v18634_v49  ;;  %v1806_v48 = vld [vmem:[#allocation6 + $0x3138] sm:$0xff]  ;;  %v18679_v49 = vcombine.low %v1793_v6, %v1797_v46  ;;  %v18688_v53 = vcombine.high %v1801_v42, %v1805_v44  ;;  %v1853_v30 = vld [vmem:[#allocation6 + $0x32b0] sm:$0xff] }
 0x6b8   :  { %11833 = vmatpush1.bf16.msra.mxu0 %v18631_v37  ;;  %12392 = vmatpush1.bf16.msra.mxu1 %v18633_v51  ;;  %v1810_v37 = vld [vmem:[#allocation6 + $0x3158] sm:$0xff] }
 0x6b9   :  { %11834 = vmatprep.subr.bf16.mxu0 %v18640_v54  ;;  %12393 = vmatprep.subr.bf16.mxu1 %v18642_v55  ;;  %v1814_v51 = vld [vmem:[#allocation6 + $0x3178] sm:$0xff]  ;;  %v18687_v54 = vcombine.low %v1801_v42, %v1805_v44  ;;  %v18689_v55 = vcombine.low %v1802_v45, %v1806_v48  ;;  %v18736_v42 = vcombine.high %v1849_v43, %v1853_v30 }
 0x6ba   :  { %v18698_v57 = vcombine.high %v1810_v37, %v1814_v51 }
 0x6bc   :  { %11835 = vmatpush1.bf16.msra.mxu0 %v18639_v10  ;;  %12394 = vmatpush1.bf16.msra.mxu1 %v18641_v2  ;;  %v1818_v10 = vld [vmem:[#allocation6 + $0x3198] sm:$0xff] }
 0x6bd   :  { %11836 = vmatprep.subr.bf16.mxu0 %v18648_v4  ;;  %12395 = vmatprep.subr.bf16.mxu1 %v18650_v19  ;;  %v1822_v2 = vld [vmem:[#allocation6 + $0x31b8] sm:$0xff]  ;;  %v18695_v4 = vcombine.low %v1809_v50, %v1813_v13  ;;  %v18697_v19 = vcombine.low %v1810_v37, %v1814_v51  ;;  %v1865_v37 = vld [vmem:[#allocation6 + $0x3310] sm:$0xff] }
 0x6be   :  { %v18706_v7 = vcombine.high %v1818_v10, %v1822_v2  ;;  %v1869_v51 = vld [vmem:[#allocation6 + $0x3330] sm:$0xff] }
 0x6c0   :  { %11837 = vmatpush1.bf16.msra.mxu0 %v18647_v9  ;;  %12396 = vmatpush1.bf16.msra.mxu1 %v18649_v5  ;;  %v1826_v9 = vld [vmem:[#allocation6 + $0x31d8] sm:$0xff] }
 0x6c1   :  { %11849 = vmatprep.subr.bf16.mxu0 %v18656_v17  ;;  %12408 = vmatprep.subr.bf16.mxu1 %v18658_v12  ;;  %v1830_v5 = vld [vmem:[#allocation6 + $0x31f8] sm:$0xff]  ;;  %v18703_v17 = vcombine.low %v1817_v62, %v1821_v3  ;;  %v18705_v12 = vcombine.low %v1818_v10, %v1822_v2  ;;  %v18752_v62 = vcombine.high %v1865_v37, %v1869_v51  ;;  %v1873_v10 = vld [vmem:[#allocation6 + $0x3350] sm:$0xff] }
 0x6c2   :  { %v18714_v23 = vcombine.high %v1826_v9, %v1830_v5  ;;  %v1877_v2 = vld [vmem:[#allocation6 + $0x3370] sm:$0xff] }
 0x6c3   :  { %11839 = vmatmul.mubr.bf16.vlgmr.msra.gmra.mrb[4].mxu0 %v20199_v22  ;;  %12398 = vmatmul.mubr.bf16.vlgmr.msra.gmra.mrb[4].mxu1 %v20199_v22  ;;  %v18673_v22 = vcombine.low %v1786_v20, %v1790_v27  ;;  %v1841_v20 = vld [vmem:[#allocation6 + $0x3250] sm:$0xff] }
 0x6c4   :  { %11850 = vmatpush1.bf16.msra.mxu0 %v18655_v24  ;;  %12409 = vmatpush1.bf16.msra.mxu1 %v18657_v33  ;;  %v1834_v24 = vld [vmem:[#allocation6 + $0x3218] sm:$0xff]  ;;  %v1845_v27 = vld [vmem:[#allocation6 + $0x3270] sm:$0xff] }
 0x6c5   :  { %11851 = vmatprep.subr.bf16.mxu0 %v18664_v18  ;;  %12410 = vmatprep.subr.bf16.mxu1 %v18666_v21  ;;  %v1838_v33 = vld [vmem:[#allocation6 + $0x3238] sm:$0xff]  ;;  %v18711_v18 = vcombine.low %v1825_v8, %v1829_v11  ;;  %v18713_v21 = vcombine.low %v1826_v9, %v1830_v5  ;;  %v18728_v6 = vcombine.high %v1841_v20, %v1845_v27  ;;  %v1881_v9 = vld [vmem:[#allocation6 + $0x3390] sm:$0xff] }
 0x6c6   :  { %11881 = vmatprep.mubr.bf16.mxu0 %v20201_v39  ;;  %12440 = vmatprep.mubr.bf16.mxu1 %v20201_v39  ;;  %v18690_v39 = vcombine.high %v1802_v45, %v1806_v48  ;;  %v18722_v29 = vcombine.high %v1834_v24, %v1838_v33  ;;  %v1857_v45 = vld [vmem:[#allocation6 + $0x32d0] sm:$0xff]  ;;  %v18760_v8 = vcombine.high %v1873_v10, %v1877_v2 }
 0x6c7   :  { %v1861_v48 = vld [vmem:[#allocation6 + $0x32f0] sm:$0xff] }
 0x6c8   :  { %11852 = vmatpush1.bf16.msra.mxu0 %v18663_v15  ;;  %12411 = vmatpush1.bf16.msra.mxu1 %v18665_v32  ;;  %v1842_v15 = vld [vmem:[#allocation6 + $0x3258] sm:$0xff]  ;;  %v18744_v50 = vcombine.high %v1857_v45, %v1861_v48  ;;  %v1885_v5 = vld [vmem:[#allocation6 + $0x33b0] sm:$0xff] }
 0x6c9   :  { %11853 = vmatprep.subr.bf16.mxu0 %v18672_v35  ;;  %12412 = vmatprep.subr.bf16.mxu1 %v18674_v36  ;;  %v1846_v32 = vld [vmem:[#allocation6 + $0x3278] sm:$0xff]  ;;  %v18719_v35 = vcombine.low %v1833_v28, %v1837_v59  ;;  %v18721_v36 = vcombine.low %v1834_v24, %v1838_v33  ;;  %v18768_v28 = vcombine.high %v1881_v9, %v1885_v5  ;;  %v1889_v24 = vld [vmem:[#allocation6 + $0x33d0] sm:$0xff] }
 0x6ca   :  { %v18730_v46 = vcombine.high %v1842_v15, %v1846_v32  ;;  %v1893_v33 = vld [vmem:[#allocation6 + $0x33f0] sm:$0xff] }
 0x6cc   :  { %11854 = vmatpush1.bf16.msra.mxu0 %v18671_v40  ;;  %12413 = vmatpush1.bf16.msra.mxu1 %v18673_v22  ;;  %v1850_v40 = vld [vmem:[#allocation6 + $0x3298] sm:$0xff] }
 0x6cd   :  { %11855 = vmatprep.subr.bf16.mxu0 %v18680_v63  ;;  %12414 = vmatprep.subr.bf16.mxu1 %v18682_v41  ;;  %v1854_v22 = vld [vmem:[#allocation6 + $0x32b8] sm:$0xff]  ;;  %v18727_v63 = vcombine.low %v1841_v20, %v1845_v27  ;;  %v18729_v41 = vcombine.low %v1842_v15, %v1846_v32  ;;  %v18776_v20 = vcombine.high %v1889_v24, %v1893_v33  ;;  %v12584_v15 = vld [vmem:[#allocation9] sm:$0xff] }
 0x6ce   :  { %v18738_v44 = vcombine.high %v1850_v40, %v1854_v22  ;;  %v12588_v32 = vld [vmem:[#allocation9 + $0x20] sm:$0xff] }
 0x6d0   :  { %11856 = vmatpush1.bf16.msra.mxu0 %v18679_v49  ;;  %12415 = vmatpush1.bf16.msra.mxu1 %v18681_v0  ;;  %v1858_v49 = vld [vmem:[#allocation6 + $0x32d8] sm:$0xff] }
 0x6d1   :  { %11857 = vmatprep.subr.bf16.mxu0 %v18688_v53  ;;  %12416 = vmatprep.subr.bf16.mxu1 %v18690_v39  ;;  %v1862_v0 = vld [vmem:[#allocation6 + $0x32f8] sm:$0xff]  ;;  %v18735_v53 = vcombine.low %v1849_v43, %v1853_v30  ;;  %v18737_v39 = vcombine.low %v1850_v40, %v1854_v22  ;;  %v18780_v43 = vcombine.high %v12584_v15, %v12588_v32  ;;  %v12592_v40 = vld [vmem:[#allocation9 + $0x40] sm:$0xff] }
 0x6d2   :  { %v18746_v13 = vcombine.high %v1858_v49, %v1862_v0  ;;  %v12596_v22 = vld [vmem:[#allocation9 + $0x60] sm:$0xff] }
 0x6d4   :  { %11858 = vmatpush1.bf16.msra.mxu0 %v18687_v54  ;;  %12417 = vmatpush1.bf16.msra.mxu1 %v18689_v55  ;;  %v1866_v54 = vld [vmem:[#allocation6 + $0x3318] sm:$0xff] }
 0x6d5   :  { %11859 = vmatprep.subr.bf16.mxu0 %v18696_v56  ;;  %12418 = vmatprep.subr.bf16.mxu1 %v18698_v57  ;;  %v1870_v55 = vld [vmem:[#allocation6 + $0x3338] sm:$0xff]  ;;  %v18743_v56 = vcombine.low %v1857_v45, %v1861_v48  ;;  %v18745_v57 = vcombine.low %v1858_v49, %v1862_v0  ;;  %v18788_v45 = vcombine.high %v12592_v40, %v12596_v22  ;;  %v12600_v48 = vld [vmem:[#allocation9 + $0x80] sm:$0xff] }
 0x6d6   :  { %v18754_v3 = vcombine.high %v1866_v54, %v1870_v55  ;;  %v12604_v49 = vld [vmem:[#allocation9 + $0xa0] sm:$0xff] }
 0x6d8   :  { %11860 = vmatpush1.bf16.msra.mxu0 %v18695_v4  ;;  %12419 = vmatpush1.bf16.msra.mxu1 %v18697_v19  ;;  %v1874_v4 = vld [vmem:[#allocation6 + $0x3358] sm:$0xff] }
 0x6d9   :  { %11861 = vmatprep.subr.bf16.mxu0 %v18704_v26  ;;  %12420 = vmatprep.subr.bf16.mxu1 %v18706_v7  ;;  %v1878_v19 = vld [vmem:[#allocation6 + $0x3378] sm:$0xff]  ;;  %v18751_v26 = vcombine.low %v1865_v37, %v1869_v51  ;;  %v18753_v7 = vcombine.low %v1866_v54, %v1870_v55  ;;  %v18796_v37 = vcombine.high %v12600_v48, %v12604_v49  ;;  %v12608_v54 = vld [vmem:[#allocation9 + $0xc0] sm:$0xff] }
 0x6da   :  { %v18762_v11 = vcombine.high %v1874_v4, %v1878_v19  ;;  %v12612_v55 = vld [vmem:[#allocation9 + $0xe0] sm:$0xff] }
 0x6dc   :  { %11862 = vmatpush1.bf16.msra.mxu0 %v18703_v17  ;;  %12421 = vmatpush1.bf16.msra.mxu1 %v18705_v12  ;;  %v1882_v17 = vld [vmem:[#allocation6 + $0x3398] sm:$0xff] }
 0x6dd   :  { %11863 = vmatprep.subr.bf16.mxu0 %v18712_v14  ;;  %12422 = vmatprep.subr.bf16.mxu1 %v18714_v23  ;;  %v1886_v12 = vld [vmem:[#allocation6 + $0x33b8] sm:$0xff]  ;;  %v18759_v14 = vcombine.low %v1873_v10, %v1877_v2  ;;  %v18761_v23 = vcombine.low %v1874_v4, %v1878_v19  ;;  %v12616_v2 = vld [vmem:[#allocation9 + $0x100] sm:$0xff]  ;;  %v12617_v19 = vld [vmem:[#allocation9 + $0x108] sm:$0xff] }
 0x6de   :  { %v18770_v59 = vcombine.high %v1882_v17, %v1886_v12  ;;  %v12620_v4 = vld [vmem:[#allocation9 + $0x120] sm:$0xff] }
 0x6e0   :  { %11864 = vmatpush1.bf16.msra.mxu0 %v18711_v18  ;;  %12423 = vmatpush1.bf16.msra.mxu1 %v18713_v21  ;;  %v1890_v18 = vld [vmem:[#allocation6 + $0x33d8] sm:$0xff] }
 0x6e1   :  { %11865 = vmatprep.subr.bf16.mxu0 %v18720_v38  ;;  %12424 = vmatprep.subr.bf16.mxu1 %v18722_v29  ;;  %v1894_v21 = vld [vmem:[#allocation6 + $0x33f8] sm:$0xff]  ;;  %v18767_v38 = vcombine.low %v1881_v9, %v1885_v5  ;;  %v18769_v29 = vcombine.low %v1882_v17, %v1886_v12  ;;  %v12624_v5 = vld [vmem:[#allocation9 + $0x140] sm:$0xff]  ;;  %v12625_v12 = vld [vmem:[#allocation9 + $0x148] sm:$0xff] }
 0x6e2   :  { %v18778_v27 = vcombine.high %v1890_v18, %v1894_v21  ;;  %v12628_v17 = vld [vmem:[#allocation9 + $0x160] sm:$0xff] }
 0x6e4   :  { %11866 = vmatpush1.bf16.msra.mxu0 %v18719_v35  ;;  %12425 = vmatpush1.bf16.msra.mxu1 %v18721_v36  ;;  %v12585_v35 = vld [vmem:[#allocation9 + $0x8] sm:$0xff] }
 0x6e5   :  { %11867 = vmatprep.subr.bf16.mxu0 %v18728_v6  ;;  %12426 = vmatprep.subr.bf16.mxu1 %v18730_v46  ;;  %v12589_v36 = vld [vmem:[#allocation9 + $0x28] sm:$0xff]  ;;  %v18775_v6 = vcombine.low %v1889_v24, %v1893_v33  ;;  %v18777_v46 = vcombine.low %v1890_v18, %v1894_v21  ;;  %v12632_v33 = vld [vmem:[#allocation9 + $0x180] sm:$0xff] }
 0x6e6   :  { %v18782_v30 = vcombine.high %v12585_v35, %v12589_v36  ;;  %v12636_v18 = vld [vmem:[#allocation9 + $0x1a0] sm:$0xff]  ;;  %v12633_v21 = vld [vmem:[#allocation9 + $0x188] sm:$0xff] }
 0x6e8   :  { %11868 = vmatpush1.bf16.msra.mxu0 %v18727_v63  ;;  %12427 = vmatpush1.bf16.msra.mxu1 %v18729_v41  ;;  %v18779_v63 = vcombine.low %v12584_v15, %v12588_v32  ;;  %v12593_v41 = vld [vmem:[#allocation9 + $0x48] sm:$0xff]  ;;  %v12640_v32 = vld [vmem:[#allocation9 + $0x1c0] sm:$0xff] }
 0x6e9   :  { %11869 = vmatprep.subr.bf16.mxu0 %v18736_v42  ;;  %12428 = vmatprep.subr.bf16.mxu1 %v18738_v44  ;;  %v12597_v42 = vld [vmem:[#allocation9 + $0x68] sm:$0xff]  ;;  %v18781_v44 = vcombine.low %v12585_v35, %v12589_v36  ;;  %v12644_v35 = vld [vmem:[#allocation9 + $0x1e0] sm:$0xff] }
 0x6ea   :  { %v18790_v0 = vcombine.high %v12593_v41, %v12597_v42  ;;  %v12641_v36 = vld [vmem:[#allocation9 + $0x1c8] sm:$0xff] }
 0x6ec   :  { %11870 = vmatpush1.bf16.msra.mxu0 %v18735_v53  ;;  %12429 = vmatpush1.bf16.msra.mxu1 %v18737_v39  ;;  %v12601_v53 = vld [vmem:[#allocation9 + $0x88] sm:$0xff] }
 0x6ed   :  { %11871 = vmatprep.subr.bf16.mxu0 %v18744_v50  ;;  %12430 = vmatprep.subr.bf16.mxu1 %v18746_v13  ;;  %v12605_v39 = vld [vmem:[#allocation9 + $0xa8] sm:$0xff]  ;;  %v18787_v50 = vcombine.low %v12592_v40, %v12596_v22  ;;  %v18789_v13 = vcombine.low %v12593_v41, %v12597_v42  ;;  %v12648_v22 = vld [vmem:[#allocation9 + $0x200] sm:$0xff] }
 0x6ee   :  { %v18798_v51 = vcombine.high %v12601_v53, %v12605_v39  ;;  %v12649_v41 = vld [vmem:[#allocation9 + $0x208] sm:$0xff] }
 0x6ef   :  { %v12653_v42 = vld [vmem:[#allocation9 + $0x228] sm:$0xff] }
 0x6f0   :  { %11872 = vmatpush1.bf16.msra.mxu0 %v18743_v56  ;;  %12431 = vmatpush1.bf16.msra.mxu1 %v18745_v57  ;;  %v12609_v56 = vld [vmem:[#allocation9 + $0xc8] sm:$0xff] }
 0x6f1   :  { %11873 = vmatprep.subr.bf16.mxu0 %v18752_v62  ;;  %12432 = vmatprep.subr.bf16.mxu1 %v18754_v3  ;;  %v12613_v57 = vld [vmem:[#allocation9 + $0xe8] sm:$0xff]  ;;  %v18795_v62 = vcombine.low %v12600_v48, %v12604_v49  ;;  %v18804_v3 = vcombine.high %v12608_v54, %v12612_v55  ;;  %v18846_v49 = vcombine.high %v12649_v41, %v12653_v42 }
 0x6f2   :  { %v18806_v10 = vcombine.high %v12609_v56, %v12613_v57 }
 0x6f4   :  { %11874 = vmatpush1.bf16.msra.mxu0 %v18751_v26  ;;  %12433 = vmatpush1.bf16.msra.mxu1 %v18753_v7  ;;  %v12621_v26 = vld [vmem:[#allocation9 + $0x128] sm:$0xff]  ;;  %v18803_v7 = vcombine.low %v12608_v54, %v12612_v55  ;;  %v12664_v55 = vld [vmem:[#allocation9 + $0x280] sm:$0xff] }
 0x6f5   :  { %11875 = vmatprep.subr.bf16.mxu0 %v18760_v8  ;;  %12434 = vmatprep.subr.bf16.mxu1 %v18762_v11  ;;  %v18805_v8 = vcombine.low %v12609_v56, %v12613_v57  ;;  %v18812_v11 = vcombine.high %v12616_v2, %v12620_v4  ;;  %v18814_v9 = vcombine.high %v12617_v19, %v12621_v26  ;;  %v12668_v56 = vld [vmem:[#allocation9 + $0x2a0] sm:$0xff]  ;;  %v12665_v57 = vld [vmem:[#allocation9 + $0x288] sm:$0xff] }
 0x6f8   :  { %11876 = vmatpush1.bf16.msra.mxu0 %v18759_v14  ;;  %12435 = vmatpush1.bf16.msra.mxu1 %v18761_v23  ;;  %v12629_v14 = vld [vmem:[#allocation9 + $0x168] sm:$0xff]  ;;  %v18811_v23 = vcombine.low %v12616_v2, %v12620_v4  ;;  %v12672_v4 = vld [vmem:[#allocation9 + $0x2c0] sm:$0xff] }
 0x6f9   :  { %11877 = vmatprep.subr.bf16.mxu0 %v18768_v28  ;;  %12436 = vmatprep.subr.bf16.mxu1 %v18770_v59  ;;  %v18813_v28 = vcombine.low %v12617_v19, %v12621_v26  ;;  %v18820_v59 = vcombine.high %v12624_v5, %v12628_v17  ;;  %v18822_v24 = vcombine.high %v12625_v12, %v12629_v14  ;;  %v12676_v19 = vld [vmem:[#allocation9 + $0x2e0] sm:$0xff]  ;;  %v12673_v26 = vld [vmem:[#allocation9 + $0x2c8] sm:$0xff] }
 0x6fc   :  { %11878 = vmatpush1.bf16.msra.mxu0 %v18767_v38  ;;  %12437 = vmatpush1.bf16.msra.mxu1 %v18769_v29  ;;  %v12637_v38 = vld [vmem:[#allocation9 + $0x1a8] sm:$0xff]  ;;  %v18819_v29 = vcombine.low %v12624_v5, %v12628_v17  ;;  %v12680_v17 = vld [vmem:[#allocation9 + $0x300] sm:$0xff] }
 0x6fd   :  { %11879 = vmatprep.subr.bf16.mxu0 %v18776_v20  ;;  %12438 = vmatprep.subr.bf16.mxu1 %v18778_v27  ;;  %v18821_v20 = vcombine.low %v12625_v12, %v12629_v14  ;;  %v18828_v27 = vcombine.high %v12632_v33, %v12636_v18  ;;  %v18830_v15 = vcombine.high %v12633_v21, %v12637_v38  ;;  %v12684_v12 = vld [vmem:[#allocation9 + $0x320] sm:$0xff]  ;;  %v12681_v14 = vld [vmem:[#allocation9 + $0x308] sm:$0xff] }
 0x700   :  { %11880 = vmatpush1.bf16.msra.mxu0 %v18775_v6  ;;  %12439 = vmatpush1.bf16.msra.mxu1 %v18777_v46  ;;  %v12645_v6 = vld [vmem:[#allocation9 + $0x1e8] sm:$0xff]  ;;  %v18827_v46 = vcombine.low %v12632_v33, %v12636_v18  ;;  %v12688_v18 = vld [vmem:[#allocation9 + $0x340] sm:$0xff] }
 0x701   :  { %15698 = vmatprep.subr.bf16.mxu0 %v18780_v43  ;;  %15870 = vmatprep.subr.bf16.mxu1 %v18782_v30  ;;  %v18829_v43 = vcombine.low %v12633_v21, %v12637_v38  ;;  %v18836_v30 = vcombine.high %v12640_v32, %v12644_v35  ;;  %v18838_v40 = vcombine.high %v12641_v36, %v12645_v6  ;;  %v12692_v21 = vld [vmem:[#allocation9 + $0x360] sm:$0xff]  ;;  %v12689_v38 = vld [vmem:[#allocation9 + $0x348] sm:$0xff] }
 0x703   :  { %11882 = vmatmul.mubr.bf16.vlgmr.msra.gmra.mrb[4].mxu0 %v20207_v47  ;;  %12441 = vmatmul.mubr.bf16.vlgmr.msra.gmra.mrb[4].mxu1 %v20207_v47  ;;  %v18797_v47 = vcombine.low %v12601_v53, %v12605_v39  ;;  %v12660_v53 = vld [vmem:[#allocation9 + $0x260] sm:$0xff]  ;;  %v12657_v39 = vld [vmem:[#allocation9 + $0x248] sm:$0xff] }
 0x704   :  { %15699 = vmatpush1.bf16.msra.mxu0 %v18779_v63  ;;  %15730 = vmatprep.mubr.bf16.mxu0 %v20243_v58  ;;  %v12652_v63 = vld [vmem:[#allocation9 + $0x220] sm:$0xff] }
 0x705   :  { %15871 = vmatpush1.bf16.msra.mxu1 %v18781_v44  ;;  %15902 = vmatprep.mubr.bf16.mxu1 %v20243_v58  ;;  %v18835_v44 = vcombine.low %v12640_v32, %v12644_v35  ;;  %v18844_v48 = vcombine.high %v12648_v22, %v12652_v63  ;;  %v12696_v35 = vld [vmem:[#allocation9 + $0x380] sm:$0xff] }
 0x706   :  { %15700 = vmatprep.subr.bf16.mxu0 %v18788_v45  ;;  %15872 = vmatprep.subr.bf16.mxu1 %v18790_v0  ;;  %v18837_v45 = vcombine.low %v12641_v36, %v12645_v6  ;;  %v12656_v0 = vld [vmem:[#allocation9 + $0x240] sm:$0xff]  ;;  %v12697_v6 = vld [vmem:[#allocation9 + $0x388] sm:$0xff] }
 0x707   :  { %v12700_v36 = vld [vmem:[#allocation9 + $0x3a0] sm:$0xff] }
 0x708   :  { %15701 = vmatpush1.bf16.msra.mxu0 %v18787_v50  ;;  %v12661_v50 = vld [vmem:[#allocation9 + $0x268] sm:$0xff] }
 0x709   :  { %15873 = vmatpush1.bf16.msra.mxu1 %v18789_v13  ;;  %15702 = vmatprep.subr.bf16.mxu0 %v18796_v37  ;;  %v18843_v13 = vcombine.low %v12648_v22, %v12652_v63  ;;  %v18845_v37 = vcombine.low %v12649_v41, %v12653_v42  ;;  %v18854_v54 = vcombine.high %v12657_v39, %v12661_v50  ;;  %v12704_v63 = vld [vmem:[#allocation9 + $0x3c0] sm:$0xff]  ;;  %v12705_v42 = vld [vmem:[#allocation9 + $0x3c8] sm:$0xff] }
 0x70a   :  { %15874 = vmatprep.subr.bf16.mxu1 %v18798_v51  ;;  %v18852_v51 = vcombine.high %v12656_v0, %v12660_v53  ;;  %v12708_v41 = vld [vmem:[#allocation9 + $0x3e0] sm:$0xff] }
 0x70c   :  { %15703 = vmatpush1.bf16.msra.mxu0 %v18795_v62  ;;  %v12669_v62 = vld [vmem:[#allocation9 + $0x2a8] sm:$0xff] }
 0x70d   :  { %15875 = vmatpush1.bf16.msra.mxu1 %v18797_v47  ;;  %15704 = vmatprep.subr.bf16.mxu0 %v18804_v3  ;;  %v18851_v47 = vcombine.low %v12656_v0, %v12660_v53  ;;  %v18853_v3 = vcombine.low %v12657_v39, %v12661_v50  ;;  %v18862_v2 = vcombine.high %v12665_v57, %v12669_v62  ;;  %v12712_v53 = vld [vmem:[#allocation9 + $0x400] sm:$0xff]  ;;  %v12713_v50 = vld [vmem:[#allocation9 + $0x408] sm:$0xff] }
 0x70e   :  { %15876 = vmatprep.subr.bf16.mxu1 %v18806_v10  ;;  %v18860_v10 = vcombine.high %v12664_v55, %v12668_v56  ;;  %v12716_v39 = vld [vmem:[#allocation9 + $0x420] sm:$0xff] }
 0x710   :  { %15705 = vmatpush1.bf16.msra.mxu0 %v18803_v7  ;;  %v12677_v7 = vld [vmem:[#allocation9 + $0x2e8] sm:$0xff] }
 0x711   :  { %15877 = vmatpush1.bf16.msra.mxu1 %v18805_v8  ;;  %15706 = vmatprep.subr.bf16.mxu0 %v18812_v11  ;;  %v18859_v8 = vcombine.low %v12664_v55, %v12668_v56  ;;  %v18861_v11 = vcombine.low %v12665_v57, %v12669_v62  ;;  %v18870_v5 = vcombine.high %v12673_v26, %v12677_v7  ;;  %v12720_v56 = vld [vmem:[#allocation9 + $0x440] sm:$0xff] }
 0x712   :  { %15878 = vmatprep.subr.bf16.mxu1 %v18814_v9  ;;  %v18868_v9 = vcombine.high %v12672_v4, %v12676_v19  ;;  %v12724_v57 = vld [vmem:[#allocation9 + $0x460] sm:$0xff]  ;;  %v18907_v62 = vcombine.low %v12712_v53, %v12716_v39 }
 0x714   :  { %15707 = vmatpush1.bf16.msra.mxu0 %v18811_v23  ;;  %v12685_v23 = vld [vmem:[#allocation9 + $0x328] sm:$0xff] }
 0x715   :  { %15879 = vmatpush1.bf16.msra.mxu1 %v18813_v28  ;;  %15708 = vmatprep.subr.bf16.mxu0 %v18820_v59  ;;  %v18867_v28 = vcombine.low %v12672_v4, %v12676_v19  ;;  %v18869_v59 = vcombine.low %v12673_v26, %v12677_v7  ;;  %v18878_v33 = vcombine.high %v12681_v14, %v12685_v23  ;;  %v12728_v4 = vld [vmem:[#allocation9 + $0x480] sm:$0xff]  ;;  %v12729_v7 = vld [vmem:[#allocation9 + $0x488] sm:$0xff] }
 0x716   :  { %15880 = vmatprep.subr.bf16.mxu1 %v18822_v24  ;;  %v18876_v24 = vcombine.high %v12680_v17, %v12684_v12  ;;  %v12732_v19 = vld [vmem:[#allocation9 + $0x4a0] sm:$0xff] }
 0x718   :  { %15709 = vmatpush1.bf16.msra.mxu0 %v18819_v29  ;;  %v12693_v29 = vld [vmem:[#allocation9 + $0x368] sm:$0xff] }
 0x719   :  { %15881 = vmatpush1.bf16.msra.mxu1 %v18821_v20  ;;  %15710 = vmatprep.subr.bf16.mxu0 %v18828_v27  ;;  %v18875_v20 = vcombine.low %v12680_v17, %v12684_v12  ;;  %v18877_v27 = vcombine.low %v12681_v14, %v12685_v23  ;;  %v18886_v32 = vcombine.high %v12689_v38, %v12693_v29  ;;  %v12736_v12 = vld [vmem:[#allocation9 + $0x4c0] sm:$0xff]  ;;  %v12737_v23 = vld [vmem:[#allocation9 + $0x4c8] sm:$0xff] }
 0x71a   :  { %15882 = vmatprep.subr.bf16.mxu1 %v18830_v15  ;;  %v18884_v15 = vcombine.high %v12688_v18, %v12692_v21  ;;  %v12740_v14 = vld [vmem:[#allocation9 + $0x4e0] sm:$0xff] }
 0x71c   :  { %15711 = vmatpush1.bf16.msra.mxu0 %v18827_v46  ;;  %v12701_v46 = vld [vmem:[#allocation9 + $0x3a8] sm:$0xff] }
 0x71d   :  { %15883 = vmatpush1.bf16.msra.mxu1 %v18829_v43  ;;  %15712 = vmatprep.subr.bf16.mxu0 %v18836_v30  ;;  %v18883_v43 = vcombine.low %v12688_v18, %v12692_v21  ;;  %v18885_v30 = vcombine.low %v12689_v38, %v12693_v29  ;;  %v18894_v22 = vcombine.high %v12697_v6, %v12701_v46  ;;  %v12744_v21 = vld [vmem:[#allocation9 + $0x500] sm:$0xff]  ;;  %v12745_v29 = vld [vmem:[#allocation9 + $0x508] sm:$0xff] }
 0x71e   :  { %15884 = vmatprep.subr.bf16.mxu1 %v18838_v40  ;;  %v18892_v40 = vcombine.high %v12696_v35, %v12700_v36  ;;  %v12748_v38 = vld [vmem:[#allocation9 + $0x520] sm:$0xff] }
 0x720   :  { %15713 = vmatpush1.bf16.msra.mxu0 %v18835_v44  ;;  %v12709_v44 = vld [vmem:[#allocation9 + $0x3e8] sm:$0xff] }
 0x721   :  { %15885 = vmatpush1.bf16.msra.mxu1 %v18837_v45  ;;  %15714 = vmatprep.subr.bf16.mxu0 %v18844_v48  ;;  %v18891_v45 = vcombine.low %v12696_v35, %v12700_v36  ;;  %v18893_v48 = vcombine.low %v12697_v6, %v12701_v46  ;;  %v18902_v0 = vcombine.high %v12705_v42, %v12709_v44  ;;  %v12752_v36 = vld [vmem:[#allocation9 + $0x540] sm:$0xff]  ;;  %v12753_v46 = vld [vmem:[#allocation9 + $0x548] sm:$0xff] }
 0x722   :  { %15886 = vmatprep.subr.bf16.mxu1 %v18846_v49  ;;  %v18900_v49 = vcombine.high %v12704_v63, %v12708_v41  ;;  %v12756_v6 = vld [vmem:[#allocation9 + $0x560] sm:$0xff] }
 0x724   :  { %15715 = vmatpush1.bf16.msra.mxu0 %v18843_v13  ;;  %v12717_v13 = vld [vmem:[#allocation9 + $0x428] sm:$0xff] }
 0x725   :  { %15887 = vmatpush1.bf16.msra.mxu1 %v18845_v37  ;;  %15716 = vmatprep.subr.bf16.mxu0 %v18852_v51  ;;  %v18899_v37 = vcombine.low %v12704_v63, %v12708_v41  ;;  %v18901_v51 = vcombine.low %v12705_v42, %v12709_v44  ;;  %v18910_v55 = vcombine.high %v12713_v50, %v12717_v13  ;;  %v12760_v41 = vld [vmem:[#allocation9 + $0x580] sm:$0xff]  ;;  %v12761_v44 = vld [vmem:[#allocation9 + $0x588] sm:$0xff] }
 0x726   :  { %15888 = vmatprep.subr.bf16.mxu1 %v18854_v54  ;;  %v18908_v54 = vcombine.high %v12712_v53, %v12716_v39  ;;  %v12764_v42 = vld [vmem:[#allocation9 + $0x5a0] sm:$0xff] }
 0x727   :  { %v12768_v39 = vld [vmem:[#allocation9 + $0x5c0] sm:$0xff] }
 0x728   :  { %15717 = vmatpush1.bf16.msra.mxu0 %v18851_v47  ;;  %v12721_v47 = vld [vmem:[#allocation9 + $0x448] sm:$0xff] }
 0x729   :  { %15889 = vmatpush1.bf16.msra.mxu1 %v18853_v3  ;;  %15718 = vmatprep.subr.bf16.mxu0 %v18860_v10  ;;  %v12725_v3 = vld [vmem:[#allocation9 + $0x468] sm:$0xff]  ;;  %v18909_v10 = vcombine.low %v12713_v50, %v12717_v13  ;;  %v12772_v50 = vld [vmem:[#allocation9 + $0x5e0] sm:$0xff] }
 0x72a   :  { %15890 = vmatprep.subr.bf16.mxu1 %v18862_v2  ;;  %v18916_v2 = vcombine.high %v12720_v56, %v12724_v57  ;;  %v18918_v26 = vcombine.high %v12721_v47, %v12725_v3  ;;  %v12769_v13 = vld [vmem:[#allocation9 + $0x5c8] sm:$0xff] }
 0x72c   :  { %15719 = vmatpush1.bf16.msra.mxu0 %v18859_v8  ;;  %v12733_v8 = vld [vmem:[#allocation9 + $0x4a8] sm:$0xff] }
 0x72d   :  { %15891 = vmatpush1.bf16.msra.mxu1 %v18861_v11  ;;  %15720 = vmatprep.subr.bf16.mxu0 %v18868_v9  ;;  %v18915_v11 = vcombine.low %v12720_v56, %v12724_v57  ;;  %v18917_v9 = vcombine.low %v12721_v47, %v12725_v3  ;;  %v18926_v17 = vcombine.high %v12729_v7, %v12733_v8  ;;  %v12776_v57 = vld [vmem:[#allocation9 + $0x600] sm:$0xff]  ;;  %v12777_v47 = vld [vmem:[#allocation9 + $0x608] sm:$0xff] }
 0x72e   :  { %15892 = vmatprep.subr.bf16.mxu1 %v18870_v5  ;;  %v18924_v5 = vcombine.high %v12728_v4, %v12732_v19  ;;  %v12781_v3 = vld [vmem:[#allocation9 + $0x628] sm:$0xff] }
 0x730   :  { %15721 = vmatpush1.bf16.msra.mxu0 %v18867_v28  ;;  %v12741_v28 = vld [vmem:[#allocation9 + $0x4e8] sm:$0xff] }
 0x731   :  { %15893 = vmatpush1.bf16.msra.mxu1 %v18869_v59  ;;  %15722 = vmatprep.subr.bf16.mxu0 %v18876_v24  ;;  %v18923_v59 = vcombine.low %v12728_v4, %v12732_v19  ;;  %v18925_v24 = vcombine.low %v12729_v7, %v12733_v8  ;;  %v18934_v18 = vcombine.high %v12737_v23, %v12741_v28  ;;  %v12788_v7 = vld [vmem:[#allocation9 + $0x660] sm:$0xff]  ;;  %v12785_v8 = vld [vmem:[#allocation9 + $0x648] sm:$0xff] }
 0x732   :  { %15894 = vmatprep.subr.bf16.mxu1 %v18878_v33  ;;  %v18932_v33 = vcombine.high %v12736_v12, %v12740_v14  ;;  %v18974_v19 = vcombine.high %v12777_v47, %v12781_v3 }
 0x734   :  { %15723 = vmatpush1.bf16.msra.mxu0 %v18875_v20  ;;  %v12749_v20 = vld [vmem:[#allocation9 + $0x528] sm:$0xff] }
 0x735   :  { %15895 = vmatpush1.bf16.msra.mxu1 %v18877_v27  ;;  %15724 = vmatprep.subr.bf16.mxu0 %v18884_v15  ;;  %v18931_v27 = vcombine.low %v12736_v12, %v12740_v14  ;;  %v18933_v15 = vcombine.low %v12737_v23, %v12741_v28  ;;  %v18942_v35 = vcombine.high %v12745_v29, %v12749_v20  ;;  %v12792_v14 = vld [vmem:[#allocation9 + $0x680] sm:$0xff]  ;;  %v12793_v28 = vld [vmem:[#allocation9 + $0x688] sm:$0xff] }
 0x736   :  { %15896 = vmatprep.subr.bf16.mxu1 %v18886_v32  ;;  %v18940_v32 = vcombine.high %v12744_v21, %v12748_v38  ;;  %v12796_v23 = vld [vmem:[#allocation9 + $0x6a0] sm:$0xff] }
 0x738   :  { %15725 = vmatpush1.bf16.msra.mxu0 %v18883_v43  ;;  %v12757_v43 = vld [vmem:[#allocation9 + $0x568] sm:$0xff] }
 0x739   :  { %15897 = vmatpush1.bf16.msra.mxu1 %v18885_v30  ;;  %15726 = vmatprep.subr.bf16.mxu0 %v18892_v40  ;;  %v18939_v30 = vcombine.low %v12744_v21, %v12748_v38  ;;  %v18941_v40 = vcombine.low %v12745_v29, %v12749_v20  ;;  %v18950_v63 = vcombine.high %v12753_v46, %v12757_v43  ;;  %v12800_v38 = vld [vmem:[#allocation9 + $0x6c0] sm:$0xff]  ;;  %v12801_v20 = vld [vmem:[#allocation9 + $0x6c8] sm:$0xff] }
 0x73a   :  { %15898 = vmatprep.subr.bf16.mxu1 %v18894_v22  ;;  %v18948_v22 = vcombine.high %v12752_v36, %v12756_v6  ;;  %v12804_v29 = vld [vmem:[#allocation9 + $0x6e0] sm:$0xff] }
 0x73c   :  { %15727 = vmatpush1.bf16.msra.mxu0 %v18891_v45  ;;  %v12765_v45 = vld [vmem:[#allocation9 + $0x5a8] sm:$0xff] }
 0x73d   :  { %15899 = vmatpush1.bf16.msra.mxu1 %v18893_v48  ;;  %15728 = vmatprep.subr.bf16.mxu0 %v18900_v49  ;;  %v18947_v48 = vcombine.low %v12752_v36, %v12756_v6  ;;  %v18949_v49 = vcombine.low %v12753_v46, %v12757_v43  ;;  %v18958_v53 = vcombine.high %v12761_v44, %v12765_v45  ;;  %v12808_v6 = vld [vmem:[#allocation9 + $0x700] sm:$0xff]  ;;  %v12809_v43 = vld [vmem:[#allocation9 + $0x708] sm:$0xff] }
 0x73e   :  { %15900 = vmatprep.subr.bf16.mxu1 %v18902_v0  ;;  %v18956_v0 = vcombine.high %v12760_v41, %v12764_v42  ;;  %v12812_v46 = vld [vmem:[#allocation9 + $0x720] sm:$0xff] }
 0x740   :  { %15729 = vmatpush1.bf16.msra.mxu0 %v18899_v37  ;;  %v12773_v37 = vld [vmem:[#allocation9 + $0x5e8] sm:$0xff] }
 0x741   :  { %15901 = vmatpush1.bf16.msra.mxu1 %v18901_v51  ;;  %15741 = vmatprep.subr.bf16.mxu0 %v18908_v54  ;;  %v18955_v51 = vcombine.low %v12760_v41, %v12764_v42  ;;  %v18957_v54 = vcombine.low %v12761_v44, %v12765_v45  ;;  %v18966_v56 = vcombine.high %v12769_v13, %v12773_v37  ;;  %v12816_v42 = vld [vmem:[#allocation9 + $0x740] sm:$0xff]  ;;  %v12817_v45 = vld [vmem:[#allocation9 + $0x748] sm:$0xff] }
 0x742   :  { %15913 = vmatprep.subr.bf16.mxu1 %v18910_v55  ;;  %v18964_v55 = vcombine.high %v12768_v39, %v12772_v50  ;;  %v12820_v44 = vld [vmem:[#allocation9 + $0x760] sm:$0xff] }
 0x743   :  { %15731 = vmatmul.mubr.bf16.vlgmr.msra.gmra.mrb[8].mxu0 %v20239_v16 }
 0x744   :  { %15903 = vmatmul.mubr.bf16.vlgmr.msra.gmra.mrb[8].mxu1 %v20239_v16  ;;  %15742 = vmatpush1.bf16.msra.mxu0 %v18907_v62  ;;  %v12780_v62 = vld [vmem:[#allocation9 + $0x620] sm:$0xff] }
 0x745   :  { %15773 = vmatprep.mubr.bf16.mxu0 %v20245_v34  ;;  %15914 = vmatpush1.bf16.msra.mxu1 %v18909_v10  ;;  %v18963_v10 = vcombine.low %v12768_v39, %v12772_v50  ;;  %v18972_v4 = vcombine.high %v12776_v57, %v12780_v62  ;;  %v12824_v50 = vld [vmem:[#allocation9 + $0x780] sm:$0xff] }
 0x746   :  { %15945 = vmatprep.mubr.bf16.mxu1 %v20245_v34  ;;  %15743 = vmatprep.subr.bf16.mxu0 %v18916_v2  ;;  %v18965_v2 = vcombine.low %v12769_v13, %v12773_v37  ;;  %v12828_v13 = vld [vmem:[#allocation9 + $0x7a0] sm:$0xff]  ;;  %v12825_v37 = vld [vmem:[#allocation9 + $0x788] sm:$0xff] }
 0x747   :  { %15915 = vmatprep.subr.bf16.mxu1 %v18918_v26  ;;  %v12784_v26 = vld [vmem:[#allocation9 + $0x640] sm:$0xff] }
 0x748   :  { %15744 = vmatpush1.bf16.msra.mxu0 %v18915_v11  ;;  %v12789_v11 = vld [vmem:[#allocation9 + $0x668] sm:$0xff] }
 0x749   :  { %15916 = vmatpush1.bf16.msra.mxu1 %v18917_v9  ;;  %15745 = vmatprep.subr.bf16.mxu0 %v18924_v5  ;;  %v18971_v9 = vcombine.low %v12776_v57, %v12780_v62  ;;  %v18973_v5 = vcombine.low %v12777_v47, %v12781_v3  ;;  %v18982_v12 = vcombine.high %v12785_v8, %v12789_v11  ;;  %v12832_v62 = vld [vmem:[#allocation9 + $0x7c0] sm:$0xff]  ;;  %v12833_v3 = vld [vmem:[#allocation9 + $0x7c8] sm:$0xff] }
 0x74a   :  { %15917 = vmatprep.subr.bf16.mxu1 %v18926_v17  ;;  %v18980_v17 = vcombine.high %v12784_v26, %v12788_v7  ;;  %v12836_v47 = vld [vmem:[#allocation9 + $0x7e0] sm:$0xff] }
 0x74c   :  { %15746 = vmatpush1.bf16.msra.mxu0 %v18923_v59  ;;  %v12797_v59 = vld [vmem:[#allocation9 + $0x6a8] sm:$0xff] }
 0x74d   :  { %15918 = vmatpush1.bf16.msra.mxu1 %v18925_v24  ;;  %15747 = vmatprep.subr.bf16.mxu0 %v18932_v33  ;;  %v18979_v24 = vcombine.low %v12784_v26, %v12788_v7  ;;  %v18981_v33 = vcombine.low %v12785_v8, %v12789_v11  ;;  %v18990_v21 = vcombine.high %v12793_v28, %v12797_v59  ;;  %v12840_v7 = vld [vmem:[#allocation9 + $0x800] sm:$0xff]  ;;  %v12841_v11 = vld [vmem:[#allocation9 + $0x808] sm:$0xff] }
 0x74e   :  { %15919 = vmatprep.subr.bf16.mxu1 %v18934_v18  ;;  %v18988_v18 = vcombine.high %v12792_v14, %v12796_v23  ;;  %v12844_v8 = vld [vmem:[#allocation9 + $0x820] sm:$0xff] }
 0x750   :  { %15748 = vmatpush1.bf16.msra.mxu0 %v18931_v27  ;;  %v12805_v27 = vld [vmem:[#allocation9 + $0x6e8] sm:$0xff] }
 0x751   :  { %15920 = vmatpush1.bf16.msra.mxu1 %v18933_v15  ;;  %15749 = vmatprep.subr.bf16.mxu0 %v18940_v32  ;;  %v18987_v15 = vcombine.low %v12792_v14, %v12796_v23  ;;  %v18989_v32 = vcombine.low %v12793_v28, %v12797_v59  ;;  %v18998_v36 = vcombine.high %v12801_v20, %v12805_v27  ;;  %v12848_v23 = vld [vmem:[#allocation9 + $0x840] sm:$0xff]  ;;  %v12849_v59 = vld [vmem:[#allocation9 + $0x848] sm:$0xff] }
 0x752   :  { %15921 = vmatprep.subr.bf16.mxu1 %v18942_v35  ;;  %v18996_v35 = vcombine.high %v12800_v38, %v12804_v29  ;;  %v12852_v28 = vld [vmem:[#allocation9 + $0x860] sm:$0xff] }
 0x754   :  { %15750 = vmatpush1.bf16.msra.mxu0 %v18939_v30  ;;  %v12813_v30 = vld [vmem:[#allocation9 + $0x728] sm:$0xff] }
 0x755   :  { %15922 = vmatpush1.bf16.msra.mxu1 %v18941_v40  ;;  %15751 = vmatprep.subr.bf16.mxu0 %v18948_v22  ;;  %v18995_v40 = vcombine.low %v12800_v38, %v12804_v29  ;;  %v18997_v22 = vcombine.low %v12801_v20, %v12805_v27  ;;  %v19006_v41 = vcombine.high %v12809_v43, %v12813_v30  ;;  %v12856_v29 = vld [vmem:[#allocation9 + $0x880] sm:$0xff]  ;;  %v12857_v27 = vld [vmem:[#allocation9 + $0x888] sm:$0xff] }
 0x756   :  { %15923 = vmatprep.subr.bf16.mxu1 %v18950_v63  ;;  %v19004_v63 = vcombine.high %v12808_v6, %v12812_v46  ;;  %v12860_v20 = vld [vmem:[#allocation9 + $0x8a0] sm:$0xff] }
 0x758   :  { %15752 = vmatpush1.bf16.msra.mxu0 %v18947_v48  ;;  %v12821_v48 = vld [vmem:[#allocation9 + $0x768] sm:$0xff] }
 0x759   :  { %15924 = vmatpush1.bf16.msra.mxu1 %v18949_v49  ;;  %15753 = vmatprep.subr.bf16.mxu0 %v18956_v0  ;;  %v19003_v49 = vcombine.low %v12808_v6, %v12812_v46  ;;  %v19005_v0 = vcombine.low %v12809_v43, %v12813_v30  ;;  %v19014_v39 = vcombine.high %v12817_v45, %v12821_v48  ;;  %v12864_v46 = vld [vmem:[#allocation9 + $0x8c0] sm:$0xff]  ;;  %v12865_v30 = vld [vmem:[#allocation9 + $0x8c8] sm:$0xff] }
 0x75a   :  { %15925 = vmatprep.subr.bf16.mxu1 %v18958_v53  ;;  %v19012_v53 = vcombine.high %v12816_v42, %v12820_v44  ;;  %v12868_v43 = vld [vmem:[#allocation9 + $0x8e0] sm:$0xff] }
 0x75c   :  { %15754 = vmatpush1.bf16.msra.mxu0 %v18955_v51  ;;  %v12829_v51 = vld [vmem:[#allocation9 + $0x7a8] sm:$0xff] }
 0x75d   :  { %15926 = vmatpush1.bf16.msra.mxu1 %v18957_v54  ;;  %15755 = vmatprep.subr.bf16.mxu0 %v18964_v55  ;;  %v19011_v54 = vcombine.low %v12816_v42, %v12820_v44  ;;  %v19013_v55 = vcombine.low %v12817_v45, %v12821_v48  ;;  %v19022_v57 = vcombine.high %v12825_v37, %v12829_v51  ;;  %v12872_v44 = vld [vmem:[#allocation9 + $0x900] sm:$0xff]  ;;  %v12873_v48 = vld [vmem:[#allocation9 + $0x908] sm:$0xff] }
 0x75e   :  { %15927 = vmatprep.subr.bf16.mxu1 %v18966_v56  ;;  %v19020_v56 = vcombine.high %v12824_v50, %v12828_v13  ;;  %v12876_v45 = vld [vmem:[#allocation9 + $0x920] sm:$0xff] }
 0x760   :  { %15756 = vmatpush1.bf16.msra.mxu0 %v18963_v10  ;;  %v12837_v10 = vld [vmem:[#allocation9 + $0x7e8] sm:$0xff] }
 0x761   :  { %15928 = vmatpush1.bf16.msra.mxu1 %v18965_v2  ;;  %15757 = vmatprep.subr.bf16.mxu0 %v18972_v4  ;;  %v19019_v2 = vcombine.low %v12824_v50, %v12828_v13  ;;  %v19021_v4 = vcombine.low %v12825_v37, %v12829_v51  ;;  %v19030_v26 = vcombine.high %v12833_v3, %v12837_v10  ;;  %v12880_v13 = vld [vmem:[#allocation9 + $0x940] sm:$0xff]  ;;  %v12881_v51 = vld [vmem:[#allocation9 + $0x948] sm:$0xff] }
 0x762   :  { %15929 = vmatprep.subr.bf16.mxu1 %v18974_v19  ;;  %v19028_v19 = vcombine.high %v12832_v62, %v12836_v47  ;;  %v12884_v37 = vld [vmem:[#allocation9 + $0x960] sm:$0xff] }
 0x764   :  { %15758 = vmatpush1.bf16.msra.mxu0 %v18971_v9  ;;  %v12845_v9 = vld [vmem:[#allocation9 + $0x828] sm:$0xff] }
 0x765   :  { %15930 = vmatpush1.bf16.msra.mxu1 %v18973_v5  ;;  %15759 = vmatprep.subr.bf16.mxu0 %v18980_v17  ;;  %v19027_v5 = vcombine.low %v12832_v62, %v12836_v47  ;;  %v19029_v17 = vcombine.low %v12833_v3, %v12837_v10  ;;  %v19038_v14 = vcombine.high %v12841_v11, %v12845_v9  ;;  %v12888_v47 = vld [vmem:[#allocation9 + $0x980] sm:$0xff]  ;;  %v12889_v10 = vld [vmem:[#allocation9 + $0x988] sm:$0xff] }
 0x766   :  { %15931 = vmatprep.subr.bf16.mxu1 %v18982_v12  ;;  %v19036_v12 = vcombine.high %v12840_v7, %v12844_v8  ;;  %v12892_v3 = vld [vmem:[#allocation9 + $0x9a0] sm:$0xff] }
 0x768   :  { %15760 = vmatpush1.bf16.msra.mxu0 %v18979_v24  ;;  %v12853_v24 = vld [vmem:[#allocation9 + $0x868] sm:$0xff] }
 0x769   :  { %15932 = vmatpush1.bf16.msra.mxu1 %v18981_v33  ;;  %15761 = vmatprep.subr.bf16.mxu0 %v18988_v18  ;;  %v19035_v33 = vcombine.low %v12840_v7, %v12844_v8  ;;  %v19037_v18 = vcombine.low %v12841_v11, %v12845_v9  ;;  %v19046_v38 = vcombine.high %v12849_v59, %v12853_v24  ;;  %v12896_v8 = vld [vmem:[#allocation9 + $0x9c0] sm:$0xff]  ;;  %v12897_v9 = vld [vmem:[#allocation9 + $0x9c8] sm:$0xff] }
 0x76a   :  { %15933 = vmatprep.subr.bf16.mxu1 %v18990_v21  ;;  %v19044_v21 = vcombine.high %v12848_v23, %v12852_v28  ;;  %v12900_v11 = vld [vmem:[#allocation9 + $0x9e0] sm:$0xff] }
 0x76c   :  { %15762 = vmatpush1.bf16.msra.mxu0 %v18987_v15  ;;  %v12861_v15 = vld [vmem:[#allocation9 + $0x8a8] sm:$0xff] }
 0x76d   :  { %15934 = vmatpush1.bf16.msra.mxu1 %v18989_v32  ;;  %15763 = vmatprep.subr.bf16.mxu0 %v18996_v35  ;;  %v19043_v32 = vcombine.low %v12848_v23, %v12852_v28  ;;  %v19045_v35 = vcombine.low %v12849_v59, %v12853_v24  ;;  %v19054_v6 = vcombine.high %v12857_v27, %v12861_v15  ;;  %v12904_v28 = vld [vmem:[#allocation9 + $0xa00] sm:$0xff]  ;;  %v12905_v24 = vld [vmem:[#allocation9 + $0xa08] sm:$0xff] }
 0x76e   :  { %15935 = vmatprep.subr.bf16.mxu1 %v18998_v36  ;;  %v19052_v36 = vcombine.high %v12856_v29, %v12860_v20  ;;  %v12908_v59 = vld [vmem:[#allocation9 + $0xa20] sm:$0xff] }
 0x770   :  { %15764 = vmatpush1.bf16.msra.mxu0 %v18995_v40  ;;  %v12869_v40 = vld [vmem:[#allocation9 + $0x8e8] sm:$0xff] }
 0x771   :  { %15936 = vmatpush1.bf16.msra.mxu1 %v18997_v22  ;;  %15765 = vmatprep.subr.bf16.mxu0 %v19004_v63  ;;  %v19051_v22 = vcombine.low %v12856_v29, %v12860_v20  ;;  %v19053_v63 = vcombine.low %v12857_v27, %v12861_v15  ;;  %v19062_v42 = vcombine.high %v12865_v30, %v12869_v40  ;;  %v12912_v20 = vld [vmem:[#allocation9 + $0xa40] sm:$0xff]  ;;  %v12913_v15 = vld [vmem:[#allocation9 + $0xa48] sm:$0xff] }
 0x772   :  { %15937 = vmatprep.subr.bf16.mxu1 %v19006_v41  ;;  %v19060_v41 = vcombine.high %v12864_v46, %v12868_v43  ;;  %v12916_v27 = vld [vmem:[#allocation9 + $0xa60] sm:$0xff] }
 0x774   :  { %15766 = vmatpush1.bf16.msra.mxu0 %v19003_v49  ;;  %v12877_v49 = vld [vmem:[#allocation9 + $0x928] sm:$0xff] }
 0x775   :  { %15938 = vmatpush1.bf16.msra.mxu1 %v19005_v0  ;;  %15767 = vmatprep.subr.bf16.mxu0 %v19012_v53  ;;  %v19059_v0 = vcombine.low %v12864_v46, %v12868_v43  ;;  %v19061_v53 = vcombine.low %v12865_v30, %v12869_v40  ;;  %v19070_v50 = vcombine.high %v12873_v48, %v12877_v49  ;;  %v12920_v43 = vld [vmem:[#allocation9 + $0xa80] sm:$0xff]  ;;  %v12921_v40 = vld [vmem:[#allocation9 + $0xa88] sm:$0xff] }
 0x776   :  { %15939 = vmatprep.subr.bf16.mxu1 %v19014_v39  ;;  %v19068_v39 = vcombine.high %v12872_v44, %v12876_v45  ;;  %v12924_v30 = vld [vmem:[#allocation9 + $0xaa0] sm:$0xff] }
 0x778   :  { %15768 = vmatpush1.bf16.msra.mxu0 %v19011_v54  ;;  %v12885_v54 = vld [vmem:[#allocation9 + $0x968] sm:$0xff] }
 0x779   :  { %15940 = vmatpush1.bf16.msra.mxu1 %v19013_v55  ;;  %15769 = vmatprep.subr.bf16.mxu0 %v19020_v56  ;;  %v19067_v55 = vcombine.low %v12872_v44, %v12876_v45  ;;  %v19069_v56 = vcombine.low %v12873_v48, %v12877_v49  ;;  %v19078_v62 = vcombine.high %v12881_v51, %v12885_v54  ;;  %v12928_v45 = vld [vmem:[#allocation9 + $0xac0] sm:$0xff]  ;;  %v12929_v49 = vld [vmem:[#allocation9 + $0xac8] sm:$0xff] }
 0x77a   :  { %15941 = vmatprep.subr.bf16.mxu1 %v19022_v57  ;;  %v19076_v57 = vcombine.high %v12880_v13, %v12884_v37  ;;  %v12932_v48 = vld [vmem:[#allocation9 + $0xae0] sm:$0xff] }
 0x77c   :  { %15770 = vmatpush1.bf16.msra.mxu0 %v19019_v2  ;;  %v12893_v2 = vld [vmem:[#allocation9 + $0x9a8] sm:$0xff] }
 0x77d   :  { %15942 = vmatpush1.bf16.msra.mxu1 %v19021_v4  ;;  %15771 = vmatprep.subr.bf16.mxu0 %v19028_v19  ;;  %v19075_v4 = vcombine.low %v12880_v13, %v12884_v37  ;;  %v19077_v19 = vcombine.low %v12881_v51, %v12885_v54  ;;  %v19086_v7 = vcombine.high %v12889_v10, %v12893_v2  ;;  %v12936_v37 = vld [vmem:[#allocation9 + $0xb00] sm:$0xff]  ;;  %v12937_v54 = vld [vmem:[#allocation9 + $0xb08] sm:$0xff] }
 0x77e   :  { %15943 = vmatprep.subr.bf16.mxu1 %v19030_v26  ;;  %v19084_v26 = vcombine.high %v12888_v47, %v12892_v3  ;;  %v12940_v51 = vld [vmem:[#allocation9 + $0xb20] sm:$0xff] }
 0x780   :  { %15772 = vmatpush1.bf16.msra.mxu0 %v19027_v5  ;;  %v12901_v5 = vld [vmem:[#allocation9 + $0x9e8] sm:$0xff] }
 0x781   :  { %15944 = vmatpush1.bf16.msra.mxu1 %v19029_v17  ;;  %15784 = vmatprep.subr.bf16.mxu0 %v19036_v12  ;;  %v19083_v17 = vcombine.low %v12888_v47, %v12892_v3  ;;  %v19085_v12 = vcombine.low %v12889_v10, %v12893_v2  ;;  %v19094_v23 = vcombine.high %v12897_v9, %v12901_v5  ;;  %v12944_v3 = vld [vmem:[#allocation9 + $0xb40] sm:$0xff]  ;;  %v12945_v2 = vld [vmem:[#allocation9 + $0xb48] sm:$0xff] }
 0x782   :  { %15956 = vmatprep.subr.bf16.mxu1 %v19038_v14  ;;  %v19092_v14 = vcombine.high %v12896_v8, %v12900_v11  ;;  %v12948_v10 = vld [vmem:[#allocation9 + $0xb60] sm:$0xff] }
 0x783   :  { %15774 = vmatmul.mubr.bf16.vlgmr.msra.gmra.mrb[8].mxu0 %v20241_v31 }
 0x784   :  { %15946 = vmatmul.mubr.bf16.vlgmr.msra.gmra.mrb[8].mxu1 %v20241_v31  ;;  %15785 = vmatpush1.bf16.msra.mxu0 %v19035_v33  ;;  %v12909_v33 = vld [vmem:[#allocation9 + $0xa28] sm:$0xff] }
 0x785   :  { %15957 = vmatpush1.bf16.msra.mxu1 %v19037_v18  ;;  %15786 = vmatprep.subr.bf16.mxu0 %v19044_v21  ;;  %v19091_v18 = vcombine.low %v12896_v8, %v12900_v11  ;;  %v19093_v21 = vcombine.low %v12897_v9, %v12901_v5  ;;  %v19102_v29 = vcombine.high %v12905_v24, %v12909_v33  ;;  %v12952_v11 = vld [vmem:[#allocation9 + $0xb80] sm:$0xff]  ;;  %v12953_v5 = vld [vmem:[#allocation9 + $0xb88] sm:$0xff] }
 0x786   :  { %15958 = vmatprep.subr.bf16.mxu1 %v19046_v38  ;;  %v19100_v38 = vcombine.high %v12904_v28, %v12908_v59  ;;  %v12956_v9 = vld [vmem:[#allocation9 + $0xba0] sm:$0xff] }
 0x788   :  { %15787 = vmatpush1.bf16.msra.mxu0 %v19043_v32  ;;  %v12917_v32 = vld [vmem:[#allocation9 + $0xa68] sm:$0xff] }
 0x789   :  { %15959 = vmatpush1.bf16.msra.mxu1 %v19045_v35  ;;  %15788 = vmatprep.subr.bf16.mxu0 %v19052_v36  ;;  %v19099_v35 = vcombine.low %v12904_v28, %v12908_v59  ;;  %v19101_v36 = vcombine.low %v12905_v24, %v12909_v33  ;;  %v19110_v46 = vcombine.high %v12913_v15, %v12917_v32  ;;  %v12960_v59 = vld [vmem:[#allocation9 + $0xbc0] sm:$0xff]  ;;  %v12961_v33 = vld [vmem:[#allocation9 + $0xbc8] sm:$0xff] }
 0x78a   :  { %15960 = vmatprep.subr.bf16.mxu1 %v19054_v6  ;;  %v19108_v6 = vcombine.high %v12912_v20, %v12916_v27  ;;  %v12964_v24 = vld [vmem:[#allocation9 + $0xbe0] sm:$0xff] }
 0x78c   :  { %15789 = vmatpush1.bf16.msra.mxu0 %v19051_v22  ;;  %v12925_v22 = vld [vmem:[#allocation9 + $0xaa8] sm:$0xff] }
 0x78d   :  { %15961 = vmatpush1.bf16.msra.mxu1 %v19053_v63  ;;  %15790 = vmatprep.subr.bf16.mxu0 %v19060_v41  ;;  %v19107_v63 = vcombine.low %v12912_v20, %v12916_v27  ;;  %v19109_v41 = vcombine.low %v12913_v15, %v12917_v32  ;;  %v19118_v44 = vcombine.high %v12921_v40, %v12925_v22  ;;  %v20293_v27 = vld [vmem:[#allocation9 + $0xc00] sm:$0xff]  ;;  %v20297_v32 = vld [vmem:[#allocation9 + $0xc08] sm:$0xff] }
 0x78e   :  { %15962 = vmatprep.subr.bf16.mxu1 %v19062_v42  ;;  %v19116_v42 = vcombine.high %v12920_v43, %v12924_v30  ;;  %v20295_v15 = vld [vmem:[#allocation9 + $0xc20] sm:$0xff] }
 0x790   :  { %15791 = vmatpush1.bf16.msra.mxu0 %v19059_v0  ;;  %v12933_v0 = vld [vmem:[#allocation9 + $0xae8] sm:$0xff] }
 0x791   :  { %15963 = vmatpush1.bf16.msra.mxu1 %v19061_v53  ;;  %15792 = vmatprep.subr.bf16.mxu0 %v19068_v39  ;;  %v19115_v53 = vcombine.low %v12920_v43, %v12924_v30  ;;  %v19117_v39 = vcombine.low %v12921_v40, %v12925_v22  ;;  %v19126_v13 = vcombine.high %v12929_v49, %v12933_v0  ;;  %v12522_v30 = vsub.s32 4, %v20225_v25 }
 0x792   :  { %15964 = vmatprep.subr.bf16.mxu1 %v19070_v50  ;;  %v19124_v50 = vcombine.high %v12928_v45, %v12932_v48  ;;  %v12530_v40 = vsub.s32 6, %v20225_v25  ;;  %v12526_v22 = vsub.s32 5, %v20225_v25 }
 0x794   :  { %15793 = vmatpush1.bf16.msra.mxu0 %v19067_v55  ;;  %v12941_v55 = vld [vmem:[#allocation9 + $0xb28] sm:$0xff] }
 0x795   :  { %15965 = vmatpush1.bf16.msra.mxu1 %v19069_v56  ;;  %15794 = vmatprep.subr.bf16.mxu0 %v19076_v57  ;;  %v19123_v56 = vcombine.low %v12928_v45, %v12932_v48  ;;  %v19125_v57 = vcombine.low %v12929_v49, %v12933_v0  ;;  %v19134_v47 = vcombine.high %v12937_v54, %v12941_v55 }
 0x796   :  { %15966 = vmatprep.subr.bf16.mxu1 %v19078_v62  ;;  %v19132_v62 = vcombine.high %v12936_v37, %v12940_v51 }
 0x798   :  { %15795 = vmatpush1.bf16.msra.mxu0 %v19075_v4  ;;  %v12949_v4 = vld [vmem:[#allocation9 + $0xb68] sm:$0xff] }
 0x799   :  { %15967 = vmatpush1.bf16.msra.mxu1 %v19077_v19  ;;  %15796 = vmatprep.subr.bf16.mxu0 %v19084_v26  ;;  %v19131_v19 = vcombine.low %v12936_v37, %v12940_v51  ;;  %v19133_v26 = vcombine.low %v12937_v54, %v12941_v55  ;;  %v19142_v8 = vcombine.high %v12945_v2, %v12949_v4 }
 0x79a   :  { %15968 = vmatprep.subr.bf16.mxu1 %v19086_v7  ;;  %v19140_v7 = vcombine.high %v12944_v3, %v12948_v10 }
 0x79c   :  { %15797 = vmatpush1.bf16.msra.mxu0 %v19083_v17  ;;  %v12957_v17 = vld [vmem:[#allocation9 + $0xba8] sm:$0xff] }
 0x79d   :  { %15969 = vmatpush1.bf16.msra.mxu1 %v19085_v12  ;;  %15798 = vmatprep.subr.bf16.mxu0 %v19092_v14  ;;  %v19139_v12 = vcombine.low %v12944_v3, %v12948_v10  ;;  %v19141_v14 = vcombine.low %v12945_v2, %v12949_v4  ;;  %v19150_v28 = vcombine.high %v12953_v5, %v12957_v17 }
 0x79e   :  { %15970 = vmatprep.subr.bf16.mxu1 %v19094_v23  ;;  %v19148_v23 = vcombine.high %v12952_v11, %v12956_v9 }
 0x7a0   :  { %15799 = vmatpush1.bf16.msra.mxu0 %v19091_v18  ;;  %v12965_v18 = vld [vmem:[#allocation9 + $0xbe8] sm:$0xff] }
 0x7a1   :  { %15971 = vmatpush1.bf16.msra.mxu1 %v19093_v21  ;;  %15800 = vmatprep.subr.bf16.mxu0 %v19100_v38  ;;  %v19147_v21 = vcombine.low %v12952_v11, %v12956_v9  ;;  %v19149_v38 = vcombine.low %v12953_v5, %v12957_v17  ;;  %v19158_v20 = vcombine.high %v12961_v33, %v12965_v18  ;;  %v12976_v11 = vld [vmem:[#allocation9 + $0xc40] sm:$0xff] }
 0x7a2   :  { %15972 = vmatprep.subr.bf16.mxu1 %v19102_v29  ;;  %v19156_v29 = vcombine.high %v12960_v59, %v12964_v24 }
 0x7a4   :  { %15801 = vmatpush1.bf16.msra.mxu0 %v19099_v35  ;;  %v20299_v35 = vld [vmem:[#allocation9 + $0xc28] sm:$0xff] }
 0x7a5   :  { %15973 = vmatpush1.bf16.msra.mxu1 %v19101_v36  ;;  %15802 = vmatprep.subr.bf16.mxu0 %v19108_v6  ;;  %v19155_v36 = vcombine.low %v12960_v59, %v12964_v24  ;;  %v19157_v6 = vcombine.low %v12961_v33, %v12965_v18  ;;  %v19166_v43 = vcombine.high %v20297_v32, %v20299_v35 }
 0x7a6   :  { %15974 = vmatprep.subr.bf16.mxu1 %v19110_v46  ;;  %v19164_v46 = vcombine.high %v20293_v27, %v20295_v15  ;;  %v19163_v24 = vcombine.low %v20293_v27, %v20295_v15  ;;  %v19165_v33 = vcombine.low %v20297_v32, %v20299_v35 }
 0x7a8   :  { %15803 = vmatpush1.bf16.msra.mxu0 %v19107_v63  ;;  %v12534_v63 = vsub.s32 7, %v20225_v25 }
 0x7a9   :  { %15975 = vmatpush1.bf16.msra.mxu1 %v19109_v41  ;;  %15804 = vmatprep.subr.bf16.mxu0 %v19116_v42  ;;  %v19780_v41 = vld [vmem:[#allocation8] sm:$0xff] }
 0x7aa   :  { %15976 = vmatprep.subr.bf16.mxu1 %v19118_v44  ;;  %v12523_v42 = vrot.slane %v19780_v41, %v12522_v30  ;;  %v12531_v44 = vrot.slane %v19780_v41, %v12530_v40  ;;  %v12527_v45 = vrot.slane %v19780_v41, %v12526_v22  ;;  %v12535_v48 = vrot.slane %v19780_v41, %v12534_v63  ;;  %v12993_v41 = vld [vmem:[#allocation9 + $0xcc8] sm:$0xff] }
 0x7ac   :  { %15805 = vmatpush1.bf16.msra.mxu0 %v19115_v53 }
 0x7ad   :  { %15977 = vmatpush1.bf16.msra.mxu1 %v19117_v39  ;;  %15806 = vmatprep.subr.bf16.mxu0 %v19124_v50 }
 0x7ae   :  { %15978 = vmatprep.subr.bf16.mxu1 %v19126_v13 }
 0x7b0   :  { %15807 = vmatpush1.bf16.msra.mxu0 %v19123_v56 }
 0x7b1   :  { %15979 = vmatpush1.bf16.msra.mxu1 %v19125_v57  ;;  %15808 = vmatprep.subr.bf16.mxu0 %v19132_v62 }
 0x7b2   :  { %15980 = vmatprep.subr.bf16.mxu1 %v19134_v47 }
 0x7b4   :  { %15809 = vmatpush1.bf16.msra.mxu0 %v19131_v19 }
 0x7b5   :  { %15981 = vmatpush1.bf16.msra.mxu1 %v19133_v26  ;;  %15810 = vmatprep.subr.bf16.mxu0 %v19140_v7 }
 0x7b6   :  { %15982 = vmatprep.subr.bf16.mxu1 %v19142_v8 }
 0x7b8   :  { %15811 = vmatpush1.bf16.msra.mxu0 %v19139_v12  ;;  %v12980_v12 = vld [vmem:[#allocation9 + $0xc60] sm:$0xff] }
 0x7b9   :  { %15983 = vmatpush1.bf16.msra.mxu1 %v19141_v14  ;;  %15812 = vmatprep.subr.bf16.mxu0 %v19148_v23  ;;  %v12977_v14 = vld [vmem:[#allocation9 + $0xc48] sm:$0xff]  ;;  %v19171_v27 = vcombine.low %v12976_v11, %v12980_v12 }
 0x7ba   :  { %15984 = vmatprep.subr.bf16.mxu1 %v19150_v28  ;;  %v12981_v23 = vld [vmem:[#allocation9 + $0xc68] sm:$0xff] }
 0x7bb   :  { %v19173_v15 = vcombine.low %v12977_v14, %v12981_v23 }
 0x7bc   :  { %15813 = vmatpush1.bf16.msra.mxu0 %v19147_v21  ;;  %v12984_v21 = vld [vmem:[#allocation9 + $0xc80] sm:$0xff] }
 0x7bd   :  { %15985 = vmatpush1.bf16.msra.mxu1 %v19149_v38  ;;  %15814 = vmatprep.subr.bf16.mxu0 %v19156_v29  ;;  %v19172_v38 = vcombine.high %v12976_v11, %v12980_v12  ;;  %v19174_v29 = vcombine.high %v12977_v14, %v12981_v23  ;;  %v13024_v12 = vld [vmem:[#allocation9 + $0xdc0] sm:$0xff]  ;;  %v13025_v23 = vld [vmem:[#allocation9 + $0xdc8] sm:$0xff] }
 0x7be   :  { %15986 = vmatprep.subr.bf16.mxu1 %v19158_v20  ;;  %v12988_v20 = vld [vmem:[#allocation9 + $0xca0] sm:$0xff] }
 0x7bf   :  { %v19180_v32 = vcombine.high %v12984_v21, %v12988_v20  ;;  %v13028_v14 = vld [vmem:[#allocation9 + $0xde0] sm:$0xff] }
 0x7c0   :  { %15815 = vmatpush1.bf16.msra.mxu0 %v19155_v36  ;;  %v12985_v36 = vld [vmem:[#allocation9 + $0xc88] sm:$0xff] }
 0x7c1   :  { %15987 = vmatpush1.bf16.msra.mxu1 %v19157_v6  ;;  %15827 = vmatprep.subr.bf16.mxu0 %v19164_v46  ;;  %v12989_v6 = vld [vmem:[#allocation9 + $0xca8] sm:$0xff]  ;;  %v12992_v46 = vld [vmem:[#allocation9 + $0xcc0] sm:$0xff] }
 0x7c2   :  { %15999 = vmatprep.subr.bf16.mxu1 %v19166_v43  ;;  %v19182_v35 = vcombine.high %v12985_v36, %v12989_v6  ;;  %v12996_v43 = vld [vmem:[#allocation9 + $0xce0] sm:$0xff] }
 0x7d6   :  { %v11883_v49 = vpop.f32.mrb[4].mxu0  ;;  %v12442_v53 = vpop.f32.mrb[4].mxu1 }
 0x7d7   :  { %v12548_v0 = vadd.f32 %v12523_v42, %v11883_v49  ;;  %v11885_v39 = vpop.f32.mrb[5].mxu0  ;;  %v12550_v50 = vadd.f32 %v12531_v44, %v12442_v53  ;;  %v12444_v37 = vpop.f32.mrb[5].mxu1  ;;  %v13004_v53 = vld [vmem:[#allocation9 + $0xd20] sm:$0xff] }
 0x7d8   :  { %v12549_v13 = vadd.f32 %v12527_v45, %v11885_v39  ;;  %v11887_v51 = vpop.f32.mrb[6].mxu0  ;;  %v12551_v54 = vadd.f32 %v12535_v48, %v12444_v37  ;;  %v12446_v56 = vpop.f32.mrb[6].mxu1  ;;  %v13001_v39 = vld [vmem:[#allocation9 + $0xd08] sm:$0xff] }
 0x7d9   :  { %v12556_v55 = vadd.f32 %v12523_v42, %v11887_v51  ;;  %v11889_v57 = vpop.f32.mrb[7].mxu0  ;;  %v12558_v62 = vadd.f32 %v12531_v44, %v12446_v56  ;;  %v12448_v3 = vpop.f32.mrb[7].mxu1  ;;  %v12564_v10 = vmax.f32 %v12548_v0, 0.0  ;;  %v12566_v19 = vmax.f32 %v12550_v50, 0.0  ;;  %v12997_v42 = vld [vmem:[#allocation9 + $0xce8] sm:$0xff]  ;;  %v13000_v0 = vld [vmem:[#allocation9 + $0xd00] sm:$0xff] }
 0x7da   :  { %v12557_v47 = vadd.f32 %v12527_v45, %v11889_v57  ;;  %v12559_v4 = vadd.f32 %v12535_v48, %v12448_v3  ;;  %v12565_v26 = vmax.f32 %v12549_v13, 0.0  ;;  %v12567_v9 = vmax.f32 %v12551_v54, 0.0  ;;  %v13005_v50 = vld [vmem:[#allocation9 + $0xd28] sm:$0xff]  ;;  %v13012_v56 = vld [vmem:[#allocation9 + $0xd60] sm:$0xff] }
 0x7db   :  { %v12572_v2 = vmax.f32 %v12556_v55, 0.0  ;;  %v12574_v7 = vmax.f32 %v12558_v62, 0.0  ;;  %v19179_v44 = vcombine.low %v12984_v21, %v12988_v20  ;;  %v19181_v45 = vcombine.low %v12985_v36, %v12989_v6  ;;  %v13008_v55 = vld [vmem:[#allocation9 + $0xd40] sm:$0xff]  ;;  %v13009_v57 = vld [vmem:[#allocation9 + $0xd48] sm:$0xff] }
 0x7dc   :  { %v12573_v8 = vmax.f32 %v12557_v47, 0.0  ;;  %v12575_v17 = vmax.f32 %v12559_v4, 0.0  ;;  %v19188_v48 = vcombine.high %v12992_v46, %v12996_v43  ;;  %v19190_v49 = vcombine.high %v12993_v41, %v12997_v42  ;;  %v13013_v62 = vld [vmem:[#allocation9 + $0xd68] sm:$0xff]  ;;  %v13016_v4 = vld [vmem:[#allocation9 + $0xd80] sm:$0xff] }
 0x7dd   :  { %v20317_v5 = vpack.c.bf16 %v12572_v2, %v12564_v10  ;;  %v20319_v28 = vpack.c.bf16 %v12574_v7, %v12566_v19  ;;  %v19187_v13 = vcombine.low %v12992_v46, %v12996_v43  ;;  %v19189_v37 = vcombine.low %v12993_v41, %v12997_v42  ;;  %v13020_v19 = vld [vmem:[#allocation9 + $0xda0] sm:$0xff]  ;;  %v13021_v7 = vld [vmem:[#allocation9 + $0xda8] sm:$0xff] }
 0x7de   :  { %v20321_v59 = vpack.c.bf16 %v12573_v8, %v12565_v26  ;;  %v20327_v18 = vpack.c.bf16 %v12575_v17, %v12567_v9  ;;  %v19196_v51 = vcombine.high %v13000_v0, %v13004_v53  ;;  %v19198_v54 = vcombine.high %v13001_v39, %v13005_v50  ;;  %v13017_v26 = vld [vmem:[#allocation9 + $0xd88] sm:$0xff]  ;;  %v13032_v20 = vld [vmem:[#allocation9 + $0xe00] sm:$0xff] }
 0x7df   :  { %v19195_v47 = vcombine.low %v13000_v0, %v13004_v53  ;;  %v19197_v3 = vcombine.low %v13001_v39, %v13005_v50  ;;  %v19204_v10 = vcombine.high %v13008_v55, %v13012_v56  ;;  %v19206_v2 = vcombine.high %v13009_v57, %v13013_v62  ;;  %v13036_v36 = vld [vmem:[#allocation9 + $0xe20] sm:$0xff]  ;;  %v13033_v6 = vld [vmem:[#allocation9 + $0xe08] sm:$0xff] }
 0x7e0   :  { %15816 = vmatprep.mubr.bf16.mxu0 %v20321_v59  ;;  %15988 = vmatprep.mubr.bf16.mxu1 %v20321_v59  ;;  %v19203_v8 = vcombine.low %v13008_v55, %v13012_v56  ;;  %v19205_v11 = vcombine.low %v13009_v57, %v13013_v62  ;;  %v19212_v9 = vcombine.high %v13016_v4, %v13020_v19  ;;  %v13040_v43 = vld [vmem:[#allocation9 + $0xe40] sm:$0xff]  ;;  %v13041_v42 = vld [vmem:[#allocation9 + $0xe48] sm:$0xff] }
 0x7e1   :  { %15817 = vmatmul.mubr.bf16.vlgmr.msra.gmra.mrb[8].mxu0 %v20317_v5  ;;  %15989 = vmatmul.mubr.bf16.vlgmr.msra.gmra.mrb[8].mxu1 %v20317_v5  ;;  %v19214_v17 = vcombine.high %v13017_v26, %v13021_v7  ;;  %v19213_v21 = vcombine.low %v13017_v26, %v13021_v7  ;;  %v13044_v41 = vld [vmem:[#allocation9 + $0xe60] sm:$0xff]  ;;  %v13049_v50 = vld [vmem:[#allocation9 + $0xe88] sm:$0xff] }
 0x7e2   :  { %15828 = vmatpush1.bf16.msra.mxu0 %v19163_v24  ;;  %16000 = vmatpush1.bf16.msra.mxu1 %v19165_v33  ;;  %v13029_v24 = vld [vmem:[#allocation9 + $0xde8] sm:$0xff]  ;;  %v19211_v33 = vcombine.low %v13016_v4, %v13020_v19  ;;  %v13048_v53 = vld [vmem:[#allocation9 + $0xe80] sm:$0xff] }
 0x7e3   :  { %15859 = vmatprep.mubr.bf16.mxu0 %v20327_v18  ;;  %16031 = vmatprep.mubr.bf16.mxu1 %v20327_v18  ;;  %v13052_v39 = vld [vmem:[#allocation9 + $0xea0] sm:$0xff]  ;;  %v13057_v62 = vld [vmem:[#allocation9 + $0xec8] sm:$0xff] }
 0x7e4   :  { %15829 = vmatprep.subr.bf16.mxu0 %v19172_v38  ;;  %16001 = vmatprep.subr.bf16.mxu1 %v19174_v29  ;;  %v19220_v38 = vcombine.high %v13024_v12, %v13028_v14  ;;  %v19222_v29 = vcombine.high %v13025_v23, %v13029_v24  ;;  %v13056_v56 = vld [vmem:[#allocation9 + $0xec0] sm:$0xff]  ;;  %v13065_v7 = vld [vmem:[#allocation9 + $0xf08] sm:$0xff] }
 0x7e5   :  { %v13060_v57 = vld [vmem:[#allocation9 + $0xee0] sm:$0xff] }
 0x7e6   :  { %15830 = vmatpush1.bf16.msra.mxu0 %v19171_v27  ;;  %16002 = vmatpush1.bf16.msra.mxu1 %v19173_v15  ;;  %v13037_v27 = vld [vmem:[#allocation9 + $0xe28] sm:$0xff]  ;;  %v19219_v15 = vcombine.low %v13024_v12, %v13028_v14  ;;  %v13064_v19 = vld [vmem:[#allocation9 + $0xf00] sm:$0xff] }
 0x7e7   :  { %15831 = vmatprep.subr.bf16.mxu0 %v19180_v32  ;;  %16003 = vmatprep.subr.bf16.mxu1 %v19182_v35  ;;  %v19221_v32 = vcombine.low %v13025_v23, %v13029_v24  ;;  %v19228_v35 = vcombine.high %v13032_v20, %v13036_v36  ;;  %v19230_v46 = vcombine.high %v13033_v6, %v13037_v27  ;;  %v13068_v26 = vld [vmem:[#allocation9 + $0xf20] sm:$0xff]  ;;  %v13073_v24 = vld [vmem:[#allocation9 + $0xf48] sm:$0xff] }
 0x7e8   :  { %v13072_v14 = vld [vmem:[#allocation9 + $0xf40] sm:$0xff] }
 0x7e9   :  { %v13076_v23 = vld [vmem:[#allocation9 + $0xf60] sm:$0xff] }
 0x7ea   :  { %15832 = vmatpush1.bf16.msra.mxu0 %v19179_v44  ;;  %16004 = vmatpush1.bf16.msra.mxu1 %v19181_v45  ;;  %v13045_v44 = vld [vmem:[#allocation9 + $0xe68] sm:$0xff]  ;;  %v19227_v45 = vcombine.low %v13032_v20, %v13036_v36  ;;  %v13080_v36 = vld [vmem:[#allocation9 + $0xf80] sm:$0xff] }
 0x7eb   :  { %15833 = vmatprep.subr.bf16.mxu0 %v19188_v48  ;;  %16005 = vmatprep.subr.bf16.mxu1 %v19190_v49  ;;  %v19229_v48 = vcombine.low %v13033_v6, %v13037_v27  ;;  %v19236_v49 = vcombine.high %v13040_v43, %v13044_v41  ;;  %v19238_v0 = vcombine.high %v13041_v42, %v13045_v44  ;;  %v13084_v6 = vld [vmem:[#allocation9 + $0xfa0] sm:$0xff]  ;;  %v13081_v27 = vld [vmem:[#allocation9 + $0xf88] sm:$0xff] }
 0x7ee   :  { %15834 = vmatpush1.bf16.msra.mxu0 %v19187_v13  ;;  %16006 = vmatpush1.bf16.msra.mxu1 %v19189_v37  ;;  %v13053_v13 = vld [vmem:[#allocation9 + $0xea8] sm:$0xff]  ;;  %v19235_v37 = vcombine.low %v13040_v43, %v13044_v41  ;;  %v13088_v41 = vld [vmem:[#allocation9 + $0xfc0] sm:$0xff] }
 0x7ef   :  { %15835 = vmatprep.subr.bf16.mxu0 %v19196_v51  ;;  %16007 = vmatprep.subr.bf16.mxu1 %v19198_v54  ;;  %v19237_v51 = vcombine.low %v13041_v42, %v13045_v44  ;;  %v19244_v54 = vcombine.high %v13048_v53, %v13052_v39  ;;  %v19246_v55 = vcombine.high %v13049_v50, %v13053_v13  ;;  %v13092_v42 = vld [vmem:[#allocation9 + $0xfe0] sm:$0xff]  ;;  %v13089_v44 = vld [vmem:[#allocation9 + $0xfc8] sm:$0xff] }
 0x7f2   :  { %15836 = vmatpush1.bf16.msra.mxu0 %v19195_v47  ;;  %16008 = vmatpush1.bf16.msra.mxu1 %v19197_v3  ;;  %v13061_v47 = vld [vmem:[#allocation9 + $0xee8] sm:$0xff]  ;;  %v19243_v3 = vcombine.low %v13048_v53, %v13052_v39  ;;  %v12586_v39 = vld [vmem:[#allocation9 + $0x10] sm:$0xff] }
 0x7f3   :  { %15837 = vmatprep.subr.bf16.mxu0 %v19204_v10  ;;  %16009 = vmatprep.subr.bf16.mxu1 %v19206_v2  ;;  %v19245_v10 = vcombine.low %v13049_v50, %v13053_v13  ;;  %v19252_v2 = vcombine.high %v13056_v56, %v13060_v57  ;;  %v19254_v4 = vcombine.high %v13057_v62, %v13061_v47  ;;  %v12590_v50 = vld [vmem:[#allocation9 + $0x30] sm:$0xff]  ;;  %v12587_v13 = vld [vmem:[#allocation9 + $0x18] sm:$0xff] }
 0x7f6   :  { %15838 = vmatpush1.bf16.msra.mxu0 %v19203_v8  ;;  %16010 = vmatpush1.bf16.msra.mxu1 %v19205_v11  ;;  %v13069_v8 = vld [vmem:[#allocation9 + $0xf28] sm:$0xff]  ;;  %v19251_v11 = vcombine.low %v13056_v56, %v13060_v57  ;;  %v12594_v57 = vld [vmem:[#allocation9 + $0x50] sm:$0xff] }
 0x7f7   :  { %15839 = vmatprep.subr.bf16.mxu0 %v19212_v9  ;;  %16011 = vmatprep.subr.bf16.mxu1 %v19214_v17  ;;  %v19253_v9 = vcombine.low %v13057_v62, %v13061_v47  ;;  %v19260_v17 = vcombine.high %v13064_v19, %v13068_v26  ;;  %v19262_v12 = vcombine.high %v13065_v7, %v13069_v8  ;;  %v12598_v62 = vld [vmem:[#allocation9 + $0x70] sm:$0xff]  ;;  %v12595_v47 = vld [vmem:[#allocation9 + $0x58] sm:$0xff] }
 0x7fa   :  { %15840 = vmatpush1.bf16.msra.mxu0 %v19211_v33  ;;  %16012 = vmatpush1.bf16.msra.mxu1 %v19213_v21  ;;  %v13077_v33 = vld [vmem:[#allocation9 + $0xf68] sm:$0xff]  ;;  %v19259_v21 = vcombine.low %v13064_v19, %v13068_v26  ;;  %v12602_v26 = vld [vmem:[#allocation9 + $0x90] sm:$0xff] }
 0x7fb   :  { %15841 = vmatprep.subr.bf16.mxu0 %v19220_v38  ;;  %16013 = vmatprep.subr.bf16.mxu1 %v19222_v29  ;;  %v19261_v38 = vcombine.low %v13065_v7, %v13069_v8  ;;  %v19268_v29 = vcombine.high %v13072_v14, %v13076_v23  ;;  %v19270_v20 = vcombine.high %v13073_v24, %v13077_v33  ;;  %v12606_v7 = vld [vmem:[#allocation9 + $0xb0] sm:$0xff]  ;;  %v12603_v8 = vld [vmem:[#allocation9 + $0x98] sm:$0xff] }
 0x7fe   :  { %15842 = vmatpush1.bf16.msra.mxu0 %v19219_v15  ;;  %16014 = vmatpush1.bf16.msra.mxu1 %v19221_v32  ;;  %v13085_v15 = vld [vmem:[#allocation9 + $0xfa8] sm:$0xff]  ;;  %v19267_v32 = vcombine.low %v13072_v14, %v13076_v23  ;;  %v12610_v23 = vld [vmem:[#allocation9 + $0xd0] sm:$0xff] }
 0x7ff   :  { %15843 = vmatprep.subr.bf16.mxu0 %v19228_v35  ;;  %16015 = vmatprep.subr.bf16.mxu1 %v19230_v46  ;;  %v19269_v35 = vcombine.low %v13073_v24, %v13077_v33  ;;  %v19276_v46 = vcombine.high %v13080_v36, %v13084_v6  ;;  %v19278_v43 = vcombine.high %v13081_v27, %v13085_v15  ;;  %v12614_v24 = vld [vmem:[#allocation9 + $0xf0] sm:$0xff]  ;;  %v12611_v33 = vld [vmem:[#allocation9 + $0xd8] sm:$0xff] }
 0x802   :  { %15844 = vmatpush1.bf16.msra.mxu0 %v19227_v45  ;;  %16016 = vmatpush1.bf16.msra.mxu1 %v19229_v48  ;;  %v13093_v45 = vld [vmem:[#allocation9 + $0xfe8] sm:$0xff]  ;;  %v19275_v48 = vcombine.low %v13080_v36, %v13084_v6  ;;  %v12618_v6 = vld [vmem:[#allocation9 + $0x110] sm:$0xff] }
 0x803   :  { %15845 = vmatprep.subr.bf16.mxu0 %v19236_v49  ;;  %16017 = vmatprep.subr.bf16.mxu1 %v19238_v0  ;;  %v19277_v49 = vcombine.low %v13081_v27, %v13085_v15  ;;  %v19284_v0 = vcombine.high %v13088_v41, %v13092_v42  ;;  %v19286_v53 = vcombine.high %v13089_v44, %v13093_v45  ;;  %v12622_v27 = vld [vmem:[#allocation9 + $0x130] sm:$0xff]  ;;  %v12623_v15 = vld [vmem:[#allocation9 + $0x138] sm:$0xff] }
 0x806   :  { %15846 = vmatpush1.bf16.msra.mxu0 %v19235_v37  ;;  %16018 = vmatpush1.bf16.msra.mxu1 %v19237_v51  ;;  %v12591_v37 = vld [vmem:[#allocation9 + $0x38] sm:$0xff]  ;;  %v19283_v51 = vcombine.low %v13088_v41, %v13092_v42  ;;  %v12626_v41 = vld [vmem:[#allocation9 + $0x150] sm:$0xff] }
 0x807   :  { %15847 = vmatprep.subr.bf16.mxu0 %v19244_v54  ;;  %16019 = vmatprep.subr.bf16.mxu1 %v19246_v55  ;;  %v19285_v54 = vcombine.low %v13089_v44, %v13093_v45  ;;  %v18784_v55 = vcombine.high %v12586_v39, %v12590_v50  ;;  %v18786_v56 = vcombine.high %v12587_v13, %v12591_v37  ;;  %v12630_v42 = vld [vmem:[#allocation9 + $0x170] sm:$0xff]  ;;  %v12627_v44 = vld [vmem:[#allocation9 + $0x158] sm:$0xff] }
 0x808   :  { %v12631_v45 = vld [vmem:[#allocation9 + $0x178] sm:$0xff] }
 0x80a   :  { %15848 = vmatpush1.bf16.msra.mxu0 %v19243_v3  ;;  %16020 = vmatpush1.bf16.msra.mxu1 %v19245_v10  ;;  %v12599_v3 = vld [vmem:[#allocation9 + $0x78] sm:$0xff]  ;;  %v18783_v10 = vcombine.low %v12586_v39, %v12590_v50  ;;  %v12634_v39 = vld [vmem:[#allocation9 + $0x190] sm:$0xff] }
 0x80b   :  { %15849 = vmatprep.subr.bf16.mxu0 %v19252_v2  ;;  %16021 = vmatprep.subr.bf16.mxu1 %v19254_v4  ;;  %v18785_v2 = vcombine.low %v12587_v13, %v12591_v37  ;;  %v18792_v4 = vcombine.high %v12594_v57, %v12598_v62  ;;  %v18794_v19 = vcombine.high %v12595_v47, %v12599_v3  ;;  %v12638_v50 = vld [vmem:[#allocation9 + $0x1b0] sm:$0xff]  ;;  %v12635_v13 = vld [vmem:[#allocation9 + $0x198] sm:$0xff] }
 0x80c   :  { %v12639_v37 = vld [vmem:[#allocation9 + $0x1b8] sm:$0xff] }
 0x80e   :  { %15850 = vmatpush1.bf16.msra.mxu0 %v19251_v11  ;;  %16022 = vmatpush1.bf16.msra.mxu1 %v19253_v9  ;;  %v12607_v11 = vld [vmem:[#allocation9 + $0xb8] sm:$0xff]  ;;  %v18791_v9 = vcombine.low %v12594_v57, %v12598_v62  ;;  %v12642_v57 = vld [vmem:[#allocation9 + $0x1d0] sm:$0xff] }
 0x80f   :  { %15851 = vmatprep.subr.bf16.mxu0 %v19260_v17  ;;  %16023 = vmatprep.subr.bf16.mxu1 %v19262_v12  ;;  %v18793_v17 = vcombine.low %v12595_v47, %v12599_v3  ;;  %v18800_v12 = vcombine.high %v12602_v26, %v12606_v7  ;;  %v18802_v14 = vcombine.high %v12603_v8, %v12607_v11  ;;  %v12646_v62 = vld [vmem:[#allocation9 + $0x1f0] sm:$0xff]  ;;  %v12643_v47 = vld [vmem:[#allocation9 + $0x1d8] sm:$0xff] }
 0x810   :  { %v12647_v3 = vld [vmem:[#allocation9 + $0x1f8] sm:$0xff] }
 0x812   :  { %15852 = vmatpush1.bf16.msra.mxu0 %v19259_v21  ;;  %16024 = vmatpush1.bf16.msra.mxu1 %v19261_v38  ;;  %v12615_v21 = vld [vmem:[#allocation9 + $0xf8] sm:$0xff]  ;;  %v18799_v38 = vcombine.low %v12602_v26, %v12606_v7  ;;  %v12650_v26 = vld [vmem:[#allocation9 + $0x210] sm:$0xff] }
 0x813   :  { %15853 = vmatprep.subr.bf16.mxu0 %v19268_v29  ;;  %16025 = vmatprep.subr.bf16.mxu1 %v19270_v20  ;;  %v18801_v29 = vcombine.low %v12603_v8, %v12607_v11  ;;  %v18808_v20 = vcombine.high %v12610_v23, %v12614_v24  ;;  %v18810_v36 = vcombine.high %v12611_v33, %v12615_v21  ;;  %v12654_v7 = vld [vmem:[#allocation9 + $0x230] sm:$0xff]  ;;  %v12651_v8 = vld [vmem:[#allocation9 + $0x218] sm:$0xff] }
 0x814   :  { %v12655_v11 = vld [vmem:[#allocation9 + $0x238] sm:$0xff] }
 0x816   :  { %15854 = vmatpush1.bf16.msra.mxu0 %v19267_v32  ;;  %16026 = vmatpush1.bf16.msra.mxu1 %v19269_v35  ;;  %v18807_v32 = vcombine.low %v12610_v23, %v12614_v24  ;;  %v18809_v35 = vcombine.low %v12611_v33, %v12615_v21  ;;  %v12658_v23 = vld [vmem:[#allocation9 + $0x250] sm:$0xff]  ;;  %v12659_v33 = vld [vmem:[#allocation9 + $0x258] sm:$0xff] }
 0x817   :  { %15855 = vmatprep.subr.bf16.mxu0 %v19276_v46  ;;  %16027 = vmatprep.subr.bf16.mxu1 %v19278_v43  ;;  %v18816_v46 = vcombine.high %v12618_v6, %v12622_v27  ;;  %v12662_v24 = vld [vmem:[#allocation9 + $0x270] sm:$0xff]  ;;  %v12663_v21 = vld [vmem:[#allocation9 + $0x278] sm:$0xff] }
 0x81a   :  { %15856 = vmatpush1.bf16.msra.mxu0 %v19275_v48  ;;  %16028 = vmatpush1.bf16.msra.mxu1 %v19277_v49  ;;  %v18815_v48 = vcombine.low %v12618_v6, %v12622_v27  ;;  %v12666_v6 = vld [vmem:[#allocation9 + $0x290] sm:$0xff] }
 0x81b   :  { %15857 = vmatprep.subr.bf16.mxu0 %v19284_v0  ;;  %16029 = vmatprep.subr.bf16.mxu1 %v19286_v53  ;;  %v18824_v0 = vcombine.high %v12626_v41, %v12630_v42  ;;  %v18826_v53 = vcombine.high %v12627_v44, %v12631_v45  ;;  %v12670_v27 = vld [vmem:[#allocation9 + $0x2b0] sm:$0xff] }
 0x81e   :  { %15858 = vmatpush1.bf16.msra.mxu0 %v19283_v51  ;;  %16030 = vmatpush1.bf16.msra.mxu1 %v19285_v54  ;;  %v18823_v51 = vcombine.low %v12626_v41, %v12630_v42  ;;  %v18825_v54 = vcombine.low %v12627_v44, %v12631_v45  ;;  %v12674_v41 = vld [vmem:[#allocation9 + $0x2d0] sm:$0xff]  ;;  %v12675_v44 = vld [vmem:[#allocation9 + $0x2d8] sm:$0xff] }
 0x81f   :  { %16042 = vmatprep.subr.bf16.mxu0 %v18784_v55  ;;  %16214 = vmatprep.subr.bf16.mxu1 %v18786_v56  ;;  %v18832_v55 = vcombine.high %v12634_v39, %v12638_v50  ;;  %v18834_v56 = vcombine.high %v12635_v13, %v12639_v37  ;;  %v12678_v42 = vld [vmem:[#allocation9 + $0x2f0] sm:$0xff]  ;;  %v12679_v45 = vld [vmem:[#allocation9 + $0x2f8] sm:$0xff] }
 0x821   :  { %15860 = vmatmul.mubr.bf16.vlgmr.msra.gmra.mrb[8].mxu0 %v20319_v28  ;;  %16032 = vmatmul.mubr.bf16.vlgmr.msra.gmra.mrb[8].mxu1 %v20319_v28 }
 0x822   :  { %16043 = vmatpush1.bf16.msra.mxu0 %v18783_v10  ;;  %16074 = vmatprep.mubr.bf16.mxu0 %v20243_v58  ;;  %v18831_v10 = vcombine.low %v12634_v39, %v12638_v50  ;;  %v12682_v39 = vld [vmem:[#allocation9 + $0x310] sm:$0xff] }
 0x823   :  { %16215 = vmatpush1.bf16.msra.mxu1 %v18785_v2  ;;  %16246 = vmatprep.mubr.bf16.mxu1 %v20243_v58  ;;  %v12619_v58 = vld [vmem:[#allocation9 + $0x118] sm:$0xff]  ;;  %v18833_v2 = vcombine.low %v12635_v13, %v12639_v37  ;;  %v12686_v50 = vld [vmem:[#allocation9 + $0x330] sm:$0xff] }
 0x824   :  { %16044 = vmatprep.subr.bf16.mxu0 %v18792_v4  ;;  %16216 = vmatprep.subr.bf16.mxu1 %v18794_v19  ;;  %v18818_v43 = vcombine.high %v12619_v58, %v12623_v15  ;;  %v18817_v49 = vcombine.low %v12619_v58, %v12623_v15  ;;  %v18840_v4 = vcombine.high %v12642_v57, %v12646_v62  ;;  %v12667_v58 = vld [vmem:[#allocation9 + $0x298] sm:$0xff] }
 0x825   :  { %v18842_v19 = vcombine.high %v12643_v47, %v12647_v3  ;;  %v12671_v15 = vld [vmem:[#allocation9 + $0x2b8] sm:$0xff] }
 0x826   :  { %16045 = vmatpush1.bf16.msra.mxu0 %v18791_v9  ;;  %v18839_v9 = vcombine.low %v12642_v57, %v12646_v62  ;;  %v12683_v13 = vld [vmem:[#allocation9 + $0x318] sm:$0xff]  ;;  %v12690_v57 = vld [vmem:[#allocation9 + $0x350] sm:$0xff] }
 0x827   :  { %16217 = vmatpush1.bf16.msra.mxu1 %v18793_v17  ;;  %16046 = vmatprep.subr.bf16.mxu0 %v18800_v12  ;;  %v18841_v17 = vcombine.low %v12643_v47, %v12647_v3  ;;  %v18848_v12 = vcombine.high %v12650_v26, %v12654_v7  ;;  %v12687_v37 = vld [vmem:[#allocation9 + $0x338] sm:$0xff]  ;;  %v12694_v62 = vld [vmem:[#allocation9 + $0x370] sm:$0xff] }
 0x828   :  { %16218 = vmatprep.subr.bf16.mxu1 %v18802_v14  ;;  %v18850_v14 = vcombine.high %v12651_v8, %v12655_v11  ;;  %v12691_v47 = vld [vmem:[#allocation9 + $0x358] sm:$0xff] }
 0x829   :  { %v12695_v3 = vld [vmem:[#allocation9 + $0x378] sm:$0xff] }
 0x82a   :  { %16047 = vmatpush1.bf16.msra.mxu0 %v18799_v38  ;;  %v18847_v38 = vcombine.low %v12650_v26, %v12654_v7  ;;  %v12698_v26 = vld [vmem:[#allocation9 + $0x390] sm:$0xff] }
 0x82b   :  { %16219 = vmatpush1.bf16.msra.mxu1 %v18801_v29  ;;  %16048 = vmatprep.subr.bf16.mxu0 %v18808_v20  ;;  %v18849_v29 = vcombine.low %v12651_v8, %v12655_v11  ;;  %v18856_v20 = vcombine.high %v12658_v23, %v12662_v24  ;;  %v12702_v7 = vld [vmem:[#allocation9 + $0x3b0] sm:$0xff]  ;;  %v12699_v8 = vld [vmem:[#allocation9 + $0x398] sm:$0xff] }
 0x82c   :  { %16220 = vmatprep.subr.bf16.mxu1 %v18810_v36  ;;  %v18858_v36 = vcombine.high %v12659_v33, %v12663_v21  ;;  %v12703_v11 = vld [vmem:[#allocation9 + $0x3b8] sm:$0xff] }
 0x82e   :  { %16049 = vmatpush1.bf16.msra.mxu0 %v18807_v32  ;;  %v18855_v32 = vcombine.low %v12658_v23, %v12662_v24  ;;  %v12706_v23 = vld [vmem:[#allocation9 + $0x3d0] sm:$0xff] }
 0x82f   :  { %16221 = vmatpush1.bf16.msra.mxu1 %v18809_v35  ;;  %16050 = vmatprep.subr.bf16.mxu0 %v18816_v46  ;;  %v18857_v35 = vcombine.low %v12659_v33, %v12663_v21  ;;  %v18864_v46 = vcombine.high %v12666_v6, %v12670_v27  ;;  %v12710_v24 = vld [vmem:[#allocation9 + $0x3f0] sm:$0xff]  ;;  %v12707_v33 = vld [vmem:[#allocation9 + $0x3d8] sm:$0xff] }
 0x830   :  { %16222 = vmatprep.subr.bf16.mxu1 %v18818_v43  ;;  %v18866_v43 = vcombine.high %v12667_v58, %v12671_v15  ;;  %v12711_v21 = vld [vmem:[#allocation9 + $0x3f8] sm:$0xff] }
 0x832   :  { %16051 = vmatpush1.bf16.msra.mxu0 %v18815_v48  ;;  %v18863_v48 = vcombine.low %v12666_v6, %v12670_v27  ;;  %v12714_v6 = vld [vmem:[#allocation9 + $0x410] sm:$0xff] }
 0x833   :  { %16223 = vmatpush1.bf16.msra.mxu1 %v18817_v49  ;;  %16052 = vmatprep.subr.bf16.mxu0 %v18824_v0  ;;  %v18865_v49 = vcombine.low %v12667_v58, %v12671_v15  ;;  %v18872_v0 = vcombine.high %v12674_v41, %v12678_v42  ;;  %v12718_v27 = vld [vmem:[#allocation9 + $0x430] sm:$0xff]  ;;  %v12715_v58 = vld [vmem:[#allocation9 + $0x418] sm:$0xff] }
 0x834   :  { %16224 = vmatprep.subr.bf16.mxu1 %v18826_v53  ;;  %v18874_v53 = vcombine.high %v12675_v44, %v12679_v45  ;;  %v12719_v15 = vld [vmem:[#allocation9 + $0x438] sm:$0xff] }
 0x836   :  { %16053 = vmatpush1.bf16.msra.mxu0 %v18823_v51  ;;  %v18871_v51 = vcombine.low %v12674_v41, %v12678_v42  ;;  %v12722_v41 = vld [vmem:[#allocation9 + $0x450] sm:$0xff] }
 0x837   :  { %16225 = vmatpush1.bf16.msra.mxu1 %v18825_v54  ;;  %16054 = vmatprep.subr.bf16.mxu0 %v18832_v55  ;;  %v18873_v54 = vcombine.low %v12675_v44, %v12679_v45  ;;  %v18880_v55 = vcombine.high %v12682_v39, %v12686_v50  ;;  %v12726_v42 = vld [vmem:[#allocation9 + $0x470] sm:$0xff]  ;;  %v18911_v44 = vcombine.low %v12714_v6, %v12718_v27  ;;  %v12723_v45 = vld [vmem:[#allocation9 + $0x458] sm:$0xff] }
 0x838   :  { %16226 = vmatprep.subr.bf16.mxu1 %v18834_v56  ;;  %v18882_v56 = vcombine.high %v12683_v13, %v12687_v37 }
 0x83a   :  { %16055 = vmatpush1.bf16.msra.mxu0 %v18831_v10  ;;  %v18879_v10 = vcombine.low %v12682_v39, %v12686_v50  ;;  %v12734_v39 = vld [vmem:[#allocation9 + $0x4b0] sm:$0xff] }
 0x83b   :  { %16227 = vmatpush1.bf16.msra.mxu1 %v18833_v2  ;;  %16056 = vmatprep.subr.bf16.mxu0 %v18840_v4  ;;  %v18881_v2 = vcombine.low %v12683_v13, %v12687_v37  ;;  %v18888_v4 = vcombine.high %v12690_v57, %v12694_v62  ;;  %v12731_v13 = vld [vmem:[#allocation9 + $0x498] sm:$0xff] }
 0x83c   :  { %16228 = vmatprep.subr.bf16.mxu1 %v18842_v19  ;;  %v18890_v19 = vcombine.high %v12691_v47, %v12695_v3  ;;  %v12735_v37 = vld [vmem:[#allocation9 + $0x4b8] sm:$0xff] }
 0x83e   :  { %16057 = vmatpush1.bf16.msra.mxu0 %v18839_v9  ;;  %v18887_v9 = vcombine.low %v12690_v57, %v12694_v62  ;;  %v12738_v57 = vld [vmem:[#allocation9 + $0x4d0] sm:$0xff] }
 0x83f   :  { %16229 = vmatpush1.bf16.msra.mxu1 %v18841_v17  ;;  %16058 = vmatprep.subr.bf16.mxu0 %v18848_v12  ;;  %v18889_v17 = vcombine.low %v12691_v47, %v12695_v3  ;;  %v18896_v12 = vcombine.high %v12698_v26, %v12702_v7  ;;  %v12742_v62 = vld [vmem:[#allocation9 + $0x4f0] sm:$0xff]  ;;  %v12739_v47 = vld [vmem:[#allocation9 + $0x4d8] sm:$0xff] }
 0x840   :  { %16230 = vmatprep.subr.bf16.mxu1 %v18850_v14  ;;  %v18898_v14 = vcombine.high %v12699_v8, %v12703_v11  ;;  %v12743_v3 = vld [vmem:[#allocation9 + $0x4f8] sm:$0xff] }
 0x842   :  { %16059 = vmatpush1.bf16.msra.mxu0 %v18847_v38  ;;  %v18895_v38 = vcombine.low %v12698_v26, %v12702_v7  ;;  %v12750_v26 = vld [vmem:[#allocation9 + $0x530] sm:$0xff]  ;;  %v12747_v7 = vld [vmem:[#allocation9 + $0x518] sm:$0xff] }
 0x843   :  { %16231 = vmatpush1.bf16.msra.mxu1 %v18849_v29  ;;  %16060 = vmatprep.subr.bf16.mxu0 %v18856_v20  ;;  %v18897_v29 = vcombine.low %v12699_v8, %v12703_v11  ;;  %v18904_v20 = vcombine.high %v12706_v23, %v12710_v24  ;;  %v12751_v8 = vld [vmem:[#allocation9 + $0x538] sm:$0xff]  ;;  %v18937_v11 = vcombine.low %v12739_v47, %v12743_v3 }
 0x844   :  { %16232 = vmatprep.subr.bf16.mxu1 %v18858_v36  ;;  %v18906_v36 = vcombine.high %v12707_v33, %v12711_v21 }
 0x846   :  { %16061 = vmatpush1.bf16.msra.mxu0 %v18855_v32  ;;  %v18903_v32 = vcombine.low %v12706_v23, %v12710_v24  ;;  %v12755_v23 = vld [vmem:[#allocation9 + $0x558] sm:$0xff] }
 0x847   :  { %16233 = vmatpush1.bf16.msra.mxu1 %v18857_v35  ;;  %16062 = vmatprep.subr.bf16.mxu0 %v18864_v46  ;;  %v18905_v35 = vcombine.low %v12707_v33, %v12711_v21  ;;  %v18912_v46 = vcombine.high %v12714_v6, %v12718_v27  ;;  %v12759_v24 = vld [vmem:[#allocation9 + $0x578] sm:$0xff]  ;;  %v18945_v21 = vcombine.low %v12747_v7, %v12751_v8 }
 0x848   :  { %16234 = vmatprep.subr.bf16.mxu1 %v18866_v43  ;;  %v18914_v43 = vcombine.high %v12715_v58, %v12719_v15  ;;  %v12763_v6 = vld [vmem:[#allocation9 + $0x598] sm:$0xff] }
 0x849   :  { %v12767_v27 = vld [vmem:[#allocation9 + $0x5b8] sm:$0xff] }
 0x84a   :  { %16063 = vmatpush1.bf16.msra.mxu0 %v18863_v48  ;;  %v12727_v48 = vld [vmem:[#allocation9 + $0x478] sm:$0xff] }
 0x84b   :  { %16235 = vmatpush1.bf16.msra.mxu1 %v18865_v49  ;;  %16064 = vmatprep.subr.bf16.mxu0 %v18872_v0  ;;  %v18913_v49 = vcombine.low %v12715_v58, %v12719_v15  ;;  %v18920_v0 = vcombine.high %v12722_v41, %v12726_v42  ;;  %v18922_v50 = vcombine.high %v12723_v45, %v12727_v48 }
 0x84c   :  { %16236 = vmatprep.subr.bf16.mxu1 %v18874_v53  ;;  %v12730_v53 = vld [vmem:[#allocation9 + $0x490] sm:$0xff]  ;;  %v18953_v15 = vcombine.low %v12755_v23, %v12759_v24 }
 0x84e   :  { %16065 = vmatpush1.bf16.msra.mxu0 %v18871_v51  ;;  %v18919_v51 = vcombine.low %v12722_v41, %v12726_v42  ;;  %v12771_v41 = vld [vmem:[#allocation9 + $0x5d8] sm:$0xff] }
 0x84f   :  { %16237 = vmatpush1.bf16.msra.mxu1 %v18873_v54  ;;  %16066 = vmatprep.subr.bf16.mxu0 %v18880_v55  ;;  %v18921_v54 = vcombine.low %v12723_v45, %v12727_v48  ;;  %v18928_v55 = vcombine.high %v12730_v53, %v12734_v39  ;;  %v12775_v42 = vld [vmem:[#allocation9 + $0x5f8] sm:$0xff]  ;;  %v18961_v45 = vcombine.low %v12763_v6, %v12767_v27 }
 0x850   :  { %16238 = vmatprep.subr.bf16.mxu1 %v18882_v56  ;;  %v18930_v56 = vcombine.high %v12731_v13, %v12735_v37 }
 0x852   :  { %16067 = vmatpush1.bf16.msra.mxu0 %v18879_v10  ;;  %v18927_v10 = vcombine.low %v12730_v53, %v12734_v39  ;;  %v12782_v53 = vld [vmem:[#allocation9 + $0x630] sm:$0xff]  ;;  %v12779_v39 = vld [vmem:[#allocation9 + $0x618] sm:$0xff] }
 0x853   :  { %16239 = vmatpush1.bf16.msra.mxu1 %v18881_v2  ;;  %16068 = vmatprep.subr.bf16.mxu0 %v18888_v4  ;;  %v18936_v2 = vcombine.high %v12738_v57, %v12742_v62  ;;  %v18938_v4 = vcombine.high %v12739_v47, %v12743_v3 }
 0x854   :  { %16240 = vmatprep.subr.bf16.mxu1 %v18890_v19  ;;  %v12746_v19 = vld [vmem:[#allocation9 + $0x510] sm:$0xff] }
 0x855   :  { %v18943_v33 = vcombine.low %v12746_v19, %v12750_v26 }
 0x856   :  { %16069 = vmatpush1.bf16.msra.mxu0 %v18887_v9  ;;  %v18944_v9 = vcombine.high %v12746_v19, %v12750_v26  ;;  %v12795_v19 = vld [vmem:[#allocation9 + $0x698] sm:$0xff] }
 0x857   :  { %16241 = vmatpush1.bf16.msra.mxu1 %v18889_v17  ;;  %16070 = vmatprep.subr.bf16.mxu0 %v18896_v12  ;;  %v18946_v17 = vcombine.high %v12747_v7, %v12751_v8  ;;  %v12754_v12 = vld [vmem:[#allocation9 + $0x550] sm:$0xff]  ;;  %v12799_v26 = vld [vmem:[#allocation9 + $0x6b8] sm:$0xff] }
 0x858   :  { %16242 = vmatprep.subr.bf16.mxu1 %v18898_v14  ;;  %v12758_v14 = vld [vmem:[#allocation9 + $0x570] sm:$0xff] }
 0x859   :  { %v18951_v58 = vcombine.low %v12754_v12, %v12758_v14 }
 0x85a   :  { %16071 = vmatpush1.bf16.msra.mxu0 %v18895_v38  ;;  %v18952_v38 = vcombine.high %v12754_v12, %v12758_v14  ;;  %v12803_v12 = vld [vmem:[#allocation9 + $0x6d8] sm:$0xff] }
 0x85b   :  { %16243 = vmatpush1.bf16.msra.mxu1 %v18897_v29  ;;  %16072 = vmatprep.subr.bf16.mxu0 %v18904_v20  ;;  %v18954_v29 = vcombine.high %v12755_v23, %v12759_v24  ;;  %v12762_v20 = vld [vmem:[#allocation9 + $0x590] sm:$0xff]  ;;  %v12807_v14 = vld [vmem:[#allocation9 + $0x6f8] sm:$0xff]  ;;  %v18993_v24 = vcombine.low %v12795_v19, %v12799_v26 }
 0x85c   :  { %16244 = vmatprep.subr.bf16.mxu1 %v18906_v36  ;;  %v12766_v36 = vld [vmem:[#allocation9 + $0x5b0] sm:$0xff] }
 0x85e   :  { %16073 = vmatpush1.bf16.msra.mxu0 %v18903_v32  ;;  %v18960_v32 = vcombine.high %v12762_v20, %v12766_v36 }
 0x85f   :  { %16245 = vmatpush1.bf16.msra.mxu1 %v18905_v35  ;;  %16085 = vmatprep.subr.bf16.mxu0 %v18912_v46  ;;  %v18962_v35 = vcombine.high %v12763_v6, %v12767_v27  ;;  %v12770_v46 = vld [vmem:[#allocation9 + $0x5d0] sm:$0xff]  ;;  %v19001_v27 = vcombine.low %v12803_v12, %v12807_v14 }
 0x860   :  { %16257 = vmatprep.subr.bf16.mxu1 %v18914_v43  ;;  %v12774_v43 = vld [vmem:[#allocation9 + $0x5f0] sm:$0xff] }
 0x861   :  { %16075 = vmatmul.mubr.bf16.vlgmr.msra.gmra.mrb[12].mxu0 %v20239_v16  ;;  %v18968_v48 = vcombine.high %v12770_v46, %v12774_v43 }
 0x862   :  { %16247 = vmatmul.mubr.bf16.vlgmr.msra.gmra.mrb[12].mxu1 %v20239_v16  ;;  %16086 = vmatpush1.bf16.msra.mxu0 %v18911_v44  ;;  %v18929_v16 = vcombine.low %v12731_v13, %v12735_v37  ;;  %v18959_v44 = vcombine.low %v12762_v20, %v12766_v36  ;;  %v18967_v13 = vcombine.low %v12770_v46, %v12774_v43  ;;  %v12811_v20 = vld [vmem:[#allocation9 + $0x718] sm:$0xff] }
 0x863   :  { %16117 = vmatprep.mubr.bf16.mxu0 %v20245_v34  ;;  %16258 = vmatpush1.bf16.msra.mxu1 %v18913_v49  ;;  %v18970_v49 = vcombine.high %v12771_v41, %v12775_v42  ;;  %v18969_v37 = vcombine.low %v12771_v41, %v12775_v42  ;;  %v12815_v36 = vld [vmem:[#allocation9 + $0x738] sm:$0xff] }
 0x864   :  { %16289 = vmatprep.mubr.bf16.mxu1 %v20245_v34  ;;  %16087 = vmatprep.subr.bf16.mxu0 %v18920_v0  ;;  %v18935_v34 = vcombine.low %v12738_v57, %v12742_v62  ;;  %v12778_v0 = vld [vmem:[#allocation9 + $0x610] sm:$0xff]  ;;  %v12787_v57 = vld [vmem:[#allocation9 + $0x658] sm:$0xff]  ;;  %v19009_v42 = vcombine.low %v12811_v20, %v12815_v36 }
 0x865   :  { %16259 = vmatprep.subr.bf16.mxu1 %v18922_v50  ;;  %v12783_v50 = vld [vmem:[#allocation9 + $0x638] sm:$0xff]  ;;  %v18975_v47 = vcombine.low %v12778_v0, %v12782_v53 }
 0x866   :  { %16088 = vmatpush1.bf16.msra.mxu0 %v18919_v51  ;;  %v18976_v51 = vcombine.high %v12778_v0, %v12782_v53  ;;  %v12791_v62 = vld [vmem:[#allocation9 + $0x678] sm:$0xff]  ;;  %v18977_v3 = vcombine.low %v12779_v39, %v12783_v50 }
 0x867   :  { %16260 = vmatpush1.bf16.msra.mxu1 %v18921_v54  ;;  %16089 = vmatprep.subr.bf16.mxu0 %v18928_v55  ;;  %v18978_v54 = vcombine.high %v12779_v39, %v12783_v50  ;;  %v12786_v55 = vld [vmem:[#allocation9 + $0x650] sm:$0xff]  ;;  %v18985_v8 = vcombine.low %v12787_v57, %v12791_v62  ;;  %v12819_v46 = vld [vmem:[#allocation9 + $0x758] sm:$0xff] }
 0x868   :  { %16261 = vmatprep.subr.bf16.mxu1 %v18930_v56  ;;  %v12790_v56 = vld [vmem:[#allocation9 + $0x670] sm:$0xff]  ;;  %v12823_v43 = vld [vmem:[#allocation9 + $0x778] sm:$0xff] }
 0x869   :  { %v18983_v7 = vcombine.low %v12786_v55, %v12790_v56  ;;  %v12827_v0 = vld [vmem:[#allocation9 + $0x798] sm:$0xff]  ;;  %v19017_v50 = vcombine.low %v12819_v46, %v12823_v43 }
 0x86a   :  { %16090 = vmatpush1.bf16.msra.mxu0 %v18927_v10  ;;  %v18984_v10 = vcombine.high %v12786_v55, %v12790_v56  ;;  %v12831_v53 = vld [vmem:[#allocation9 + $0x7b8] sm:$0xff] }
 0x86b   :  { %16262 = vmatpush1.bf16.msra.mxu1 %v18929_v16  ;;  %16091 = vmatprep.subr.bf16.mxu0 %v18936_v2  ;;  %v18986_v16 = vcombine.high %v12787_v57, %v12791_v62  ;;  %v12794_v2 = vld [vmem:[#allocation9 + $0x690] sm:$0xff]  ;;  %v12835_v55 = vld [vmem:[#allocation9 + $0x7d8] sm:$0xff]  ;;  %v19025_v62 = vcombine.low %v12827_v0, %v12831_v53 }
 0x86c   :  { %16263 = vmatprep.subr.bf16.mxu1 %v18938_v4  ;;  %v12798_v4 = vld [vmem:[#allocation9 + $0x6b0] sm:$0xff]  ;;  %v12839_v56 = vld [vmem:[#allocation9 + $0x7f8] sm:$0xff] }
 0x86d   :  { %v18991_v23 = vcombine.low %v12794_v2, %v12798_v4 }
 0x86e   :  { %16092 = vmatpush1.bf16.msra.mxu0 %v18935_v34  ;;  %v18992_v34 = vcombine.high %v12794_v2, %v12798_v4  ;;  %v12843_v2 = vld [vmem:[#allocation9 + $0x818] sm:$0xff] }
 0x86f   :  { %16264 = vmatpush1.bf16.msra.mxu1 %v18937_v11  ;;  %16093 = vmatprep.subr.bf16.mxu0 %v18944_v9  ;;  %v18994_v11 = vcombine.high %v12795_v19, %v12799_v26  ;;  %v12802_v9 = vld [vmem:[#allocation9 + $0x6d0] sm:$0xff]  ;;  %v12847_v4 = vld [vmem:[#allocation9 + $0x838] sm:$0xff]  ;;  %v19033_v26 = vcombine.low %v12835_v55, %v12839_v56 }
 0x870   :  { %16265 = vmatprep.subr.bf16.mxu1 %v18946_v17  ;;  %v12806_v17 = vld [vmem:[#allocation9 + $0x6f0] sm:$0xff] }
 0x871   :  { %v18999_v6 = vcombine.low %v12802_v9, %v12806_v17 }
 0x872   :  { %16094 = vmatpush1.bf16.msra.mxu0 %v18943_v33  ;;  %v19000_v33 = vcombine.high %v12802_v9, %v12806_v17  ;;  %v12851_v17 = vld [vmem:[#allocation9 + $0x858] sm:$0xff] }
 0x873   :  { %16266 = vmatpush1.bf16.msra.mxu1 %v18945_v21  ;;  %16095 = vmatprep.subr.bf16.mxu0 %v18952_v38  ;;  %v19002_v21 = vcombine.high %v12803_v12, %v12807_v14  ;;  %v12810_v38 = vld [vmem:[#allocation9 + $0x710] sm:$0xff]  ;;  %v12855_v12 = vld [vmem:[#allocation9 + $0x878] sm:$0xff]  ;;  %v19041_v14 = vcombine.low %v12843_v2, %v12847_v4 }
 0x874   :  { %16267 = vmatprep.subr.bf16.mxu1 %v18954_v29  ;;  %v12814_v29 = vld [vmem:[#allocation9 + $0x730] sm:$0xff] }
 0x875   :  { %v19007_v41 = vcombine.low %v12810_v38, %v12814_v29 }
 0x876   :  { %16096 = vmatpush1.bf16.msra.mxu0 %v18951_v58  ;;  %v19008_v58 = vcombine.high %v12810_v38, %v12814_v29  ;;  %v12859_v38 = vld [vmem:[#allocation9 + $0x898] sm:$0xff] }
 0x877   :  { %16268 = vmatpush1.bf16.msra.mxu1 %v18953_v15  ;;  %16097 = vmatprep.subr.bf16.mxu0 %v18960_v32  ;;  %v19010_v15 = vcombine.high %v12811_v20, %v12815_v36  ;;  %v12818_v32 = vld [vmem:[#allocation9 + $0x750] sm:$0xff]  ;;  %v12863_v29 = vld [vmem:[#allocation9 + $0x8b8] sm:$0xff]  ;;  %v19049_v36 = vcombine.low %v12851_v17, %v12855_v12 }
 0x878   :  { %16269 = vmatprep.subr.bf16.mxu1 %v18962_v35  ;;  %v12822_v35 = vld [vmem:[#allocation9 + $0x770] sm:$0xff] }
 0x879   :  { %v19015_v39 = vcombine.low %v12818_v32, %v12822_v35 }
 0x87a   :  { %16098 = vmatpush1.bf16.msra.mxu0 %v18959_v44  ;;  %v19016_v44 = vcombine.high %v12818_v32, %v12822_v35  ;;  %v12867_v32 = vld [vmem:[#allocation9 + $0x8d8] sm:$0xff] }
 0x87b   :  { %16270 = vmatpush1.bf16.msra.mxu1 %v18961_v45  ;;  %16099 = vmatprep.subr.bf16.mxu0 %v18968_v48  ;;  %v19018_v45 = vcombine.high %v12819_v46, %v12823_v43  ;;  %v12826_v48 = vld [vmem:[#allocation9 + $0x790] sm:$0xff]  ;;  %v12871_v35 = vld [vmem:[#allocation9 + $0x8f8] sm:$0xff] }
 0x87c   :  { %16271 = vmatprep.subr.bf16.mxu1 %v18970_v49  ;;  %v12830_v49 = vld [vmem:[#allocation9 + $0x7b0] sm:$0xff] }
 0x87d   :  { %v19023_v57 = vcombine.low %v12826_v48, %v12830_v49 }
 0x87e   :  { %16100 = vmatpush1.bf16.msra.mxu0 %v18967_v13  ;;  %v19024_v13 = vcombine.high %v12826_v48, %v12830_v49  ;;  %v12879_v48 = vld [vmem:[#allocation9 + $0x938] sm:$0xff]  ;;  %v19065_v49 = vcombine.low %v12867_v32, %v12871_v35 }
 0x87f   :  { %16272 = vmatpush1.bf16.msra.mxu1 %v18969_v37  ;;  %16101 = vmatprep.subr.bf16.mxu0 %v18976_v51  ;;  %v19026_v37 = vcombine.high %v12827_v0, %v12831_v53  ;;  %v12834_v51 = vld [vmem:[#allocation9 + $0x7d0] sm:$0xff] }
 0x880   :  { %16273 = vmatprep.subr.bf16.mxu1 %v18978_v54  ;;  %v12838_v54 = vld [vmem:[#allocation9 + $0x7f0] sm:$0xff] }
 0x881   :  { %v19031_v19 = vcombine.low %v12834_v51, %v12838_v54 }
 0x882   :  { %16102 = vmatpush1.bf16.msra.mxu0 %v18975_v47  ;;  %v19032_v47 = vcombine.high %v12834_v51, %v12838_v54 }
 0x883   :  { %16274 = vmatpush1.bf16.msra.mxu1 %v18977_v3  ;;  %16103 = vmatprep.subr.bf16.mxu0 %v18984_v10  ;;  %v19034_v3 = vcombine.high %v12835_v55, %v12839_v56  ;;  %v12842_v10 = vld [vmem:[#allocation9 + $0x810] sm:$0xff] }
 0x884   :  { %16275 = vmatprep.subr.bf16.mxu1 %v18986_v16  ;;  %v12846_v16 = vld [vmem:[#allocation9 + $0x830] sm:$0xff] }
 0x885   :  { %v19039_v9 = vcombine.low %v12842_v10, %v12846_v16 }
 0x886   :  { %16104 = vmatpush1.bf16.msra.mxu0 %v18983_v7  ;;  %v19040_v7 = vcombine.high %v12842_v10, %v12846_v16 }
 0x887   :  { %16276 = vmatpush1.bf16.msra.mxu1 %v18985_v8  ;;  %16105 = vmatprep.subr.bf16.mxu0 %v18992_v34  ;;  %v19042_v8 = vcombine.high %v12843_v2, %v12847_v4  ;;  %v12850_v34 = vld [vmem:[#allocation9 + $0x850] sm:$0xff] }
 0x888   :  { %16277 = vmatprep.subr.bf16.mxu1 %v18994_v11  ;;  %v12854_v11 = vld [vmem:[#allocation9 + $0x870] sm:$0xff] }
 0x889   :  { %v19047_v20 = vcombine.low %v12850_v34, %v12854_v11 }
 0x88a   :  { %16106 = vmatpush1.bf16.msra.mxu0 %v18991_v23  ;;  %v19048_v23 = vcombine.high %v12850_v34, %v12854_v11 }
 0x88b   :  { %16278 = vmatpush1.bf16.msra.mxu1 %v18993_v24  ;;  %16107 = vmatprep.subr.bf16.mxu0 %v19000_v33  ;;  %v12858_v24 = vld [vmem:[#allocation9 + $0x890] sm:$0xff] }
 0x88c   :  { %16279 = vmatprep.subr.bf16.mxu1 %v19002_v21  ;;  %v12862_v33 = vld [vmem:[#allocation9 + $0x8b0] sm:$0xff]  ;;  %v19050_v21 = vcombine.high %v12851_v17, %v12855_v12 }
 0x88d   :  { %v19055_v46 = vcombine.low %v12858_v24, %v12862_v33  ;;  %v12906_v12 = vld [vmem:[#allocation9 + $0xa10] sm:$0xff] }
 0x88e   :  { %16108 = vmatpush1.bf16.msra.mxu0 %v18999_v6  ;;  %v19056_v6 = vcombine.high %v12858_v24, %v12862_v33  ;;  %v12911_v24 = vld [vmem:[#allocation9 + $0xa38] sm:$0xff] }
 0x88f   :  { %16280 = vmatpush1.bf16.msra.mxu1 %v19001_v27  ;;  %16109 = vmatprep.subr.bf16.mxu0 %v19008_v58  ;;  %v19058_v27 = vcombine.high %v12859_v38, %v12863_v29  ;;  %v12866_v58 = vld [vmem:[#allocation9 + $0x8d0] sm:$0xff] }
 0x890   :  { %16281 = vmatprep.subr.bf16.mxu1 %v19010_v15  ;;  %v12870_v15 = vld [vmem:[#allocation9 + $0x8f0] sm:$0xff] }
 0x891   :  { %v19064_v43 = vcombine.high %v12866_v58, %v12870_v15 }
 0x892   :  { %16110 = vmatpush1.bf16.msra.mxu0 %v19007_v41  ;;  %v19066_v41 = vcombine.high %v12867_v32, %v12871_v35 }
 0x893   :  { %16282 = vmatpush1.bf16.msra.mxu1 %v19009_v42  ;;  %16111 = vmatprep.subr.bf16.mxu0 %v19016_v44  ;;  %v12874_v42 = vld [vmem:[#allocation9 + $0x910] sm:$0xff] }
 0x894   :  { %16283 = vmatprep.subr.bf16.mxu1 %v19018_v45  ;;  %v12878_v44 = vld [vmem:[#allocation9 + $0x930] sm:$0xff]  ;;  %v12875_v45 = vld [vmem:[#allocation9 + $0x918] sm:$0xff] }
 0x895   :  { %v19072_v0 = vcombine.high %v12874_v42, %v12878_v44  ;;  %v19074_v53 = vcombine.high %v12875_v45, %v12879_v48  ;;  %v19071_v51 = vcombine.low %v12874_v42, %v12878_v44  ;;  %v19073_v54 = vcombine.low %v12875_v45, %v12879_v48 }
 0x896   :  { %16112 = vmatpush1.bf16.msra.mxu0 %v19015_v39  ;;  %v12882_v39 = vld [vmem:[#allocation9 + $0x950] sm:$0xff] }
 0x897   :  { %16284 = vmatpush1.bf16.msra.mxu1 %v19017_v50  ;;  %16113 = vmatprep.subr.bf16.mxu0 %v19024_v13  ;;  %v12886_v50 = vld [vmem:[#allocation9 + $0x970] sm:$0xff]  ;;  %v12883_v13 = vld [vmem:[#allocation9 + $0x958] sm:$0xff] }
 0x898   :  { %16285 = vmatprep.subr.bf16.mxu1 %v19026_v37  ;;  %v12887_v37 = vld [vmem:[#allocation9 + $0x978] sm:$0xff]  ;;  %v19080_v55 = vcombine.high %v12882_v39, %v12886_v50  ;;  %v19079_v10 = vcombine.low %v12882_v39, %v12886_v50 }
 0x899   :  { %v19082_v56 = vcombine.high %v12883_v13, %v12887_v37  ;;  %v19081_v16 = vcombine.low %v12883_v13, %v12887_v37 }
 0x89a   :  { %16114 = vmatpush1.bf16.msra.mxu0 %v19023_v57  ;;  %v12890_v57 = vld [vmem:[#allocation9 + $0x990] sm:$0xff] }
 0x89b   :  { %16286 = vmatpush1.bf16.msra.mxu1 %v19025_v62  ;;  %16115 = vmatprep.subr.bf16.mxu0 %v19032_v47  ;;  %v12894_v62 = vld [vmem:[#allocation9 + $0x9b0] sm:$0xff]  ;;  %v12891_v47 = vld [vmem:[#allocation9 + $0x998] sm:$0xff] }
 0x89c   :  { %16287 = vmatprep.subr.bf16.mxu1 %v19034_v3  ;;  %v12895_v3 = vld [vmem:[#allocation9 + $0x9b8] sm:$0xff]  ;;  %v19088_v2 = vcombine.high %v12890_v57, %v12894_v62  ;;  %v19087_v34 = vcombine.low %v12890_v57, %v12894_v62 }
 0x89d   :  { %v19090_v4 = vcombine.high %v12891_v47, %v12895_v3  ;;  %v19089_v11 = vcombine.low %v12891_v47, %v12895_v3 }
 0x89e   :  { %16116 = vmatpush1.bf16.msra.mxu0 %v19031_v19  ;;  %v12898_v19 = vld [vmem:[#allocation9 + $0x9d0] sm:$0xff] }
 0x89f   :  { %16288 = vmatpush1.bf16.msra.mxu1 %v19033_v26  ;;  %16128 = vmatprep.subr.bf16.mxu0 %v19040_v7  ;;  %v12902_v26 = vld [vmem:[#allocation9 + $0x9f0] sm:$0xff]  ;;  %v12899_v7 = vld [vmem:[#allocation9 + $0x9d8] sm:$0xff] }
 0x8a0   :  { %16300 = vmatprep.subr.bf16.mxu1 %v19042_v8  ;;  %v12903_v8 = vld [vmem:[#allocation9 + $0x9f8] sm:$0xff]  ;;  %v19095_v33 = vcombine.low %v12898_v19, %v12902_v26 }
 0x8a1   :  { %16118 = vmatmul.mubr.bf16.vlgmr.msra.gmra.mrb[12].mxu0 %v20241_v31  ;;  %v19098_v17 = vcombine.high %v12899_v7, %v12903_v8 }
 0x8a2   :  { %16290 = vmatmul.mubr.bf16.vlgmr.msra.gmra.mrb[12].mxu1 %v20241_v31  ;;  %16129 = vmatpush1.bf16.msra.mxu0 %v19039_v9  ;;  %v19057_v31 = vcombine.low %v12859_v38, %v12863_v29  ;;  %v19096_v9 = vcombine.high %v12898_v19, %v12902_v26 }
 0x8a3   :  { %16160 = vmatprep.mubr.bf16.mxu0 %v20321_v59  ;;  %16301 = vmatpush1.bf16.msra.mxu1 %v19041_v14  ;;  %v12910_v14 = vld [vmem:[#allocation9 + $0xa30] sm:$0xff] }
 0x8a4   :  { %16332 = vmatprep.mubr.bf16.mxu1 %v20321_v59  ;;  %16130 = vmatprep.subr.bf16.mxu0 %v19048_v23  ;;  %v19063_v59 = vcombine.low %v12866_v58, %v12870_v15  ;;  %v12907_v23 = vld [vmem:[#allocation9 + $0xa18] sm:$0xff]  ;;  %v19104_v38 = vcombine.high %v12906_v12, %v12910_v14  ;;  %v19103_v58 = vcombine.low %v12906_v12, %v12910_v14 }
 0x8a5   :  { %16302 = vmatprep.subr.bf16.mxu1 %v19050_v21  ;;  %v19097_v21 = vcombine.low %v12899_v7, %v12903_v8  ;;  %v19106_v29 = vcombine.high %v12907_v23, %v12911_v24  ;;  %v19105_v15 = vcombine.low %v12907_v23, %v12911_v24 }
 0x8a6   :  { %16131 = vmatpush1.bf16.msra.mxu0 %v19047_v20  ;;  %v12914_v20 = vld [vmem:[#allocation9 + $0xa50] sm:$0xff] }
 0x8a7   :  { %16303 = vmatpush1.bf16.msra.mxu1 %v19049_v36  ;;  %16132 = vmatprep.subr.bf16.mxu0 %v19056_v6  ;;  %v12918_v36 = vld [vmem:[#allocation9 + $0xa70] sm:$0xff]  ;;  %v12915_v6 = vld [vmem:[#allocation9 + $0xa58] sm:$0xff] }
 0x8a8   :  { %16304 = vmatprep.subr.bf16.mxu1 %v19058_v27  ;;  %v12919_v27 = vld [vmem:[#allocation9 + $0xa78] sm:$0xff]  ;;  %v19112_v32 = vcombine.high %v12914_v20, %v12918_v36  ;;  %v19111_v42 = vcombine.low %v12914_v20, %v12918_v36 }
 0x8a9   :  { %v19114_v35 = vcombine.high %v12915_v6, %v12919_v27  ;;  %v19113_v44 = vcombine.low %v12915_v6, %v12919_v27 }
 0x8aa   :  { %16133 = vmatpush1.bf16.msra.mxu0 %v19055_v46  ;;  %v12922_v46 = vld [vmem:[#allocation9 + $0xa90] sm:$0xff] }
 0x8ab   :  { %16305 = vmatpush1.bf16.msra.mxu1 %v19057_v31  ;;  %16134 = vmatprep.subr.bf16.mxu0 %v19064_v43  ;;  %v12926_v31 = vld [vmem:[#allocation9 + $0xab0] sm:$0xff]  ;;  %v12923_v43 = vld [vmem:[#allocation9 + $0xa98] sm:$0xff] }
 0x8ac   :  { %16306 = vmatprep.subr.bf16.mxu1 %v19066_v41  ;;  %v12927_v41 = vld [vmem:[#allocation9 + $0xab8] sm:$0xff]  ;;  %v19120_v45 = vcombine.high %v12922_v46, %v12926_v31  ;;  %v19119_v39 = vcombine.low %v12922_v46, %v12926_v31 }
 0x8ad   :  { %v19122_v48 = vcombine.high %v12923_v43, %v12927_v41  ;;  %v19121_v50 = vcombine.low %v12923_v43, %v12927_v41 }
 0x8ae   :  { %16135 = vmatpush1.bf16.msra.mxu0 %v19063_v59  ;;  %v12930_v59 = vld [vmem:[#allocation9 + $0xad0] sm:$0xff] }
 0x8af   :  { %16307 = vmatpush1.bf16.msra.mxu1 %v19065_v49  ;;  %16136 = vmatprep.subr.bf16.mxu0 %v19072_v0  ;;  %v12934_v49 = vld [vmem:[#allocation9 + $0xaf0] sm:$0xff]  ;;  %v12931_v0 = vld [vmem:[#allocation9 + $0xad8] sm:$0xff] }
 0x8b0   :  { %16308 = vmatprep.subr.bf16.mxu1 %v19074_v53  ;;  %v12935_v53 = vld [vmem:[#allocation9 + $0xaf8] sm:$0xff]  ;;  %v19128_v13 = vcombine.high %v12930_v59, %v12934_v49  ;;  %v19127_v57 = vcombine.low %v12930_v59, %v12934_v49 }
 0x8b1   :  { %v19130_v37 = vcombine.high %v12931_v0, %v12935_v53  ;;  %v19129_v62 = vcombine.low %v12931_v0, %v12935_v53  ;;  %v12983_v59 = vld [vmem:[#allocation9 + $0xc78] sm:$0xff]  ;;  %v12986_v53 = vld [vmem:[#allocation9 + $0xc90] sm:$0xff] }
 0x8b2   :  { %16137 = vmatpush1.bf16.msra.mxu0 %v19071_v51  ;;  %v12938_v51 = vld [vmem:[#allocation9 + $0xb10] sm:$0xff] }
 0x8b3   :  { %16309 = vmatpush1.bf16.msra.mxu1 %v19073_v54  ;;  %16138 = vmatprep.subr.bf16.mxu0 %v19080_v55  ;;  %v12942_v54 = vld [vmem:[#allocation9 + $0xb30] sm:$0xff]  ;;  %v12939_v55 = vld [vmem:[#allocation9 + $0xb18] sm:$0xff] }
 0x8b4   :  { %16310 = vmatprep.subr.bf16.mxu1 %v19082_v56  ;;  %v12943_v56 = vld [vmem:[#allocation9 + $0xb38] sm:$0xff]  ;;  %v19136_v47 = vcombine.high %v12938_v51, %v12942_v54  ;;  %v19135_v19 = vcombine.low %v12938_v51, %v12942_v54 }
 0x8b5   :  { %v19138_v3 = vcombine.high %v12939_v55, %v12943_v56  ;;  %v19137_v26 = vcombine.low %v12939_v55, %v12943_v56 }
 0x8b6   :  { %16139 = vmatpush1.bf16.msra.mxu0 %v19079_v10  ;;  %v12946_v10 = vld [vmem:[#allocation9 + $0xb50] sm:$0xff] }
 0x8b7   :  { %16311 = vmatpush1.bf16.msra.mxu1 %v19081_v16  ;;  %16140 = vmatprep.subr.bf16.mxu0 %v19088_v2  ;;  %v12950_v16 = vld [vmem:[#allocation9 + $0xb70] sm:$0xff]  ;;  %v12947_v2 = vld [vmem:[#allocation9 + $0xb58] sm:$0xff] }
 0x8b8   :  { %16312 = vmatprep.subr.bf16.mxu1 %v19090_v4  ;;  %v12951_v4 = vld [vmem:[#allocation9 + $0xb78] sm:$0xff]  ;;  %v19144_v7 = vcombine.high %v12946_v10, %v12950_v16  ;;  %v19143_v12 = vcombine.low %v12946_v10, %v12950_v16 }
 0x8b9   :  { %v19146_v8 = vcombine.high %v12947_v2, %v12951_v4  ;;  %v19145_v14 = vcombine.low %v12947_v2, %v12951_v4  ;;  %v13002_v4 = vld [vmem:[#allocation9 + $0xd10] sm:$0xff] }
 0x8ba   :  { %16141 = vmatpush1.bf16.msra.mxu0 %v19087_v34  ;;  %v12954_v34 = vld [vmem:[#allocation9 + $0xb90] sm:$0xff] }
 0x8bb   :  { %16313 = vmatpush1.bf16.msra.mxu1 %v19089_v11  ;;  %16142 = vmatprep.subr.bf16.mxu0 %v19096_v9  ;;  %v12958_v11 = vld [vmem:[#allocation9 + $0xbb0] sm:$0xff]  ;;  %v12955_v9 = vld [vmem:[#allocation9 + $0xb98] sm:$0xff] }
 0x8bc   :  { %16314 = vmatprep.subr.bf16.mxu1 %v19098_v17  ;;  %v12959_v17 = vld [vmem:[#allocation9 + $0xbb8] sm:$0xff]  ;;  %v19152_v23 = vcombine.high %v12954_v34, %v12958_v11  ;;  %v19151_v20 = vcombine.low %v12954_v34, %v12958_v11 }
 0x8bd   :  { %v19154_v24 = vcombine.high %v12955_v9, %v12959_v17  ;;  %v19153_v36 = vcombine.low %v12955_v9, %v12959_v17  ;;  %v13010_v9 = vld [vmem:[#allocation9 + $0xd50] sm:$0xff] }
 0x8be   :  { %16143 = vmatpush1.bf16.msra.mxu0 %v19095_v33  ;;  %v12962_v33 = vld [vmem:[#allocation9 + $0xbd0] sm:$0xff] }
 0x8bf   :  { %16315 = vmatpush1.bf16.msra.mxu1 %v19097_v21  ;;  %16144 = vmatprep.subr.bf16.mxu0 %v19104_v38  ;;  %v12966_v21 = vld [vmem:[#allocation9 + $0xbf0] sm:$0xff]  ;;  %v12963_v38 = vld [vmem:[#allocation9 + $0xbd8] sm:$0xff] }
 0x8c0   :  { %16316 = vmatprep.subr.bf16.mxu1 %v19106_v29  ;;  %v12967_v29 = vld [vmem:[#allocation9 + $0xbf8] sm:$0xff]  ;;  %v19160_v6 = vcombine.high %v12962_v33, %v12966_v21  ;;  %v19159_v46 = vcombine.low %v12962_v33, %v12966_v21  ;;  %v13014_v17 = vld [vmem:[#allocation9 + $0xd70] sm:$0xff] }
 0x8c1   :  { %v19162_v27 = vcombine.high %v12963_v38, %v12967_v29  ;;  %v19161_v31 = vcombine.low %v12963_v38, %v12967_v29  ;;  %v19208_v21 = vcombine.high %v13010_v9, %v13014_v17  ;;  %v13018_v29 = vld [vmem:[#allocation9 + $0xd90] sm:$0xff] }
 0x8c2   :  { %16145 = vmatpush1.bf16.msra.mxu0 %v19103_v58  ;;  %v12970_v58 = vld [vmem:[#allocation9 + $0xc10] sm:$0xff] }
 0x8c3   :  { %16317 = vmatpush1.bf16.msra.mxu1 %v19105_v15  ;;  %16146 = vmatprep.subr.bf16.mxu0 %v19112_v32  ;;  %v12974_v15 = vld [vmem:[#allocation9 + $0xc30] sm:$0xff]  ;;  %v12971_v32 = vld [vmem:[#allocation9 + $0xc18] sm:$0xff] }
 0x8c4   :  { %16318 = vmatprep.subr.bf16.mxu1 %v19114_v35  ;;  %v12975_v35 = vld [vmem:[#allocation9 + $0xc38] sm:$0xff]  ;;  %v19168_v43 = vcombine.high %v12970_v58, %v12974_v15 }
 0x8c5   :  { %v19170_v41 = vcombine.high %v12971_v32, %v12975_v35  ;;  %v19169_v49 = vcombine.low %v12971_v32, %v12975_v35  ;;  %v19207_v35 = vcombine.low %v13010_v9, %v13014_v17 }
 0x8c6   :  { %16147 = vmatpush1.bf16.msra.mxu0 %v19111_v42  ;;  %v12978_v42 = vld [vmem:[#allocation9 + $0xc50] sm:$0xff] }
 0x8c7   :  { %16319 = vmatpush1.bf16.msra.mxu1 %v19113_v44  ;;  %16148 = vmatprep.subr.bf16.mxu0 %v19120_v45  ;;  %v12982_v44 = vld [vmem:[#allocation9 + $0xc70] sm:$0xff]  ;;  %v19167_v45 = vcombine.low %v12970_v58, %v12974_v15  ;;  %v13023_v58 = vld [vmem:[#allocation9 + $0xdb8] sm:$0xff] }
 0x8c8   :  { %16320 = vmatprep.subr.bf16.mxu1 %v19122_v48  ;;  %v12979_v48 = vld [vmem:[#allocation9 + $0xc58] sm:$0xff]  ;;  %v19176_v0 = vcombine.high %v12978_v42, %v12982_v44  ;;  %v19175_v51 = vcombine.low %v12978_v42, %v12982_v44 }
 0x8c9   :  { %v19177_v54 = vcombine.low %v12979_v48, %v12983_v59 }
 0x8ca   :  { %16149 = vmatpush1.bf16.msra.mxu0 %v19119_v39  ;;  %v12990_v39 = vld [vmem:[#allocation9 + $0xcb0] sm:$0xff] }
 0x8cb   :  { %16321 = vmatpush1.bf16.msra.mxu1 %v19121_v50  ;;  %16150 = vmatprep.subr.bf16.mxu0 %v19128_v13  ;;  %v19178_v50 = vcombine.high %v12979_v48, %v12983_v59  ;;  %v12987_v13 = vld [vmem:[#allocation9 + $0xc98] sm:$0xff]  ;;  %v19184_v55 = vcombine.high %v12986_v53, %v12990_v39  ;;  %v19183_v10 = vcombine.low %v12986_v53, %v12990_v39 }
 0x8cc   :  { %16322 = vmatprep.subr.bf16.mxu1 %v19130_v37  ;;  %v12991_v37 = vld [vmem:[#allocation9 + $0xcb8] sm:$0xff] }
 0x8cd   :  { %v19186_v56 = vcombine.high %v12987_v13, %v12991_v37 }
 0x8ce   :  { %16151 = vmatpush1.bf16.msra.mxu0 %v19127_v57  ;;  %v12994_v57 = vld [vmem:[#allocation9 + $0xcd0] sm:$0xff] }
 0x8cf   :  { %16323 = vmatpush1.bf16.msra.mxu1 %v19129_v62  ;;  %16152 = vmatprep.subr.bf16.mxu0 %v19136_v47  ;;  %v12998_v62 = vld [vmem:[#allocation9 + $0xcf0] sm:$0xff]  ;;  %v12995_v47 = vld [vmem:[#allocation9 + $0xcd8] sm:$0xff] }
 0x8d0   :  { %16324 = vmatprep.subr.bf16.mxu1 %v19138_v3  ;;  %v12999_v3 = vld [vmem:[#allocation9 + $0xcf8] sm:$0xff]  ;;  %v19192_v16 = vcombine.high %v12994_v57, %v12998_v62 }
 0x8d1   :  { %v19194_v2 = vcombine.high %v12995_v47, %v12999_v3 }
 0x8d2   :  { %16153 = vmatpush1.bf16.msra.mxu0 %v19135_v19  ;;  %v13006_v19 = vld [vmem:[#allocation9 + $0xd30] sm:$0xff] }
 0x8d3   :  { %16325 = vmatpush1.bf16.msra.mxu1 %v19137_v26  ;;  %16154 = vmatprep.subr.bf16.mxu0 %v19144_v7  ;;  %v13003_v26 = vld [vmem:[#allocation9 + $0xd18] sm:$0xff]  ;;  %v19200_v34 = vcombine.high %v13002_v4, %v13006_v19 }
 0x8d4   :  { %16326 = vmatprep.subr.bf16.mxu1 %v19146_v8  ;;  %v13007_v7 = vld [vmem:[#allocation9 + $0xd38] sm:$0xff]  ;;  %v19193_v8 = vcombine.low %v12995_v47, %v12999_v3 }
 0x8d5   :  { %v19202_v11 = vcombine.high %v13003_v26, %v13007_v7  ;;  %v19201_v33 = vcombine.low %v13003_v26, %v13007_v7  ;;  %v13035_v7 = vld [vmem:[#allocation9 + $0xe18] sm:$0xff] }
 0x8d6   :  { %16155 = vmatpush1.bf16.msra.mxu0 %v19143_v12  ;;  %v13011_v12 = vld [vmem:[#allocation9 + $0xd58] sm:$0xff] }
 0x8d7   :  { %16327 = vmatpush1.bf16.msra.mxu1 %v19145_v14  ;;  %16156 = vmatprep.subr.bf16.mxu0 %v19152_v23  ;;  %v13015_v14 = vld [vmem:[#allocation9 + $0xd78] sm:$0xff]  ;;  %v19199_v23 = vcombine.low %v13002_v4, %v13006_v19 }
 0x8d8   :  { %16328 = vmatprep.subr.bf16.mxu1 %v19154_v24  ;;  %v20351_v24 = vld [vmem:[#allocation11] sm:$0xff]  ;;  %v19210_v38 = vcombine.high %v13011_v12, %v13015_v14 }
 0x8d9   :  { %v13105_v15 = vrot.slane %v20351_v24, %v12510_v61  ;;  %v13113_v32 = vrot.slane %v20351_v24, %v12518_v1 }
 0x8da   :  { %16157 = vmatpush1.bf16.msra.mxu0 %v19151_v20  ;;  %v13022_v20 = vld [vmem:[#allocation9 + $0xdb0] sm:$0xff] }
 0x8db   :  { %16329 = vmatpush1.bf16.msra.mxu1 %v19153_v36  ;;  %16158 = vmatprep.subr.bf16.mxu0 %v19160_v6  ;;  %v13101_v36 = vrot.slane %v20351_v24, %v12506_v52  ;;  %v13109_v6 = vrot.slane %v20351_v24, %v12514_v60  ;;  %v19216_v52 = vcombine.high %v13018_v29, %v13022_v20 }
 0x8dc   :  { %16330 = vmatprep.subr.bf16.mxu1 %v19162_v27  ;;  %v13019_v27 = vld [vmem:[#allocation9 + $0xd98] sm:$0xff]  ;;  %v19215_v61 = vcombine.low %v13018_v29, %v13022_v20  ;;  %v13046_v29 = vld [vmem:[#allocation9 + $0xe70] sm:$0xff] }
 0x8dd   :  { %v19218_v42 = vcombine.high %v13019_v27, %v13023_v58  ;;  %v13043_v20 = vld [vmem:[#allocation9 + $0xe58] sm:$0xff] }
 0x8de   :  { %16159 = vmatpush1.bf16.msra.mxu0 %v19159_v46  ;;  %v19209_v46 = vcombine.low %v13011_v12, %v13015_v14 }
 0x8df   :  { %16331 = vmatpush1.bf16.msra.mxu1 %v19161_v31  ;;  %16171 = vmatprep.subr.bf16.mxu0 %v19168_v43  ;;  %v13026_v31 = vld [vmem:[#allocation9 + $0xdd0] sm:$0xff] }
 0x8e0   :  { %16343 = vmatprep.subr.bf16.mxu1 %v19170_v41  ;;  %v13030_v43 = vld [vmem:[#allocation9 + $0xdf0] sm:$0xff] }
 0x8e1   :  { %16161 = vmatmul.mubr.bf16.vlgmr.msra.gmra.mrb[12].mxu0 %v20317_v5 }
 0x8e2   :  { %16333 = vmatmul.mubr.bf16.vlgmr.msra.gmra.mrb[12].mxu1 %v20317_v5  ;;  %16172 = vmatpush1.bf16.msra.mxu0 %v19167_v45  ;;  %v19185_v5 = vcombine.low %v12987_v13, %v12991_v37  ;;  %v19217_v13 = vcombine.low %v13019_v27, %v13023_v58  ;;  %v19223_v37 = vcombine.low %v13026_v31, %v13030_v43 }
 0x8e3   :  { %16203 = vmatprep.mubr.bf16.mxu0 %v20327_v18  ;;  %16344 = vmatpush1.bf16.msra.mxu1 %v19169_v49  ;;  %v13027_v49 = vld [vmem:[#allocation9 + $0xdd8] sm:$0xff] }
 0x8e4   :  { %16375 = vmatprep.mubr.bf16.mxu1 %v20327_v18  ;;  %16173 = vmatprep.subr.bf16.mxu0 %v19176_v0  ;;  %v19191_v18 = vcombine.low %v12994_v57, %v12998_v62  ;;  %v13031_v0 = vld [vmem:[#allocation9 + $0xdf8] sm:$0xff]  ;;  %v19224_v57 = vcombine.high %v13026_v31, %v13030_v43 }
 0x8e5   :  { %16345 = vmatprep.subr.bf16.mxu1 %v19178_v50  ;;  %v19225_v3 = vcombine.low %v13027_v49, %v13031_v0 }
 0x8e6   :  { %16174 = vmatpush1.bf16.msra.mxu0 %v19175_v51 }
 0x8e7   :  { %16346 = vmatpush1.bf16.msra.mxu1 %v19177_v54  ;;  %16175 = vmatprep.subr.bf16.mxu0 %v19184_v55 }
 0x8e8   :  { %16347 = vmatprep.subr.bf16.mxu1 %v19186_v56 }
 0x8ea   :  { %16176 = vmatpush1.bf16.msra.mxu0 %v19183_v10  ;;  %v19226_v10 = vcombine.high %v13027_v49, %v13031_v0 }
 0x8eb   :  { %16348 = vmatpush1.bf16.msra.mxu1 %v19185_v5  ;;  %16177 = vmatprep.subr.bf16.mxu0 %v19192_v16  ;;  %v13034_v5 = vld [vmem:[#allocation9 + $0xe10] sm:$0xff] }
 0x8ec   :  { %16349 = vmatprep.subr.bf16.mxu1 %v19194_v2  ;;  %v13038_v16 = vld [vmem:[#allocation9 + $0xe30] sm:$0xff] }
 0x8ed   :  { %v19232_v14 = vcombine.high %v13034_v5, %v13038_v16 }
 0x8ee   :  { %16178 = vmatpush1.bf16.msra.mxu0 %v19191_v18  ;;  %v13039_v18 = vld [vmem:[#allocation9 + $0xe38] sm:$0xff] }
 0x8ef   :  { %16350 = vmatpush1.bf16.msra.mxu1 %v19193_v8  ;;  %16179 = vmatprep.subr.bf16.mxu0 %v19200_v34  ;;  %v19233_v27 = vcombine.low %v13035_v7, %v13039_v18 }
 0x8f0   :  { %16351 = vmatprep.subr.bf16.mxu1 %v19202_v11 }
 0x8f2   :  { %16180 = vmatpush1.bf16.msra.mxu0 %v19199_v23 }
 0x8f3   :  { %16352 = vmatpush1.bf16.msra.mxu1 %v19201_v33  ;;  %16181 = vmatprep.subr.bf16.mxu0 %v19208_v21  ;;  %v19234_v21 = vcombine.high %v13035_v7, %v13039_v18 }
 0x8f4   :  { %v15861_v41 = vpop.f32.mrb[8].mxu0  ;;  %v16033_v60 = vpop.f32.mrb[8].mxu1  ;;  %16353 = vmatprep.subr.bf16.mxu1 %v19210_v38  ;;  %v13042_v38 = vld [vmem:[#allocation9 + $0xe50] sm:$0xff] }
 0x8f5   :  { %v19444_v44 = vadd.f32 %v15861_v41, %v13101_v36  ;;  %v19448_v45 = vadd.f32 %v16033_v60, %v13109_v6  ;;  %v15863_v48 = vpop.f32.mrb[9].mxu0  ;;  %v16035_v59 = vpop.f32.mrb[9].mxu1  ;;  %v19240_v58 = vcombine.high %v13042_v38, %v13046_v29  ;;  %v19239_v31 = vcombine.low %v13042_v38, %v13046_v29 }
 0x8f6   :  { %v19445_v53 = vadd.f32 %v15863_v48, %v13105_v15  ;;  %v19449_v1 = vadd.f32 %v16035_v59, %v13113_v32  ;;  %v15865_v39 = vpop.f32.mrb[10].mxu0  ;;  %v16037_v50 = vpop.f32.mrb[10].mxu1  ;;  %16182 = vmatpush1.bf16.msra.mxu0 %v19207_v35  ;;  %v13054_v35 = vld [vmem:[#allocation9 + $0xeb0] sm:$0xff]  ;;  %v13063_v48 = vld [vmem:[#allocation9 + $0xef8] sm:$0xff] }
 0x8f7   :  { %v19446_v51 = vadd.f32 %v15865_v39, %v13101_v36  ;;  %v19450_v54 = vadd.f32 %v16037_v50, %v13109_v6  ;;  %16354 = vmatpush1.bf16.msra.mxu1 %v19209_v46  ;;  %v15867_v55 = vpop.f32.mrb[11].mxu0  ;;  %v16039_v56 = vpop.f32.mrb[11].mxu1  ;;  %16183 = vmatprep.subr.bf16.mxu0 %v19216_v52  ;;  %v16386_v2 = vmax.f32 %v19444_v44, 0.0  ;;  %v16388_v4 = vmax.f32 %v19448_v45, 0.0  ;;  %v13047_v36 = vld [vmem:[#allocation9 + $0xe78] sm:$0xff]  ;;  %v13062_v44 = vld [vmem:[#allocation9 + $0xef0] sm:$0xff] }
 0x8f8   :  { %v19447_v62 = vadd.f32 %v15867_v55, %v13105_v15  ;;  %v19451_v47 = vadd.f32 %v16039_v56, %v13113_v32  ;;  %16355 = vmatprep.subr.bf16.mxu1 %v19218_v42  ;;  %v16387_v8 = vmax.f32 %v19445_v53, 0.0  ;;  %v16389_v34 = vmax.f32 %v19449_v1, 0.0  ;;  %v13050_v32 = vld [vmem:[#allocation9 + $0xe90] sm:$0xff]  ;;  %v13051_v46 = vld [vmem:[#allocation9 + $0xe98] sm:$0xff] }
 0x8f9   :  { %v16394_v19 = vmax.f32 %v19446_v51, 0.0  ;;  %v16396_v26 = vmax.f32 %v19450_v54, 0.0  ;;  %v19231_v6 = vcombine.low %v13034_v5, %v13038_v16  ;;  %v19242_v15 = vcombine.high %v13043_v20, %v13047_v36  ;;  %v13055_v52 = vld [vmem:[#allocation9 + $0xeb8] sm:$0xff]  ;;  %v13058_v42 = vld [vmem:[#allocation9 + $0xed0] sm:$0xff] }
 0x8fa   :  { %v16395_v11 = vmax.f32 %v19447_v62, 0.0  ;;  %v16397_v9 = vmax.f32 %v19451_v47, 0.0  ;;  %16184 = vmatpush1.bf16.msra.mxu0 %v19215_v61  ;;  %v19241_v43 = vcombine.low %v13043_v20, %v13047_v36  ;;  %v19248_v41 = vcombine.high %v13050_v32, %v13054_v35  ;;  %v13059_v45 = vld [vmem:[#allocation9 + $0xed8] sm:$0xff]  ;;  %v13066_v53 = vld [vmem:[#allocation9 + $0xf10] sm:$0xff] }
 0x8fb   :  { %v20365_v17 = vpack.c.bf16 %v16394_v19, %v16386_v2  ;;  %v20367_v12 = vpack.c.bf16 %v16396_v26, %v16388_v4  ;;  %16356 = vmatpush1.bf16.msra.mxu1 %v19217_v13  ;;  %16185 = vmatprep.subr.bf16.mxu0 %v19224_v57  ;;  %v19250_v60 = vcombine.high %v13051_v46, %v13055_v52  ;;  %v13070_v1 = vld [vmem:[#allocation9 + $0xf30] sm:$0xff]  ;;  %v13067_v39 = vld [vmem:[#allocation9 + $0xf18] sm:$0xff] }
 0x8fc   :  { %v20369_v23 = vpack.c.bf16 %v16395_v11, %v16387_v8  ;;  %v20371_v33 = vpack.c.bf16 %v16397_v9, %v16389_v34  ;;  %16357 = vmatprep.subr.bf16.mxu1 %v19226_v10  ;;  %v19247_v59 = vcombine.low %v13050_v32, %v13054_v35  ;;  %v19249_v61 = vcombine.low %v13051_v46, %v13055_v52  ;;  %v13071_v50 = vld [vmem:[#allocation9 + $0xf38] sm:$0xff]  ;;  %v13074_v55 = vld [vmem:[#allocation9 + $0xf50] sm:$0xff]  ;;  %v19719_v32 = vld [vmem:[#allocation12 + $0x80] sm:$0xff]  }
 0x8fd   :  { %v19256_v49 = vcombine.high %v13058_v42, %v13062_v44  ;;  %v19258_v0 = vcombine.high %v13059_v45, %v13063_v48  ;;  %v19255_v13 = vcombine.low %v13058_v42, %v13062_v44  ;;  %v19264_v51 = vcombine.high %v13066_v53, %v13070_v1  ;;  %v13078_v56 = vld [vmem:[#allocation9 + $0xf70] sm:$0xff]  ;;  %v13075_v57 = vld [vmem:[#allocation9 + $0xf58] sm:$0xff]  ;;  %v19728_v44 = vld [vmem:[#allocation12 + $0x58] sm:$0xff]  }
 0x8fe   :  { %16186 = vmatpush1.bf16.msra.mxu0 %v19223_v37  ;;  %v19257_v37 = vcombine.low %v13059_v45, %v13063_v48  ;;  %v19266_v54 = vcombine.high %v13067_v39, %v13071_v50  ;;  %v13079_v62 = vld [vmem:[#allocation9 + $0xf78] sm:$0xff]  ;;  %v19263_v47 = vcombine.low %v13066_v53, %v13070_v1  ;;  %v19272_v10 = vcombine.high %v13074_v55, %v13078_v56  ;;  %v13082_v16 = vld [vmem:[#allocation9 + $0xf90] sm:$0xff]  ;;  %v19730_v45 = vld [vmem:[#allocation12 + $0x18] sm:$0xff]  }
 0x8ff   :  { %16358 = vmatpush1.bf16.msra.mxu1 %v19225_v3  ;;  %16187 = vmatprep.subr.bf16.mxu0 %v19232_v14  ;;  %v19265_v3 = vcombine.low %v13067_v39, %v13071_v50  ;;  %v19274_v5 = vcombine.high %v13075_v57, %v13079_v62  ;;  %v13086_v2 = vld [vmem:[#allocation9 + $0xfb0] sm:$0xff]  ;;  %v13083_v4 = vld [vmem:[#allocation9 + $0xf98] sm:$0xff]  ;;  %v19271_v26 = vcombine.low %v13074_v55, %v13078_v56  ;;  %v19732_v48 = vld [vmem:[#allocation12 + $0x60] sm:$0xff]  }
 0x900   :  { %16359 = vmatprep.subr.bf16.mxu1 %v19234_v21  ;;  %v13087_v19 = vld [vmem:[#allocation9 + $0xfb8] sm:$0xff]  ;;  %v19273_v7 = vcombine.low %v13075_v57, %v13079_v62  ;;  %v19280_v18 = vcombine.high %v13082_v16, %v13086_v2  ;;  %v13090_v34 = vld [vmem:[#allocation9 + $0xfd0] sm:$0xff]  ;;  %v19279_v21 = vcombine.low %v13082_v16, %v13086_v2  ;;  %v19746_v55 = vld [vmem:[#allocation12 + $0x38] sm:$0xff]  }
 0x901   :  { %v19282_v8 = vcombine.high %v13083_v4, %v13087_v19  ;;  %v13094_v11 = vld [vmem:[#allocation9 + $0xff0] sm:$0xff]  ;;  %v13091_v9 = vld [vmem:[#allocation9 + $0xfd8] sm:$0xff]  ;;  %v19281_v38 = vcombine.low %v13083_v4, %v13087_v19  ;;  %v19747_v56 = vld [vmem:[#allocation12 + $0xb8] sm:$0xff]  }
 0x902   :  { %16188 = vmatpush1.bf16.msra.mxu0 %v19231_v6  ;;  %v13095_v14 = vld [vmem:[#allocation9 + $0xff8] sm:$0xff]  ;;  %v19288_v29 = vcombine.high %v13090_v34, %v13094_v11  ;;  %v19287_v36 = vcombine.low %v13090_v34, %v13094_v11  ;;  %v19720_v35 = vld [vmem:[#allocation12 + $0x48] sm:$0xff]   ;;  %v19748_v57 = vld [vmem:[#allocation12 + $0x140] sm:$0xff]  }
 0x903   :  { %16360 = vmatpush1.bf16.msra.mxu1 %v19233_v27  ;;  %16189 = vmatprep.subr.bf16.mxu0 %v19240_v58  ;;  %v19290_v20 = vcombine.high %v13091_v9, %v13095_v14  ;;  %v19289_v6 = vcombine.low %v13091_v9, %v13095_v14  ;;  %v19716_v27 = vld [vmem:[#allocation12 + $0x40] sm:$0xff]   ;;  %v19721_v46 = vld [vmem:[#allocation12 + $0xc8] sm:$0xff]   ;;  %v19727_v42 = vld [vmem:[#allocation12 + $0x90] sm:$0xff]  }
 0x904   :  { %16361 = vmatprep.subr.bf16.mxu1 %v19242_v15  ;;  %v19717_v58 = vld [vmem:[#allocation12 + $0xc0] sm:$0xff]   ;;  %v19722_v52 = vld [vmem:[#allocation12 + $0x8] sm:$0xff]   ;;  %v19740_v39 = vld [vmem:[#allocation12 + $0x70] sm:$0xff]  }
 0x905   :  { %v19718_v15 = vld [vmem:[#allocation12] sm:$0xff]   ;;  %v19738_v53 = vld [vmem:[#allocation12 + $0x28] sm:$0xff]   ;;  %v19741_v50 = vld [vmem:[#allocation12 + $0xf0] sm:$0xff]  }
 0x906   :  { %16190 = vmatpush1.bf16.msra.mxu0 %v19239_v31  ;;  %v19723_v31 = vld [vmem:[#allocation12 + $0x88] sm:$0xff]   ;;  %v19749_v62 = vld [vmem:[#allocation12 + $0x1c0] sm:$0xff]   ;;  %v19756_v4 = vld [vmem:[#allocation12 + $0x150] sm:$0xff]  }
 0x907   :  { %16362 = vmatpush1.bf16.msra.mxu1 %v19241_v43  ;;  %16191 = vmatprep.subr.bf16.mxu0 %v19248_v41  ;;  %v19724_v43 = vld [vmem:[#allocation12 + $0x50] sm:$0xff]   ;;  %v19739_v1 = vld [vmem:[#allocation12 + $0xa8] sm:$0xff]   ;;  %v19764_v34 = vld [vmem:[#allocation12 + $0x160] sm:$0xff]  }
 0x908   :  { %16363 = vmatprep.subr.bf16.mxu1 %v19250_v60  ;;  %v19725_v41 = vld [vmem:[#allocation12 + $0xd0] sm:$0xff]   ;;  %v19754_v16 = vld [vmem:[#allocation12 + $0x108] sm:$0xff]   ;;  %v19765_v11 = vld [vmem:[#allocation12 + $0x1e0] sm:$0xff]  }
 0x909   :  { %v19726_v60 = vld [vmem:[#allocation12 + $0x10] sm:$0xff]   ;;  %v19755_v2 = vld [vmem:[#allocation12 + $0x188] sm:$0xff]   ;;  %v19766_v9 = vld [vmem:[#allocation12 + $0x120] sm:$0xff]  }
 0x90a   :  { %16192 = vmatpush1.bf16.msra.mxu0 %v19247_v59  ;;  %v19733_v59 = vld [vmem:[#allocation12 + $0xe0] sm:$0xff]   ;;  %v19757_v19 = vld [vmem:[#allocation12 + $0x1d0] sm:$0xff]  }
 0x90b   :  { %16364 = vmatpush1.bf16.msra.mxu1 %v19249_v61  ;;  %16193 = vmatprep.subr.bf16.mxu0 %v19256_v49  ;;  %v19735_v61 = vld [vmem:[#allocation12 + $0xa0] sm:$0xff]   ;;  %v19736_v49 = vld [vmem:[#allocation12 + $0x68] sm:$0xff]  }
 0x90c   :  { %16365 = vmatprep.subr.bf16.mxu1 %v19258_v0  ;;  %v19737_v0 = vld [vmem:[#allocation12 + $0xe8] sm:$0xff]   ;;  %v19767_v14 = vld [vmem:[#allocation12 + $0x1a0] sm:$0xff]  }
 0x90e   :  { %16194 = vmatpush1.bf16.msra.mxu0 %v19255_v13  ;;  %v19742_v13 = vld [vmem:[#allocation12 + $0x30] sm:$0xff]  }
 0x90f   :  { %16366 = vmatpush1.bf16.msra.mxu1 %v19257_v37  ;;  %16195 = vmatprep.subr.bf16.mxu0 %v19264_v51  ;;  %v19743_v37 = vld [vmem:[#allocation12 + $0xb0] sm:$0xff]   ;;  %v19744_v51 = vld [vmem:[#allocation12 + $0x78] sm:$0xff]  }
 0x910   :  { %16367 = vmatprep.subr.bf16.mxu1 %v19266_v54  ;;  %v19745_v54 = vld [vmem:[#allocation12 + $0xf8] sm:$0xff]  }
 0x912   :  { %16196 = vmatpush1.bf16.msra.mxu0 %v19263_v47  ;;  %v19750_v47 = vld [vmem:[#allocation12 + $0x100] sm:$0xff]  }
 0x913   :  { %16368 = vmatpush1.bf16.msra.mxu1 %v19265_v3  ;;  %16197 = vmatprep.subr.bf16.mxu0 %v19272_v10  ;;  %v19751_v3 = vld [vmem:[#allocation12 + $0x180] sm:$0xff]   ;;  %v19752_v10 = vld [vmem:[#allocation12 + $0x148] sm:$0xff]  }
 0x914   :  { %16369 = vmatprep.subr.bf16.mxu1 %v19274_v5  ;;  %v19753_v5 = vld [vmem:[#allocation12 + $0x1c8] sm:$0xff]  }
 0x916   :  { %16198 = vmatpush1.bf16.msra.mxu0 %v19271_v26  ;;  %v19758_v26 = vld [vmem:[#allocation12 + $0x110] sm:$0xff]  }
 0x917   :  { %16370 = vmatpush1.bf16.msra.mxu1 %v19273_v7  ;;  %16199 = vmatprep.subr.bf16.mxu0 %v19280_v18  ;;  %v19759_v7 = vld [vmem:[#allocation12 + $0x190] sm:$0xff]   ;;  %v19760_v18 = vld [vmem:[#allocation12 + $0x158] sm:$0xff]  }
 0x918   :  { %16371 = vmatprep.subr.bf16.mxu1 %v19282_v8  ;;  %v19761_v8 = vld [vmem:[#allocation12 + $0x1d8] sm:$0xff]  }
 0x91a   :  { %16200 = vmatpush1.bf16.msra.mxu0 %v19279_v21  ;;  %v19768_v21 = vld [vmem:[#allocation12 + $0x168] sm:$0xff]  }
 0x91b   :  { %16372 = vmatpush1.bf16.msra.mxu1 %v19281_v38  ;;  %16201 = vmatprep.subr.bf16.mxu0 %v19288_v29  ;;  %v19769_v38 = vld [vmem:[#allocation12 + $0x1e8] sm:$0xff]  }
 0x91c   :  { %16373 = vmatprep.subr.bf16.mxu1 %v19290_v20  ;;  %v19770_v29 = vld [vmem:[#allocation12 + $0x128] sm:$0xff]  }
 0x91d   :  { %v19771_v20 = vld [vmem:[#allocation12 + $0x1a8] sm:$0xff]  }
 0x91e   :  { %16202 = vmatpush1.bf16.msra.mxu0 %v19287_v36  ;;  %v19772_v36 = vld [vmem:[#allocation12 + $0x170] sm:$0xff]  }
 0x91f   :  { %16374 = vmatpush1.bf16.msra.mxu1 %v19289_v6  ;;  %19356 = vmatprep.subr.bf16.mxu0 %v19716_v27  ;;  %v19773_v6 = vld [vmem:[#allocation12 + $0x1f0] sm:$0xff]  }
 0x920   :  { %19378 = vmatprep.subr.bf16.mxu1 %v19717_v58  ;;  %v19774_v27 = vld [vmem:[#allocation12 + $0x130] sm:$0xff]  }
 0x921   :  { %16204 = vmatmul.mubr.bf16.vlgmr.msra.gmra.mrb[12].mxu0 %v20319_v28  ;;  %v19775_v58 = vld [vmem:[#allocation12 + $0x1b0] sm:$0xff]  }
 0x922   :  { %16376 = vmatmul.mubr.bf16.vlgmr.msra.gmra.mrb[12].mxu1 %v20319_v28  ;;  %19357 = vmatpush3.bf16.msra.mxu0 %v19718_v15  ;;  %v19729_v28 = vld [vmem:[#allocation12 + $0xd8] sm:$0xff]  }
 0x923   :  { %16961 = vmatprep.mubr.bf16.mxu0 %v20369_v23  ;;  %19379 = vmatpush3.bf16.msra.mxu1 %v19719_v32  ;;  %v19731_v23 = vld [vmem:[#allocation12 + $0x98] sm:$0xff]  }
 0x924   :  { %17002 = vmatprep.mubr.bf16.mxu1 %v20371_v33  ;;  %19358 = vmatprep.subr.bf16.mxu0 %v19720_v35  ;;  %v19734_v33 = vld [vmem:[#allocation12 + $0x20] sm:$0xff]   ;;  %v19776_v15 = vld [vmem:[#allocation12 + $0x178] sm:$0xff]  }
 0x925   :  { %19380 = vmatprep.subr.bf16.mxu1 %v19721_v46  ;;  %v19777_v32 = vld [vmem:[#allocation12 + $0x1f8] sm:$0xff]  }
 0x926   :  { %19359 = vmatpush3.bf16.msra.mxu0 %v19722_v52  ;;  %v19778_v35 = vld [vmem:[#allocation12 + $0x138] sm:$0xff]   ;;  %v13117_v52 = vrot.slane %v20351_v24, %v12522_v30 }
 0x927   :  { %19381 = vmatpush3.bf16.msra.mxu1 %v19723_v31  ;;  %19360 = vmatprep.subr.bf16.mxu0 %v19724_v43  ;;  %v19779_v46 = vld [vmem:[#allocation12 + $0x1b8] sm:$0xff]   ;;  %v13125_v31 = vrot.slane %v20351_v24, %v12530_v40  ;;  %v13121_v43 = vrot.slane %v20351_v24, %v12526_v22 }
 0x928   :  { %19382 = vmatprep.subr.bf16.mxu1 %v19725_v41  ;;  %v13129_v41 = vrot.slane %v20351_v24, %v12534_v63 }
 0x92a   :  { %19361 = vmatpush3.bf16.msra.mxu0 %v19726_v60 }
 0x92b   :  { %19383 = vmatpush3.bf16.msra.mxu1 %v19727_v42  ;;  %19362 = vmatprep.subr.bf16.mxu0 %v19728_v44 }
 0x92c   :  { %19384 = vmatprep.subr.bf16.mxu1 %v19729_v28 }
 0x92e   :  { %19363 = vmatpush3.bf16.msra.mxu0 %v19730_v45 }
 0x92f   :  { %19385 = vmatpush3.bf16.msra.mxu1 %v19731_v23  ;;  %19364 = vmatprep.subr.bf16.mxu0 %v19732_v48 }
 0x930   :  { %19386 = vmatprep.subr.bf16.mxu1 %v19733_v59 }
 0x932   :  { %19365 = vmatpush3.bf16.msra.mxu0 %v19734_v33 }
 0x933   :  { %19387 = vmatpush3.bf16.msra.mxu1 %v19735_v61  ;;  %19366 = vmatprep.subr.bf16.mxu0 %v19736_v49 }
 0x934   :  { %19388 = vmatprep.subr.bf16.mxu1 %v19737_v0 }
 0x936   :  { %19367 = vmatpush3.bf16.msra.mxu0 %v19738_v53 }
 0x937   :  { %19389 = vmatpush3.bf16.msra.mxu1 %v19739_v1  ;;  %19368 = vmatprep.subr.bf16.mxu0 %v19740_v39 }
 0x938   :  { %19390 = vmatprep.subr.bf16.mxu1 %v19741_v50 }
 0x93a   :  { %19369 = vmatpush3.bf16.msra.mxu0 %v19742_v13 }
 0x93b   :  { %19391 = vmatpush3.bf16.msra.mxu1 %v19743_v37  ;;  %19370 = vmatprep.subr.bf16.mxu0 %v19744_v51 }
 0x93c   :  { %19392 = vmatprep.subr.bf16.mxu1 %v19745_v54 }
 0x93e   :  { %19371 = vmatpush3.bf16.msra.mxu0 %v19746_v55 }
 0x93f   :  { %19393 = vmatpush3.bf16.msra.mxu1 %v19747_v56  ;;  %19400 = vmatprep.subr.bf16.mxu0 %v19748_v57 }
 0x940   :  { %19422 = vmatprep.subr.bf16.mxu1 %v19749_v62 }
 0x941   :  { %16962 = vmatmul.mubr.bf16.vlgmr.msra.gmra.mrb[16].mxu0 %v20365_v17  ;;  %v19762_v17 = vld [vmem:[#allocation12 + $0x118] sm:$0xff]  }
 0x942   :  { %17003 = vmatmul.mubr.bf16.vlgmr.msra.gmra.mrb[16].mxu1 %v20367_v12  ;;  %19401 = vmatpush3.bf16.msra.mxu0 %v19750_v47  ;;  %v19763_v12 = vld [vmem:[#allocation12 + $0x198] sm:$0xff]   ;;  %v19291_v47 = vld [vmem:[#allocation14] ss:$0 sm:$0xff] }
 0x943   :  { %19423 = vmatpush3.bf16.msra.mxu1 %v19751_v3  ;;  %19402 = vmatprep.subr.bf16.mxu0 %v19752_v10 }
 0x944   :  { %19424 = vmatprep.subr.bf16.mxu1 %v19753_v5 }
 0x946   :  { %19403 = vmatpush3.bf16.msra.mxu0 %v19754_v16 }
 0x947   :  { %19425 = vmatpush3.bf16.msra.mxu1 %v19755_v2  ;;  %19404 = vmatprep.subr.bf16.mxu0 %v19756_v4 }
 0x948   :  { %19426 = vmatprep.subr.bf16.mxu1 %v19757_v19 }
 0x94a   :  { %19405 = vmatpush3.bf16.msra.mxu0 %v19758_v26 }
 0x94b   :  { %19427 = vmatpush3.bf16.msra.mxu1 %v19759_v7  ;;  %19406 = vmatprep.subr.bf16.mxu0 %v19760_v18 }
 0x94c   :  { %19428 = vmatprep.subr.bf16.mxu1 %v19761_v8 }
 0x94e   :  { %19407 = vmatpush3.bf16.msra.mxu0 %v19762_v17 }
 0x94f   :  { %19429 = vmatpush3.bf16.msra.mxu1 %v19763_v12  ;;  %19408 = vmatprep.subr.bf16.mxu0 %v19764_v34 }
 0x950   :  { %19430 = vmatprep.subr.bf16.mxu1 %v19765_v11 }
 0x952   :  { %19409 = vmatpush3.bf16.msra.mxu0 %v19766_v9 }
 0x953   :  { %19431 = vmatpush3.bf16.msra.mxu1 %v19767_v14  ;;  %19410 = vmatprep.subr.bf16.mxu0 %v19768_v21 }
 0x954   :  { %19432 = vmatprep.subr.bf16.mxu1 %v19769_v38 }
 0x956   :  { %19411 = vmatpush3.bf16.msra.mxu0 %v19770_v29 }
 0x957   :  { %19433 = vmatpush3.bf16.msra.mxu1 %v19771_v20  ;;  %19412 = vmatprep.subr.bf16.mxu0 %v19772_v36 }
 0x958   :  { %19434 = vmatprep.subr.bf16.mxu1 %v19773_v6 }
 0x95a   :  { %19413 = vmatpush3.bf16.msra.mxu0 %v19774_v27 }
 0x95b   :  { %19435 = vmatpush3.bf16.msra.mxu1 %v19775_v58  ;;  %19414 = vmatprep.subr.bf16.mxu0 %v19776_v15 }
 0x95c   :  { %19436 = vmatprep.subr.bf16.mxu1 %v19777_v32 }
 0x95e   :  { %19415 = vmatpush3.bf16.msra.mxu0 %v19778_v35 }
 0x95f   :  { %19437 = vmatpush3.bf16.msra.mxu1 %v19779_v46 }
 0x9f4   :  { %v16205_v60 = vpop.f32.mrb[12].mxu0 }
 0x9f5   :  { %v19452_v42 = vadd.f32 %v16205_v60, %v13117_v52  ;;  %v16377_v44 = vpop.f32.mrb[12].mxu1  ;;  %v16207_v28 = vpop.f32.mrb[13].mxu0 }
 0x9f6   :  { %v19456_v45 = vadd.f32 %v16377_v44, %v13125_v31  ;;  %v19453_v23 = vadd.f32 %v16207_v28, %v13121_v43  ;;  %v16379_v48 = vpop.f32.mrb[13].mxu1  ;;  %v16209_v30 = vpop.f32.mrb[14].mxu0 }
 0x9f7   :  { %v19457_v59 = vadd.f32 %v16379_v48, %v13129_v41  ;;  %v19454_v33 = vadd.f32 %v16209_v30, %v13117_v52  ;;  %v16381_v61 = vpop.f32.mrb[14].mxu1  ;;  %v16211_v40 = vpop.f32.mrb[15].mxu0  ;;  %v16390_v22 = vmax.f32 %v19452_v42, 0.0 }
 0x9f8   :  { %v19458_v49 = vadd.f32 %v16381_v61, %v13125_v31  ;;  %v19455_v0 = vadd.f32 %v16211_v40, %v13121_v43  ;;  %v16383_v53 = vpop.f32.mrb[15].mxu1  ;;  %v16392_v39 = vmax.f32 %v19456_v45, 0.0  ;;  %v16391_v63 = vmax.f32 %v19453_v23, 0.0 }
 0x9f9   :  { %v16398_v1 = vmax.f32 %v19454_v33, 0.0  ;;  %v19459_v25 = vadd.f32 %v16383_v53, %v13129_v41  ;;  %v16393_v13 = vmax.f32 %v19457_v59, 0.0 }
 0x9fa   :  { %v16400_v24 = vmax.f32 %v19458_v49, 0.0  ;;  %v16399_v50 = vmax.f32 %v19455_v0, 0.0 }
 0x9fb   :  { %v16406_v37 = vpack.c.bf16 %v16398_v1, %v16390_v22  ;;  %v16401_v51 = vmax.f32 %v19459_v25, 0.0 }
 0x9fc   :  { %v16408_v54 = vpack.c.bf16 %v16400_v24, %v16392_v39  ;;  %v16407_v55 = vpack.c.bf16 %v16399_v50, %v16391_v63 }
 0x9fd   :  { %v16409_v56 = vpack.c.bf16 %v16401_v51, %v16393_v13 }
 0x9fe   :  { %17043 = vmatprep.mubr.bf16.mxu0 %v16407_v55 }
 0x9ff   :  { %17084 = vmatprep.mubr.bf16.mxu1 %v16409_v56  ;;  %17044 = vmatmul.mubr.bf16.vlgmr.msra.gmra.mrb[20].mxu0 %v16406_v37 }
 0xa00   :  { %17085 = vmatmul.mubr.bf16.vlgmr.msra.gmra.mrb[20].mxu1 %v16408_v54 }
 0xa14   :  { %v19372_v57 = vpop.f32.mrb[16].mxu0 }
 0xa15   :  { %v19394_v62 = vpop.f32.mrb[16].mxu1  ;;  %v19373_v3 = vpop.f32.mrb[17].mxu0 }
 0xa16   :  { %v19374_v10 = vadd.f32 %v19373_v3, %v19372_v57  ;;  %v19395_v5 = vpop.f32.mrb[17].mxu1  ;;  %v19375_v16 = vpop.f32.mrb[18].mxu0 }
 0xa17   :  { %v19396_v2 = vadd.f32 %v19395_v5, %v19394_v62  ;;  %v19397_v4 = vpop.f32.mrb[18].mxu1  ;;  %v19376_v19 = vpop.f32.mrb[19].mxu0 }
 0xa18   :  { %v16964_v26 = vadd.f32 %v19374_v10, %v19291_v47  ;;  %v19377_v7 = vadd.f32 %v19376_v19, %v19375_v16  ;;  %v19398_v18 = vpop.f32.mrb[19].mxu1 }
 0xa19   :  { %v19399_v8 = vadd.f32 %v19398_v18, %v19397_v4 }
 0xa1a   :  { %v17005_v17 = vadd.f32 %v19396_v2, %v16964_v26  ;;  %v16967_v12 = vadd.f32 %v19377_v7, %v19291_v47 }
 0xa1c   :  { %v17008_v34 = vadd.f32 %v19399_v8, %v16967_v12 }
 0xad2   :  { %v19416_v11 = vpop.f32.mrb[20].mxu0 }
 0xad3   :  { %v19438_v9 = vpop.f32.mrb[20].mxu1  ;;  %v19417_v14 = vpop.f32.mrb[21].mxu0 }
 0xad4   :  { %v19418_v21 = vadd.f32 %v19417_v14, %v19416_v11  ;;  %v19439_v38 = vpop.f32.mrb[21].mxu1  ;;  %v19419_v29 = vpop.f32.mrb[22].mxu0 }
 0xad5   :  { %v19440_v20 = vadd.f32 %v19439_v38, %v19438_v9  ;;  %v19441_v36 = vpop.f32.mrb[22].mxu1  ;;  %v19420_v6 = vpop.f32.mrb[23].mxu0 }
 0xad6   :  { %v17046_v27 = vadd.f32 %v19418_v21, %v17005_v17  ;;  %v19421_v58 = vadd.f32 %v19420_v6, %v19419_v29  ;;  %v19442_v15 = vpop.f32.mrb[23].mxu1 }
 0xad7   :  { %v19443_v32 = vadd.f32 %v19442_v15, %v19441_v36 }
 0xad8   :  { %v17087_v35 = vadd.f32 %v19440_v20, %v17046_v27  ;;  %v17049_v46 = vadd.f32 %v19421_v58, %v17008_v34 }
 0xada   :  { %17093 = vst [vmem:[#allocation15] sm:$0xff] %v17087_v35  ;;  %v17090_v52 = vadd.f32 %v19443_v32, %v17049_v46 }
 0xadc   :  { %17094 = vst [vmem:[#allocation15 + $0x8] sm:$0xff] %v17090_v52 }
 0xadd   :  { %19946 = shalt.err (!%p19943_p4)
}
 0xade   :  { %s19947_s15 = scalar_lea.hbm %s20410_s7, 256 }
 0xadf   :  { %p19948_p5 = scmp.ne.s32.totalorder %s20410_s7, %s19947_s15  ;;  %p19951_p6 = scmp.lt.u32.totalorder %s19947_s15, %s20410_s7 }
 0xae1   :  { %p19953_p7 = pnand %p19951_p6, %p19948_p5 }
 0xae3   :  { %19956 = shalt.err (!%p19953_p7)
}
 0xae4   :  { %s19981_s21 = smov 128   ;;  %s19982_s22 = smov 8  }
 0xae5   :  { %17106 = dma.vmem_to_hbm [thread:$0]  %s17101_s3, 256, %s20410_s7, [#allocation5], %s19981_s21, %s19981_s21, %s19982_s22  }
 0xae6   :  { %19965 = dma.done.wait [#allocation5], 256  }
 0xae7   :  { %19966 = vsyncadd [#allocation5], 4294967040 }
 0xae8   :  { %17110 = vsyncpa [#allocation4], 1 }
 0xae9   :  { %17111 = vsyncpa [#allocation7], 1 }
 0xaea   :  { %17112 = vsyncpa [#allocation10], 1 }
 0xaeb   :  { %17113 = vsyncpa [#allocation13], 1 }
 0xaec   :  { %17114 = vsyncpa [#allocation5], 1 }

</bundles_post_ra>
